<compile_context>
chip_gen: v7x
topology: tpu7x:2x2x1
jax: 0.10.0
libtpu: 0.0.40
codegen_flags: <defaults>
</compile_context>

<pallas_src>
import functools

import jax
import jax.numpy as jnp
from jax.experimental import pallas as pl
from jax.experimental.pallas import tpu as pltpu


_TILE_M = 512                      # max rows per M tile (multiple of 16); keep <=512 on v7x
_VMEM_LIMIT = 48 * 1024 * 1024     # <= v7x 64 MiB physical VMEM, fine on v5e/v6e
_BN_EPS = 1e-5
_LAST_COUT_PAD = 128               # lane-dense padding of the 1-channel head
_STAT_ROWS = 8                     # sublane-padded rows per per-tile stats block


def _round_up(x, m):
    return ((x + m - 1) // m) * m


# ----------------------------------------------------------------------------
# Pallas kernels
# ----------------------------------------------------------------------------
def _matmul_stats_kernel(p_ref, w_ref, y_ref, sum_ref, sq_ref):
    """BN pass 1: y = patches @ W (bf16 operands, f32 accumulate), stored bf16,
    plus per-tile partial sum / sum-of-squares (broadcast over 8 sublane rows
    so the partials block is (8, C) and the grid axis stays fully parallel)."""
    y = jnp.dot(p_ref[...], w_ref[...], preferred_element_type=jnp.float32)
    y_ref[...] = y.astype(y_ref.dtype)
    tile_sum = jnp.sum(y, axis=0, keepdims=True)
    tile_sq = jnp.sum(y * y, axis=0, keepdims=True)
    # Every row of the (8, C) partials block holds the same tile sum; pass 2
    # divides by _STAT_ROWS.  Zero-padded patch rows produce zero y rows and
    # therefore contribute nothing to either statistic.
    sum_ref[...] = jnp.broadcast_to(tile_sum, sum_ref.shape)
    sq_ref[...] = jnp.broadcast_to(tile_sq, sq_ref.shape)


def _bn_apply_kernel(y_ref, sum_ref, sq_ref, gamma_ref, beta_ref, o_ref, *, count):
    """BN pass 2: reduce partials, compute scale/shift in-kernel, apply
    y*scale + shift, then LeakyReLU(0.2).  All math in f32, store bf16."""
    s1 = jnp.sum(sum_ref[...], axis=0, keepdims=True) * (1.0 / _STAT_ROWS)
    s2 = jnp.sum(sq_ref[...], axis=0, keepdims=True) * (1.0 / _STAT_ROWS)
    mean = s1 * (1.0 / count)
    # TODO(synk): E[y^2]-E[y]^2 can cancel for large per-channel means; switch
    # to a shifted variance if drift vs the PyTorch reference is observed.
    var = s2 * (1.0 / count) - mean * mean
    scale = gamma_ref[...] * jax.lax.rsqrt(var + _BN_EPS)
    shift = beta_ref[...] - mean * scale
    y = y_ref[...].astype(jnp.float32) * scale + shift
    o_ref[...] = jnp.where(y > 0, y, 0.2 * y).astype(o_ref.dtype)


def _matmul_bias_act_kernel(p_ref, w_ref, b_ref, o_ref, *, act):
    """Fused conv-as-matmul + bias + activation (layers without BatchNorm)."""
    y = jnp.dot(p_ref[...], w_ref[...], preferred_element_type=jnp.float32)
    y = y + b_ref[...]
    if act == "lrelu":
        y = jnp.where(y > 0, y, 0.2 * y)
    else:  # sigmoid: explicit f32 exp + divide (exp lands on the EUP slot)
        y = 1.0 / (1.0 + jnp.exp(-y))
    o_ref[...] = y.astype(o_ref.dtype)


# ----------------------------------------------------------------------------
# Tiling helpers
# ----------------------------------------------------------------------------
def _tile_plan(M):
    m_pad = _round_up(M, 16)
    if m_pad <= _TILE_M:
        tile_m = m_pad
    else:
        tile_m = _TILE_M
        m_pad = _round_up(M, tile_m)
    return m_pad, tile_m, m_pad // tile_m


def _pad_rows(a, m_pad):
    M = a.shape[0]
    return a if m_pad == M else jnp.pad(a, ((0, m_pad - M), (0, 0)))


def _cparams():
    return pltpu.CompilerParams(
        dimension_semantics=("parallel",),
        vmem_limit_bytes=_VMEM_LIMIT,
    )


# ----------------------------------------------------------------------------
# Layer wrappers
# ----------------------------------------------------------------------------
def conv_bn_lrelu(patches, w, gamma, beta):
    M, K = patches.shape
    Cout = w.shape[1]
    m_pad, tile_m, grid_m = _tile_plan(M)
    p = _pad_rows(patches, m_pad)                       # already bf16

    stat_rows = grid_m * _STAT_ROWS
    pass1_cost = pl.CostEstimate(
        flops=2 * m_pad * K * Cout,
        transcendentals=0,
        bytes_accessed=m_pad * K * 2 + K * Cout * 2 + m_pad * Cout * 2
        + 2 * stat_rows * Cout * 4,
    )
    y_raw, s_part, q_part = pl.pallas_call(
        _matmul_stats_kernel,
        out_shape=(
            jax.ShapeDtypeStruct((m_pad, Cout), jnp.bfloat16),
            jax.ShapeDtypeStruct((stat_rows, Cout), jnp.float32),
            jax.ShapeDtypeStruct((stat_rows, Cout), jnp.float32),
        ),
        grid=(grid_m,),
        in_specs=[
            pl.BlockSpec((tile_m, K), lambda m: (m, 0)),
            pl.BlockSpec((K, Cout), lambda m: (0, 0)),
        ],
        out_specs=(
            pl.BlockSpec((tile_m, Cout), lambda m: (m, 0)),
            pl.BlockSpec((_STAT_ROWS, Cout), lambda m: (m, 0)),
            pl.BlockSpec((_STAT_ROWS, Cout), lambda m: (m, 0)),
        ),
        compiler_params=_cparams(),
        cost_estimate=pass1_cost,
    )(p, w)

    pass2_cost = pl.CostEstimate(
        flops=4 * m_pad * Cout,
        transcendentals=Cout,
        bytes_accessed=2 * m_pad * Cout * 2 + 2 * stat_rows * Cout * 4
        + 2 * Cout * 4,
    )
    y = pl.pallas_call(
        functools.partial(_bn_apply_kernel, count=float(M)),
        out_shape=jax.ShapeDtypeStruct((m_pad, Cout), jnp.bfloat16),
        grid=(grid_m,),
        in_specs=[
            pl.BlockSpec((tile_m, Cout), lambda m: (m, 0)),
            pl.BlockSpec((stat_rows, Cout), lambda m: (0, 0)),
            pl.BlockSpec((stat_rows, Cout), lambda m: (0, 0)),
            pl.BlockSpec((1, Cout), lambda m: (0, 0)),
            pl.BlockSpec((1, Cout), lambda m: (0, 0)),
        ],
        out_specs=pl.BlockSpec((tile_m, Cout), lambda m: (m, 0)),
        compiler_params=_cparams(),
        cost_estimate=pass2_cost,
    )(y_raw, s_part, q_part, gamma, beta)
    return y[:M]


def conv_bias_act(patches, w, b, act):
    M, K = patches.shape
    Cout = w.shape[1]
    m_pad, tile_m, grid_m = _tile_plan(M)
    p = _pad_rows(patches, m_pad)                       # already bf16
    cost = pl.CostEstimate(
        flops=2 * m_pad * K * Cout,
        transcendentals=(m_pad * Cout if act == "sigmoid" else 0),
        bytes_accessed=m_pad * K * 2 + K * Cout * 2 + Cout * 4
        + m_pad * Cout * 2,
    )
    y = pl.pallas_call(
        functools.partial(_matmul_bias_act_kernel, act=act),
        out_shape=jax.ShapeDtypeStruct((m_pad, Cout), jnp.bfloat16),
        grid=(grid_m,),
        in_specs=[
            pl.BlockSpec((tile_m, K), lambda m: (m, 0)),
            pl.BlockSpec((K, Cout), lambda m: (0, 0)),
            pl.BlockSpec((1, Cout), lambda m: (0, 0)),
        ],
        out_specs=pl.BlockSpec((tile_m, Cout), lambda m: (m, 0)),
        compiler_params=_cparams(),
        cost_estimate=cost,
    )(p, w, b)
    return y[:M]


# ----------------------------------------------------------------------------
# Plain-JAX glue: NHWC im2col matching PyTorch Conv2d semantics
# ----------------------------------------------------------------------------
# TODO(synk): for the stride-1 layers (4 & 5), fuse patch extraction into the
# kernel (manual-DMA shifted matmuls over a kh*kw grid axis) to remove the 16x
# im2col materialization; kept as explicit bf16 im2col here for robustness.
def im2col_nhwc(x, k, stride, pad):
    # x: [N, H, W, C] -> patches [N*Ho*Wo, k*k*C] with K ordered (kh, kw, C)
    N, H, W, C = x.shape
    xp = jnp.pad(x, ((0, 0), (pad, pad), (pad, pad), (0, 0)))
    Ho = (H + 2 * pad - k) // stride + 1
    Wo = (W + 2 * pad - k) // stride + 1
    cols = []
    for i in range(k):
        for j in range(k):
            cols.append(xp[:, i:i + stride * Ho:stride, j:j + stride * Wo:stride, :])
    patches = jnp.concatenate(cols, axis=-1)            # [N, Ho, Wo, k*k*C]
    return patches.reshape(N * Ho * Wo, k * k * C), Ho, Wo


# ----------------------------------------------------------------------------
# Parameter construction (deterministic, pix2pix-style N(0, 0.02) init)
# ----------------------------------------------------------------------------
# (Cout, Cin_true, Cin_padded, k, stride, pad, use_bn, act)
_LAYERS = [
    (64,    2,   8, 4, 2, 1, False, "lrelu"),   # Cin padded 2->8 => K = 128 (lane-dense)
    (128,  64,  64, 4, 2, 1, True,  "lrelu"),
    (256, 128, 128, 4, 2, 1, True,  "lrelu"),
    (512, 256, 256, 4, 1, 1, True,  "lrelu"),
    (1,   512, 512, 4, 1, 1, False, "sigmoid"),
]


def init_params(key):
    params = []
    n_layers = len(_LAYERS)
    for li, (cout, cin, cin_p, k, _s, _p, _use_bn, _act) in enumerate(_LAYERS):
        key, wk = jax.random.split(key)
        # PyTorch layout [Cout, Cin, kh, kw].
        w_pt = 0.02 * jax.random.normal(wk, (cout, cin, k, k), dtype=jnp.float32)
        if cin_p > cin:
            # Zero rows for the lane-padding input channels (layer 1 only).
            w_pt = jnp.pad(w_pt, ((0, 0), (0, cin_p - cin), (0, 0), (0, 0)))
        # NHWC im2col K-order is (kh, kw, Cin) -> weight matrix [kh*kw*Cin, Cout].
        w_mat = jnp.transpose(w_pt, (2, 3, 1, 0)).reshape(k * k * cin_p, cout)
        cout_p = cout
        if li == n_layers - 1 and cout < _LAST_COUT_PAD:
            cout_p = _LAST_COUT_PAD                     # lane-dense 1-channel head
            w_mat = jnp.pad(w_mat, ((0, 0), (0, cout_p - cout)))
        params.append(dict(
            w=w_mat.astype(jnp.bfloat16),               # bf16 MXU operand
            b=jnp.zeros((1, cout_p), dtype=jnp.float32),  # used only w/o BN
            gamma=jnp.ones((1, cout), dtype=jnp.float32),
            beta=jnp.zeros((1, cout), dtype=jnp.float32),
        ))
    return params


# ----------------------------------------------------------------------------
# Forward pass
# ----------------------------------------------------------------------------
def discriminator_forward(params, x1, x2):
    # x1, x2: [N, 1, H, W] (NCHW, like PyTorch)
    x = jnp.concatenate([x1, x2], axis=1)               # [N, 2, H, W]
    x = jnp.transpose(x, (0, 2, 3, 1)).astype(jnp.bfloat16)   # NHWC, bf16 end-to-end
    cin_p0 = _LAYERS[0][2]
    if cin_p0 > x.shape[-1]:                            # lane-friendly Cin pad (2 -> 8)
        x = jnp.pad(x, ((0, 0), (0, 0), (0, 0), (0, cin_p0 - x.shape[-1])))
    N = x.shape[0]
    for (_cout, _cin, _cin_p, k, s, p, use_bn, act), lp in zip(_LAYERS, params):
        patches, Ho, Wo = im2col_nhwc(x, k, s, p)
        if use_bn:
            y = conv_bn_lrelu(patches, lp["w"], lp["gamma"], lp["beta"])
        else:
            y = conv_bias_act(patches, lp["w"], lp["b"], act)
        x = y.reshape(N, Ho, Wo, y.shape[-1])
    out = x[..., :1].astype(jnp.float32)                # drop zero-padded head lanes
    return jnp.transpose(out, (0, 3, 1, 2))             # back to NCHW: [N, 1, Ho, Wo]


if __name__ == "__main__":
    key = jax.random.PRNGKey(0)
    kp, k1, k2 = jax.random.split(key, 3)

    # batch=2 (=> BatchNorm branch), 1-channel 32x32 images.
    N, H, W = 2, 32, 32
    x1 = jax.random.normal(k1, (N, 1, H, W), dtype=jnp.float32)
    x2 = jax.random.normal(k2, (N, 1, H, W), dtype=jnp.float32)

    params = init_params(kp)
    fwd = jax.jit(discriminator_forward)
    out = jax.block_until_ready(fwd(params, x1, x2))

    assert out.shape == (N, 1, 2, 2), out.shape
    assert out.dtype == jnp.float32, out.dtype
    assert bool(jnp.all((out >= 0.0) & (out <= 1.0))), "sigmoid range violated"
    print("KERNEL_OK")
</pallas_src>

<mosaic_0001>
module attributes {stable_mosaic.version = 11 : i64} {
  func.func @_matmul_bias_act_kernel(%arg0: i32, %arg1: memref<512x128xbf16, #tpu.memory_space<vmem>>, %arg2: memref<128x64xbf16, #tpu.memory_space<vmem>>, %arg3: memref<1x64xf32, #tpu.memory_space<vmem>>, %arg4: memref<512x64xbf16, #tpu.memory_space<vmem>>) attributes {dimension_semantics = [#tpu.dimension_semantics<parallel>], iteration_bounds = array<i64: 1>, scalar_prefetch = 0 : i64, scratch_operands = 0 : i64, tpu.core_type = #tpu.core_type<tc>, window_params = [{transform_indices = @transform_0, window_bounds = array<i64: 512, 128>}, {pipeline_mode = #tpu.pipeline_mode<synchronous>, transform_indices = @transform_1, window_bounds = array<i64: 128, 64>}, {pipeline_mode = #tpu.pipeline_mode<synchronous>, transform_indices = @transform_2, window_bounds = array<i64: 1, 64>}, {transform_indices = @transform_3, window_bounds = array<i64: 512, 64>}]} {
    %c0 = arith.constant 0 : index
    %c0_0 = arith.constant 0 : index
    %0 = vector.load %arg1[%c0, %c0_0] : memref<512x128xbf16, #tpu.memory_space<vmem>>, vector<512x128xbf16>
    %c0_1 = arith.constant 0 : index
    %c0_2 = arith.constant 0 : index
    %1 = vector.load %arg2[%c0_1, %c0_2] : memref<128x64xbf16, #tpu.memory_space<vmem>>, vector<128x64xbf16>
    %cst = arith.constant dense<0.000000e+00> : vector<512x64xf32>
    %2 = tpu.matmul %0, %1, %cst {dimension_numbers = #tpu.dot_dimension_numbers<[1], [0], [0], [1], [0, 0, 1, 1], [], []>} : vector<512x128xbf16>, vector<128x64xbf16>, vector<512x64xf32> -> vector<512x64xf32>
    %c0_3 = arith.constant 0 : index
    %c0_4 = arith.constant 0 : index
    %3 = vector.load %arg3[%c0_3, %c0_4] : memref<1x64xf32, #tpu.memory_space<vmem>>, vector<1x64xf32>
    %4 = vector.broadcast %3 : vector<1x64xf32> to vector<512x64xf32>
    %5 = arith.addf %2, %4 : vector<512x64xf32>
    %cst_5 = arith.constant 0.000000e+00 : f32
    %6 = vector.broadcast %cst_5 : f32 to vector<512x64xf32>
    %7 = arith.cmpf ogt, %5, %6 : vector<512x64xf32>
    %cst_6 = arith.constant 2.000000e-01 : f32
    %8 = vector.broadcast %cst_6 : f32 to vector<512x64xf32>
    %9 = arith.mulf %8, %5 : vector<512x64xf32>
    %10 = arith.select %7, %5, %9 : vector<512x64xi1>, vector<512x64xf32>
    %11 = arith.truncf %10 : vector<512x64xf32> to vector<512x64xbf16>
    %c0_7 = arith.constant 0 : index
    %c0_8 = arith.constant 0 : index
    %12 = vector.load %arg4[%c0_7, %c0_8] : memref<512x64xbf16, #tpu.memory_space<vmem>>, vector<512x64xbf16>
    tpu.vector_store %arg4[%c0_7, %c0_8], %11 {strides = array<i32>} : memref<512x64xbf16, #tpu.memory_space<vmem>>, vector<512x64xbf16>,
    return
  }
  func.func @transform_0(%arg0: i32) -> (i32, i32) {
    %c0_i32 = arith.constant 0 : i32
    %c0_i32_0 = arith.constant 0 : i32
    return %arg0, %c0_i32 : i32, i32
  }
  func.func @transform_1(%arg0: i32) -> (i32, i32) {
    %c0_i32 = arith.constant 0 : i32
    %c0_i32_0 = arith.constant 0 : i32
    %c0_i32_1 = arith.constant 0 : i32
    return %c0_i32, %c0_i32_0 : i32, i32
  }
  func.func @transform_2(%arg0: i32) -> (i32, i32) {
    %c0_i32 = arith.constant 0 : i32
    %c0_i32_0 = arith.constant 0 : i32
    %c0_i32_1 = arith.constant 0 : i32
    return %c0_i32, %c0_i32_0 : i32, i32
  }
  func.func @transform_3(%arg0: i32) -> (i32, i32) {
    %c0_i32 = arith.constant 0 : i32
    %c0_i32_0 = arith.constant 0 : i32
    return %arg0, %c0_i32 : i32, i32
  }
}

module attributes {stable_mosaic.version = 11 : i64} {
  func.func @_matmul_stats_kernel(%arg0: i32, %arg1: memref<128x1024xbf16, #tpu.memory_space<vmem>>, %arg2: memref<1024x128xbf16, #tpu.memory_space<vmem>>, %arg3: memref<128x128xbf16, #tpu.memory_space<vmem>>, %arg4: memref<8x128xf32, #tpu.memory_space<vmem>>, %arg5: memref<8x128xf32, #tpu.memory_space<vmem>>) attributes {dimension_semantics = [#tpu.dimension_semantics<parallel>], iteration_bounds = array<i64: 1>, scalar_prefetch = 0 : i64, scratch_operands = 0 : i64, tpu.core_type = #tpu.core_type<tc>, window_params = [{transform_indices = @transform_0, window_bounds = array<i64: 128, 1024>}, {pipeline_mode = #tpu.pipeline_mode<synchronous>, transform_indices = @transform_1, window_bounds = array<i64: 1024, 128>}, {transform_indices = @transform_2, window_bounds = array<i64: 128, 128>}, {transform_indices = @transform_3, window_bounds = array<i64: 8, 128>}, {transform_indices = @transform_4, window_bounds = array<i64: 8, 128>}]} {
    %c0 = arith.constant 0 : index
    %c0_0 = arith.constant 0 : index
    %0 = vector.load %arg1[%c0, %c0_0] : memref<128x1024xbf16, #tpu.memory_space<vmem>>, vector<128x1024xbf16>
    %c0_1 = arith.constant 0 : index
    %c0_2 = arith.constant 0 : index
    %1 = vector.load %arg2[%c0_1, %c0_2] : memref<1024x128xbf16, #tpu.memory_space<vmem>>, vector<1024x128xbf16>
    %cst = arith.constant dense<0.000000e+00> : vector<128x128xf32>
    %2 = tpu.matmul %0, %1, %cst {dimension_numbers = #tpu.dot_dimension_numbers<[1], [0], [0], [1], [0, 0, 1, 1], [], []>} : vector<128x1024xbf16>, vector<1024x128xbf16>, vector<128x128xf32> -> vector<128x128xf32>
    %3 = arith.truncf %2 : vector<128x128xf32> to vector<128x128xbf16>
    %c0_3 = arith.constant 0 : index
    %c0_4 = arith.constant 0 : index
    %4 = vector.load %arg3[%c0_3, %c0_4] : memref<128x128xbf16, #tpu.memory_space<vmem>>, vector<128x128xbf16>
    tpu.vector_store %arg3[%c0_3, %c0_4], %3 {strides = array<i32>} : memref<128x128xbf16, #tpu.memory_space<vmem>>, vector<128x128xbf16>,
    %cst_5 = arith.constant dense<0.000000e+00> : vector<128xf32>
    %5 = vector.multi_reduction <add>, %2, %cst_5 [0] : vector<128x128xf32> to vector<128xf32>
    %6 = vector.shape_cast %5 : vector<128xf32> to vector<1x128xf32>
    %7 = arith.mulf %2, %2 : vector<128x128xf32>
    %cst_6 = arith.constant dense<0.000000e+00> : vector<128xf32>
    %8 = vector.multi_reduction <add>, %7, %cst_6 [0] : vector<128x128xf32> to vector<128xf32>
    %9 = vector.shape_cast %8 : vector<128xf32> to vector<1x128xf32>
    %10 = vector.shape_cast %6 : vector<1x128xf32> to vector<1x128xf32>
    %11 = vector.broadcast %10 : vector<1x128xf32> to vector<8x128xf32>
    %c0_7 = arith.constant 0 : index
    %c0_8 = arith.constant 0 : index
    %12 = vector.load %arg4[%c0_7, %c0_8] : memref<8x128xf32, #tpu.memory_space<vmem>>, vector<8x128xf32>
    tpu.vector_store %arg4[%c0_7, %c0_8], %11 {strides = array<i32>} : memref<8x128xf32, #tpu.memory_space<vmem>>, vector<8x128xf32>,
    %13 = vector.shape_cast %9 : vector<1x128xf32> to vector<1x128xf32>
    %14 = vector.broadcast %13 : vector<1x128xf32> to vector<8x128xf32>
    %c0_9 = arith.constant 0 : index
    %c0_10 = arith.constant 0 : index
    %15 = vector.load %arg5[%c0_9, %c0_10] : memref<8x128xf32, #tpu.memory_space<vmem>>, vector<8x128xf32>
    tpu.vector_store %arg5[%c0_9, %c0_10], %14 {strides = array<i32>} : memref<8x128xf32, #tpu.memory_space<vmem>>, vector<8x128xf32>,
    return
  }
  func.func @transform_0(%arg0: i32) -> (i32, i32) {
    %c0_i32 = arith.constant 0 : i32
    %c0_i32_0 = arith.constant 0 : i32
    return %arg0, %c0_i32 : i32, i32
  }
  func.func @transform_1(%arg0: i32) -> (i32, i32) {
    %c0_i32 = arith.constant 0 : i32
    %c0_i32_0 = arith.constant 0 : i32
    %c0_i32_1 = arith.constant 0 : i32
    return %c0_i32, %c0_i32_0 : i32, i32
  }
  func.func @transform_2(%arg0: i32) -> (i32, i32) {
    %c0_i32 = arith.constant 0 : i32
    %c0_i32_0 = arith.constant 0 : i32
    return %arg0, %c0_i32 : i32, i32
  }
  func.func @transform_3(%arg0: i32) -> (i32, i32) {
    %c0_i32 = arith.constant 0 : i32
    %c0_i32_0 = arith.constant 0 : i32
    return %arg0, %c0_i32 : i32, i32
  }
  func.func @transform_4(%arg0: i32) -> (i32, i32) {
    %c0_i32 = arith.constant 0 : i32
    %c0_i32_0 = arith.constant 0 : i32
    return %arg0, %c0_i32 : i32, i32
  }
}

module attributes {stable_mosaic.version = 11 : i64} {
  func.func @_bn_apply_kernel(%arg0: i32, %arg1: memref<128x128xbf16, #tpu.memory_space<vmem>>, %arg2: memref<8x128xf32, #tpu.memory_space<vmem>>, %arg3: memref<8x128xf32, #tpu.memory_space<vmem>>, %arg4: memref<1x128xf32, #tpu.memory_space<vmem>>, %arg5: memref<1x128xf32, #tpu.memory_space<vmem>>, %arg6: memref<128x128xbf16, #tpu.memory_space<vmem>>) attributes {dimension_semantics = [#tpu.dimension_semantics<parallel>], iteration_bounds = array<i64: 1>, scalar_prefetch = 0 : i64, scratch_operands = 0 : i64, tpu.core_type = #tpu.core_type<tc>, window_params = [{transform_indices = @transform_0, window_bounds = array<i64: 128, 128>}, {pipeline_mode = #tpu.pipeline_mode<synchronous>, transform_indices = @transform_1, window_bounds = array<i64: 8, 128>}, {pipeline_mode = #tpu.pipeline_mode<synchronous>, transform_indices = @transform_2, window_bounds = array<i64: 8, 128>}, {pipeline_mode = #tpu.pipeline_mode<synchronous>, transform_indices = @transform_3, window_bounds = array<i64: 1, 128>}, {pipeline_mode = #tpu.pipeline_mode<synchronous>, transform_indices = @transform_4, window_bounds = array<i64: 1, 128>}, {transform_indices = @transform_5, window_bounds = array<i64: 128, 128>}]} {
    %c0 = arith.constant 0 : index
    %c0_0 = arith.constant 0 : index
    %0 = vector.load %arg2[%c0, %c0_0] : memref<8x128xf32, #tpu.memory_space<vmem>>, vector<8x128xf32>
    %cst = arith.constant dense<0.000000e+00> : vector<128xf32>
    %1 = vector.multi_reduction <add>, %0, %cst [0] : vector<8x128xf32> to vector<128xf32>
    %2 = vector.shape_cast %1 : vector<128xf32> to vector<1x128xf32>
    %cst_1 = arith.constant 1.250000e-01 : f32
    %3 = vector.broadcast %cst_1 : f32 to vector<1x128xf32>
    %4 = arith.mulf %2, %3 : vector<1x128xf32>
    %c0_2 = arith.constant 0 : index
    %c0_3 = arith.constant 0 : index
    %5 = vector.load %arg3[%c0_2, %c0_3] : memref<8x128xf32, #tpu.memory_space<vmem>>, vector<8x128xf32>
    %cst_4 = arith.constant dense<0.000000e+00> : vector<128xf32>
    %6 = vector.multi_reduction <add>, %5, %cst_4 [0] : vector<8x128xf32> to vector<128xf32>
    %7 = vector.shape_cast %6 : vector<128xf32> to vector<1x128xf32>
    %cst_5 = arith.constant 1.250000e-01 : f32
    %8 = vector.broadcast %cst_5 : f32 to vector<1x128xf32>
    %9 = arith.mulf %7, %8 : vector<1x128xf32>
    %cst_6 = arith.constant 7.812500e-03 : f32
    %10 = vector.broadcast %cst_6 : f32 to vector<1x128xf32>
    %11 = arith.mulf %4, %10 : vector<1x128xf32>
    %cst_7 = arith.constant 7.812500e-03 : f32
    %12 = vector.broadcast %cst_7 : f32 to vector<1x128xf32>
    %13 = arith.mulf %9, %12 : vector<1x128xf32>
    %14 = arith.mulf %11, %11 : vector<1x128xf32>
    %15 = arith.subf %13, %14 : vector<1x128xf32>
    %c0_8 = arith.constant 0 : index
    %c0_9 = arith.constant 0 : index
    %16 = vector.load %arg4[%c0_8, %c0_9] : memref<1x128xf32, #tpu.memory_space<vmem>>, vector<1x128xf32>
    %cst_10 = arith.constant 9.99999974E-6 : f32
    %17 = vector.broadcast %cst_10 : f32 to vector<1x128xf32>
    %18 = arith.addf %15, %17 : vector<1x128xf32>
    %19 = math.rsqrt %18 : vector<1x128xf32>
    %20 = arith.mulf %16, %19 : vector<1x128xf32>
    %c0_11 = arith.constant 0 : index
    %c0_12 = arith.constant 0 : index
    %21 = vector.load %arg5[%c0_11, %c0_12] : memref<1x128xf32, #tpu.memory_space<vmem>>, vector<1x128xf32>
    %22 = arith.mulf %11, %20 : vector<1x128xf32>
    %23 = arith.subf %21, %22 : vector<1x128xf32>
    %c0_13 = arith.constant 0 : index
    %c0_14 = arith.constant 0 : index
    %24 = vector.load %arg1[%c0_13, %c0_14] : memref<128x128xbf16, #tpu.memory_space<vmem>>, vector<128x128xbf16>
    %25 = arith.extf %24 : vector<128x128xbf16> to vector<128x128xf32>
    %26 = vector.broadcast %20 : vector<1x128xf32> to vector<128x128xf32>
    %27 = arith.mulf %25, %26 : vector<128x128xf32>
    %28 = vector.broadcast %23 : vector<1x128xf32> to vector<128x128xf32>
    %29 = arith.addf %27, %28 : vector<128x128xf32>
    %cst_15 = arith.constant 0.000000e+00 : f32
    %30 = vector.broadcast %cst_15 : f32 to vector<128x128xf32>
    %31 = arith.cmpf ogt, %29, %30 : vector<128x128xf32>
    %cst_16 = arith.constant 2.000000e-01 : f32
    %32 = vector.broadcast %cst_16 : f32 to vector<128x128xf32>
    %33 = arith.mulf %32, %29 : vector<128x128xf32>
    %34 = arith.select %31, %29, %33 : vector<128x128xi1>, vector<128x128xf32>
    %35 = arith.truncf %34 : vector<128x128xf32> to vector<128x128xbf16>
    %c0_17 = arith.constant 0 : index
    %c0_18 = arith.constant 0 : index
    %36 = vector.load %arg6[%c0_17, %c0_18] : memref<128x128xbf16, #tpu.memory_space<vmem>>, vector<128x128xbf16>
    tpu.vector_store %arg6[%c0_17, %c0_18], %35 {strides = array<i32>} : memref<128x128xbf16, #tpu.memory_space<vmem>>, vector<128x128xbf16>,
    return
  }
  func.func @transform_0(%arg0: i32) -> (i32, i32) {
    %c0_i32 = arith.constant 0 : i32
    %c0_i32_0 = arith.constant 0 : i32
    return %arg0, %c0_i32 : i32, i32
  }
  func.func @transform_1(%arg0: i32) -> (i32, i32) {
    %c0_i32 = arith.constant 0 : i32
    %c0_i32_0 = arith.constant 0 : i32
    %c0_i32_1 = arith.constant 0 : i32
    return %c0_i32, %c0_i32_0 : i32, i32
  }
  func.func @transform_2(%arg0: i32) -> (i32, i32) {
    %c0_i32 = arith.constant 0 : i32
    %c0_i32_0 = arith.constant 0 : i32
    %c0_i32_1 = arith.constant 0 : i32
    return %c0_i32, %c0_i32_0 : i32, i32
  }
  func.func @transform_3(%arg0: i32) -> (i32, i32) {
    %c0_i32 = arith.constant 0 : i32
    %c0_i32_0 = arith.constant 0 : i32
    %c0_i32_1 = arith.constant 0 : i32
    return %c0_i32, %c0_i32_0 : i32, i32
  }
  func.func @transform_4(%arg0: i32) -> (i32, i32) {
    %c0_i32 = arith.constant 0 : i32
    %c0_i32_0 = arith.constant 0 : i32
    %c0_i32_1 = arith.constant 0 : i32
    return %c0_i32, %c0_i32_0 : i32, i32
  }
  func.func @transform_5(%arg0: i32) -> (i32, i32) {
    %c0_i32 = arith.constant 0 : i32
    %c0_i32_0 = arith.constant 0 : i32
    return %arg0, %c0_i32 : i32, i32
  }
}

module attributes {stable_mosaic.version = 11 : i64} {
  func.func @_matmul_stats_kernel(%arg0: i32, %arg1: memref<32x2048xbf16, #tpu.memory_space<vmem>>, %arg2: memref<2048x256xbf16, #tpu.memory_space<vmem>>, %arg3: memref<32x256xbf16, #tpu.memory_space<vmem>>, %arg4: memref<8x256xf32, #tpu.memory_space<vmem>>, %arg5: memref<8x256xf32, #tpu.memory_space<vmem>>) attributes {dimension_semantics = [#tpu.dimension_semantics<parallel>], iteration_bounds = array<i64: 1>, scalar_prefetch = 0 : i64, scratch_operands = 0 : i64, tpu.core_type = #tpu.core_type<tc>, window_params = [{transform_indices = @transform_0, window_bounds = array<i64: 32, 2048>}, {pipeline_mode = #tpu.pipeline_mode<synchronous>, transform_indices = @transform_1, window_bounds = array<i64: 2048, 256>}, {transform_indices = @transform_2, window_bounds = array<i64: 32, 256>}, {transform_indices = @transform_3, window_bounds = array<i64: 8, 256>}, {transform_indices = @transform_4, window_bounds = array<i64: 8, 256>}]} {
    %c0 = arith.constant 0 : index
    %c0_0 = arith.constant 0 : index
    %0 = vector.load %arg1[%c0, %c0_0] : memref<32x2048xbf16, #tpu.memory_space<vmem>>, vector<32x2048xbf16>
    %c0_1 = arith.constant 0 : index
    %c0_2 = arith.constant 0 : index
    %1 = vector.load %arg2[%c0_1, %c0_2] : memref<2048x256xbf16, #tpu.memory_space<vmem>>, vector<2048x256xbf16>
    %cst = arith.constant dense<0.000000e+00> : vector<32x256xf32>
    %2 = tpu.matmul %0, %1, %cst {dimension_numbers = #tpu.dot_dimension_numbers<[1], [0], [0], [1], [0, 0, 1, 1], [], []>} : vector<32x2048xbf16>, vector<2048x256xbf16>, vector<32x256xf32> -> vector<32x256xf32>
    %3 = arith.truncf %2 : vector<32x256xf32> to vector<32x256xbf16>
    %c0_3 = arith.constant 0 : index
    %c0_4 = arith.constant 0 : index
    %4 = vector.load %arg3[%c0_3, %c0_4] : memref<32x256xbf16, #tpu.memory_space<vmem>>, vector<32x256xbf16>
    tpu.vector_store %arg3[%c0_3, %c0_4], %3 {strides = array<i32>} : memref<32x256xbf16, #tpu.memory_space<vmem>>, vector<32x256xbf16>,
    %cst_5 = arith.constant dense<0.000000e+00> : vector<256xf32>
    %5 = vector.multi_reduction <add>, %2, %cst_5 [0] : vector<32x256xf32> to vector<256xf32>
    %6 = vector.shape_cast %5 : vector<256xf32> to vector<1x256xf32>
    %7 = arith.mulf %2, %2 : vector<32x256xf32>
    %cst_6 = arith.constant dense<0.000000e+00> : vector<256xf32>
    %8 = vector.multi_reduction <add>, %7, %cst_6 [0] : vector<32x256xf32> to vector<256xf32>
    %9 = vector.shape_cast %8 : vector<256xf32> to vector<1x256xf32>
    %10 = vector.shape_cast %6 : vector<1x256xf32> to vector<1x256xf32>
    %11 = vector.broadcast %10 : vector<1x256xf32> to vector<8x256xf32>
    %c0_7 = arith.constant 0 : index
    %c0_8 = arith.constant 0 : index
    %12 = vector.load %arg4[%c0_7, %c0_8] : memref<8x256xf32, #tpu.memory_space<vmem>>, vector<8x256xf32>
    tpu.vector_store %arg4[%c0_7, %c0_8], %11 {strides = array<i32>} : memref<8x256xf32, #tpu.memory_space<vmem>>, vector<8x256xf32>,
    %13 = vector.shape_cast %9 : vector<1x256xf32> to vector<1x256xf32>
    %14 = vector.broadcast %13 : vector<1x256xf32> to vector<8x256xf32>
    %c0_9 = arith.constant 0 : index
    %c0_10 = arith.constant 0 : index
    %15 = vector.load %arg5[%c0_9, %c0_10] : memref<8x256xf32, #tpu.memory_space<vmem>>, vector<8x256xf32>
    tpu.vector_store %arg5[%c0_9, %c0_10], %14 {strides = array<i32>} : memref<8x256xf32, #tpu.memory_space<vmem>>, vector<8x256xf32>,
    return
  }
  func.func @transform_0(%arg0: i32) -> (i32, i32) {
    %c0_i32 = arith.constant 0 : i32
    %c0_i32_0 = arith.constant 0 : i32
    return %arg0, %c0_i32 : i32, i32
  }
  func.func @transform_1(%arg0: i32) -> (i32, i32) {
    %c0_i32 = arith.constant 0 : i32
    %c0_i32_0 = arith.constant 0 : i32
    %c0_i32_1 = arith.constant 0 : i32
    return %c0_i32, %c0_i32_0 : i32, i32
  }
  func.func @transform_2(%arg0: i32) -> (i32, i32) {
    %c0_i32 = arith.constant 0 : i32
    %c0_i32_0 = arith.constant 0 : i32
    return %arg0, %c0_i32 : i32, i32
  }
  func.func @transform_3(%arg0: i32) -> (i32, i32) {
    %c0_i32 = arith.constant 0 : i32
    %c0_i32_0 = arith.constant 0 : i32
    return %arg0, %c0_i32 : i32, i32
  }
  func.func @transform_4(%arg0: i32) -> (i32, i32) {
    %c0_i32 = arith.constant 0 : i32
    %c0_i32_0 = arith.constant 0 : i32
    return %arg0, %c0_i32 : i32, i32
  }
}

module attributes {stable_mosaic.version = 11 : i64} {
  func.func @_bn_apply_kernel(%arg0: i32, %arg1: memref<32x256xbf16, #tpu.memory_space<vmem>>, %arg2: memref<8x256xf32, #tpu.memory_space<vmem>>, %arg3: memref<8x256xf32, #tpu.memory_space<vmem>>, %arg4: memref<1x256xf32, #tpu.memory_space<vmem>>, %arg5: memref<1x256xf32, #tpu.memory_space<vmem>>, %arg6: memref<32x256xbf16, #tpu.memory_space<vmem>>) attributes {dimension_semantics = [#tpu.dimension_semantics<parallel>], iteration_bounds = array<i64: 1>, scalar_prefetch = 0 : i64, scratch_operands = 0 : i64, tpu.core_type = #tpu.core_type<tc>, window_params = [{transform_indices = @transform_0, window_bounds = array<i64: 32, 256>}, {pipeline_mode = #tpu.pipeline_mode<synchronous>, transform_indices = @transform_1, window_bounds = array<i64: 8, 256>}, {pipeline_mode = #tpu.pipeline_mode<synchronous>, transform_indices = @transform_2, window_bounds = array<i64: 8, 256>}, {pipeline_mode = #tpu.pipeline_mode<synchronous>, transform_indices = @transform_3, window_bounds = array<i64: 1, 256>}, {pipeline_mode = #tpu.pipeline_mode<synchronous>, transform_indices = @transform_4, window_bounds = array<i64: 1, 256>}, {transform_indices = @transform_5, window_bounds = array<i64: 32, 256>}]} {
    %c0 = arith.constant 0 : index
    %c0_0 = arith.constant 0 : index
    %0 = vector.load %arg2[%c0, %c0_0] : memref<8x256xf32, #tpu.memory_space<vmem>>, vector<8x256xf32>
    %cst = arith.constant dense<0.000000e+00> : vector<256xf32>
    %1 = vector.multi_reduction <add>, %0, %cst [0] : vector<8x256xf32> to vector<256xf32>
    %2 = vector.shape_cast %1 : vector<256xf32> to vector<1x256xf32>
    %cst_1 = arith.constant 1.250000e-01 : f32
    %3 = vector.broadcast %cst_1 : f32 to vector<1x256xf32>
    %4 = arith.mulf %2, %3 : vector<1x256xf32>
    %c0_2 = arith.constant 0 : index
    %c0_3 = arith.constant 0 : index
    %5 = vector.load %arg3[%c0_2, %c0_3] : memref<8x256xf32, #tpu.memory_space<vmem>>, vector<8x256xf32>
    %cst_4 = arith.constant dense<0.000000e+00> : vector<256xf32>
    %6 = vector.multi_reduction <add>, %5, %cst_4 [0] : vector<8x256xf32> to vector<256xf32>
    %7 = vector.shape_cast %6 : vector<256xf32> to vector<1x256xf32>
    %cst_5 = arith.constant 1.250000e-01 : f32
    %8 = vector.broadcast %cst_5 : f32 to vector<1x256xf32>
    %9 = arith.mulf %7, %8 : vector<1x256xf32>
    %cst_6 = arith.constant 3.125000e-02 : f32
    %10 = vector.broadcast %cst_6 : f32 to vector<1x256xf32>
    %11 = arith.mulf %4, %10 : vector<1x256xf32>
    %cst_7 = arith.constant 3.125000e-02 : f32
    %12 = vector.broadcast %cst_7 : f32 to vector<1x256xf32>
    %13 = arith.mulf %9, %12 : vector<1x256xf32>
    %14 = arith.mulf %11, %11 : vector<1x256xf32>
    %15 = arith.subf %13, %14 : vector<1x256xf32>
    %c0_8 = arith.constant 0 : index
    %c0_9 = arith.constant 0 : index
    %16 = vector.load %arg4[%c0_8, %c0_9] : memref<1x256xf32, #tpu.memory_space<vmem>>, vector<1x256xf32>
    %cst_10 = arith.constant 9.99999974E-6 : f32
    %17 = vector.broadcast %cst_10 : f32 to vector<1x256xf32>
    %18 = arith.addf %15, %17 : vector<1x256xf32>
    %19 = math.rsqrt %18 : vector<1x256xf32>
    %20 = arith.mulf %16, %19 : vector<1x256xf32>
    %c0_11 = arith.constant 0 : index
    %c0_12 = arith.constant 0 : index
    %21 = vector.load %arg5[%c0_11, %c0_12] : memref<1x256xf32, #tpu.memory_space<vmem>>, vector<1x256xf32>
    %22 = arith.mulf %11, %20 : vector<1x256xf32>
    %23 = arith.subf %21, %22 : vector<1x256xf32>
    %c0_13 = arith.constant 0 : index
    %c0_14 = arith.constant 0 : index
    %24 = vector.load %arg1[%c0_13, %c0_14] : memref<32x256xbf16, #tpu.memory_space<vmem>>, vector<32x256xbf16>
    %25 = arith.extf %24 : vector<32x256xbf16> to vector<32x256xf32>
    %26 = vector.broadcast %20 : vector<1x256xf32> to vector<32x256xf32>
    %27 = arith.mulf %25, %26 : vector<32x256xf32>
    %28 = vector.broadcast %23 : vector<1x256xf32> to vector<32x256xf32>
    %29 = arith.addf %27, %28 : vector<32x256xf32>
    %cst_15 = arith.constant 0.000000e+00 : f32
    %30 = vector.broadcast %cst_15 : f32 to vector<32x256xf32>
    %31 = arith.cmpf ogt, %29, %30 : vector<32x256xf32>
    %cst_16 = arith.constant 2.000000e-01 : f32
    %32 = vector.broadcast %cst_16 : f32 to vector<32x256xf32>
    %33 = arith.mulf %32, %29 : vector<32x256xf32>
    %34 = arith.select %31, %29, %33 : vector<32x256xi1>, vector<32x256xf32>
    %35 = arith.truncf %34 : vector<32x256xf32> to vector<32x256xbf16>
    %c0_17 = arith.constant 0 : index
    %c0_18 = arith.constant 0 : index
    %36 = vector.load %arg6[%c0_17, %c0_18] : memref<32x256xbf16, #tpu.memory_space<vmem>>, vector<32x256xbf16>
    tpu.vector_store %arg6[%c0_17, %c0_18], %35 {strides = array<i32>} : memref<32x256xbf16, #tpu.memory_space<vmem>>, vector<32x256xbf16>,
    return
  }
  func.func @transform_0(%arg0: i32) -> (i32, i32) {
    %c0_i32 = arith.constant 0 : i32
    %c0_i32_0 = arith.constant 0 : i32
    return %arg0, %c0_i32 : i32, i32
  }
  func.func @transform_1(%arg0: i32) -> (i32, i32) {
    %c0_i32 = arith.constant 0 : i32
    %c0_i32_0 = arith.constant 0 : i32
    %c0_i32_1 = arith.constant 0 : i32
    return %c0_i32, %c0_i32_0 : i32, i32
  }
  func.func @transform_2(%arg0: i32) -> (i32, i32) {
    %c0_i32 = arith.constant 0 : i32
    %c0_i32_0 = arith.constant 0 : i32
    %c0_i32_1 = arith.constant 0 : i32
    return %c0_i32, %c0_i32_0 : i32, i32
  }
  func.func @transform_3(%arg0: i32) -> (i32, i32) {
    %c0_i32 = arith.constant 0 : i32
    %c0_i32_0 = arith.constant 0 : i32
    %c0_i32_1 = arith.constant 0 : i32
    return %c0_i32, %c0_i32_0 : i32, i32
  }
  func.func @transform_4(%arg0: i32) -> (i32, i32) {
    %c0_i32 = arith.constant 0 : i32
    %c0_i32_0 = arith.constant 0 : i32
    %c0_i32_1 = arith.constant 0 : i32
    return %c0_i32, %c0_i32_0 : i32, i32
  }
  func.func @transform_5(%arg0: i32) -> (i32, i32) {
    %c0_i32 = arith.constant 0 : i32
    %c0_i32_0 = arith.constant 0 : i32
    return %arg0, %c0_i32 : i32, i32
  }
}

module attributes {stable_mosaic.version = 11 : i64} {
  func.func @_matmul_stats_kernel(%arg0: i32, %arg1: memref<32x4096xbf16, #tpu.memory_space<vmem>>, %arg2: memref<4096x512xbf16, #tpu.memory_space<vmem>>, %arg3: memref<32x512xbf16, #tpu.memory_space<vmem>>, %arg4: memref<8x512xf32, #tpu.memory_space<vmem>>, %arg5: memref<8x512xf32, #tpu.memory_space<vmem>>) attributes {dimension_semantics = [#tpu.dimension_semantics<parallel>], iteration_bounds = array<i64: 1>, scalar_prefetch = 0 : i64, scratch_operands = 0 : i64, tpu.core_type = #tpu.core_type<tc>, window_params = [{transform_indices = @transform_0, window_bounds = array<i64: 32, 4096>}, {pipeline_mode = #tpu.pipeline_mode<synchronous>, transform_indices = @transform_1, window_bounds = array<i64: 4096, 512>}, {transform_indices = @transform_2, window_bounds = array<i64: 32, 512>}, {transform_indices = @transform_3, window_bounds = array<i64: 8, 512>}, {transform_indices = @transform_4, window_bounds = array<i64: 8, 512>}]} {
    %c0 = arith.constant 0 : index
    %c0_0 = arith.constant 0 : index
    %0 = vector.load %arg1[%c0, %c0_0] : memref<32x4096xbf16, #tpu.memory_space<vmem>>, vector<32x4096xbf16>
    %c0_1 = arith.constant 0 : index
    %c0_2 = arith.constant 0 : index
    %1 = vector.load %arg2[%c0_1, %c0_2] : memref<4096x512xbf16, #tpu.memory_space<vmem>>, vector<4096x512xbf16>
    %cst = arith.constant dense<0.000000e+00> : vector<32x512xf32>
    %2 = tpu.matmul %0, %1, %cst {dimension_numbers = #tpu.dot_dimension_numbers<[1], [0], [0], [1], [0, 0, 1, 1], [], []>} : vector<32x4096xbf16>, vector<4096x512xbf16>, vector<32x512xf32> -> vector<32x512xf32>
    %3 = arith.truncf %2 : vector<32x512xf32> to vector<32x512xbf16>
    %c0_3 = arith.constant 0 : index
    %c0_4 = arith.constant 0 : index
    %4 = vector.load %arg3[%c0_3, %c0_4] : memref<32x512xbf16, #tpu.memory_space<vmem>>, vector<32x512xbf16>
    tpu.vector_store %arg3[%c0_3, %c0_4], %3 {strides = array<i32>} : memref<32x512xbf16, #tpu.memory_space<vmem>>, vector<32x512xbf16>,
    %cst_5 = arith.constant dense<0.000000e+00> : vector<512xf32>
    %5 = vector.multi_reduction <add>, %2, %cst_5 [0] : vector<32x512xf32> to vector<512xf32>
    %6 = vector.shape_cast %5 : vector<512xf32> to vector<1x512xf32>
    %7 = arith.mulf %2, %2 : vector<32x512xf32>
    %cst_6 = arith.constant dense<0.000000e+00> : vector<512xf32>
    %8 = vector.multi_reduction <add>, %7, %cst_6 [0] : vector<32x512xf32> to vector<512xf32>
    %9 = vector.shape_cast %8 : vector<512xf32> to vector<1x512xf32>
    %10 = vector.shape_cast %6 : vector<1x512xf32> to vector<1x512xf32>
    %11 = vector.broadcast %10 : vector<1x512xf32> to vector<8x512xf32>
    %c0_7 = arith.constant 0 : index
    %c0_8 = arith.constant 0 : index
    %12 = vector.load %arg4[%c0_7, %c0_8] : memref<8x512xf32, #tpu.memory_space<vmem>>, vector<8x512xf32>
    tpu.vector_store %arg4[%c0_7, %c0_8], %11 {strides = array<i32>} : memref<8x512xf32, #tpu.memory_space<vmem>>, vector<8x512xf32>,
    %13 = vector.shape_cast %9 : vector<1x512xf32> to vector<1x512xf32>
    %14 = vector.broadcast %13 : vector<1x512xf32> to vector<8x512xf32>
    %c0_9 = arith.constant 0 : index
    %c0_10 = arith.constant 0 : index
    %15 = vector.load %arg5[%c0_9, %c0_10] : memref<8x512xf32, #tpu.memory_space<vmem>>, vector<8x512xf32>
    tpu.vector_store %arg5[%c0_9, %c0_10], %14 {strides = array<i32>} : memref<8x512xf32, #tpu.memory_space<vmem>>, vector<8x512xf32>,
    return
  }
  func.func @transform_0(%arg0: i32) -> (i32, i32) {
    %c0_i32 = arith.constant 0 : i32
    %c0_i32_0 = arith.constant 0 : i32
    return %arg0, %c0_i32 : i32, i32
  }
  func.func @transform_1(%arg0: i32) -> (i32, i32) {
    %c0_i32 = arith.constant 0 : i32
    %c0_i32_0 = arith.constant 0 : i32
    %c0_i32_1 = arith.constant 0 : i32
    return %c0_i32, %c0_i32_0 : i32, i32
  }
  func.func @transform_2(%arg0: i32) -> (i32, i32) {
    %c0_i32 = arith.constant 0 : i32
    %c0_i32_0 = arith.constant 0 : i32
    return %arg0, %c0_i32 : i32, i32
  }
  func.func @transform_3(%arg0: i32) -> (i32, i32) {
    %c0_i32 = arith.constant 0 : i32
    %c0_i32_0 = arith.constant 0 : i32
    return %arg0, %c0_i32 : i32, i32
  }
  func.func @transform_4(%arg0: i32) -> (i32, i32) {
    %c0_i32 = arith.constant 0 : i32
    %c0_i32_0 = arith.constant 0 : i32
    return %arg0, %c0_i32 : i32, i32
  }
}

module attributes {stable_mosaic.version = 11 : i64} {
  func.func @_bn_apply_kernel(%arg0: i32, %arg1: memref<32x512xbf16, #tpu.memory_space<vmem>>, %arg2: memref<8x512xf32, #tpu.memory_space<vmem>>, %arg3: memref<8x512xf32, #tpu.memory_space<vmem>>, %arg4: memref<1x512xf32, #tpu.memory_space<vmem>>, %arg5: memref<1x512xf32, #tpu.memory_space<vmem>>, %arg6: memref<32x512xbf16, #tpu.memory_space<vmem>>) attributes {dimension_semantics = [#tpu.dimension_semantics<parallel>], iteration_bounds = array<i64: 1>, scalar_prefetch = 0 : i64, scratch_operands = 0 : i64, tpu.core_type = #tpu.core_type<tc>, window_params = [{transform_indices = @transform_0, window_bounds = array<i64: 32, 512>}, {pipeline_mode = #tpu.pipeline_mode<synchronous>, transform_indices = @transform_1, window_bounds = array<i64: 8, 512>}, {pipeline_mode = #tpu.pipeline_mode<synchronous>, transform_indices = @transform_2, window_bounds = array<i64: 8, 512>}, {pipeline_mode = #tpu.pipeline_mode<synchronous>, transform_indices = @transform_3, window_bounds = array<i64: 1, 512>}, {pipeline_mode = #tpu.pipeline_mode<synchronous>, transform_indices = @transform_4, window_bounds = array<i64: 1, 512>}, {transform_indices = @transform_5, window_bounds = array<i64: 32, 512>}]} {
    %c0 = arith.constant 0 : index
    %c0_0 = arith.constant 0 : index
    %0 = vector.load %arg2[%c0, %c0_0] : memref<8x512xf32, #tpu.memory_space<vmem>>, vector<8x512xf32>
    %cst = arith.constant dense<0.000000e+00> : vector<512xf32>
    %1 = vector.multi_reduction <add>, %0, %cst [0] : vector<8x512xf32> to vector<512xf32>
    %2 = vector.shape_cast %1 : vector<512xf32> to vector<1x512xf32>
    %cst_1 = arith.constant 1.250000e-01 : f32
    %3 = vector.broadcast %cst_1 : f32 to vector<1x512xf32>
    %4 = arith.mulf %2, %3 : vector<1x512xf32>
    %c0_2 = arith.constant 0 : index
    %c0_3 = arith.constant 0 : index
    %5 = vector.load %arg3[%c0_2, %c0_3] : memref<8x512xf32, #tpu.memory_space<vmem>>, vector<8x512xf32>
    %cst_4 = arith.constant dense<0.000000e+00> : vector<512xf32>
    %6 = vector.multi_reduction <add>, %5, %cst_4 [0] : vector<8x512xf32> to vector<512xf32>
    %7 = vector.shape_cast %6 : vector<512xf32> to vector<1x512xf32>
    %cst_5 = arith.constant 1.250000e-01 : f32
    %8 = vector.broadcast %cst_5 : f32 to vector<1x512xf32>
    %9 = arith.mulf %7, %8 : vector<1x512xf32>
    %cst_6 = arith.constant 0.055555556 : f32
    %10 = vector.broadcast %cst_6 : f32 to vector<1x512xf32>
    %11 = arith.mulf %4, %10 : vector<1x512xf32>
    %cst_7 = arith.constant 0.055555556 : f32
    %12 = vector.broadcast %cst_7 : f32 to vector<1x512xf32>
    %13 = arith.mulf %9, %12 : vector<1x512xf32>
    %14 = arith.mulf %11, %11 : vector<1x512xf32>
    %15 = arith.subf %13, %14 : vector<1x512xf32>
    %c0_8 = arith.constant 0 : index
    %c0_9 = arith.constant 0 : index
    %16 = vector.load %arg4[%c0_8, %c0_9] : memref<1x512xf32, #tpu.memory_space<vmem>>, vector<1x512xf32>
    %cst_10 = arith.constant 9.99999974E-6 : f32
    %17 = vector.broadcast %cst_10 : f32 to vector<1x512xf32>
    %18 = arith.addf %15, %17 : vector<1x512xf32>
    %19 = math.rsqrt %18 : vector<1x512xf32>
    %20 = arith.mulf %16, %19 : vector<1x512xf32>
    %c0_11 = arith.constant 0 : index
    %c0_12 = arith.constant 0 : index
    %21 = vector.load %arg5[%c0_11, %c0_12] : memref<1x512xf32, #tpu.memory_space<vmem>>, vector<1x512xf32>
    %22 = arith.mulf %11, %20 : vector<1x512xf32>
    %23 = arith.subf %21, %22 : vector<1x512xf32>
    %c0_13 = arith.constant 0 : index
    %c0_14 = arith.constant 0 : index
    %24 = vector.load %arg1[%c0_13, %c0_14] : memref<32x512xbf16, #tpu.memory_space<vmem>>, vector<32x512xbf16>
    %25 = arith.extf %24 : vector<32x512xbf16> to vector<32x512xf32>
    %26 = vector.broadcast %20 : vector<1x512xf32> to vector<32x512xf32>
    %27 = arith.mulf %25, %26 : vector<32x512xf32>
    %28 = vector.broadcast %23 : vector<1x512xf32> to vector<32x512xf32>
    %29 = arith.addf %27, %28 : vector<32x512xf32>
    %cst_15 = arith.constant 0.000000e+00 : f32
    %30 = vector.broadcast %cst_15 : f32 to vector<32x512xf32>
    %31 = arith.cmpf ogt, %29, %30 : vector<32x512xf32>
    %cst_16 = arith.constant 2.000000e-01 : f32
    %32 = vector.broadcast %cst_16 : f32 to vector<32x512xf32>
    %33 = arith.mulf %32, %29 : vector<32x512xf32>
    %34 = arith.select %31, %29, %33 : vector<32x512xi1>, vector<32x512xf32>
    %35 = arith.truncf %34 : vector<32x512xf32> to vector<32x512xbf16>
    %c0_17 = arith.constant 0 : index
    %c0_18 = arith.constant 0 : index
    %36 = vector.load %arg6[%c0_17, %c0_18] : memref<32x512xbf16, #tpu.memory_space<vmem>>, vector<32x512xbf16>
    tpu.vector_store %arg6[%c0_17, %c0_18], %35 {strides = array<i32>} : memref<32x512xbf16, #tpu.memory_space<vmem>>, vector<32x512xbf16>,
    return
  }
  func.func @transform_0(%arg0: i32) -> (i32, i32) {
    %c0_i32 = arith.constant 0 : i32
    %c0_i32_0 = arith.constant 0 : i32
    return %arg0, %c0_i32 : i32, i32
  }
  func.func @transform_1(%arg0: i32) -> (i32, i32) {
    %c0_i32 = arith.constant 0 : i32
    %c0_i32_0 = arith.constant 0 : i32
    %c0_i32_1 = arith.constant 0 : i32
    return %c0_i32, %c0_i32_0 : i32, i32
  }
  func.func @transform_2(%arg0: i32) -> (i32, i32) {
    %c0_i32 = arith.constant 0 : i32
    %c0_i32_0 = arith.constant 0 : i32
    %c0_i32_1 = arith.constant 0 : i32
    return %c0_i32, %c0_i32_0 : i32, i32
  }
  func.func @transform_3(%arg0: i32) -> (i32, i32) {
    %c0_i32 = arith.constant 0 : i32
    %c0_i32_0 = arith.constant 0 : i32
    %c0_i32_1 = arith.constant 0 : i32
    return %c0_i32, %c0_i32_0 : i32, i32
  }
  func.func @transform_4(%arg0: i32) -> (i32, i32) {
    %c0_i32 = arith.constant 0 : i32
    %c0_i32_0 = arith.constant 0 : i32
    %c0_i32_1 = arith.constant 0 : i32
    return %c0_i32, %c0_i32_0 : i32, i32
  }
  func.func @transform_5(%arg0: i32) -> (i32, i32) {
    %c0_i32 = arith.constant 0 : i32
    %c0_i32_0 = arith.constant 0 : i32
    return %arg0, %c0_i32 : i32, i32
  }
}

module attributes {stable_mosaic.version = 11 : i64} {
  func.func @_matmul_bias_act_kernel(%arg0: i32, %arg1: memref<16x8192xbf16, #tpu.memory_space<vmem>>, %arg2: memref<8192x128xbf16, #tpu.memory_space<vmem>>, %arg3: memref<1x128xf32, #tpu.memory_space<vmem>>, %arg4: memref<16x128xbf16, #tpu.memory_space<vmem>>) attributes {dimension_semantics = [#tpu.dimension_semantics<parallel>], iteration_bounds = array<i64: 1>, scalar_prefetch = 0 : i64, scratch_operands = 0 : i64, tpu.core_type = #tpu.core_type<tc>, window_params = [{transform_indices = @transform_0, window_bounds = array<i64: 16, 8192>}, {pipeline_mode = #tpu.pipeline_mode<synchronous>, transform_indices = @transform_1, window_bounds = array<i64: 8192, 128>}, {pipeline_mode = #tpu.pipeline_mode<synchronous>, transform_indices = @transform_2, window_bounds = array<i64: 1, 128>}, {transform_indices = @transform_3, window_bounds = array<i64: 16, 128>}]} {
    %c0 = arith.constant 0 : index
    %c0_0 = arith.constant 0 : index
    %0 = vector.load %arg1[%c0, %c0_0] : memref<16x8192xbf16, #tpu.memory_space<vmem>>, vector<16x8192xbf16>
    %c0_1 = arith.constant 0 : index
    %c0_2 = arith.constant 0 : index
    %1 = vector.load %arg2[%c0_1, %c0_2] : memref<8192x128xbf16, #tpu.memory_space<vmem>>, vector<8192x128xbf16>
    %cst = arith.constant dense<0.000000e+00> : vector<16x128xf32>
    %2 = tpu.matmul %0, %1, %cst {dimension_numbers = #tpu.dot_dimension_numbers<[1], [0], [0], [1], [0, 0, 1, 1], [], []>} : vector<16x8192xbf16>, vector<8192x128xbf16>, vector<16x128xf32> -> vector<16x128xf32>
    %c0_3 = arith.constant 0 : index
    %c0_4 = arith.constant 0 : index
    %3 = vector.load %arg3[%c0_3, %c0_4] : memref<1x128xf32, #tpu.memory_space<vmem>>, vector<1x128xf32>
    %4 = vector.broadcast %3 : vector<1x128xf32> to vector<16x128xf32>
    %5 = arith.addf %2, %4 : vector<16x128xf32>
    %cst_5 = arith.constant 0.000000e+00 : f32
    %6 = vector.broadcast %cst_5 : f32 to vector<16x128xf32>
    %7 = arith.subf %6, %5 : vector<16x128xf32>
    %8 = math.exp %7 : vector<16x128xf32>
    %cst_6 = arith.constant 1.000000e+00 : f32
    %9 = vector.broadcast %cst_6 : f32 to vector<16x128xf32>
    %10 = arith.addf %9, %8 : vector<16x128xf32>
    %cst_7 = arith.constant 1.000000e+00 : f32
    %11 = vector.broadcast %cst_7 : f32 to vector<16x128xf32>
    %12 = arith.divf %11, %10 : vector<16x128xf32>
    %13 = arith.truncf %12 : vector<16x128xf32> to vector<16x128xbf16>
    %c0_8 = arith.constant 0 : index
    %c0_9 = arith.constant 0 : index
    %14 = vector.load %arg4[%c0_8, %c0_9] : memref<16x128xbf16, #tpu.memory_space<vmem>>, vector<16x128xbf16>
    tpu.vector_store %arg4[%c0_8, %c0_9], %13 {strides = array<i32>} : memref<16x128xbf16, #tpu.memory_space<vmem>>, vector<16x128xbf16>,
    return
  }
  func.func @transform_0(%arg0: i32) -> (i32, i32) {
    %c0_i32 = arith.constant 0 : i32
    %c0_i32_0 = arith.constant 0 : i32
    return %arg0, %c0_i32 : i32, i32
  }
  func.func @transform_1(%arg0: i32) -> (i32, i32) {
    %c0_i32 = arith.constant 0 : i32
    %c0_i32_0 = arith.constant 0 : i32
    %c0_i32_1 = arith.constant 0 : i32
    return %c0_i32, %c0_i32_0 : i32, i32
  }
  func.func @transform_2(%arg0: i32) -> (i32, i32) {
    %c0_i32 = arith.constant 0 : i32
    %c0_i32_0 = arith.constant 0 : i32
    %c0_i32_1 = arith.constant 0 : i32
    return %c0_i32, %c0_i32_0 : i32, i32
  }
  func.func @transform_3(%arg0: i32) -> (i32, i32) {
    %c0_i32 = arith.constant 0 : i32
    %c0_i32_0 = arith.constant 0 : i32
    return %arg0, %c0_i32 : i32, i32
  }
}

</mosaic_0001>

<bundles_post_ra>
// kernel: discriminator_forward.8
= control target key start
LH: loop header
LB: loop body
LE: loop exit
PB: predicated region body
PF: predicated region fallthrough
CT: control target
= control target key end

     0   :  { %vm1079_vm0 = vcmask 519168   ;;  %s2037_s1 = inlined_call_operand.vmem [shape: bf16[128,64], index: 1, kind: input, shape index: {}]   ;;  %s2038_s0 = inlined_call_operand.vmem [shape: bf16[512,128], index: 0, kind: input, shape index: {}]   ;;  %s2039_s2 = inlined_call_operand.vmem [shape: f32[1,64], index: 2, kind: input, shape index: {}]   ;;  %s2040_s3 = inlined_call_operand.vmem [shape: bf16[512,64], index: 3, kind: output, shape index: {}]  }
   0x1   :  { %v1453_v0 = vld [vmem:[%s2037_s1] sm:$0xff]   ;;  %v1454_v1 = vld [vmem:[%s2037_s1 + $0x8] sm:$0xff]   ;;  %v1455_v2 = vld [vmem:[%s2037_s1 + $0x10] sm:$0xff]  }
   0x2   :  { %1357 = vmatprep.subr.bf16.mxu0 %v1453_v0  ;;  %1437 = vmatprep.subr.bf16.mxu1 %v1453_v0  ;;  %v1456_v3 = vld [vmem:[%s2037_s1 + $0x18] sm:$0xff]   ;;  %v1461_v4 = vld [vmem:[%s2038_s0] sm:$0xff]   ;;  %v1458_v7 = vld [vmem:[%s2037_s1 + $0x28] sm:$0xff]  }
   0x3   :  { %1358 = vmatpush3.bf16.msra.mxu0 %v1453_v0  ;;  %1445 = vmatpush3.bf16.msra.mxu1 %v1453_v0  ;;  %v1462_v5 = vld [vmem:[%s2038_s0 + $0x80] sm:$0xff]   ;;  %v1459_v8 = vld [vmem:[%s2037_s1 + $0x30] sm:$0xff]   ;;  %v1460_v9 = vld [vmem:[%s2037_s1 + $0x38] sm:$0xff]  }
   0x4   :  { %1359 = vmatprep.subr.bf16.mxu0 %v1454_v1  ;;  %1438 = vmatprep.subr.bf16.mxu1 %v1454_v1  ;;  %v1457_v6 = vld [vmem:[%s2037_s1 + $0x20] sm:$0xff]   ;;  %v1463_v10 = vld [vmem:[%s2038_s0 + $0x8] sm:$0xff]   ;;  %v1465_v12 = vld [vmem:[%s2038_s0 + $0x10] sm:$0xff]  }
   0x5   :  { %1373 = vmatprep.mubr.bf16.mxu0 %v1461_v4  ;;  %1405 = vmatprep.mubr.bf16.mxu1 %v1462_v5  ;;  %v1464_v11 = vld [vmem:[%s2038_s0 + $0x88] sm:$0xff]   ;;  %v1466_v13 = vld [vmem:[%s2038_s0 + $0x90] sm:$0xff]   ;;  %v1467_v14 = vld [vmem:[%s2038_s0 + $0x18] sm:$0xff]  }
   0x6   :  { %v1468_v15 = vld [vmem:[%s2038_s0 + $0x98] sm:$0xff]   ;;  %v1469_v16 = vld [vmem:[%s2038_s0 + $0x20] sm:$0xff]   ;;  %v1471_v18 = vld [vmem:[%s2038_s0 + $0x28] sm:$0xff]  }
   0x7   :  { %1360 = vmatpush3.bf16.msra.mxu0 %v1454_v1  ;;  %1446 = vmatpush3.bf16.msra.mxu1 %v1454_v1  ;;  %v1470_v17 = vld [vmem:[%s2038_s0 + $0xa0] sm:$0xff]   ;;  %v1472_v19 = vld [vmem:[%s2038_s0 + $0xa8] sm:$0xff]   ;;  %v1473_v20 = vld [vmem:[%s2038_s0 + $0x30] sm:$0xff]  }
   0x8   :  { %1361 = vmatprep.subr.bf16.mxu0 %v1455_v2  ;;  %1439 = vmatprep.subr.bf16.mxu1 %v1455_v2  ;;  %v1474_v21 = vld [vmem:[%s2038_s0 + $0xb0] sm:$0xff]   ;;  %v1475_v22 = vld [vmem:[%s2038_s0 + $0x38] sm:$0xff]   ;;  %v1477_v24 = vld [vmem:[%s2038_s0 + $0x40] sm:$0xff]  }
   0x9   :  { %v1476_v23 = vld [vmem:[%s2038_s0 + $0xb8] sm:$0xff]   ;;  %v1478_v25 = vld [vmem:[%s2038_s0 + $0xc0] sm:$0xff]   ;;  %v1479_v26 = vld [vmem:[%s2038_s0 + $0x48] sm:$0xff]  }
   0xa   :  { %v1480_v27 = vld [vmem:[%s2038_s0 + $0xc8] sm:$0xff]   ;;  %v1481_v28 = vld [vmem:[%s2038_s0 + $0x50] sm:$0xff]   ;;  %v1483_v30 = vld [vmem:[%s2038_s0 + $0x58] sm:$0xff]  }
   0xb   :  { %1362 = vmatpush3.bf16.msra.mxu0 %v1455_v2  ;;  %1447 = vmatpush3.bf16.msra.mxu1 %v1455_v2  ;;  %v1482_v29 = vld [vmem:[%s2038_s0 + $0xd0] sm:$0xff]   ;;  %v1484_v31 = vld [vmem:[%s2038_s0 + $0xd8] sm:$0xff]   ;;  %v1485_v32 = vld [vmem:[%s2038_s0 + $0x60] sm:$0xff]  }
   0xc   :  { %1363 = vmatprep.subr.bf16.mxu0 %v1456_v3  ;;  %1440 = vmatprep.subr.bf16.mxu1 %v1456_v3  ;;  %v1486_v33 = vld [vmem:[%s2038_s0 + $0xe0] sm:$0xff]   ;;  %v1487_v34 = vld [vmem:[%s2038_s0 + $0x68] sm:$0xff]   ;;  %v1489_v36 = vld [vmem:[%s2038_s0 + $0x70] sm:$0xff]  }
   0xd   :  { %v1488_v35 = vld [vmem:[%s2038_s0 + $0xe8] sm:$0xff]   ;;  %v1490_v37 = vld [vmem:[%s2038_s0 + $0xf0] sm:$0xff]   ;;  %v1491_v38 = vld [vmem:[%s2038_s0 + $0x78] sm:$0xff]  }
   0xe   :  { %v1492_v39 = vld [vmem:[%s2038_s0 + $0xf8] sm:$0xff]   ;;  %v1636_v40 = vld [vmem:[%s2039_s2] ss:$0 sm:$0xff] }
   0xf   :  { %1364 = vmatpush3.bf16.msra.mxu0 %v1456_v3  ;;  %1448 = vmatpush3.bf16.msra.mxu1 %v1456_v3 }
  0x10   :  { %1365 = vmatprep.subr.bf16.mxu0 %v1457_v6  ;;  %1441 = vmatprep.subr.bf16.mxu1 %v1457_v6 }
  0x13   :  { %1366 = vmatpush3.bf16.msra.mxu0 %v1457_v6  ;;  %1449 = vmatpush3.bf16.msra.mxu1 %v1457_v6 }
  0x14   :  { %1367 = vmatprep.subr.bf16.mxu0 %v1458_v7  ;;  %1442 = vmatprep.subr.bf16.mxu1 %v1458_v7 }
  0x17   :  { %1368 = vmatpush3.bf16.msra.mxu0 %v1458_v7  ;;  %1450 = vmatpush3.bf16.msra.mxu1 %v1458_v7 }
  0x18   :  { %1369 = vmatprep.subr.bf16.mxu0 %v1459_v8  ;;  %1443 = vmatprep.subr.bf16.mxu1 %v1459_v8 }
  0x1b   :  { %1370 = vmatpush3.bf16.msra.mxu0 %v1459_v8  ;;  %1451 = vmatpush3.bf16.msra.mxu1 %v1459_v8 }
  0x1c   :  { %1371 = vmatprep.subr.bf16.mxu0 %v1460_v9  ;;  %1444 = vmatprep.subr.bf16.mxu1 %v1460_v9 }
  0x1f   :  { %1372 = vmatpush3.bf16.msra.mxu0 %v1460_v9  ;;  %1452 = vmatpush3.bf16.msra.mxu1 %v1460_v9 }
  0x22   :  { %1374 = vmatmul.mubr.bf16.vlgmr.msra.gmra.mrb[0].mxu0 %v1463_v10  ;;  %1406 = vmatmul.mubr.bf16.vlgmr.msra.gmra.mrb[0].mxu1 %v1464_v11 }
  0x23   :  { %1377 = vmatprep.mubr.bf16.mxu0 %v1465_v12  ;;  %1409 = vmatprep.mubr.bf16.mxu1 %v1466_v13 }
  0x2a   :  { %1378 = vmatmul.mubr.bf16.gmra.mrb[4].mxu0 %v1467_v14  ;;  %1410 = vmatmul.mubr.bf16.gmra.mrb[4].mxu1 %v1468_v15 }
  0x2b   :  { %1381 = vmatprep.mubr.bf16.mxu0 %v1469_v16  ;;  %1413 = vmatprep.mubr.bf16.mxu1 %v1470_v17 }
  0x32   :  { %1382 = vmatmul.mubr.bf16.gmra.mrb[8].mxu0 %v1471_v18  ;;  %1414 = vmatmul.mubr.bf16.gmra.mrb[8].mxu1 %v1472_v19 }
  0x33   :  { %1385 = vmatprep.mubr.bf16.mxu0 %v1473_v20  ;;  %1417 = vmatprep.mubr.bf16.mxu1 %v1474_v21 }
  0x3a   :  { %1386 = vmatmul.mubr.bf16.gmra.mrb[12].mxu0 %v1475_v22  ;;  %1418 = vmatmul.mubr.bf16.gmra.mrb[12].mxu1 %v1476_v23 }
  0x3b   :  { %1389 = vmatprep.mubr.bf16.mxu0 %v1477_v24  ;;  %1421 = vmatprep.mubr.bf16.mxu1 %v1478_v25 }
  0x42   :  { %1390 = vmatmul.mubr.bf16.gmra.mrb[16].mxu0 %v1479_v26  ;;  %1422 = vmatmul.mubr.bf16.gmra.mrb[16].mxu1 %v1480_v27 }
  0x43   :  { %1393 = vmatprep.mubr.bf16.mxu0 %v1481_v28  ;;  %1425 = vmatprep.mubr.bf16.mxu1 %v1482_v29 }
  0x4a   :  { %1394 = vmatmul.mubr.bf16.gmra.mrb[20].mxu0 %v1483_v30  ;;  %1426 = vmatmul.mubr.bf16.gmra.mrb[20].mxu1 %v1484_v31 }
  0x4b   :  { %1397 = vmatprep.mubr.bf16.mxu0 %v1485_v32  ;;  %1429 = vmatprep.mubr.bf16.mxu1 %v1486_v33 }
  0x52   :  { %1398 = vmatmul.mubr.bf16.gmra.mrb[24].mxu0 %v1487_v34  ;;  %1430 = vmatmul.mubr.bf16.gmra.mrb[24].mxu1 %v1488_v35 }
  0x53   :  { %1401 = vmatprep.mubr.bf16.mxu0 %v1489_v36  ;;  %1433 = vmatprep.mubr.bf16.mxu1 %v1490_v37 }
  0x5a   :  { %1402 = vmatmul.mubr.bf16.gmra.mrb[28].mxu0 %v1491_v38  ;;  %1434 = vmatmul.mubr.bf16.gmra.mrb[28].mxu1 %v1492_v39 }
  0xf5   :  { %v1375_v41 = vpop.f32.mrb[0].mxu0  ;;  %v1407_v42 = vpop.f32.mrb[0].mxu1 }
  0xf6   :  { %v385_v43 = vadd.f32 %v1375_v41, %v1636_v40  ;;  %v513_v44 = vadd.f32 %v1407_v42, %v1636_v40  ;;  %v376_v45 = vpop.f32.mrb[1].mxu0  ;;  %v504_v46 = vpop.f32.mrb[1].mxu1 }
  0xf7   :  { %v377_v47 = vadd.f32 %v1636_v40, %v376_v45  ;;  %v505_v48 = vadd.f32 %v1636_v40, %v504_v46  ;;  %v1376_v49 = vpop.f32.mrb[2].mxu0  ;;  %v1408_v50 = vpop.f32.mrb[2].mxu1 }
  0xf8   :  { %vm633_vm1 = vcmp.gt.f32.partialorder %v385_v43, 0.0  ;;  %v697_v51 = vmul.f32 0.2, %v385_v43  ;;  %vm665_vm2 = vcmp.gt.f32.partialorder %v513_v44, 0.0  ;;  %v729_v52 = vmul.f32 0.2, %v513_v44 }
  0xf9   :  { %vm631_vm3 = vcmp.gt.f32.partialorder %v377_v47, 0.0  ;;  %v695_v53 = vmul.f32 0.2, %v377_v47  ;;  %vm663_vm4 = vcmp.gt.f32.partialorder %v505_v48, 0.0  ;;  %v727_v54 = vmul.f32 0.2, %v505_v48 }
  0xfa   :  { %v761_v55 = vsel %vm633_vm1, %v385_v43, %v697_v51  ;;  %v793_v56 = vsel %vm665_vm2, %v513_v44, %v729_v52  ;;  %v388_v57 = vadd.f32 %v1376_v49, %v1636_v40  ;;  %v516_v58 = vadd.f32 %v1408_v50, %v1636_v40  ;;  %v379_v59 = vpop.f32.mrb[3].mxu0  ;;  %v507_v60 = vpop.f32.mrb[3].mxu1 }
  0xfb   :  { %v1255_v61 = vpack.c.bf16 %v761_v55, %v761_v55  ;;  %v1287_v62 = vpack.c.bf16 %v793_v56, %v793_v56  ;;  %v759_v63 = vsel %vm631_vm3, %v377_v47, %v695_v53  ;;  %v791_v0 = vsel %vm663_vm4, %v505_v48, %v727_v54 }
  0xfc   :  { %v1253_v1 = vpack.c.bf16 %v759_v63, %v759_v63  ;;  %v1285_v2 = vpack.c.bf16 %v791_v0, %v791_v0  ;;  %vm634_vm5 = vcmp.gt.f32.partialorder %v388_v57, 0.0  ;;  %v698_v3 = vmul.f32 0.2, %v388_v57 }
  0xfd   :  { %1082 = vst.msk [vmem:[%s2040_s3 + $0x8] sm:$0xf] %vm1079_vm0, %v1255_v61  ;;  %1114 = vst.msk [vmem:[%s2040_s3 + $0x88] sm:$0xf] %vm1079_vm0, %v1287_v62  ;;  %vm666_vm6 = vcmp.gt.f32.partialorder %v516_v58, 0.0  ;;  %v380_v5 = vadd.f32 %v1636_v40, %v379_v59  ;;  %v508_v6 = vadd.f32 %v1636_v40, %v507_v60  ;;  %v1379_v7 = vpop.f32.mrb[4].mxu0 }
  0xfe   :  { %v730_v4 = vmul.f32 0.2, %v516_v58  ;;  %v1411_v8 = vpop.f32.mrb[4].mxu1  ;;  %1080 = vst.msk [vmem:[%s2040_s3] sm:$0xf] %vm1079_vm0, %v1253_v1  ;;  %v762_v9 = vsel %vm634_vm5, %v388_v57, %v698_v3  ;;  %v401_v10 = vadd.f32 %v1379_v7, %v1636_v40  ;;  %v392_v12 = vpop.f32.mrb[5].mxu0 }
  0xff   :  { %1112 = vst.msk [vmem:[%s2040_s3 + $0x80] sm:$0xf] %vm1079_vm0, %v1285_v2  ;;  %v529_v11 = vadd.f32 %v1411_v8, %v1636_v40  ;;  %v520_v13 = vpop.f32.mrb[5].mxu1  ;;  %v1256_v14 = vpack.c.bf16 %v762_v9, %v762_v9  ;;  %vm632_vm7 = vcmp.gt.f32.partialorder %v380_v5, 0.0  ;;  %v696_v16 = vmul.f32 0.2, %v380_v5 }
 0x100   :  { %v794_v15 = vsel %vm666_vm6, %v516_v58, %v730_v4  ;;  %v1380_v17 = vpop.f32.mrb[6].mxu0  ;;  %v1412_v18 = vpop.f32.mrb[6].mxu1  ;;  %vm664_vm8 = vcmp.gt.f32.partialorder %v508_v6, 0.0  ;;  %v728_v20 = vmul.f32 0.2, %v508_v6  ;;  %vm637_vm9 = vcmp.gt.f32.partialorder %v401_v10, 0.0 }
 0x101   :  { %v1288_v19 = vpack.c.bf16 %v794_v15, %v794_v15  ;;  %v395_v21 = vpop.f32.mrb[7].mxu0  ;;  %v523_v22 = vpop.f32.mrb[7].mxu1  ;;  %1083 = vst.msk [vmem:[%s2040_s3 + $0xc] sm:$0xf] %vm1079_vm0, %v1256_v14  ;;  %v760_v23 = vsel %vm632_vm7, %v380_v5, %v696_v16  ;;  %v701_v24 = vmul.f32 0.2, %v401_v10  ;;  %v393_v28 = vadd.f32 %v1636_v40, %v392_v12 }
 0x102   :  { %vm669_vm10 = vcmp.gt.f32.partialorder %v529_v11, 0.0  ;;  %v733_v25 = vmul.f32 0.2, %v529_v11  ;;  %v1254_v26 = vpack.c.bf16 %v760_v23, %v760_v23  ;;  %v792_v27 = vsel %vm664_vm8, %v508_v6, %v728_v20 }
 0x103   :  { %1115 = vst.msk [vmem:[%s2040_s3 + $0x8c] sm:$0xf] %vm1079_vm0, %v1288_v19  ;;  %v521_v29 = vadd.f32 %v1636_v40, %v520_v13  ;;  %v1286_v30 = vpack.c.bf16 %v792_v27, %v792_v27  ;;  %v765_v31 = vsel %vm637_vm9, %v401_v10, %v701_v24  ;;  %v404_v33 = vadd.f32 %v1380_v17, %v1636_v40 }
 0x104   :  { %v797_v32 = vsel %vm669_vm10, %v529_v11, %v733_v25  ;;  %1081 = vst.msk [vmem:[%s2040_s3 + $0x4] sm:$0xf] %vm1079_vm0, %v1254_v26  ;;  %v1259_v34 = vpack.c.bf16 %v765_v31, %v765_v31  ;;  %vm635_vm11 = vcmp.gt.f32.partialorder %v393_v28, 0.0  ;;  %v699_v36 = vmul.f32 0.2, %v393_v28 }
 0x105   :  { %v1291_v35 = vpack.c.bf16 %v797_v32, %v797_v32  ;;  %1113 = vst.msk [vmem:[%s2040_s3 + $0x84] sm:$0xf] %vm1079_vm0, %v1286_v30  ;;  %vm667_vm12 = vcmp.gt.f32.partialorder %v521_v29, 0.0  ;;  %v731_v37 = vmul.f32 0.2, %v521_v29  ;;  %vm638_vm13 = vcmp.gt.f32.partialorder %v404_v33, 0.0 }
 0x106   :  { %v702_v38 = vmul.f32 0.2, %v404_v33  ;;  %1086 = vst.msk [vmem:[%s2040_s3 + $0x18] sm:$0xf] %vm1079_vm0, %v1259_v34  ;;  %v763_v39 = vsel %vm635_vm11, %v393_v28, %v699_v36  ;;  %v532_v41 = vadd.f32 %v1412_v18, %v1636_v40  ;;  %v396_v42 = vadd.f32 %v1636_v40, %v395_v21  ;;  %v1383_v44 = vpop.f32.mrb[8].mxu0  ;;  %v1415_v45 = vpop.f32.mrb[8].mxu1 }
 0x107   :  { %1118 = vst.msk [vmem:[%s2040_s3 + $0x98] sm:$0xf] %vm1079_vm0, %v1291_v35  ;;  %v524_v43 = vadd.f32 %v1636_v40, %v523_v22  ;;  %v1257_v46 = vpack.c.bf16 %v763_v39, %v763_v39  ;;  %v795_v47 = vsel %vm667_vm12, %v521_v29, %v731_v37  ;;  %v417_v49 = vadd.f32 %v1383_v44, %v1636_v40  ;;  %v408_v50 = vpop.f32.mrb[9].mxu0  ;;  %v536_v51 = vpop.f32.mrb[9].mxu1 }
 0x108   :  { %v766_v48 = vsel %vm638_vm13, %v404_v33, %v702_v38  ;;  %v1289_v52 = vpack.c.bf16 %v795_v47, %v795_v47  ;;  %vm670_vm14 = vcmp.gt.f32.partialorder %v532_v41, 0.0  ;;  %v734_v54 = vmul.f32 0.2, %v532_v41  ;;  %v1384_v55 = vpop.f32.mrb[10].mxu0  ;;  %v1416_v56 = vpop.f32.mrb[10].mxu1 }
 0x109   :  { %v1260_v53 = vpack.c.bf16 %v766_v48, %v766_v48  ;;  %1084 = vst.msk [vmem:[%s2040_s3 + $0x10] sm:$0xf] %vm1079_vm0, %v1257_v46  ;;  %vm636_vm15 = vcmp.gt.f32.partialorder %v396_v42, 0.0  ;;  %v700_v57 = vmul.f32 0.2, %v396_v42  ;;  %vm668_vm1 = vcmp.gt.f32.partialorder %v524_v43, 0.0 }
 0x10a   :  { %v732_v58 = vmul.f32 0.2, %v524_v43  ;;  %1116 = vst.msk [vmem:[%s2040_s3 + $0x90] sm:$0xf] %vm1079_vm0, %v1289_v52  ;;  %v798_v59 = vsel %vm670_vm14, %v532_v41, %v734_v54  ;;  %vm641_vm2 = vcmp.gt.f32.partialorder %v417_v49, 0.0  ;;  %v545_v61 = vadd.f32 %v1415_v45, %v1636_v40  ;;  %v411_v62 = vpop.f32.mrb[11].mxu0 }
 0x10b   :  { %1087 = vst.msk [vmem:[%s2040_s3 + $0x1c] sm:$0xf] %vm1079_vm0, %v1260_v53  ;;  %v705_v60 = vmul.f32 0.2, %v417_v49  ;;  %v539_v63 = vpop.f32.mrb[11].mxu1  ;;  %v1292_v0 = vpack.c.bf16 %v798_v59, %v798_v59  ;;  %v764_v1 = vsel %vm636_vm15, %v396_v42, %v700_v57  ;;  %v409_v3 = vadd.f32 %v1636_v40, %v408_v50 }
 0x10c   :  { %v796_v2 = vsel %vm668_vm1, %v524_v43, %v732_v58  ;;  %v1258_v4 = vpack.c.bf16 %v764_v1, %v764_v1  ;;  %vm673_vm3 = vcmp.gt.f32.partialorder %v545_v61, 0.0  ;;  %v737_v8 = vmul.f32 0.2, %v545_v61 }
 0x10d   :  { %v1290_v5 = vpack.c.bf16 %v796_v2, %v796_v2  ;;  %v769_v6 = vsel %vm641_vm2, %v417_v49, %v705_v60  ;;  %1119 = vst.msk [vmem:[%s2040_s3 + $0x9c] sm:$0xf] %vm1079_vm0, %v1292_v0  ;;  %vm639_vm4 = vcmp.gt.f32.partialorder %v409_v3, 0.0  ;;  %v703_v9 = vmul.f32 0.2, %v409_v3  ;;  %v1387_v10 = vpop.f32.mrb[12].mxu0 }
 0x10e   :  { %v1263_v7 = vpack.c.bf16 %v769_v6, %v769_v6  ;;  %1085 = vst.msk [vmem:[%s2040_s3 + $0x14] sm:$0xf] %vm1079_vm0, %v1258_v4  ;;  %v537_v11 = vadd.f32 %v1636_v40, %v536_v51  ;;  %v420_v12 = vadd.f32 %v1384_v55, %v1636_v40  ;;  %v548_v13 = vadd.f32 %v1416_v56, %v1636_v40  ;;  %v1419_v15 = vpop.f32.mrb[12].mxu1  ;;  %v424_v16 = vpop.f32.mrb[13].mxu0 }
 0x10f   :  { %1117 = vst.msk [vmem:[%s2040_s3 + $0x94] sm:$0xf] %vm1079_vm0, %v1290_v5  ;;  %v412_v14 = vadd.f32 %v1636_v40, %v411_v62  ;;  %v801_v17 = vsel %vm673_vm3, %v545_v61, %v737_v8  ;;  %v767_v18 = vsel %vm639_vm4, %v409_v3, %v703_v9  ;;  %v540_v19 = vadd.f32 %v1636_v40, %v539_v63  ;;  %v552_v21 = vpop.f32.mrb[13].mxu1  ;;  %v1388_v22 = vpop.f32.mrb[14].mxu0 }
 0x110   :  { %1090 = vst.msk [vmem:[%s2040_s3 + $0x28] sm:$0xf] %vm1079_vm0, %v1263_v7  ;;  %v433_v20 = vadd.f32 %v1387_v10, %v1636_v40  ;;  %v1295_v23 = vpack.c.bf16 %v801_v17, %v801_v17  ;;  %v1261_v24 = vpack.c.bf16 %v767_v18, %v767_v18  ;;  %vm671_vm5 = vcmp.gt.f32.partialorder %v537_v11, 0.0  ;;  %v1420_v26 = vpop.f32.mrb[14].mxu1  ;;  %v427_v27 = vpop.f32.mrb[15].mxu0 }
 0x111   :  { %v735_v25 = vmul.f32 0.2, %v537_v11  ;;  %vm642_vm6 = vcmp.gt.f32.partialorder %v420_v12, 0.0  ;;  %v706_v28 = vmul.f32 0.2, %v420_v12  ;;  %vm674_vm7 = vcmp.gt.f32.partialorder %v548_v13, 0.0 }
 0x112   :  { %v738_v29 = vmul.f32 0.2, %v548_v13  ;;  %1122 = vst.msk [vmem:[%s2040_s3 + $0xa8] sm:$0xf] %vm1079_vm0, %v1295_v23  ;;  %1088 = vst.msk [vmem:[%s2040_s3 + $0x20] sm:$0xf] %vm1079_vm0, %v1261_v24  ;;  %v561_v44 = vadd.f32 %v1419_v15, %v1636_v40  ;;  %v425_v48 = vadd.f32 %v1636_v40, %v424_v16  ;;  %v553_v49 = vadd.f32 %v1636_v40, %v552_v21 }
 0x113   :  { %v799_v30 = vsel %vm671_vm5, %v537_v11, %v735_v25  ;;  %vm640_vm8 = vcmp.gt.f32.partialorder %v412_v14, 0.0  ;;  %v704_v31 = vmul.f32 0.2, %v412_v14  ;;  %vm672_vm9 = vcmp.gt.f32.partialorder %v540_v19, 0.0  ;;  %v555_v32 = vpop.f32.mrb[15].mxu1 }
 0x114   :  { %v1293_v33 = vpack.c.bf16 %v799_v30, %v799_v30  ;;  %v770_v34 = vsel %vm642_vm6, %v420_v12, %v706_v28  ;;  %v802_v35 = vsel %vm674_vm7, %v548_v13, %v738_v29  ;;  %v736_v36 = vmul.f32 0.2, %v540_v19 }
 0x115   :  { %v1264_v37 = vpack.c.bf16 %v770_v34, %v770_v34  ;;  %v1296_v38 = vpack.c.bf16 %v802_v35, %v802_v35  ;;  %v768_v39 = vsel %vm640_vm8, %v412_v14, %v704_v31  ;;  %vm645_vm10 = vcmp.gt.f32.partialorder %v433_v20, 0.0  ;;  %v1391_v45 = vpop.f32.mrb[16].mxu0  ;;  %v1423_v46 = vpop.f32.mrb[16].mxu1 }
 0x116   :  { %1120 = vst.msk [vmem:[%s2040_s3 + $0xa0] sm:$0xf] %vm1079_vm0, %v1293_v33  ;;  %v1262_v41 = vpack.c.bf16 %v768_v39, %v768_v39  ;;  %v800_v42 = vsel %vm672_vm9, %v540_v19, %v736_v36  ;;  %v709_v43 = vmul.f32 0.2, %v433_v20  ;;  %v436_v50 = vadd.f32 %v1388_v22, %v1636_v40  ;;  %v440_v51 = vpop.f32.mrb[17].mxu0  ;;  %v568_v52 = vpop.f32.mrb[17].mxu1 }
 0x117   :  { %1091 = vst.msk [vmem:[%s2040_s3 + $0x2c] sm:$0xf] %vm1079_vm0, %v1264_v37  ;;  %1123 = vst.msk [vmem:[%s2040_s3 + $0xac] sm:$0xf] %vm1079_vm0, %v1296_v38  ;;  %v1294_v47 = vpack.c.bf16 %v800_v42, %v800_v42  ;;  %vm677_vm11 = vcmp.gt.f32.partialorder %v561_v44, 0.0  ;;  %v564_v55 = vadd.f32 %v1420_v26, %v1636_v40  ;;  %v1762_v56 = vpop.f32.mrb[18].mxu0  ;;  %v428_v7 = vadd.f32 %v1636_v40, %v427_v27 }
 0x118   :  { %1089 = vst.msk [vmem:[%s2040_s3 + $0x24] sm:$0xf] %vm1079_vm0, %v1262_v41  ;;  %v773_v53 = vsel %vm645_vm10, %v433_v20, %v709_v43  ;;  %v741_v54 = vmul.f32 0.2, %v561_v44  ;;  %v1764_v57 = vpop.f32.mrb[18].mxu1  ;;  %vm643_vm12 = vcmp.gt.f32.partialorder %v425_v48, 0.0  ;;  %v556_v11 = vadd.f32 %v1636_v40, %v555_v32 }
 0x119   :  { %1121 = vst.msk [vmem:[%s2040_s3 + $0xa4] sm:$0xf] %vm1079_vm0, %v1294_v47  ;;  %v1267_v58 = vpack.c.bf16 %v773_v53, %v773_v53  ;;  %v707_v59 = vmul.f32 0.2, %v425_v48  ;;  %vm675_vm13 = vcmp.gt.f32.partialorder %v553_v49, 0.0  ;;  %v1770_v60 = vpop.f32.mrb[19].mxu0  ;;  %v449_v14 = vadd.f32 %v1391_v45, %v1636_v40 }
 0x11a   :  { %v1772_v61 = vpop.f32.mrb[19].mxu1  ;;  %v805_v62 = vsel %vm677_vm11, %v561_v44, %v741_v54  ;;  %v739_v63 = vmul.f32 0.2, %v553_v49  ;;  %vm646_vm14 = vcmp.gt.f32.partialorder %v436_v50, 0.0  ;;  %v710_v0 = vmul.f32 0.2, %v436_v50 }
 0x11b   :  { %1094 = vst.msk [vmem:[%s2040_s3 + $0x38] sm:$0xf] %vm1079_vm0, %v1267_v58  ;;  %v1299_v1 = vpack.c.bf16 %v805_v62, %v805_v62  ;;  %v771_v2 = vsel %vm643_vm12, %v425_v48, %v707_v59  ;;  %vm678_vm15 = vcmp.gt.f32.partialorder %v564_v55, 0.0  ;;  %v742_v3 = vmul.f32 0.2, %v564_v55 }
 0x11c   :  { %v1265_v4 = vpack.c.bf16 %v771_v2, %v771_v2  ;;  %v803_v5 = vsel %vm675_vm13, %v553_v49, %v739_v63  ;;  %v774_v6 = vsel %vm646_vm14, %v436_v50, %v710_v0  ;;  %vm644_vm1 = vcmp.gt.f32.partialorder %v428_v7, 0.0 }
 0x11d   :  { %1126 = vst.msk [vmem:[%s2040_s3 + $0xb8] sm:$0xf] %vm1079_vm0, %v1299_v1  ;;  %v1297_v8 = vpack.c.bf16 %v803_v5, %v803_v5  ;;  %v1268_v9 = vpack.c.bf16 %v774_v6, %v774_v6  ;;  %v806_v10 = vsel %vm678_vm15, %v564_v55, %v742_v3  ;;  %v708_v13 = vmul.f32 0.2, %v428_v7  ;;  %v1395_v15 = vpop.f32.mrb[20].mxu0  ;;  %v1427_v16 = vpop.f32.mrb[20].mxu1 }
 0x11e   :  { %1092 = vst.msk [vmem:[%s2040_s3 + $0x30] sm:$0xf] %vm1079_vm0, %v1265_v4  ;;  %v1300_v12 = vpack.c.bf16 %v806_v10, %v806_v10  ;;  %vm676_vm2 = vcmp.gt.f32.partialorder %v556_v11, 0.0  ;;  %v740_v17 = vmul.f32 0.2, %v556_v11  ;;  %v577_v18 = vadd.f32 %v1423_v46, %v1636_v40  ;;  %v456_v20 = vpop.f32.mrb[21].mxu0 }
 0x11f   :  { %1124 = vst.msk [vmem:[%s2040_s3 + $0xb0] sm:$0xf] %vm1079_vm0, %v1297_v8  ;;  %1095 = vst.msk [vmem:[%s2040_s3 + $0x3c] sm:$0xf] %vm1079_vm0, %v1268_v9  ;;  %v441_v19 = vadd.f32 %v1636_v40, %v440_v51  ;;  %v1799_v21 = vpop.f32.mrb[21].mxu1  ;;  %v772_v22 = vsel %vm644_vm1, %v428_v7, %v708_v13  ;;  %vm649_vm3 = vcmp.gt.f32.partialorder %v449_v14, 0.0  ;;  %v569_v24 = vadd.f32 %v1636_v40, %v568_v52 }
 0x120   :  { %1127 = vst.msk [vmem:[%s2040_s3 + $0xbc] sm:$0xf] %vm1079_vm0, %v1300_v12  ;;  %v713_v23 = vmul.f32 0.2, %v449_v14  ;;  %v1806_v25 = vpop.f32.mrb[22].mxu0  ;;  %v1808_v26 = vpop.f32.mrb[22].mxu1  ;;  %v1266_v27 = vpack.c.bf16 %v772_v22, %v772_v22  ;;  %v804_v28 = vsel %vm676_vm2, %v556_v11, %v740_v17  ;;  %v452_v41 = vadd.f32 %v1762_v56, %v1636_v40 }
 0x121   :  { %vm681_vm4 = vcmp.gt.f32.partialorder %v577_v18, 0.0  ;;  %v745_v29 = vmul.f32 0.2, %v577_v18  ;;  %v1810_v30 = vpop.f32.mrb[23].mxu0  ;;  %v1812_v31 = vpop.f32.mrb[23].mxu1  ;;  %v1298_v32 = vpack.c.bf16 %v804_v28, %v804_v28  ;;  %vm647_vm5 = vcmp.gt.f32.partialorder %v441_v19, 0.0 }
 0x122   :  { %v777_v33 = vsel %vm649_vm3, %v449_v14, %v713_v23  ;;  %v711_v34 = vmul.f32 0.2, %v441_v19  ;;  %1093 = vst.msk [vmem:[%s2040_s3 + $0x34] sm:$0xf] %vm1079_vm0, %v1266_v27  ;;  %vm679_vm6 = vcmp.gt.f32.partialorder %v569_v24, 0.0  ;;  %v580_v42 = vadd.f32 %v1764_v57, %v1636_v40 }
 0x123   :  { %v1271_v35 = vpack.c.bf16 %v777_v33, %v777_v33  ;;  %v809_v36 = vsel %vm681_vm4, %v577_v18, %v745_v29  ;;  %v743_v37 = vmul.f32 0.2, %v569_v24  ;;  %1125 = vst.msk [vmem:[%s2040_s3 + $0xb4] sm:$0xf] %vm1079_vm0, %v1298_v32  ;;  %v444_v45 = vadd.f32 %v1636_v40, %v1770_v60 }
 0x124   :  { %v1303_v38 = vpack.c.bf16 %v809_v36, %v809_v36  ;;  %v775_v39 = vsel %vm647_vm5, %v441_v19, %v711_v34  ;;  %v572_v46 = vadd.f32 %v1636_v40, %v1772_v61  ;;  %vm650_vm7 = vcmp.gt.f32.partialorder %v452_v41, 0.0 }
 0x125   :  { %1098 = vst.msk [vmem:[%s2040_s3 + $0x48] sm:$0xf] %vm1079_vm0, %v1271_v35  ;;  %v1269_v43 = vpack.c.bf16 %v775_v39, %v775_v39  ;;  %v807_v44 = vsel %vm679_vm6, %v569_v24, %v743_v37  ;;  %v714_v48 = vmul.f32 0.2, %v452_v41  ;;  %vm682_vm8 = vcmp.gt.f32.partialorder %v580_v42, 0.0  ;;  %v1838_v49 = vpop.f32.mrb[24].mxu0 }
 0x126   :  { %1130 = vst.msk [vmem:[%s2040_s3 + $0xc8] sm:$0xf] %vm1079_vm0, %v1303_v38  ;;  %v1301_v47 = vpack.c.bf16 %v807_v44, %v807_v44  ;;  %v1840_v50 = vpop.f32.mrb[24].mxu1  ;;  %v746_v51 = vmul.f32 0.2, %v580_v42  ;;  %vm648_vm9 = vcmp.gt.f32.partialorder %v444_v45, 0.0  ;;  %v465_v55 = vadd.f32 %v1395_v15, %v1636_v40 }
 0x127   :  { %1096 = vst.msk [vmem:[%s2040_s3 + $0x40] sm:$0xf] %vm1079_vm0, %v1269_v43  ;;  %v712_v52 = vmul.f32 0.2, %v444_v45  ;;  %vm680_vm10 = vcmp.gt.f32.partialorder %v572_v46, 0.0  ;;  %v778_v53 = vsel %vm650_vm7, %v452_v41, %v714_v48  ;;  %v593_v56 = vadd.f32 %v1427_v16, %v1636_v40  ;;  %v1852_v57 = vpop.f32.mrb[25].mxu0 }
 0x128   :  { %1128 = vst.msk [vmem:[%s2040_s3 + $0xc0] sm:$0xf] %vm1079_vm0, %v1301_v47  ;;  %v744_v54 = vmul.f32 0.2, %v572_v46  ;;  %v1854_v58 = vpop.f32.mrb[25].mxu1  ;;  %v1272_v59 = vpack.c.bf16 %v778_v53, %v778_v53  ;;  %v810_v60 = vsel %vm682_vm8, %v580_v42, %v746_v51  ;;  %v457_v62 = vadd.f32 %v1636_v40, %v456_v20  ;;  %v1858_v63 = vpop.f32.mrb[26].mxu0 }
 0x129   :  { %v776_v61 = vsel %vm648_vm9, %v444_v45, %v712_v52  ;;  %v1860_v0 = vpop.f32.mrb[26].mxu1  ;;  %v1304_v1 = vpack.c.bf16 %v810_v60, %v810_v60  ;;  %vm653_vm11 = vcmp.gt.f32.partialorder %v465_v55, 0.0  ;;  %v1863_v4 = vpop.f32.mrb[27].mxu0  ;;  %v717_v7 = vmul.f32 0.2, %v465_v55 }
 0x12a   :  { %v1270_v2 = vpack.c.bf16 %v776_v61, %v776_v61  ;;  %v808_v3 = vsel %vm680_vm10, %v572_v46, %v744_v54  ;;  %v1865_v5 = vpop.f32.mrb[27].mxu1  ;;  %1099 = vst.msk [vmem:[%s2040_s3 + $0x4c] sm:$0xf] %vm1079_vm0, %v1272_v59  ;;  %vm685_vm12 = vcmp.gt.f32.partialorder %v593_v56, 0.0  ;;  %v749_v8 = vmul.f32 0.2, %v593_v56 }
 0x12b   :  { %v1302_v6 = vpack.c.bf16 %v808_v3, %v808_v3  ;;  %1131 = vst.msk [vmem:[%s2040_s3 + $0xcc] sm:$0xf] %vm1079_vm0, %v1304_v1  ;;  %vm651_vm13 = vcmp.gt.f32.partialorder %v457_v62, 0.0  ;;  %v715_v9 = vmul.f32 0.2, %v457_v62  ;;  %v585_v10 = vadd.f32 %v1636_v40, %v1799_v21 }
 0x12c   :  { %1097 = vst.msk [vmem:[%s2040_s3 + $0x44] sm:$0xf] %vm1079_vm0, %v1270_v2  ;;  %v468_v11 = vadd.f32 %v1806_v25, %v1636_v40  ;;  %v781_v12 = vsel %vm653_vm11, %v465_v55, %v717_v7  ;;  %v813_v13 = vsel %vm685_vm12, %v593_v56, %v749_v8  ;;  %v596_v14 = vadd.f32 %v1808_v26, %v1636_v40 }
 0x12d   :  { %1129 = vst.msk [vmem:[%s2040_s3 + $0xc4] sm:$0xf] %vm1079_vm0, %v1302_v6  ;;  %v460_v15 = vadd.f32 %v1636_v40, %v1810_v30  ;;  %v1275_v16 = vpack.c.bf16 %v781_v12, %v781_v12  ;;  %v1307_v17 = vpack.c.bf16 %v813_v13, %v813_v13  ;;  %v779_v18 = vsel %vm651_vm13, %v457_v62, %v715_v9  ;;  %v1891_v19 = vpop.f32.mrb[28].mxu0  ;;  %v1893_v20 = vpop.f32.mrb[28].mxu1 }
 0x12e   :  { %vm683_vm14 = vcmp.gt.f32.partialorder %v585_v10, 0.0  ;;  %v1273_v21 = vpack.c.bf16 %v779_v18, %v779_v18  ;;  %v747_v22 = vmul.f32 0.2, %v585_v10  ;;  %vm654_vm15 = vcmp.gt.f32.partialorder %v468_v11, 0.0  ;;  %v1895_v24 = vpop.f32.mrb[29].mxu0  ;;  %v1913_v32 = vpop.f32.mrb[29].mxu1 }
 0x12f   :  { %v718_v23 = vmul.f32 0.2, %v468_v11  ;;  %1102 = vst.msk [vmem:[%s2040_s3 + $0x58] sm:$0xf] %vm1079_vm0, %v1275_v16  ;;  %1134 = vst.msk [vmem:[%s2040_s3 + $0xd8] sm:$0xf] %vm1079_vm0, %v1307_v17  ;;  %v588_v29 = vadd.f32 %v1636_v40, %v1812_v31  ;;  %v481_v30 = vadd.f32 %v1838_v49, %v1636_v40  ;;  %v609_v45 = vadd.f32 %v1840_v50, %v1636_v40 }
 0x130   :  { %vm686_vm1 = vcmp.gt.f32.partialorder %v596_v14, 0.0  ;;  %v750_v25 = vmul.f32 0.2, %v596_v14  ;;  %vm652_vm2 = vcmp.gt.f32.partialorder %v460_v15, 0.0  ;;  %v716_v26 = vmul.f32 0.2, %v460_v15 }
 0x131   :  { %1100 = vst.msk [vmem:[%s2040_s3 + $0x50] sm:$0xf] %vm1079_vm0, %v1273_v21  ;;  %v811_v27 = vsel %vm683_vm14, %v585_v10, %v747_v22  ;;  %v782_v28 = vsel %vm654_vm15, %v468_v11, %v718_v23  ;;  %v1915_v33 = vpop.f32.mrb[30].mxu0  ;;  %v1917_v38 = vpop.f32.mrb[30].mxu1  ;;  %vm684_vm3 = vcmp.gt.f32.partialorder %v588_v29, 0.0  ;;  %vm657_vm4 = vcmp.gt.f32.partialorder %v481_v30, 0.0 }
 0x132   :  { %v1305_v34 = vpack.c.bf16 %v811_v27, %v811_v27  ;;  %v1276_v35 = vpack.c.bf16 %v782_v28, %v782_v28  ;;  %v814_v36 = vsel %vm686_vm1, %v596_v14, %v750_v25  ;;  %v780_v37 = vsel %vm652_vm2, %v460_v15, %v716_v26  ;;  %v1919_v39 = vpop.f32.mrb[31].mxu0  ;;  %v1921_v31 = vpop.f32.mrb[31].mxu1 }
 0x133   :  { %v1308_v41 = vpack.c.bf16 %v814_v36, %v814_v36  ;;  %v1274_v42 = vpack.c.bf16 %v780_v37, %v780_v37  ;;  %v748_v43 = vmul.f32 0.2, %v588_v29  ;;  %v721_v44 = vmul.f32 0.2, %v481_v30 }
 0x134   :  { %1132 = vst.msk [vmem:[%s2040_s3 + $0xd0] sm:$0xf] %vm1079_vm0, %v1305_v34  ;;  %1103 = vst.msk [vmem:[%s2040_s3 + $0x5c] sm:$0xf] %vm1079_vm0, %v1276_v35  ;;  %v473_v46 = vadd.f32 %v1636_v40, %v1852_v57  ;;  %v601_v48 = vadd.f32 %v1636_v40, %v1854_v58  ;;  %v484_v49 = vadd.f32 %v1858_v63, %v1636_v40  ;;  %vm689_vm5 = vcmp.gt.f32.partialorder %v609_v45, 0.0 }
 0x135   :  { %1135 = vst.msk [vmem:[%s2040_s3 + $0xdc] sm:$0xf] %vm1079_vm0, %v1308_v41  ;;  %1101 = vst.msk [vmem:[%s2040_s3 + $0x54] sm:$0xf] %vm1079_vm0, %v1274_v42  ;;  %v812_v47 = vsel %vm684_vm3, %v588_v29, %v748_v43  ;;  %v612_v50 = vadd.f32 %v1860_v0, %v1636_v40  ;;  %v785_v52 = vsel %vm657_vm4, %v481_v30, %v721_v44  ;;  %v753_v53 = vmul.f32 0.2, %v609_v45 }
 0x136   :  { %v1306_v51 = vpack.c.bf16 %v812_v47, %v812_v47  ;;  %v1279_v54 = vpack.c.bf16 %v785_v52, %v785_v52  ;;  %vm655_vm6 = vcmp.gt.f32.partialorder %v473_v46, 0.0  ;;  %v719_v55 = vmul.f32 0.2, %v473_v46 }
 0x137   :  { %vm687_vm7 = vcmp.gt.f32.partialorder %v601_v48, 0.0  ;;  %v817_v56 = vsel %vm689_vm5, %v609_v45, %v753_v53  ;;  %v751_v57 = vmul.f32 0.2, %v601_v48  ;;  %vm658_vm8 = vcmp.gt.f32.partialorder %v484_v49, 0.0 }
 0x138   :  { %1133 = vst.msk [vmem:[%s2040_s3 + $0xd4] sm:$0xf] %vm1079_vm0, %v1306_v51  ;;  %v722_v58 = vmul.f32 0.2, %v484_v49  ;;  %1106 = vst.msk [vmem:[%s2040_s3 + $0x68] sm:$0xf] %vm1079_vm0, %v1279_v54  ;;  %v1311_v59 = vpack.c.bf16 %v817_v56, %v817_v56  ;;  %v783_v60 = vsel %vm655_vm6, %v473_v46, %v719_v55  ;;  %v476_v1 = vadd.f32 %v1636_v40, %v1863_v4 }
 0x139   :  { %vm690_vm9 = vcmp.gt.f32.partialorder %v612_v50, 0.0  ;;  %v754_v61 = vmul.f32 0.2, %v612_v50  ;;  %v1277_v62 = vpack.c.bf16 %v783_v60, %v783_v60  ;;  %v815_v63 = vsel %vm687_vm7, %v601_v48, %v751_v57 }
 0x13a   :  { %v786_v0 = vsel %vm658_vm8, %v484_v49, %v722_v58  ;;  %1138 = vst.msk [vmem:[%s2040_s3 + $0xe8] sm:$0xf] %vm1079_vm0, %v1311_v59  ;;  %v1309_v2 = vpack.c.bf16 %v815_v63, %v815_v63  ;;  %v604_v7 = vadd.f32 %v1636_v40, %v1865_v5  ;;  %vm656_vm10 = vcmp.gt.f32.partialorder %v476_v1, 0.0 }
 0x13b   :  { %v1280_v3 = vpack.c.bf16 %v786_v0, %v786_v0  ;;  %v818_v6 = vsel %vm690_vm9, %v612_v50, %v754_v61  ;;  %1104 = vst.msk [vmem:[%s2040_s3 + $0x60] sm:$0xf] %vm1079_vm0, %v1277_v62  ;;  %v720_v9 = vmul.f32 0.2, %v476_v1  ;;  %v497_v4 = vadd.f32 %v1891_v19, %v1636_v40 }
 0x13c   :  { %v1312_v8 = vpack.c.bf16 %v818_v6, %v818_v6  ;;  %1136 = vst.msk [vmem:[%s2040_s3 + $0xe0] sm:$0xf] %vm1079_vm0, %v1309_v2  ;;  %vm688_vm11 = vcmp.gt.f32.partialorder %v604_v7, 0.0  ;;  %v752_v5 = vmul.f32 0.2, %v604_v7  ;;  %v625_v10 = vadd.f32 %v1893_v20, %v1636_v40 }
 0x13d   :  { %1107 = vst.msk [vmem:[%s2040_s3 + $0x6c] sm:$0xf] %vm1079_vm0, %v1280_v3  ;;  %v489_v11 = vadd.f32 %v1636_v40, %v1895_v24  ;;  %v784_v12 = vsel %vm656_vm10, %v476_v1, %v720_v9  ;;  %vm661_vm12 = vcmp.gt.f32.partialorder %v497_v4, 0.0  ;;  %v725_v13 = vmul.f32 0.2, %v497_v4 }
 0x13e   :  { %1139 = vst.msk [vmem:[%s2040_s3 + $0xec] sm:$0xf] %vm1079_vm0, %v1312_v8  ;;  %v617_v14 = vadd.f32 %v1636_v40, %v1913_v32  ;;  %v1278_v15 = vpack.c.bf16 %v784_v12, %v784_v12  ;;  %v816_v16 = vsel %vm688_vm11, %v604_v7, %v752_v5  ;;  %vm693_vm13 = vcmp.gt.f32.partialorder %v625_v10, 0.0 }
 0x13f   :  { %v757_v17 = vmul.f32 0.2, %v625_v10  ;;  %v1310_v18 = vpack.c.bf16 %v816_v16, %v816_v16  ;;  %v789_v19 = vsel %vm661_vm12, %v497_v4, %v725_v13  ;;  %vm659_vm14 = vcmp.gt.f32.partialorder %v489_v11, 0.0 }
 0x140   :  { %v723_v20 = vmul.f32 0.2, %v489_v11  ;;  %1105 = vst.msk [vmem:[%s2040_s3 + $0x64] sm:$0xf] %vm1079_vm0, %v1278_v15  ;;  %v1283_v21 = vpack.c.bf16 %v789_v19, %v789_v19  ;;  %vm691_vm15 = vcmp.gt.f32.partialorder %v617_v14, 0.0  ;;  %v500_v26 = vadd.f32 %v1915_v33, %v1636_v40 }
 0x141   :  { %v821_v22 = vsel %vm693_vm13, %v625_v10, %v757_v17  ;;  %v755_v23 = vmul.f32 0.2, %v617_v14  ;;  %1137 = vst.msk [vmem:[%s2040_s3 + $0xe4] sm:$0xf] %vm1079_vm0, %v1310_v18  ;;  %v628_v27 = vadd.f32 %v1917_v38, %v1636_v40  ;;  %v492_v30 = vadd.f32 %v1636_v40, %v1919_v39 }
 0x142   :  { %v1315_v24 = vpack.c.bf16 %v821_v22, %v821_v22  ;;  %v787_v25 = vsel %vm659_vm14, %v489_v11, %v723_v20  ;;  %1110 = vst.msk [vmem:[%s2040_s3 + $0x78] sm:$0xf] %vm1079_vm0, %v1283_v21  ;;  %v620_v32 = vadd.f32 %v1636_v40, %v1921_v31  ;;  %vm662_vm1 = vcmp.gt.f32.partialorder %v500_v26, 0.0 }
 0x143   :  { %v1281_v28 = vpack.c.bf16 %v787_v25, %v787_v25  ;;  %v819_v29 = vsel %vm691_vm15, %v617_v14, %v755_v23  ;;  %v726_v34 = vmul.f32 0.2, %v500_v26  ;;  %vm694_vm2 = vcmp.gt.f32.partialorder %v628_v27, 0.0 }
 0x144   :  { %1142 = vst.msk [vmem:[%s2040_s3 + $0xf8] sm:$0xf] %vm1079_vm0, %v1315_v24  ;;  %v1313_v33 = vpack.c.bf16 %v819_v29, %v819_v29  ;;  %v758_v35 = vmul.f32 0.2, %v628_v27  ;;  %vm660_vm3 = vcmp.gt.f32.partialorder %v492_v30, 0.0  ;;  %vm692_vm4 = vcmp.gt.f32.partialorder %v620_v32, 0.0 }
 0x145   :  { %1108 = vst.msk [vmem:[%s2040_s3 + $0x70] sm:$0xf] %vm1079_vm0, %v1281_v28  ;;  %v724_v36 = vmul.f32 0.2, %v492_v30  ;;  %v790_v40 = vsel %vm662_vm1, %v500_v26, %v726_v34  ;;  %v756_v37 = vmul.f32 0.2, %v620_v32 }
 0x146   :  { %1140 = vst.msk [vmem:[%s2040_s3 + $0xf0] sm:$0xf] %vm1079_vm0, %v1313_v33  ;;  %v1284_v38 = vpack.c.bf16 %v790_v40, %v790_v40  ;;  %v822_v39 = vsel %vm694_vm2, %v628_v27, %v758_v35 }
 0x147   :  { %v788_v41 = vsel %vm660_vm3, %v492_v30, %v724_v36  ;;  %v1316_v42 = vpack.c.bf16 %v822_v39, %v822_v39  ;;  %v820_v31 = vsel %vm692_vm4, %v620_v32, %v756_v37 }
 0x148   :  { %v1282_v43 = vpack.c.bf16 %v788_v41, %v788_v41  ;;  %1111 = vst.msk [vmem:[%s2040_s3 + $0x7c] sm:$0xf] %vm1079_vm0, %v1284_v38  ;;  %v1314_v44 = vpack.c.bf16 %v820_v31, %v820_v31 }
 0x149   :  { %1143 = vst.msk [vmem:[%s2040_s3 + $0xfc] sm:$0xf] %vm1079_vm0, %v1316_v42 }
 0x14a   :  { %1109 = vst.msk [vmem:[%s2040_s3 + $0x74] sm:$0xf] %vm1079_vm0, %v1282_v43  ;;  %1141 = vst.msk [vmem:[%s2040_s3 + $0xf4] sm:$0xf] %vm1079_vm0, %v1314_v44 }

// kernel: discriminator_forward.10
= control target key start
LH: loop header
LB: loop body
LE: loop exit
PB: predicated region body
PF: predicated region fallthrough
CT: control target
= control target key end

     0   :  { %v80_v21 = vlaneseq  ;;  %s509_s1 = inlined_call_operand.vmem [shape: f32[8,128], index: 1, kind: input, shape index: {}]   ;;  %s510_s2 = inlined_call_operand.vmem [shape: f32[8,128], index: 2, kind: input, shape index: {}]   ;;  %s511_s0 = inlined_call_operand.vmem [shape: bf16[128,128], index: 0, kind: input, shape index: {}]   ;;  %s512_s3 = inlined_call_operand.vmem [shape: f32[1,128], index: 3, kind: input, shape index: {}]   ;;  %s513_s4 = inlined_call_operand.vmem [shape: f32[1,128], index: 4, kind: input, shape index: {}]   ;;  %s514_s5 = inlined_call_operand.vmem [shape: bf16[128,128], index: 5, kind: output, shape index: {}]  }
   0x1   :  { %v20_v0 = vld [vmem:[%s509_s1] sm:$0xff]  ;;  %v359_v24 = vld [vmem:[%s511_s0 + $0x8] sm:$0xff]   ;;  %v360_v26 = vld [vmem:[%s511_s0 + $0x10] sm:$0xff]  }
   0x2   :  { %v28_v1 = vld [vmem:[%s510_s2] sm:$0xff]  ;;  %v21_v2 = vrot.slane %v20_v0, 4  ;;  %v81_v22 = vshrl.u32 %v80_v21, 7  ;;  %v361_v28 = vld [vmem:[%s511_s0 + $0x18] sm:$0xff]   ;;  %v293_v33 = vunpack.c.l.bf16 %v359_v24  ;;  %v363_v34 = vld [vmem:[%s511_s0 + $0x28] sm:$0xff]   ;;  %v294_v36 = vunpack.c.h.bf16 %v359_v24 }
   0x3   :  { %v29_v3 = vrot.slane %v28_v1, 4  ;;  %v288_v23 = vld [vmem:[%s511_s0] sm:$0xff]   ;;  %v297_v37 = vunpack.c.l.bf16 %v360_v26  ;;  %v298_v38 = vunpack.c.h.bf16 %v360_v26  ;;  %v364_v39 = vld [vmem:[%s511_s0 + $0x30] sm:$0xff]   ;;  %v438_v40 = vld [vmem:[%s511_s0 + $0x38] sm:$0xff]   ;;  %v301_v42 = vunpack.c.l.bf16 %v361_v28 }
   0x4   :  { %v22_v4 = vadd.f32 %v21_v2, %v20_v0  ;;  %v40_v25 = vld [vmem:[%s512_s3] sm:$0x1]  ;;  %v82_v27 = vsub.s32 0, %v81_v22  ;;  %v289_v31 = vunpack.c.l.bf16 %v288_v23  ;;  %v290_v32 = vunpack.c.h.bf16 %v288_v23 }
   0x5   :  { %v30_v5 = vadd.f32 %v29_v3, %v28_v1  ;;  %v362_v29 = vld [vmem:[%s511_s0 + $0x20] sm:$0xff]   ;;  %v302_v43 = vunpack.c.h.bf16 %v361_v28  ;;  %v309_v48 = vunpack.c.l.bf16 %v363_v34  ;;  %v310_v49 = vunpack.c.h.bf16 %v363_v34 }
   0x6   :  { %v23_v6 = vrot.slane %v22_v4, 2  ;;  %v44_v41 = vld [vmem:[%s513_s4] sm:$0x1]  ;;  %v305_v44 = vunpack.c.l.bf16 %v362_v29  ;;  %v306_v45 = vunpack.c.h.bf16 %v362_v29  ;;  %v313_v50 = vunpack.c.l.bf16 %v364_v39 }
   0x7   :  { %v31_v7 = vrot.slane %v30_v5, 2  ;;  %v314_v51 = vunpack.c.h.bf16 %v364_v39  ;;  %v317_v52 = vunpack.c.l.bf16 %v438_v40  ;;  %v318_v53 = vunpack.c.h.bf16 %v438_v40 }
   0x8   :  { %v24_v8 = vadd.f32 %v23_v6, %v22_v4 }
   0x9   :  { %v32_v9 = vadd.f32 %v31_v7, %v30_v5 }
   0xa   :  { %v25_v10 = vrot.slane %v24_v8, 1 }
   0xb   :  { %v33_v11 = vrot.slane %v32_v9, 1 }
   0xc   :  { %v26_v12 = vadd.f32 %v25_v10, %v24_v8 }
   0xd   :  { %v34_v13 = vadd.f32 %v33_v11, %v32_v9 }
   0xe   :  { %v27_v14 = vmul.f32 0.125, %v26_v12 }
   0xf   :  { %v35_v15 = vmul.f32 0.125, %v34_v13 }
  0x10   :  { %v36_v16 = vmul.f32 0.0078125, %v27_v14 }
  0x11   :  { %v37_v17 = vmul.f32 0.0078125, %v35_v15 }
  0x12   :  { %v38_v18 = vmul.f32 %v36_v16, %v36_v16 }
  0x14   :  { %v39_v19 = vsub.f32 %v37_v17, %v38_v18 }
  0x16   :  { %v41_v20 = vadd.f32 1e-05, %v39_v19 }
  0x18   :  { %373 = vrsqrt.f32 %v41_v20 }
  0x22   :  { %v374_v30 = vpop.eup %373 }
  0x23   :  { %v43_v35 = vmul.f32 %v374_v30, %v40_v25 }
  0x25   :  { %v45_v46 = vmul.f32 %v43_v35, %v36_v16  ;;  %v443_v47 = vrot.slane %v43_v35, %v82_v27 }
  0x27   :  { %v46_v54 = vsub.f32 %v44_v41, %v45_v46  ;;  %v85_v55 = vmul.f32 %v289_v31, %v443_v47  ;;  %v86_v56 = vmul.f32 %v290_v32, %v443_v47  ;;  %v87_v57 = vmul.f32 %v293_v33, %v443_v47 }
  0x28   :  { %v88_v58 = vmul.f32 %v294_v36, %v443_v47  ;;  %v89_v59 = vmul.f32 %v297_v37, %v443_v47  ;;  %v90_v60 = vmul.f32 %v298_v38, %v443_v47  ;;  %v91_v61 = vmul.f32 %v301_v42, %v443_v47 }
  0x29   :  { %v454_v62 = vrot.slane %v46_v54, %v82_v27  ;;  %v92_v63 = vmul.f32 %v302_v43, %v443_v47  ;;  %v93_v0 = vmul.f32 %v305_v44, %v443_v47  ;;  %v94_v1 = vmul.f32 %v306_v45, %v443_v47 }
  0x2a   :  { %v95_v2 = vmul.f32 %v309_v48, %v443_v47  ;;  %v96_v3 = vmul.f32 %v310_v49, %v443_v47  ;;  %v97_v4 = vmul.f32 %v313_v50, %v443_v47  ;;  %v98_v5 = vmul.f32 %v314_v51, %v443_v47 }
  0x2b   :  { %v107_v6 = vadd.f32 %v454_v62, %v85_v55  ;;  %v108_v7 = vadd.f32 %v454_v62, %v86_v56  ;;  %v109_v8 = vadd.f32 %v454_v62, %v87_v57  ;;  %v110_v9 = vadd.f32 %v454_v62, %v88_v58 }
  0x2c   :  { %v111_v10 = vadd.f32 %v454_v62, %v89_v59  ;;  %v112_v11 = vadd.f32 %v454_v62, %v90_v60  ;;  %v113_v12 = vadd.f32 %v454_v62, %v91_v61  ;;  %v114_v13 = vadd.f32 %v454_v62, %v92_v63 }
  0x2d   :  { %vm123_vm0 = vcmp.gt.f32.partialorder %v107_v6, 0.0  ;;  %vm124_vm1 = vcmp.gt.f32.partialorder %v108_v7, 0.0  ;;  %v139_v14 = vmul.f32 0.2, %v107_v6  ;;  %v140_v15 = vmul.f32 0.2, %v108_v7 }
  0x2e   :  { %vm125_vm2 = vcmp.gt.f32.partialorder %v109_v8, 0.0  ;;  %vm126_vm3 = vcmp.gt.f32.partialorder %v110_v9, 0.0  ;;  %v141_v16 = vmul.f32 0.2, %v109_v8  ;;  %v142_v17 = vmul.f32 0.2, %v110_v9 }
  0x2f   :  { %v155_v18 = vsel %vm123_vm0, %v107_v6, %v139_v14  ;;  %v156_v19 = vsel %vm124_vm1, %v108_v7, %v140_v15  ;;  %vm127_vm4 = vcmp.gt.f32.partialorder %v111_v10, 0.0  ;;  %vm128_vm5 = vcmp.gt.f32.partialorder %v112_v11, 0.0 }
  0x30   :  { %v322_v20 = vpack.c.bf16 %v156_v19, %v155_v18  ;;  %v157_v21 = vsel %vm125_vm2, %v109_v8, %v141_v16  ;;  %v158_v22 = vsel %vm126_vm3, %v110_v9, %v142_v17  ;;  %v143_v23 = vmul.f32 0.2, %v111_v10 }
  0x31   :  { %v327_v24 = vpack.c.bf16 %v158_v22, %v157_v21  ;;  %v144_v25 = vmul.f32 0.2, %v112_v11  ;;  %vm129_vm6 = vcmp.gt.f32.partialorder %v113_v12, 0.0  ;;  %vm130_vm7 = vcmp.gt.f32.partialorder %v114_v13, 0.0 }
  0x32   :  { %323 = vst [vmem:[%s514_s5] sm:$0xff] %v322_v20   ;;  %v159_v26 = vsel %vm127_vm4, %v111_v10, %v143_v23  ;;  %v145_v27 = vmul.f32 0.2, %v113_v12  ;;  %v146_v28 = vmul.f32 0.2, %v114_v13  ;;  %v115_v29 = vadd.f32 %v454_v62, %v93_v0 }
  0x33   :  { %366 = vst [vmem:[%s514_s5 + $0x8] sm:$0xff] %v327_v24   ;;  %v160_v30 = vsel %vm128_vm5, %v112_v11, %v144_v25  ;;  %v116_v31 = vadd.f32 %v454_v62, %v94_v1  ;;  %v117_v32 = vadd.f32 %v454_v62, %v95_v2  ;;  %v118_v33 = vadd.f32 %v454_v62, %v96_v3 }
  0x34   :  { %v332_v34 = vpack.c.bf16 %v160_v30, %v159_v26  ;;  %v161_v35 = vsel %vm129_vm6, %v113_v12, %v145_v27  ;;  %v162_v36 = vsel %vm130_vm7, %v114_v13, %v146_v28  ;;  %vm131_vm8 = vcmp.gt.f32.partialorder %v115_v29, 0.0 }
  0x35   :  { %v337_v37 = vpack.c.bf16 %v162_v36, %v161_v35  ;;  %vm132_vm9 = vcmp.gt.f32.partialorder %v116_v31, 0.0  ;;  %v147_v38 = vmul.f32 0.2, %v115_v29  ;;  %v148_v39 = vmul.f32 0.2, %v116_v31 }
  0x36   :  { %367 = vst [vmem:[%s514_s5 + $0x10] sm:$0xff] %v332_v34   ;;  %vm133_vm10 = vcmp.gt.f32.partialorder %v117_v32, 0.0  ;;  %vm134_vm11 = vcmp.gt.f32.partialorder %v118_v33, 0.0  ;;  %v149_v41 = vmul.f32 0.2, %v117_v32  ;;  %v119_v45 = vadd.f32 %v454_v62, %v97_v4 }
  0x37   :  { %v150_v42 = vmul.f32 0.2, %v118_v33  ;;  %368 = vst [vmem:[%s514_s5 + $0x18] sm:$0xff] %v337_v37   ;;  %v163_v43 = vsel %vm131_vm8, %v115_v29, %v147_v38  ;;  %v164_v44 = vsel %vm132_vm9, %v116_v31, %v148_v39  ;;  %v120_v46 = vadd.f32 %v454_v62, %v98_v5 }
  0x38   :  { %v342_v48 = vpack.c.bf16 %v164_v44, %v163_v43  ;;  %v165_v49 = vsel %vm133_vm10, %v117_v32, %v149_v41  ;;  %v99_v51 = vmul.f32 %v317_v52, %v443_v47  ;;  %vm135_vm12 = vcmp.gt.f32.partialorder %v119_v45, 0.0 }
  0x39   :  { %v166_v50 = vsel %vm134_vm11, %v118_v33, %v150_v42  ;;  %vm136_vm13 = vcmp.gt.f32.partialorder %v120_v46, 0.0  ;;  %v151_v55 = vmul.f32 0.2, %v119_v45  ;;  %v152_v56 = vmul.f32 0.2, %v120_v46 }
  0x3a   :  { %v347_v54 = vpack.c.bf16 %v166_v50, %v165_v49  ;;  %369 = vst [vmem:[%s514_s5 + $0x20] sm:$0xff] %v342_v48   ;;  %v100_v57 = vmul.f32 %v318_v53, %v443_v47  ;;  %v121_v58 = vadd.f32 %v454_v62, %v99_v51 }
  0x3b   :  { %v167_v52 = vsel %vm135_vm12, %v119_v45, %v151_v55  ;;  %v168_v59 = vsel %vm136_vm13, %v120_v46, %v152_v56 }
  0x3c   :  { %370 = vst [vmem:[%s514_s5 + $0x28] sm:$0xff] %v347_v54   ;;  %v122_v60 = vadd.f32 %v454_v62, %v100_v57  ;;  %vm137_vm14 = vcmp.gt.f32.partialorder %v121_v58, 0.0  ;;  %v153_v61 = vmul.f32 0.2, %v121_v58  ;;  %v352_v63 = vpack.c.bf16 %v168_v59, %v167_v52 }
  0x3e   :  { %vm138_vm15 = vcmp.gt.f32.partialorder %v122_v60, 0.0  ;;  %v154_v0 = vmul.f32 0.2, %v122_v60  ;;  %v169_v1 = vsel %vm137_vm14, %v121_v58, %v153_v61  ;;  %371 = vst [vmem:[%s514_s5 + $0x30] sm:$0xff] %v352_v63  }
  0x40   :  { %v170_v40 = vsel %vm138_vm15, %v122_v60, %v154_v0 }
  0x41   :  { %v357_v47 = vpack.c.bf16 %v170_v40, %v169_v1 }
  0x43   :  { %372 = vst [vmem:[%s514_s5 + $0x38] sm:$0xff] %v357_v47  }

// kernel: discriminator_forward.9
= control target key start
LH: loop header
LB: loop body
LE: loop exit
PB: predicated region body
PF: predicated region fallthrough
CT: control target
= control target key end

     0   :  { %s2465_s1 = inlined_call_operand.vmem [shape: bf16[1024,128], index: 1, kind: input, shape index: {}]   ;;  %s2466_s0 = inlined_call_operand.vmem [shape: bf16[128,1024], index: 0, kind: input, shape index: {}]   ;;  %s2467_s2 = inlined_call_operand.vmem [shape: bf16[128,128], index: 2, kind: output, shape index: {0}]   ;;  %s2468_s3 = inlined_call_operand.vmem [shape: f32[8,128], index: 3, kind: output, shape index: {1}]   ;;  %s2469_s4 = inlined_call_operand.vmem [shape: f32[8,128], index: 4, kind: output, shape index: {2}]  }
   0x1   :  { %v1914_v0 = vld [vmem:[%s2465_s1 + $0x40] sm:$0xff]   ;;  %v1918_v4 = vld [vmem:[%s2465_s1 + $0x48] sm:$0xff]   ;;  %v1922_v8 = vld [vmem:[%s2465_s1 + $0x50] sm:$0xff]  }
   0x2   :  { %v1915_v1 = vld [vmem:[%s2465_s1 + $0xc0] sm:$0xff]   ;;  %1658 = vmatprep.subr.bf16.mxu0 %v1914_v0  ;;  %v1919_v5 = vld [vmem:[%s2465_s1 + $0xc8] sm:$0xff]   ;;  %v1923_v9 = vld [vmem:[%s2465_s1 + $0xd0] sm:$0xff]  }
   0x3   :  { %v1916_v2 = vld [vmem:[%s2465_s1] sm:$0xff]   ;;  %1722 = vmatprep.subr.bf16.mxu1 %v1915_v1  ;;  %v1920_v6 = vld [vmem:[%s2465_s1 + $0x8] sm:$0xff]   ;;  %v1924_v10 = vld [vmem:[%s2465_s1 + $0x10] sm:$0xff]  }
   0x4   :  { %v1917_v3 = vld [vmem:[%s2465_s1 + $0x80] sm:$0xff]   ;;  %1659 = vmatpush3.bf16.msra.mxu0 %v1916_v2  ;;  %v1921_v7 = vld [vmem:[%s2465_s1 + $0x88] sm:$0xff]   ;;  %v1925_v11 = vld [vmem:[%s2465_s1 + $0x90] sm:$0xff]  }
   0x5   :  { %1723 = vmatpush3.bf16.msra.mxu1 %v1917_v3  ;;  %1660 = vmatprep.subr.bf16.mxu0 %v1918_v4  ;;  %v1926_v12 = vld [vmem:[%s2465_s1 + $0x58] sm:$0xff]   ;;  %v1930_v16 = vld [vmem:[%s2465_s1 + $0x60] sm:$0xff]   ;;  %v1934_v20 = vld [vmem:[%s2465_s1 + $0x68] sm:$0xff]  }
   0x6   :  { %1724 = vmatprep.subr.bf16.mxu1 %v1919_v5  ;;  %v1927_v13 = vld [vmem:[%s2465_s1 + $0xd8] sm:$0xff]   ;;  %v1931_v17 = vld [vmem:[%s2465_s1 + $0xe0] sm:$0xff]   ;;  %v1935_v21 = vld [vmem:[%s2465_s1 + $0xe8] sm:$0xff]  }
   0x7   :  { %v1928_v14 = vld [vmem:[%s2465_s1 + $0x18] sm:$0xff]   ;;  %v1932_v18 = vld [vmem:[%s2465_s1 + $0x20] sm:$0xff]   ;;  %v1936_v22 = vld [vmem:[%s2465_s1 + $0x28] sm:$0xff]  }
   0x8   :  { %1661 = vmatpush3.bf16.msra.mxu0 %v1920_v6  ;;  %v1929_v15 = vld [vmem:[%s2465_s1 + $0x98] sm:$0xff]   ;;  %v1933_v19 = vld [vmem:[%s2465_s1 + $0xa0] sm:$0xff]   ;;  %v1937_v23 = vld [vmem:[%s2465_s1 + $0xa8] sm:$0xff]  }
   0x9   :  { %1725 = vmatpush3.bf16.msra.mxu1 %v1921_v7  ;;  %1662 = vmatprep.subr.bf16.mxu0 %v1922_v8  ;;  %v1938_v24 = vld [vmem:[%s2465_s1 + $0x70] sm:$0xff]   ;;  %v1942_v28 = vld [vmem:[%s2465_s1 + $0x78] sm:$0xff]   ;;  %v15_v32 = vld [vmem:[%s2466_s0] sm:$0xff] }
   0xa   :  { %1726 = vmatprep.subr.bf16.mxu1 %v1923_v9  ;;  %v1939_v25 = vld [vmem:[%s2465_s1 + $0xf0] sm:$0xff]   ;;  %v1943_v29 = vld [vmem:[%s2465_s1 + $0xf8] sm:$0xff]   ;;  %v19_v33 = vld [vmem:[%s2466_s0 + $0x20] sm:$0xff] }
   0xb   :  { %v1940_v26 = vld [vmem:[%s2465_s1 + $0x30] sm:$0xff]   ;;  %v1944_v30 = vld [vmem:[%s2465_s1 + $0x38] sm:$0xff]   ;;  %v16_v34 = vld [vmem:[%s2466_s0 + $0x8] sm:$0xff]  ;;  %v1451_v35 = vcombine.low %v15_v32, %v19_v33  ;;  %v1452_v36 = vcombine.high %v15_v32, %v19_v33 }
   0xc   :  { %1663 = vmatpush3.bf16.msra.mxu0 %v1924_v10  ;;  %v1941_v27 = vld [vmem:[%s2465_s1 + $0xb0] sm:$0xff]   ;;  %v1945_v31 = vld [vmem:[%s2465_s1 + $0xb8] sm:$0xff]   ;;  %v20_v37 = vld [vmem:[%s2466_s0 + $0x28] sm:$0xff] }
   0xd   :  { %1727 = vmatpush3.bf16.msra.mxu1 %v1925_v11  ;;  %1664 = vmatprep.subr.bf16.mxu0 %v1926_v12  ;;  %v1453_v38 = vcombine.low %v16_v34, %v20_v37  ;;  %v1454_v39 = vcombine.high %v16_v34, %v20_v37  ;;  %v1946_v40 = vld [vmem:[%s2465_s1 + $0x140] sm:$0xff]   ;;  %v24_v47 = vld [vmem:[%s2466_s0 + $0x48] sm:$0xff]  ;;  %v1954_v62 = vld [vmem:[%s2465_s1 + $0x150] sm:$0xff]  }
   0xe   :  { %1728 = vmatprep.subr.bf16.mxu1 %v1927_v13  ;;  %943 = vmatprep.mubr.bf16.mxu0 %v1452_v36  ;;  %v1947_v41 = vld [vmem:[%s2465_s1 + $0x100] sm:$0xff]   ;;  %v28_v48 = vld [vmem:[%s2466_s0 + $0x68] sm:$0xff]  ;;  %v1955_v63 = vld [vmem:[%s2465_s1 + $0x110] sm:$0xff]  }
   0xf   :  { %1040 = vmatprep.mubr.bf16.mxu1 %v1454_v39  ;;  %v1948_v42 = vld [vmem:[%s2465_s1 + $0x1c0] sm:$0xff]   ;;  %v1462_v49 = vcombine.high %v24_v47, %v28_v48  ;;  %v1950_v50 = vld [vmem:[%s2465_s1 + $0x148] sm:$0xff]   ;;  %v1461_v53 = vcombine.low %v24_v47, %v28_v48  ;;  %v1956_v0 = vld [vmem:[%s2465_s1 + $0x1d0] sm:$0xff]  }
  0x10   :  { %1665 = vmatpush3.bf16.msra.mxu0 %v1928_v14  ;;  %v1949_v43 = vld [vmem:[%s2465_s1 + $0x180] sm:$0xff]   ;;  %v1951_v52 = vld [vmem:[%s2465_s1 + $0x108] sm:$0xff]   ;;  %v1957_v1 = vld [vmem:[%s2465_s1 + $0x190] sm:$0xff]  }
  0x11   :  { %1729 = vmatpush3.bf16.msra.mxu1 %v1929_v15  ;;  %1666 = vmatprep.subr.bf16.mxu0 %v1930_v16  ;;  %v23_v44 = vld [vmem:[%s2466_s0 + $0x40] sm:$0xff]  ;;  %v1952_v54 = vld [vmem:[%s2465_s1 + $0x1c8] sm:$0xff]   ;;  %v1958_v10 = vld [vmem:[%s2465_s1 + $0x158] sm:$0xff]  }
  0x12   :  { %1730 = vmatprep.subr.bf16.mxu1 %v1931_v17  ;;  %v27_v45 = vld [vmem:[%s2466_s0 + $0x60] sm:$0xff]  ;;  %v1953_v55 = vld [vmem:[%s2465_s1 + $0x188] sm:$0xff]   ;;  %v1959_v11 = vld [vmem:[%s2465_s1 + $0x118] sm:$0xff]  }
  0x13   :  { %v1460_v46 = vcombine.high %v23_v44, %v27_v45  ;;  %v1459_v51 = vcombine.low %v23_v44, %v27_v45  ;;  %v31_v56 = vld [vmem:[%s2466_s0 + $0x80] sm:$0xff]  ;;  %v32_v58 = vld [vmem:[%s2466_s0 + $0x88] sm:$0xff]  ;;  %v1960_v12 = vld [vmem:[%s2465_s1 + $0x1d8] sm:$0xff]  }
  0x14   :  { %1667 = vmatpush3.bf16.msra.mxu0 %v1932_v18  ;;  %v35_v57 = vld [vmem:[%s2466_s0 + $0xa0] sm:$0xff]  ;;  %v36_v59 = vld [vmem:[%s2466_s0 + $0xa8] sm:$0xff]  ;;  %v1961_v13 = vld [vmem:[%s2465_s1 + $0x198] sm:$0xff]  }
  0x15   :  { %1731 = vmatpush3.bf16.msra.mxu1 %v1933_v19  ;;  %1668 = vmatprep.subr.bf16.mxu0 %v1934_v20  ;;  %v1468_v60 = vcombine.high %v31_v56, %v35_v57  ;;  %v1470_v61 = vcombine.high %v32_v58, %v36_v59  ;;  %v1467_v2 = vcombine.low %v31_v56, %v35_v57  ;;  %v39_v3 = vld [vmem:[%s2466_s0 + $0xc0] sm:$0xff]  ;;  %v40_v5 = vld [vmem:[%s2466_s0 + $0xc8] sm:$0xff]  ;;  %v1971_v39 = vld [vmem:[%s2465_s1 + $0x130] sm:$0xff]  }
  0x16   :  { %1732 = vmatprep.subr.bf16.mxu1 %v1935_v21  ;;  %v43_v4 = vld [vmem:[%s2466_s0 + $0xe0] sm:$0xff]  ;;  %v1469_v6 = vcombine.low %v32_v58, %v36_v59  ;;  %v44_v8 = vld [vmem:[%s2466_s0 + $0xe8] sm:$0xff]  ;;  %v1975_v48 = vld [vmem:[%s2465_s1 + $0x138] sm:$0xff]  }
  0x17   :  { %v1476_v7 = vcombine.high %v39_v3, %v43_v4  ;;  %v1478_v9 = vcombine.high %v40_v5, %v44_v8  ;;  %v47_v14 = vld [vmem:[%s2466_s0 + $0x100] sm:$0xff]  ;;  %v48_v16 = vld [vmem:[%s2466_s0 + $0x108] sm:$0xff]  ;;  %v1475_v19 = vcombine.low %v39_v3, %v43_v4  ;;  %v1477_v21 = vcombine.low %v40_v5, %v44_v8  ;;  %v26_v8 = vld [vmem:[%s2466_s0 + $0x58] sm:$0xff] }
  0x18   :  { %1669 = vmatpush3.bf16.msra.mxu0 %v1936_v22  ;;  %v51_v15 = vld [vmem:[%s2466_s0 + $0x120] sm:$0xff]  ;;  %v52_v17 = vld [vmem:[%s2466_s0 + $0x128] sm:$0xff] }
  0x19   :  { %1733 = vmatpush3.bf16.msra.mxu1 %v1937_v23  ;;  %1670 = vmatprep.subr.bf16.mxu0 %v1938_v24  ;;  %v1962_v18 = vld [vmem:[%s2465_s1 + $0x160] sm:$0xff]   ;;  %v1484_v22 = vcombine.high %v47_v14, %v51_v15  ;;  %v1486_v24 = vcombine.high %v48_v16, %v52_v17  ;;  %v1968_v32 = vld [vmem:[%s2465_s1 + $0x1e8] sm:$0xff]   ;;  %v1483_v34 = vcombine.low %v47_v14, %v51_v15  ;;  %v33_v14 = vld [vmem:[%s2466_s0 + $0x90] sm:$0xff] }
  0x1a   :  { %1734 = vmatprep.subr.bf16.mxu1 %v1939_v25  ;;  %v1963_v20 = vld [vmem:[%s2465_s1 + $0x120] sm:$0xff]   ;;  %v1969_v33 = vld [vmem:[%s2465_s1 + $0x1a8] sm:$0xff]   ;;  %v37_v15 = vld [vmem:[%s2466_s0 + $0xb0] sm:$0xff] }
  0x1b   :  { %v1964_v23 = vld [vmem:[%s2465_s1 + $0x1e0] sm:$0xff]   ;;  %v64_v44 = vld [vmem:[%s2466_s0 + $0x188] sm:$0xff] }
  0x1c   :  { %1671 = vmatpush3.bf16.msra.mxu0 %v1940_v26  ;;  %v1965_v25 = vld [vmem:[%s2465_s1 + $0x1a0] sm:$0xff]   ;;  %v68_v45 = vld [vmem:[%s2466_s0 + $0x1a8] sm:$0xff] }
  0x1d   :  { %1735 = vmatpush3.bf16.msra.mxu1 %v1941_v27  ;;  %1672 = vmatprep.subr.bf16.mxu0 %v1942_v28  ;;  %v55_v26 = vld [vmem:[%s2466_s0 + $0x140] sm:$0xff]  ;;  %v1966_v28 = vld [vmem:[%s2465_s1 + $0x168] sm:$0xff]   ;;  %v1501_v59 = vcombine.low %v64_v44, %v68_v45 }
  0x1e   :  { %1736 = vmatprep.subr.bf16.mxu1 %v1943_v29  ;;  %v59_v27 = vld [vmem:[%s2466_s0 + $0x160] sm:$0xff]  ;;  %v56_v29 = vld [vmem:[%s2466_s0 + $0x148] sm:$0xff] }
  0x1f   :  { %v1492_v36 = vcombine.high %v55_v26, %v59_v27  ;;  %v1491_v47 = vcombine.low %v55_v26, %v59_v27  ;;  %v72_v56 = vld [vmem:[%s2466_s0 + $0x1c8] sm:$0xff]  ;;  %v1471_v26 = vcombine.low %v33_v14, %v37_v15 }
  0x20   :  { %1673 = vmatpush3.bf16.msra.mxu0 %v1944_v30  ;;  %v60_v30 = vld [vmem:[%s2466_s0 + $0x168] sm:$0xff] }
  0x21   :  { %1737 = vmatpush3.bf16.msra.mxu1 %v1945_v31  ;;  %1786 = vmatprep.subr.bf16.mxu0 %v1946_v40  ;;  %v1967_v31 = vld [vmem:[%s2465_s1 + $0x128] sm:$0xff]   ;;  %v1494_v37 = vcombine.high %v56_v29, %v60_v30  ;;  %v1972_v40 = vld [vmem:[%s2465_s1 + $0x1f0] sm:$0xff]  }
  0x22   :  { %1850 = vmatprep.subr.bf16.mxu1 %v1948_v42  ;;  %v67_v42 = vld [vmem:[%s2466_s0 + $0x1a0] sm:$0xff]  ;;  %v76_v57 = vld [vmem:[%s2466_s0 + $0x1e8] sm:$0xff] }
  0x23   :  { %944 = vmatmul.mubr.bf16.vlgmr.msra.gmra.mrb[0].mxu0 %v1451_v35  ;;  %v1485_v35 = vcombine.low %v48_v16, %v52_v17  ;;  %v1509_v3 = vcombine.low %v72_v56, %v76_v57  ;;  %v34_v16 = vld [vmem:[%s2466_s0 + $0x98] sm:$0xff] }
  0x24   :  { %1041 = vmatmul.mubr.bf16.vlgmr.msra.gmra.mrb[0].mxu1 %v1453_v38  ;;  %1787 = vmatpush3.bf16.msra.mxu0 %v1947_v41  ;;  %v1970_v38 = vld [vmem:[%s2465_s1 + $0x170] sm:$0xff]   ;;  %v63_v41 = vld [vmem:[%s2466_s0 + $0x180] sm:$0xff]  ;;  %v38_v17 = vld [vmem:[%s2466_s0 + $0xb8] sm:$0xff] }
  0x25   :  { %1851 = vmatpush3.bf16.msra.mxu1 %v1949_v43  ;;  %951 = vmatprep.mubr.bf16.mxu0 %v1460_v46  ;;  %v1973_v43 = vld [vmem:[%s2465_s1 + $0x1b0] sm:$0xff]   ;;  %v1974_v46 = vld [vmem:[%s2465_s1 + $0x178] sm:$0xff]   ;;  %v1499_v58 = vcombine.low %v63_v41, %v67_v42  ;;  %v1473_v27 = vcombine.low %v34_v16, %v38_v17 }
  0x26   :  { %1048 = vmatprep.mubr.bf16.mxu1 %v1462_v49  ;;  %1788 = vmatprep.subr.bf16.mxu0 %v1950_v50  ;;  %v1493_v49 = vcombine.low %v56_v29, %v60_v30  ;;  %v1500_v50 = vcombine.high %v63_v41, %v67_v42  ;;  %v49_v30 = vld [vmem:[%s2466_s0 + $0x110] sm:$0xff]  ;;  %v62_v41 = vld [vmem:[%s2466_s0 + $0x178] sm:$0xff] }
  0x27   :  { %1852 = vmatprep.subr.bf16.mxu1 %v1952_v54  ;;  %v71_v54 = vld [vmem:[%s2466_s0 + $0x1c0] sm:$0xff] }
  0x28   :  { %1789 = vmatpush3.bf16.msra.mxu0 %v1951_v52  ;;  %v1502_v52 = vcombine.high %v64_v44, %v68_v45 }
  0x29   :  { %1853 = vmatpush3.bf16.msra.mxu1 %v1953_v55  ;;  %1790 = vmatprep.subr.bf16.mxu0 %v1954_v62  ;;  %v75_v55 = vld [vmem:[%s2466_s0 + $0x1e0] sm:$0xff]  ;;  %v17_v62 = vld [vmem:[%s2466_s0 + $0x10] sm:$0xff] }
  0x2a   :  { %1854 = vmatprep.subr.bf16.mxu1 %v1956_v0  ;;  %v18_v0 = vld [vmem:[%s2466_s0 + $0x18] sm:$0xff] }
  0x2b   :  { %952 = vmatmul.mubr.bf16.gmra.mrb[4].mxu0 %v1459_v51  ;;  %v1976_v51 = vld [vmem:[%s2465_s1 + $0x1f8] sm:$0xff]  }
  0x2c   :  { %1049 = vmatmul.mubr.bf16.gmra.mrb[4].mxu1 %v1461_v53  ;;  %959 = vmatprep.mubr.bf16.mxu0 %v1468_v60  ;;  %v1977_v53 = vld [vmem:[%s2465_s1 + $0x1b8] sm:$0xff]   ;;  %v1508_v60 = vcombine.high %v71_v54, %v75_v55 }
  0x2d   :  { %1056 = vmatprep.mubr.bf16.mxu1 %v1470_v61  ;;  %1791 = vmatpush3.bf16.msra.mxu0 %v1955_v63  ;;  %v1510_v61 = vcombine.high %v72_v56, %v76_v57  ;;  %v21_v63 = vld [vmem:[%s2466_s0 + $0x30] sm:$0xff]  ;;  %v74_v56 = vld [vmem:[%s2466_s0 + $0x1d8] sm:$0xff] }
  0x2e   :  { %1855 = vmatpush3.bf16.msra.mxu1 %v1957_v1  ;;  %1792 = vmatprep.subr.bf16.mxu0 %v1958_v10  ;;  %v22_v1 = vld [vmem:[%s2466_s0 + $0x38] sm:$0xff]  ;;  %v1456_v4 = vcombine.high %v17_v62, %v21_v63  ;;  %v1455_v10 = vcombine.low %v17_v62, %v21_v63 }
  0x2f   :  { %1856 = vmatprep.subr.bf16.mxu1 %v1960_v12  ;;  %v1458_v5 = vcombine.high %v18_v0, %v22_v1  ;;  %v78_v57 = vld [vmem:[%s2466_s0 + $0x1f8] sm:$0xff] }
  0x30   :  { %v1513_v63 = vcombine.low %v74_v56, %v78_v57 }
  0x31   :  { %1793 = vmatpush3.bf16.msra.mxu0 %v1959_v11  ;;  %v1457_v11 = vcombine.low %v18_v0, %v22_v1 }
  0x32   :  { %1857 = vmatpush3.bf16.msra.mxu1 %v1961_v13  ;;  %1794 = vmatprep.subr.bf16.mxu0 %v1962_v18 }
  0x33   :  { %960 = vmatmul.mubr.bf16.gmra.mrb[8].mxu0 %v1467_v2  ;;  %1858 = vmatprep.subr.bf16.mxu1 %v1964_v23  ;;  %v1507_v2 = vcombine.low %v71_v54, %v75_v55  ;;  %v45_v23 = vld [vmem:[%s2466_s0 + $0xf0] sm:$0xff] }
  0x34   :  { %1057 = vmatmul.mubr.bf16.gmra.mrb[8].mxu1 %v1469_v6  ;;  %967 = vmatprep.mubr.bf16.mxu0 %v1476_v7  ;;  %v25_v6 = vld [vmem:[%s2466_s0 + $0x50] sm:$0xff] }
  0x35   :  { %1064 = vmatprep.mubr.bf16.mxu1 %v1478_v9  ;;  %1795 = vmatpush3.bf16.msra.mxu0 %v1963_v20  ;;  %v29_v7 = vld [vmem:[%s2466_s0 + $0x70] sm:$0xff]  ;;  %v30_v9 = vld [vmem:[%s2466_s0 + $0x78] sm:$0xff]  ;;  %v1472_v20 = vcombine.high %v33_v14, %v37_v15 }
  0x36   :  { %1859 = vmatpush3.bf16.msra.mxu1 %v1965_v25  ;;  %1796 = vmatprep.subr.bf16.mxu0 %v1966_v28  ;;  %v1464_v12 = vcombine.high %v25_v6, %v29_v7  ;;  %v1466_v13 = vcombine.high %v26_v8, %v30_v9  ;;  %v1463_v18 = vcombine.low %v25_v6, %v29_v7  ;;  %v46_v25 = vld [vmem:[%s2466_s0 + $0xf8] sm:$0xff]  ;;  %v73_v54 = vld [vmem:[%s2466_s0 + $0x1d0] sm:$0xff] }
  0x37   :  { %1860 = vmatprep.subr.bf16.mxu1 %v1968_v32  ;;  %v50_v32 = vld [vmem:[%s2466_s0 + $0x118] sm:$0xff]  ;;  %v77_v55 = vld [vmem:[%s2466_s0 + $0x1f0] sm:$0xff] }
  0x38   :  { %v1511_v62 = vcombine.low %v73_v54, %v77_v55 }
  0x39   :  { %1797 = vmatpush3.bf16.msra.mxu0 %v1967_v31  ;;  %v53_v31 = vld [vmem:[%s2466_s0 + $0x130] sm:$0xff] }
  0x3a   :  { %1861 = vmatpush3.bf16.msra.mxu1 %v1969_v33  ;;  %1798 = vmatprep.subr.bf16.mxu0 %v1970_v38  ;;  %v54_v33 = vld [vmem:[%s2466_s0 + $0x138] sm:$0xff]  ;;  %v57_v38 = vld [vmem:[%s2466_s0 + $0x150] sm:$0xff]  ;;  %v1487_v42 = vcombine.low %v49_v30, %v53_v31 }
  0x3b   :  { %968 = vmatmul.mubr.bf16.gmra.mrb[12].mxu0 %v1475_v19  ;;  %1862 = vmatprep.subr.bf16.mxu1 %v1972_v40  ;;  %v1465_v19 = vcombine.low %v26_v8, %v30_v9  ;;  %v58_v40 = vld [vmem:[%s2466_s0 + $0x158] sm:$0xff] }
  0x3c   :  { %1065 = vmatmul.mubr.bf16.gmra.mrb[12].mxu1 %v1477_v21  ;;  %975 = vmatprep.mubr.bf16.mxu0 %v1484_v22  ;;  %v1474_v21 = vcombine.high %v34_v16, %v38_v17  ;;  %v41_v22 = vld [vmem:[%s2466_s0 + $0xd0] sm:$0xff]  ;;  %v1498_v45 = vcombine.high %v58_v40, %v62_v41 }
  0x3d   :  { %1072 = vmatprep.mubr.bf16.mxu1 %v1486_v24  ;;  %1799 = vmatpush3.bf16.msra.mxu0 %v1971_v39  ;;  %v42_v24 = vld [vmem:[%s2466_s0 + $0xd8] sm:$0xff]  ;;  %v1480_v28 = vcombine.high %v41_v22, %v45_v23  ;;  %v61_v39 = vld [vmem:[%s2466_s0 + $0x170] sm:$0xff] }
  0x3e   :  { %1863 = vmatpush3.bf16.msra.mxu1 %v1973_v43  ;;  %1800 = vmatprep.subr.bf16.mxu0 %v1974_v46  ;;  %v1482_v29 = vcombine.high %v42_v24, %v46_v25  ;;  %v1489_v43 = vcombine.low %v50_v32, %v54_v33  ;;  %v1496_v44 = vcombine.high %v57_v38, %v61_v39  ;;  %v65_v46 = vld [vmem:[%s2466_s0 + $0x190] sm:$0xff] }
  0x3f   :  { %1864 = vmatprep.subr.bf16.mxu1 %v1976_v51  ;;  %v1497_v51 = vcombine.low %v58_v40, %v62_v41 }
  0x41   :  { %1801 = vmatpush3.bf16.msra.mxu0 %v1975_v48  ;;  %v66_v48 = vld [vmem:[%s2466_s0 + $0x198] sm:$0xff] }
  0x42   :  { %1865 = vmatpush3.bf16.msra.mxu1 %v1977_v53 }
  0x43   :  { %976 = vmatmul.mubr.bf16.gmra.mrb[16].mxu0 %v1483_v34  ;;  %v1479_v34 = vcombine.low %v41_v22, %v45_v23 }
  0x44   :  { %1073 = vmatmul.mubr.bf16.gmra.mrb[16].mxu1 %v1485_v35  ;;  %983 = vmatprep.mubr.bf16.mxu0 %v1492_v36  ;;  %v1481_v35 = vcombine.low %v42_v24, %v46_v25  ;;  %v1488_v36 = vcombine.high %v49_v30, %v53_v31 }
  0x45   :  { %1080 = vmatprep.mubr.bf16.mxu1 %v1494_v37  ;;  %v1490_v37 = vcombine.high %v50_v32, %v54_v33 }
  0x4b   :  { %984 = vmatmul.mubr.bf16.gmra.mrb[20].mxu0 %v1491_v47  ;;  %v69_v47 = vld [vmem:[%s2466_s0 + $0x1b0] sm:$0xff] }
  0x4c   :  { %1081 = vmatmul.mubr.bf16.gmra.mrb[20].mxu1 %v1493_v49  ;;  %991 = vmatprep.mubr.bf16.mxu0 %v1500_v50  ;;  %v70_v49 = vld [vmem:[%s2466_s0 + $0x1b8] sm:$0xff]  ;;  %v1495_v50 = vcombine.low %v57_v38, %v61_v39 }
  0x4d   :  { %1088 = vmatprep.mubr.bf16.mxu1 %v1502_v52  ;;  %v1504_v52 = vcombine.high %v65_v46, %v69_v47  ;;  %v1506_v53 = vcombine.high %v66_v48, %v70_v49 }
  0x53   :  { %992 = vmatmul.mubr.bf16.gmra.mrb[24].mxu0 %v1499_v58  ;;  %v1503_v58 = vcombine.low %v65_v46, %v69_v47 }
  0x54   :  { %1089 = vmatmul.mubr.bf16.gmra.mrb[24].mxu1 %v1501_v59  ;;  %999 = vmatprep.mubr.bf16.mxu0 %v1508_v60  ;;  %v1505_v59 = vcombine.low %v66_v48, %v70_v49  ;;  %v1512_v60 = vcombine.high %v73_v54, %v77_v55 }
  0x55   :  { %1096 = vmatprep.mubr.bf16.mxu1 %v1510_v61  ;;  %v1514_v61 = vcombine.high %v74_v56, %v78_v57 }
  0x5b   :  { %1000 = vmatmul.mubr.bf16.gmra.mrb[28].mxu0 %v1507_v2 }
  0x5c   :  { %1097 = vmatmul.mubr.bf16.gmra.mrb[28].mxu1 %v1509_v3  ;;  %1137 = vmatprep.mubr.bf16.mxu0 %v1456_v4 }
  0x5d   :  { %1234 = vmatprep.mubr.bf16.mxu1 %v1458_v5 }
  0x63   :  { %1138 = vmatmul.mubr.bf16.vlgmr.msra.gmra.mrb[32].mxu0 %v1455_v10 }
  0x64   :  { %1235 = vmatmul.mubr.bf16.vlgmr.msra.gmra.mrb[32].mxu1 %v1457_v11  ;;  %1145 = vmatprep.mubr.bf16.mxu0 %v1464_v12 }
  0x65   :  { %1242 = vmatprep.mubr.bf16.mxu1 %v1466_v13 }
  0x6b   :  { %1146 = vmatmul.mubr.bf16.gmra.mrb[36].mxu0 %v1463_v18 }
  0x6c   :  { %1243 = vmatmul.mubr.bf16.gmra.mrb[36].mxu1 %v1465_v19  ;;  %1153 = vmatprep.mubr.bf16.mxu0 %v1472_v20 }
  0x6d   :  { %1250 = vmatprep.mubr.bf16.mxu1 %v1474_v21 }
  0x73   :  { %1154 = vmatmul.mubr.bf16.gmra.mrb[40].mxu0 %v1471_v26 }
  0x74   :  { %1251 = vmatmul.mubr.bf16.gmra.mrb[40].mxu1 %v1473_v27  ;;  %1161 = vmatprep.mubr.bf16.mxu0 %v1480_v28 }
  0x75   :  { %1258 = vmatprep.mubr.bf16.mxu1 %v1482_v29 }
  0x7b   :  { %1162 = vmatmul.mubr.bf16.gmra.mrb[44].mxu0 %v1479_v34 }
  0x7c   :  { %1259 = vmatmul.mubr.bf16.gmra.mrb[44].mxu1 %v1481_v35  ;;  %1169 = vmatprep.mubr.bf16.mxu0 %v1488_v36 }
  0x7d   :  { %1266 = vmatprep.mubr.bf16.mxu1 %v1490_v37 }
  0x83   :  { %1170 = vmatmul.mubr.bf16.gmra.mrb[48].mxu0 %v1487_v42 }
  0x84   :  { %1267 = vmatmul.mubr.bf16.gmra.mrb[48].mxu1 %v1489_v43  ;;  %1177 = vmatprep.mubr.bf16.mxu0 %v1496_v44 }
  0x85   :  { %1274 = vmatprep.mubr.bf16.mxu1 %v1498_v45 }
  0x8b   :  { %1178 = vmatmul.mubr.bf16.gmra.mrb[52].mxu0 %v1495_v50 }
  0x8c   :  { %1275 = vmatmul.mubr.bf16.gmra.mrb[52].mxu1 %v1497_v51  ;;  %1185 = vmatprep.mubr.bf16.mxu0 %v1504_v52 }
  0x8d   :  { %1282 = vmatprep.mubr.bf16.mxu1 %v1506_v53 }
  0x93   :  { %1186 = vmatmul.mubr.bf16.gmra.mrb[56].mxu0 %v1503_v58 }
  0x94   :  { %1283 = vmatmul.mubr.bf16.gmra.mrb[56].mxu1 %v1505_v59  ;;  %1193 = vmatprep.mubr.bf16.mxu0 %v1512_v60 }
  0x95   :  { %1290 = vmatprep.mubr.bf16.mxu1 %v1514_v61 }
  0x9b   :  { %1194 = vmatmul.mubr.bf16.gmra.mrb[60].mxu0 %v1511_v62 }
  0x9c   :  { %1291 = vmatmul.mubr.bf16.gmra.mrb[60].mxu1 %v1513_v63 }
  0xf6   :  { %v1674_v0 = vpop.f32.mrb[0].mxu0 }
  0xf7   :  { %v1738_v1 = vpop.f32.mrb[0].mxu1  ;;  %v1675_v2 = vpop.f32.mrb[1].mxu0 }
  0xf8   :  { %v1676_v3 = vadd.f32 %v1675_v2, %v1674_v0  ;;  %v1739_v4 = vpop.f32.mrb[1].mxu1  ;;  %v1677_v5 = vpop.f32.mrb[2].mxu0 }
  0xf9   :  { %v1740_v6 = vadd.f32 %v1739_v4, %v1738_v1  ;;  %v1741_v7 = vpop.f32.mrb[2].mxu1  ;;  %v1678_v8 = vpop.f32.mrb[3].mxu0 }
  0xfa   :  { %v1679_v9 = vadd.f32 %v1678_v8, %v1677_v5  ;;  %v1742_v10 = vpop.f32.mrb[3].mxu1 }
  0xfb   :  { %v2387_v11 = vadd.f32 %v1740_v6, %v1676_v3  ;;  %v1743_v12 = vadd.f32 %v1742_v10, %v1741_v7 }
  0xfd   :  { %v2389_v13 = vadd.f32 %v1743_v12, %v1679_v9 }
  0xfe   :  { %v1680_v14 = vpop.f32.mrb[4].mxu0 }
  0xff   :  { %v1744_v15 = vpop.f32.mrb[4].mxu1  ;;  %v1681_v16 = vpop.f32.mrb[5].mxu0 }
 0x100   :  { %v1682_v17 = vadd.f32 %v1681_v16, %v1680_v14  ;;  %v1745_v18 = vpop.f32.mrb[5].mxu1  ;;  %v1683_v19 = vpop.f32.mrb[6].mxu0 }
 0x101   :  { %v1746_v20 = vadd.f32 %v1745_v18, %v1744_v15  ;;  %v1747_v21 = vpop.f32.mrb[6].mxu1  ;;  %v1684_v22 = vpop.f32.mrb[7].mxu0 }
 0x102   :  { %v1685_v23 = vadd.f32 %v1684_v22, %v1683_v19  ;;  %v1748_v24 = vpop.f32.mrb[7].mxu1 }
 0x103   :  { %v2391_v25 = vadd.f32 %v1746_v20, %v1682_v17  ;;  %v1749_v26 = vadd.f32 %v1748_v24, %v1747_v21 }
 0x105   :  { %v2393_v27 = vadd.f32 %v1749_v26, %v1685_v23 }
 0x106   :  { %v1686_v28 = vpop.f32.mrb[8].mxu0 }
 0x107   :  { %v1750_v29 = vpop.f32.mrb[8].mxu1  ;;  %v1687_v30 = vpop.f32.mrb[9].mxu0 }
 0x108   :  { %v1688_v31 = vadd.f32 %v1687_v30, %v1686_v28  ;;  %v1751_v32 = vpop.f32.mrb[9].mxu1  ;;  %v1689_v33 = vpop.f32.mrb[10].mxu0 }
 0x109   :  { %v1752_v34 = vadd.f32 %v1751_v32, %v1750_v29  ;;  %v1753_v35 = vpop.f32.mrb[10].mxu1  ;;  %v1690_v36 = vpop.f32.mrb[11].mxu0 }
 0x10a   :  { %v1691_v37 = vadd.f32 %v1690_v36, %v1689_v33  ;;  %v1754_v38 = vpop.f32.mrb[11].mxu1 }
 0x10b   :  { %v2395_v39 = vadd.f32 %v1752_v34, %v1688_v31  ;;  %v1755_v40 = vadd.f32 %v1754_v38, %v1753_v35 }
 0x10d   :  { %v2397_v41 = vadd.f32 %v1755_v40, %v1691_v37 }
 0x10e   :  { %v1692_v42 = vpop.f32.mrb[12].mxu0 }
 0x10f   :  { %v1756_v43 = vpop.f32.mrb[12].mxu1  ;;  %v1693_v44 = vpop.f32.mrb[13].mxu0 }
 0x110   :  { %v1694_v45 = vadd.f32 %v1693_v44, %v1692_v42  ;;  %v1757_v46 = vpop.f32.mrb[13].mxu1  ;;  %v1695_v47 = vpop.f32.mrb[14].mxu0 }
 0x111   :  { %v1758_v48 = vadd.f32 %v1757_v46, %v1756_v43  ;;  %v1759_v49 = vpop.f32.mrb[14].mxu1  ;;  %v1696_v50 = vpop.f32.mrb[15].mxu0 }
 0x112   :  { %v1697_v51 = vadd.f32 %v1696_v50, %v1695_v47  ;;  %v1760_v52 = vpop.f32.mrb[15].mxu1 }
 0x113   :  { %v2399_v53 = vadd.f32 %v1758_v48, %v1694_v45  ;;  %v1761_v54 = vadd.f32 %v1760_v52, %v1759_v49 }
 0x115   :  { %v2401_v55 = vadd.f32 %v1761_v54, %v1697_v51 }
 0x116   :  { %v1698_v56 = vpop.f32.mrb[16].mxu0 }
 0x117   :  { %v1762_v57 = vpop.f32.mrb[16].mxu1  ;;  %v1699_v58 = vpop.f32.mrb[17].mxu0 }
 0x118   :  { %v1700_v59 = vadd.f32 %v1699_v58, %v1698_v56  ;;  %v1763_v60 = vpop.f32.mrb[17].mxu1  ;;  %v1701_v61 = vpop.f32.mrb[18].mxu0 }
 0x119   :  { %v1764_v62 = vadd.f32 %v1763_v60, %v1762_v57  ;;  %v1765_v63 = vpop.f32.mrb[18].mxu1  ;;  %v1702_v0 = vpop.f32.mrb[19].mxu0 }
 0x11a   :  { %v1703_v1 = vadd.f32 %v1702_v0, %v1701_v61  ;;  %v1766_v2 = vpop.f32.mrb[19].mxu1 }
 0x11b   :  { %v2403_v3 = vadd.f32 %v1764_v62, %v1700_v59  ;;  %v1767_v4 = vadd.f32 %v1766_v2, %v1765_v63 }
 0x11d   :  { %v2405_v5 = vadd.f32 %v1767_v4, %v1703_v1 }
 0x11e   :  { %v1704_v6 = vpop.f32.mrb[20].mxu0 }
 0x11f   :  { %v1768_v7 = vpop.f32.mrb[20].mxu1  ;;  %v1705_v8 = vpop.f32.mrb[21].mxu0 }
 0x120   :  { %v1706_v9 = vadd.f32 %v1705_v8, %v1704_v6  ;;  %v1769_v10 = vpop.f32.mrb[21].mxu1  ;;  %v1707_v12 = vpop.f32.mrb[22].mxu0 }
 0x121   :  { %v1770_v14 = vadd.f32 %v1769_v10, %v1768_v7  ;;  %v1771_v15 = vpop.f32.mrb[22].mxu1  ;;  %v1708_v16 = vpop.f32.mrb[23].mxu0 }
 0x122   :  { %v1709_v17 = vadd.f32 %v1708_v16, %v1707_v12  ;;  %v1772_v18 = vpop.f32.mrb[23].mxu1 }
 0x123   :  { %v2407_v19 = vadd.f32 %v1770_v14, %v1706_v9  ;;  %v1773_v20 = vadd.f32 %v1772_v18, %v1771_v15 }
 0x125   :  { %v2409_v21 = vadd.f32 %v1773_v20, %v1709_v17 }
 0x126   :  { %v1710_v22 = vpop.f32.mrb[24].mxu0 }
 0x127   :  { %v1774_v23 = vpop.f32.mrb[24].mxu1  ;;  %v1711_v24 = vpop.f32.mrb[25].mxu0 }
 0x128   :  { %v1712_v26 = vadd.f32 %v1711_v24, %v1710_v22  ;;  %v1775_v28 = vpop.f32.mrb[25].mxu1  ;;  %v1713_v29 = vpop.f32.mrb[26].mxu0 }
 0x129   :  { %v1776_v30 = vadd.f32 %v1775_v28, %v1774_v23  ;;  %v1777_v31 = vpop.f32.mrb[26].mxu1  ;;  %v1714_v32 = vpop.f32.mrb[27].mxu0 }
 0x12a   :  { %v1715_v33 = vadd.f32 %v1714_v32, %v1713_v29  ;;  %v1778_v34 = vpop.f32.mrb[27].mxu1 }
 0x12b   :  { %v2411_v35 = vadd.f32 %v1776_v30, %v1712_v26  ;;  %v1779_v36 = vadd.f32 %v1778_v34, %v1777_v31 }
 0x12d   :  { %v2413_v37 = vadd.f32 %v1779_v36, %v1715_v33 }
 0x12e   :  { %v1716_v38 = vpop.f32.mrb[28].mxu0 }
 0x12f   :  { %v1780_v40 = vpop.f32.mrb[28].mxu1  ;;  %v1717_v42 = vpop.f32.mrb[29].mxu0 }
 0x130   :  { %v1718_v43 = vadd.f32 %v1717_v42, %v1716_v38  ;;  %v1781_v44 = vpop.f32.mrb[29].mxu1  ;;  %v1719_v45 = vpop.f32.mrb[30].mxu0 }
 0x131   :  { %v1782_v46 = vadd.f32 %v1781_v44, %v1780_v40  ;;  %v1783_v47 = vpop.f32.mrb[30].mxu1  ;;  %v1720_v48 = vpop.f32.mrb[31].mxu0 }
 0x132   :  { %v1721_v49 = vadd.f32 %v1720_v48, %v1719_v45  ;;  %v1784_v50 = vpop.f32.mrb[31].mxu1 }
 0x133   :  { %v2415_v51 = vadd.f32 %v1782_v46, %v1718_v43  ;;  %v1785_v52 = vadd.f32 %v1784_v50, %v1783_v47 }
 0x135   :  { %v2417_v54 = vadd.f32 %v1785_v52, %v1721_v49 }
 0x136   :  { %v1802_v56 = vpop.f32.mrb[32].mxu0 }
 0x137   :  { %v1866_v57 = vpop.f32.mrb[32].mxu1  ;;  %v1803_v58 = vpop.f32.mrb[33].mxu0 }
 0x138   :  { %v1804_v59 = vadd.f32 %v1803_v58, %v1802_v56  ;;  %v1867_v60 = vpop.f32.mrb[33].mxu1  ;;  %v1805_v61 = vpop.f32.mrb[34].mxu0 }
 0x139   :  { %v1868_v62 = vadd.f32 %v1867_v60, %v1866_v57  ;;  %v1869_v63 = vpop.f32.mrb[34].mxu1  ;;  %v1806_v0 = vpop.f32.mrb[35].mxu0 }
 0x13a   :  { %v1140_v1 = vadd.f32 %v1804_v59, %v2387_v11  ;;  %v1807_v2 = vadd.f32 %v1806_v0, %v1805_v61  ;;  %v1870_v4 = vpop.f32.mrb[35].mxu1 }
 0x13b   :  { %v1871_v6 = vadd.f32 %v1870_v4, %v1869_v63 }
 0x13c   :  { %v1237_v7 = vadd.f32 %v1868_v62, %v1140_v1  ;;  %v1143_v8 = vadd.f32 %v1807_v2, %v2389_v13 }
 0x13e   :  { %v1240_v9 = vadd.f32 %v1871_v6, %v1143_v8  ;;  %v1808_v10 = vpop.f32.mrb[36].mxu0  ;;  %v1400_v12 = vmul.f32 %v1237_v7, %v1237_v7 }
 0x13f   :  { %v1872_v14 = vpop.f32.mrb[36].mxu1  ;;  %v1809_v15 = vpop.f32.mrb[37].mxu0 }
 0x140   :  { %v1614_v16 = vpack.c.bf16 %v1240_v9, %v1237_v7  ;;  %v1379_v17 = vadd.f32 %v1240_v9, %v1237_v7  ;;  %v1401_v18 = vmul.f32 %v1240_v9, %v1240_v9  ;;  %v1810_v20 = vadd.f32 %v1809_v15, %v1808_v10  ;;  %v1873_v22 = vpop.f32.mrb[37].mxu1  ;;  %v1811_v23 = vpop.f32.mrb[38].mxu0 }
 0x141   :  { %v1874_v24 = vadd.f32 %v1873_v22, %v1872_v14  ;;  %v1875_v26 = vpop.f32.mrb[38].mxu1  ;;  %v1812_v11 = vpop.f32.mrb[39].mxu0 }
 0x142   :  { %1615 = vst [vmem:[%s2467_s2] sm:$0xff] %v1614_v16   ;;  %v1416_v28 = vadd.f32 %v1401_v18, %v1400_v12  ;;  %v1148_v13 = vadd.f32 %v1810_v20, %v2391_v25  ;;  %v1813_v29 = vadd.f32 %v1812_v11, %v1811_v23  ;;  %v1876_v30 = vpop.f32.mrb[39].mxu1 }
 0x143   :  { %v1877_v31 = vadd.f32 %v1876_v30, %v1875_v26 }
 0x144   :  { %v1245_v32 = vadd.f32 %v1874_v24, %v1148_v13  ;;  %v1151_v33 = vadd.f32 %v1813_v29, %v2393_v27 }
 0x146   :  { %v1380_v34 = vadd.f32 %v1379_v17, %v1245_v32  ;;  %v1402_v36 = vmul.f32 %v1245_v32, %v1245_v32  ;;  %v1248_v38 = vadd.f32 %v1877_v31, %v1151_v33  ;;  %v1814_v40 = vpop.f32.mrb[40].mxu0 }
 0x147   :  { %v1878_v42 = vpop.f32.mrb[40].mxu1  ;;  %v1815_v43 = vpop.f32.mrb[41].mxu0 }
 0x148   :  { %v1417_v44 = vadd.f32 %v1416_v28, %v1402_v36  ;;  %v1619_v45 = vpack.c.bf16 %v1248_v38, %v1245_v32  ;;  %v1381_v46 = vadd.f32 %v1380_v34, %v1248_v38  ;;  %v1403_v47 = vmul.f32 %v1248_v38, %v1248_v38  ;;  %v1879_v48 = vpop.f32.mrb[41].mxu1  ;;  %v1817_v49 = vpop.f32.mrb[42].mxu0 }
 0x149   :  { %v1816_v50 = vadd.f32 %v1815_v43, %v1814_v40  ;;  %v1880_v25 = vadd.f32 %v1879_v48, %v1878_v42  ;;  %v1881_v52 = vpop.f32.mrb[42].mxu1  ;;  %v1818_v56 = vpop.f32.mrb[43].mxu0 }
 0x14a   :  { %1651 = vst [vmem:[%s2467_s2 + $0x8] sm:$0xff] %v1619_v45   ;;  %v1418_v27 = vadd.f32 %v1417_v44, %v1403_v47  ;;  %v1819_v57 = vadd.f32 %v1818_v56, %v1817_v49  ;;  %v1882_v58 = vpop.f32.mrb[43].mxu1 }
 0x14b   :  { %v1156_v59 = vadd.f32 %v1816_v50, %v2395_v39  ;;  %v1883_v60 = vadd.f32 %v1882_v58, %v1881_v52 }
 0x14c   :  { %v1159_v61 = vadd.f32 %v1819_v57, %v2397_v41 }
 0x14d   :  { %v1253_v62 = vadd.f32 %v1880_v25, %v1156_v59 }
 0x14e   :  { %v1256_v63 = vadd.f32 %v1883_v60, %v1159_v61  ;;  %v1820_v0 = vpop.f32.mrb[44].mxu0 }
 0x14f   :  { %v1382_v1 = vadd.f32 %v1381_v46, %v1253_v62  ;;  %v1404_v2 = vmul.f32 %v1253_v62, %v1253_v62  ;;  %v1884_v4 = vpop.f32.mrb[44].mxu1  ;;  %v1821_v6 = vpop.f32.mrb[45].mxu0 }
 0x150   :  { %v1624_v7 = vpack.c.bf16 %v1256_v63, %v1253_v62  ;;  %v1405_v8 = vmul.f32 %v1256_v63, %v1256_v63  ;;  %v1822_v9 = vadd.f32 %v1821_v6, %v1820_v0  ;;  %v1885_v10 = vpop.f32.mrb[45].mxu1  ;;  %v1823_v12 = vpop.f32.mrb[46].mxu0 }
 0x151   :  { %v1419_v14 = vadd.f32 %v1418_v27, %v1404_v2  ;;  %v1383_v15 = vadd.f32 %v1382_v1, %v1256_v63  ;;  %v1886_v16 = vadd.f32 %v1885_v10, %v1884_v4  ;;  %v1887_v17 = vpop.f32.mrb[46].mxu1  ;;  %v1824_v39 = vpop.f32.mrb[47].mxu0 }
 0x152   :  { %1652 = vst [vmem:[%s2467_s2 + $0x10] sm:$0xff] %v1624_v7   ;;  %v1164_v41 = vadd.f32 %v1822_v9, %v2399_v53  ;;  %v1825_v18 = vadd.f32 %v1824_v39, %v1823_v12  ;;  %v1888_v20 = vpop.f32.mrb[47].mxu1 }
 0x153   :  { %v1420_v22 = vadd.f32 %v1419_v14, %v1405_v8  ;;  %v1889_v23 = vadd.f32 %v1888_v20, %v1887_v17 }
 0x154   :  { %v1261_v24 = vadd.f32 %v1886_v16, %v1164_v41  ;;  %v1167_v26 = vadd.f32 %v1825_v18, %v2401_v55 }
 0x156   :  { %v1384_v11 = vadd.f32 %v1383_v15, %v1261_v24  ;;  %v1406_v28 = vmul.f32 %v1261_v24, %v1261_v24  ;;  %v1264_v13 = vadd.f32 %v1889_v23, %v1167_v26  ;;  %v1826_v29 = vpop.f32.mrb[48].mxu0 }
 0x157   :  { %v1890_v30 = vpop.f32.mrb[48].mxu1  ;;  %v1827_v31 = vpop.f32.mrb[49].mxu0 }
 0x158   :  { %v1421_v32 = vadd.f32 %v1420_v22, %v1406_v28  ;;  %v1629_v33 = vpack.c.bf16 %v1264_v13, %v1261_v24  ;;  %v1385_v34 = vadd.f32 %v1384_v11, %v1264_v13  ;;  %v1407_v36 = vmul.f32 %v1264_v13, %v1264_v13  ;;  %v1891_v38 = vpop.f32.mrb[49].mxu1  ;;  %v1829_v40 = vpop.f32.mrb[50].mxu0 }
 0x159   :  { %v1828_v53 = vadd.f32 %v1827_v31, %v1826_v29  ;;  %v1892_v42 = vadd.f32 %v1891_v38, %v1890_v30  ;;  %v1893_v43 = vpop.f32.mrb[50].mxu1  ;;  %v1830_v44 = vpop.f32.mrb[51].mxu0 }
 0x15a   :  { %1653 = vst [vmem:[%s2467_s2 + $0x18] sm:$0xff] %v1629_v33   ;;  %v1422_v55 = vadd.f32 %v1421_v32, %v1407_v36  ;;  %v1831_v45 = vadd.f32 %v1830_v44, %v1829_v40  ;;  %v1894_v46 = vpop.f32.mrb[51].mxu1 }
 0x15b   :  { %v1172_v47 = vadd.f32 %v1828_v53, %v2403_v3  ;;  %v1895_v48 = vadd.f32 %v1894_v46, %v1893_v43 }
 0x15c   :  { %v1175_v49 = vadd.f32 %v1831_v45, %v2405_v5 }
 0x15d   :  { %v1269_v50 = vadd.f32 %v1892_v42, %v1172_v47 }
 0x15e   :  { %v1272_v25 = vadd.f32 %v1895_v48, %v1175_v49  ;;  %v1832_v52 = vpop.f32.mrb[52].mxu0 }
 0x15f   :  { %v1386_v56 = vadd.f32 %v1385_v34, %v1269_v50  ;;  %v1408_v27 = vmul.f32 %v1269_v50, %v1269_v50  ;;  %v1896_v57 = vpop.f32.mrb[52].mxu1  ;;  %v1833_v58 = vpop.f32.mrb[53].mxu0 }
 0x160   :  { %v1634_v59 = vpack.c.bf16 %v1272_v25, %v1269_v50  ;;  %v1409_v60 = vmul.f32 %v1272_v25, %v1272_v25  ;;  %v1834_v61 = vadd.f32 %v1833_v58, %v1832_v52  ;;  %v1897_v62 = vpop.f32.mrb[53].mxu1  ;;  %v1835_v63 = vpop.f32.mrb[54].mxu0 }
 0x161   :  { %v1423_v0 = vadd.f32 %v1422_v55, %v1408_v27  ;;  %v1387_v1 = vadd.f32 %v1386_v56, %v1272_v25  ;;  %v1898_v2 = vadd.f32 %v1897_v62, %v1896_v57  ;;  %v1899_v4 = vpop.f32.mrb[54].mxu1  ;;  %v1836_v3 = vpop.f32.mrb[55].mxu0 }
 0x162   :  { %1654 = vst [vmem:[%s2467_s2 + $0x20] sm:$0xff] %v1634_v59   ;;  %v1180_v5 = vadd.f32 %v1834_v61, %v2407_v19  ;;  %v1837_v6 = vadd.f32 %v1836_v3, %v1835_v63  ;;  %v1900_v7 = vpop.f32.mrb[55].mxu1 }
 0x163   :  { %v1424_v8 = vadd.f32 %v1423_v0, %v1409_v60  ;;  %v1901_v9 = vadd.f32 %v1900_v7, %v1899_v4 }
 0x164   :  { %v1277_v10 = vadd.f32 %v1898_v2, %v1180_v5  ;;  %v1183_v12 = vadd.f32 %v1837_v6, %v2409_v21 }
 0x166   :  { %v1388_v14 = vadd.f32 %v1387_v1, %v1277_v10  ;;  %v1410_v15 = vmul.f32 %v1277_v10, %v1277_v10  ;;  %v1280_v16 = vadd.f32 %v1901_v9, %v1183_v12  ;;  %v1838_v17 = vpop.f32.mrb[56].mxu0 }
 0x167   :  { %v1902_v39 = vpop.f32.mrb[56].mxu1  ;;  %v1839_v41 = vpop.f32.mrb[57].mxu0 }
 0x168   :  { %v1425_v18 = vadd.f32 %v1424_v8, %v1410_v15  ;;  %v1639_v20 = vpack.c.bf16 %v1280_v16, %v1277_v10  ;;  %v1389_v22 = vadd.f32 %v1388_v14, %v1280_v16  ;;  %v1411_v23 = vmul.f32 %v1280_v16, %v1280_v16  ;;  %v1903_v24 = vpop.f32.mrb[57].mxu1  ;;  %v1841_v26 = vpop.f32.mrb[58].mxu0 }
 0x169   :  { %v1840_v19 = vadd.f32 %v1839_v41, %v1838_v17  ;;  %v1904_v11 = vadd.f32 %v1903_v24, %v1902_v39  ;;  %v1905_v28 = vpop.f32.mrb[58].mxu1  ;;  %v1842_v13 = vpop.f32.mrb[59].mxu0 }
 0x16a   :  { %1655 = vst [vmem:[%s2467_s2 + $0x28] sm:$0xff] %v1639_v20   ;;  %v1426_v21 = vadd.f32 %v1425_v18, %v1411_v23  ;;  %v1843_v29 = vadd.f32 %v1842_v13, %v1841_v26  ;;  %v1906_v30 = vpop.f32.mrb[59].mxu1 }
 0x16b   :  { %v1188_v31 = vadd.f32 %v1840_v19, %v2411_v35  ;;  %v1907_v32 = vadd.f32 %v1906_v30, %v1905_v28 }
 0x16c   :  { %v1191_v33 = vadd.f32 %v1843_v29, %v2413_v37 }
 0x16d   :  { %v1285_v34 = vadd.f32 %v1904_v11, %v1188_v31 }
 0x16e   :  { %v1288_v36 = vadd.f32 %v1907_v32, %v1191_v33  ;;  %v1844_v38 = vpop.f32.mrb[60].mxu0 }
 0x16f   :  { %v1390_v40 = vadd.f32 %v1389_v22, %v1285_v34  ;;  %v1412_v53 = vmul.f32 %v1285_v34, %v1285_v34  ;;  %v1908_v42 = vpop.f32.mrb[60].mxu1  ;;  %v1845_v43 = vpop.f32.mrb[61].mxu0 }
 0x170   :  { %v1644_v44 = vpack.c.bf16 %v1288_v36, %v1285_v34  ;;  %v1413_v55 = vmul.f32 %v1288_v36, %v1288_v36  ;;  %v1846_v45 = vadd.f32 %v1845_v43, %v1844_v38  ;;  %v1909_v46 = vpop.f32.mrb[61].mxu1  ;;  %v1847_v47 = vpop.f32.mrb[62].mxu0 }
 0x171   :  { %v1427_v48 = vadd.f32 %v1426_v21, %v1412_v53  ;;  %v1391_v49 = vadd.f32 %v1390_v40, %v1288_v36  ;;  %v1910_v50 = vadd.f32 %v1909_v46, %v1908_v42  ;;  %v1911_v25 = vpop.f32.mrb[62].mxu1  ;;  %v1848_v35 = vpop.f32.mrb[63].mxu0 }
 0x172   :  { %1656 = vst [vmem:[%s2467_s2 + $0x30] sm:$0xff] %v1644_v44   ;;  %v1196_v37 = vadd.f32 %v1846_v45, %v2415_v51  ;;  %v1849_v52 = vadd.f32 %v1848_v35, %v1847_v47  ;;  %v1912_v56 = vpop.f32.mrb[63].mxu1 }
 0x173   :  { %v1428_v27 = vadd.f32 %v1427_v48, %v1413_v55  ;;  %v1913_v57 = vadd.f32 %v1912_v56, %v1911_v25 }
 0x174   :  { %v1293_v58 = vadd.f32 %v1910_v50, %v1196_v37  ;;  %v1199_v59 = vadd.f32 %v1849_v52, %v2417_v54 }
 0x176   :  { %v1392_v60 = vadd.f32 %v1391_v49, %v1293_v58  ;;  %v1414_v61 = vmul.f32 %v1293_v58, %v1293_v58  ;;  %v1296_v62 = vadd.f32 %v1913_v57, %v1199_v59 }
 0x178   :  { %v1429_v63 = vadd.f32 %v1428_v27, %v1414_v61  ;;  %v1649_v0 = vpack.c.bf16 %v1296_v62, %v1293_v58  ;;  %v1393_v1 = vadd.f32 %v1392_v60, %v1296_v62  ;;  %v1415_v2 = vmul.f32 %v1296_v62, %v1296_v62 }
 0x17a   :  { %1657 = vst [vmem:[%s2467_s2 + $0x38] sm:$0xff] %v1649_v0   ;;  %v1394_v4 = vrot.slane %v1393_v1, 4  ;;  %v1430_v51 = vadd.f32 %v1429_v63, %v1415_v2 }
 0x17c   :  { %v1395_v3 = vadd.f32 %v1394_v4, %v1393_v1  ;;  %v1431_v5 = vrot.slane %v1430_v51, 4 }
 0x17e   :  { %v1396_v6 = vrot.slane %v1395_v3, 2  ;;  %v1432_v7 = vadd.f32 %v1431_v5, %v1430_v51 }
 0x180   :  { %v1397_v8 = vadd.f32 %v1396_v6, %v1395_v3  ;;  %v1433_v9 = vrot.slane %v1432_v7, 2 }
 0x182   :  { %v1398_v54 = vrot.slane %v1397_v8, 1  ;;  %v1434_v10 = vadd.f32 %v1433_v9, %v1432_v7 }
 0x184   :  { %v1399_v12 = vadd.f32 %v1398_v54, %v1397_v8  ;;  %v1435_v14 = vrot.slane %v1434_v10, 1 }
 0x186   :  { %v1436_v15 = vadd.f32 %v1435_v14, %v1434_v10  ;;  %1437 = vst [vmem:[%s2468_s3] sm:$0xff] %v1399_v12 }
 0x188   :  { %1438 = vst [vmem:[%s2469_s4] sm:$0xff] %v1436_v15 }

// kernel: discriminator_forward.12
= control target key start
LH: loop header
LB: loop body
LE: loop exit
PB: predicated region body
PF: predicated region fallthrough
CT: control target
= control target key end

     0   :  { %v225_v42 = vmov 1966171168   ;;  %v71_v44 = vlaneseq  ;;  %s298_s1 = inlined_call_operand.vmem [shape: f32[8,256], index: 1, kind: input, shape index: {}]   ;;  %s299_s2 = inlined_call_operand.vmem [shape: f32[8,256], index: 2, kind: input, shape index: {}]   ;;  %s300_s3 = inlined_call_operand.vmem [shape: f32[1,256], index: 3, kind: input, shape index: {}]   ;;  %s301_s0 = inlined_call_operand.vmem [shape: bf16[32,256], index: 0, kind: input, shape index: {}]   ;;  %s302_s4 = inlined_call_operand.vmem [shape: f32[1,256], index: 4, kind: input, shape index: {}]   ;;  %s303_s5 = inlined_call_operand.vmem [shape: bf16[32,256], index: 5, kind: output, shape index: {}]  }
   0x1   :  { %v20_v0 = vld [vmem:[%s298_s1] sm:$0xff]  ;;  %v21_v1 = vld [vmem:[%s298_s1 + $0x8] sm:$0xff]  ;;  %v69_v43 = vunpack.c.l.s4 %v225_v42 }
   0x2   :  { %v36_v2 = vld [vmem:[%s299_s2] sm:$0xff]  ;;  %v22_v3 = vrot.slane %v20_v0, 4  ;;  %v28_v4 = vrot.slane %v21_v1, 4  ;;  %v37_v5 = vld [vmem:[%s299_s2 + $0x8] sm:$0xff]  ;;  %v72_v46 = vshrl.u32 %v71_v44, 7 }
   0x3   :  { %v38_v6 = vrot.slane %v36_v2, 4  ;;  %v44_v7 = vrot.slane %v37_v5, 4  ;;  %v70_v45 = vunpack.c.0.s8 %v69_v43  ;;  %v60_v52 = vld [vmem:[%s300_s3] sm:$0x3]  ;;  %v118_v62 = vld [vmem:[%s301_s0 + $0x8] sm:$0xff] }
   0x4   :  { %v23_v8 = vadd.f32 %v22_v3, %v20_v0  ;;  %v29_v9 = vadd.f32 %v28_v4, %v21_v1  ;;  %v88_v54 = vsub.s32 0, %v72_v46  ;;  %v92_v55 = vsub.s32 1, %v72_v46  ;;  %v117_v61 = vld [vmem:[%s301_s0] sm:$0xff]  ;;  %v119_v0 = vld [vmem:[%s301_s0 + $0x10] sm:$0xff]  ;;  %v120_v1 = vld [vmem:[%s301_s0 + $0x18] sm:$0xff] }
   0x5   :  { %v39_v10 = vadd.f32 %v38_v6, %v36_v2  ;;  %v45_v11 = vadd.f32 %v44_v7, %v37_v5  ;;  %v73_v48 = vsub.s32 %v70_v45, %v72_v46  ;;  %v121_v2 = vunpack.c.l.bf16 %v117_v61  ;;  %v84_v7 = vld [vmem:[%s302_s4] sm:$0x3] }
   0x6   :  { %v24_v12 = vrot.slane %v23_v8, 2  ;;  %v30_v13 = vrot.slane %v29_v9, 2  ;;  %v122_v4 = vunpack.c.h.bf16 %v117_v61  ;;  %v123_v5 = vunpack.c.l.bf16 %v118_v62 }
   0x7   :  { %v40_v14 = vrot.slane %v39_v10, 2  ;;  %v46_v15 = vrot.slane %v45_v11, 2  ;;  %v124_v6 = vunpack.c.h.bf16 %v118_v62 }
   0x8   :  { %v25_v16 = vadd.f32 %v24_v12, %v23_v8  ;;  %v31_v17 = vadd.f32 %v30_v13, %v29_v9  ;;  %v125_v8 = vunpack.c.l.bf16 %v119_v0  ;;  %v126_v9 = vunpack.c.h.bf16 %v119_v0 }
   0x9   :  { %v41_v18 = vadd.f32 %v40_v14, %v39_v10  ;;  %v47_v19 = vadd.f32 %v46_v15, %v45_v11  ;;  %v127_v10 = vunpack.c.l.bf16 %v120_v1  ;;  %v128_v11 = vunpack.c.h.bf16 %v120_v1 }
   0xa   :  { %v26_v20 = vrot.slane %v25_v16, 1  ;;  %v32_v21 = vrot.slane %v31_v17, 1 }
   0xb   :  { %v42_v22 = vrot.slane %v41_v18, 1  ;;  %v48_v23 = vrot.slane %v47_v19, 1 }
   0xc   :  { %v27_v24 = vadd.f32 %v26_v20, %v25_v16  ;;  %v33_v25 = vadd.f32 %v32_v21, %v31_v17 }
   0xd   :  { %v43_v26 = vadd.f32 %v42_v22, %v41_v18  ;;  %v49_v27 = vadd.f32 %v48_v23, %v47_v19 }
   0xe   :  { %v34_v28 = vmul.f32 0.125, %v27_v24  ;;  %v35_v29 = vmul.f32 0.125, %v33_v25 }
   0xf   :  { %v50_v30 = vmul.f32 0.125, %v43_v26  ;;  %v51_v31 = vmul.f32 0.125, %v49_v27 }
  0x10   :  { %v52_v32 = vmul.f32 0.03125, %v34_v28  ;;  %v53_v33 = vmul.f32 0.03125, %v35_v29 }
  0x11   :  { %v54_v34 = vmul.f32 0.03125, %v50_v30  ;;  %v55_v35 = vmul.f32 0.03125, %v51_v31 }
  0x12   :  { %v56_v36 = vmul.f32 %v52_v32, %v52_v32  ;;  %v57_v37 = vmul.f32 %v53_v33, %v53_v33 }
  0x14   :  { %v58_v38 = vsub.f32 %v54_v34, %v56_v36  ;;  %v59_v39 = vsub.f32 %v55_v35, %v57_v37 }
  0x16   :  { %v61_v40 = vadd.f32 1e-05, %v58_v38  ;;  %v62_v41 = vadd.f32 1e-05, %v59_v39 }
  0x18   :  { %221 = vrsqrt.f32 %v61_v40 }
  0x19   :  { %223 = vrsqrt.f32 %v62_v41 }
  0x22   :  { %v222_v47 = vpop.eup %221 }
  0x23   :  { %v224_v49 = vpop.eup %223 }
  0x24   :  { %v67_v50 = vcombine.low %v222_v47, %v224_v49 }
  0x26   :  { %v74_v51 = vrot.slane %v67_v50, %v73_v48 }
  0x28   :  { %v81_v53 = vrot.slane %v74_v51, %v73_v48 }
  0x2a   :  { %v83_v56 = vmul.f32 %v81_v53, %v60_v52 }
  0x2c   :  { %v89_v57 = vrot.slane %v83_v56, %v88_v54  ;;  %v93_v58 = vrot.slane %v83_v56, %v92_v55 }
  0x2e   :  { %v96_v59 = vmul.f32 %v89_v57, %v52_v32  ;;  %v97_v60 = vmul.f32 %v93_v58, %v53_v33  ;;  %v129_v13 = vmul.f32 %v121_v2, %v89_v57  ;;  %v130_v15 = vmul.f32 %v122_v4, %v93_v58 }
  0x2f   :  { %v131_v16 = vmul.f32 %v123_v5, %v89_v57  ;;  %v132_v17 = vmul.f32 %v124_v6, %v93_v58  ;;  %v133_v18 = vmul.f32 %v125_v8, %v89_v57  ;;  %v134_v19 = vmul.f32 %v126_v9, %v93_v58 }
  0x30   :  { %v100_v63 = vcombine.low %v96_v59, %v97_v60  ;;  %v135_v20 = vmul.f32 %v127_v10, %v89_v57  ;;  %v136_v21 = vmul.f32 %v128_v11, %v93_v58 }
  0x32   :  { %v107_v3 = vrot.slane %v100_v63, %v73_v48 }
  0x34   :  { %v114_v12 = vrot.slane %v107_v3, %v73_v48 }
  0x36   :  { %v116_v14 = vsub.f32 %v84_v7, %v114_v12 }
  0x38   :  { %v141_v22 = vrot.slane %v116_v14, %v88_v54  ;;  %v145_v23 = vrot.slane %v116_v14, %v92_v55 }
  0x3a   :  { %v148_v24 = vadd.f32 %v141_v22, %v129_v13  ;;  %v149_v25 = vadd.f32 %v145_v23, %v130_v15  ;;  %v150_v26 = vadd.f32 %v141_v22, %v131_v16  ;;  %v151_v27 = vadd.f32 %v145_v23, %v132_v17 }
  0x3b   :  { %v152_v28 = vadd.f32 %v141_v22, %v133_v18  ;;  %v153_v29 = vadd.f32 %v145_v23, %v134_v19  ;;  %v154_v30 = vadd.f32 %v141_v22, %v135_v20  ;;  %v155_v31 = vadd.f32 %v145_v23, %v136_v21 }
  0x3c   :  { %vm156_vm0 = vcmp.gt.f32.partialorder %v148_v24, 0.0  ;;  %vm157_vm1 = vcmp.gt.f32.partialorder %v149_v25, 0.0  ;;  %v164_v32 = vmul.f32 0.2, %v148_v24  ;;  %v165_v33 = vmul.f32 0.2, %v149_v25 }
  0x3d   :  { %vm158_vm2 = vcmp.gt.f32.partialorder %v150_v26, 0.0  ;;  %vm159_vm3 = vcmp.gt.f32.partialorder %v151_v27, 0.0  ;;  %v166_v34 = vmul.f32 0.2, %v150_v26  ;;  %v167_v35 = vmul.f32 0.2, %v151_v27 }
  0x3e   :  { %v172_v36 = vsel %vm156_vm0, %v148_v24, %v164_v32  ;;  %v173_v37 = vsel %vm157_vm1, %v149_v25, %v165_v33  ;;  %vm160_vm4 = vcmp.gt.f32.partialorder %v152_v28, 0.0  ;;  %vm161_vm5 = vcmp.gt.f32.partialorder %v153_v29, 0.0 }
  0x3f   :  { %v216_v38 = vpack.c.bf16 %v173_v37, %v172_v36  ;;  %v174_v39 = vsel %vm158_vm2, %v150_v26, %v166_v34  ;;  %v175_v40 = vsel %vm159_vm3, %v151_v27, %v167_v35  ;;  %v168_v41 = vmul.f32 0.2, %v152_v28 }
  0x40   :  { %v217_v42 = vpack.c.bf16 %v175_v40, %v174_v39  ;;  %v169_v43 = vmul.f32 0.2, %v153_v29  ;;  %vm162_vm6 = vcmp.gt.f32.partialorder %v154_v30, 0.0  ;;  %vm163_vm7 = vcmp.gt.f32.partialorder %v155_v31, 0.0 }
  0x41   :  { %204 = vst [vmem:[%s303_s5] sm:$0xff] %v216_v38  ;;  %v176_v44 = vsel %vm160_vm4, %v152_v28, %v168_v41  ;;  %v170_v45 = vmul.f32 0.2, %v154_v30  ;;  %v171_v46 = vmul.f32 0.2, %v155_v31 }
  0x42   :  { %205 = vst [vmem:[%s303_s5 + $0x8] sm:$0xff] %v217_v42  ;;  %v177_v47 = vsel %vm161_vm5, %v153_v29, %v169_v43 }
  0x43   :  { %v218_v48 = vpack.c.bf16 %v177_v47, %v176_v44  ;;  %v178_v49 = vsel %vm162_vm6, %v154_v30, %v170_v45  ;;  %v179_v50 = vsel %vm163_vm7, %v155_v31, %v171_v46 }
  0x44   :  { %v219_v51 = vpack.c.bf16 %v179_v50, %v178_v49 }
  0x45   :  { %206 = vst [vmem:[%s303_s5 + $0x10] sm:$0xff] %v218_v48 }
  0x46   :  { %207 = vst [vmem:[%s303_s5 + $0x18] sm:$0xff] %v219_v51 }

// kernel: discriminator_forward.11
= control target key start
LH: loop header
LB: loop body
LE: loop exit
PB: predicated region body
PF: predicated region fallthrough
CT: control target
= control target key end

     0   :  { %s3951_s1 = inlined_call_operand.vmem [shape: bf16[2048,256], index: 1, kind: input, shape index: {}]   ;;  %s3952_s0 = inlined_call_operand.vmem [shape: bf16[32,2048], index: 0, kind: input, shape index: {}]   ;;  %s3953_s2 = inlined_call_operand.vmem [shape: bf16[32,256], index: 2, kind: output, shape index: {0}]   ;;  %s3954_s3 = inlined_call_operand.vmem [shape: f32[8,256], index: 3, kind: output, shape index: {1}]   ;;  %s3955_s4 = inlined_call_operand.vmem [shape: f32[8,256], index: 4, kind: output, shape index: {2}]  }
   0x1   :  { %v2606_v0 = vld [vmem:[%s3951_s1 + $0x4] ss:$8 sps:$4 sm:$0xff]   ;;  %v2610_v2 = vld [vmem:[%s3951_s1] ss:$8 sps:$4 sm:$0xff]   ;;  %v2612_v4 = vld [vmem:[%s3951_s1 + $0x14] ss:$8 sps:$4 sm:$0xff]  }
   0x2   :  { %v2608_v1 = vld [vmem:[%s3951_s1 + $0x404] ss:$8 sps:$4 sm:$0xff]   ;;  %1742 = vmatprep.subr.bf16.mxu1 %v2606_v0  ;;  %v2611_v3 = vld [vmem:[%s3951_s1 + $0x400] ss:$8 sps:$4 sm:$0xff]   ;;  %v2614_v5 = vld [vmem:[%s3951_s1 + $0x414] ss:$8 sps:$4 sm:$0xff]  }
   0x3   :  { %1954 = vmatprep.subr.bf16.mxu0 %v2608_v1  ;;  %1743 = vmatpush1.bf16.msra.mxu1 %v2610_v2  ;;  %v2616_v6 = vld [vmem:[%s3951_s1 + $0x10] ss:$8 sps:$4 sm:$0xff]   ;;  %v2618_v8 = vld [vmem:[%s3951_s1 + $0x24] ss:$8 sps:$4 sm:$0xff]   ;;  %v2622_v10 = vld [vmem:[%s3951_s1 + $0x20] ss:$8 sps:$4 sm:$0xff]  }
   0x4   :  { %1955 = vmatpush1.bf16.msra.mxu0 %v2611_v3  ;;  %1744 = vmatprep.subr.bf16.mxu1 %v2612_v4  ;;  %v2617_v7 = vld [vmem:[%s3951_s1 + $0x410] ss:$8 sps:$4 sm:$0xff]   ;;  %v2620_v9 = vld [vmem:[%s3951_s1 + $0x424] ss:$8 sps:$4 sm:$0xff]   ;;  %v2623_v11 = vld [vmem:[%s3951_s1 + $0x420] ss:$8 sps:$4 sm:$0xff]  }
   0x5   :  { %1956 = vmatprep.subr.bf16.mxu0 %v2614_v5  ;;  %v2624_v12 = vld [vmem:[%s3951_s1 + $0x34] ss:$8 sps:$4 sm:$0xff]   ;;  %v2628_v14 = vld [vmem:[%s3951_s1 + $0x30] ss:$8 sps:$4 sm:$0xff]   ;;  %v2630_v16 = vld [vmem:[%s3951_s1 + $0x44] ss:$8 sps:$4 sm:$0xff]  }
   0x6   :  { %v2626_v13 = vld [vmem:[%s3951_s1 + $0x434] ss:$8 sps:$4 sm:$0xff]   ;;  %v2629_v15 = vld [vmem:[%s3951_s1 + $0x430] ss:$8 sps:$4 sm:$0xff]   ;;  %v2632_v17 = vld [vmem:[%s3951_s1 + $0x444] ss:$8 sps:$4 sm:$0xff]  }
   0x7   :  { %1745 = vmatpush1.bf16.msra.mxu1 %v2616_v6  ;;  %v2634_v18 = vld [vmem:[%s3951_s1 + $0x40] ss:$8 sps:$4 sm:$0xff]   ;;  %v2636_v20 = vld [vmem:[%s3951_s1 + $0x54] ss:$8 sps:$4 sm:$0xff]   ;;  %v2640_v22 = vld [vmem:[%s3951_s1 + $0x50] ss:$8 sps:$4 sm:$0xff]  }
   0x8   :  { %1957 = vmatpush1.bf16.msra.mxu0 %v2617_v7  ;;  %1746 = vmatprep.subr.bf16.mxu1 %v2618_v8  ;;  %v2635_v19 = vld [vmem:[%s3951_s1 + $0x440] ss:$8 sps:$4 sm:$0xff]   ;;  %v2638_v21 = vld [vmem:[%s3951_s1 + $0x454] ss:$8 sps:$4 sm:$0xff]   ;;  %v2641_v23 = vld [vmem:[%s3951_s1 + $0x450] ss:$8 sps:$4 sm:$0xff]  }
   0x9   :  { %1958 = vmatprep.subr.bf16.mxu0 %v2620_v9  ;;  %v2642_v24 = vld [vmem:[%s3951_s1 + $0x64] ss:$8 sps:$4 sm:$0xff]   ;;  %v2646_v26 = vld [vmem:[%s3951_s1 + $0x60] ss:$8 sps:$4 sm:$0xff]   ;;  %v2648_v28 = vld [vmem:[%s3951_s1 + $0x74] ss:$8 sps:$4 sm:$0xff]  }
   0xa   :  { %v2644_v25 = vld [vmem:[%s3951_s1 + $0x464] ss:$8 sps:$4 sm:$0xff]   ;;  %v2647_v27 = vld [vmem:[%s3951_s1 + $0x460] ss:$8 sps:$4 sm:$0xff]   ;;  %v2650_v29 = vld [vmem:[%s3951_s1 + $0x474] ss:$8 sps:$4 sm:$0xff]  }
   0xb   :  { %1747 = vmatpush1.bf16.msra.mxu1 %v2622_v10  ;;  %v2652_v30 = vld [vmem:[%s3951_s1 + $0x70] ss:$8 sps:$4 sm:$0xff]   ;;  %v2654_v32 = vld [vmem:[%s3951_s1 + $0x84] ss:$8 sps:$4 sm:$0xff]   ;;  %v2658_v34 = vld [vmem:[%s3951_s1 + $0x80] ss:$8 sps:$4 sm:$0xff]  }
   0xc   :  { %1959 = vmatpush1.bf16.msra.mxu0 %v2623_v11  ;;  %1748 = vmatprep.subr.bf16.mxu1 %v2624_v12  ;;  %v2653_v31 = vld [vmem:[%s3951_s1 + $0x470] ss:$8 sps:$4 sm:$0xff]   ;;  %v2656_v33 = vld [vmem:[%s3951_s1 + $0x484] ss:$8 sps:$4 sm:$0xff]   ;;  %v2659_v35 = vld [vmem:[%s3951_s1 + $0x480] ss:$8 sps:$4 sm:$0xff]  }
   0xd   :  { %1960 = vmatprep.subr.bf16.mxu0 %v2626_v13  ;;  %v2660_v36 = vld [vmem:[%s3951_s1 + $0x94] ss:$8 sps:$4 sm:$0xff]   ;;  %v2664_v38 = vld [vmem:[%s3951_s1 + $0x90] ss:$8 sps:$4 sm:$0xff]   ;;  %v2666_v40 = vld [vmem:[%s3951_s1 + $0xa4] ss:$8 sps:$4 sm:$0xff]  }
   0xe   :  { %v2662_v37 = vld [vmem:[%s3951_s1 + $0x494] ss:$8 sps:$4 sm:$0xff]   ;;  %v2665_v39 = vld [vmem:[%s3951_s1 + $0x490] ss:$8 sps:$4 sm:$0xff]   ;;  %v2668_v41 = vld [vmem:[%s3951_s1 + $0x4a4] ss:$8 sps:$4 sm:$0xff]  }
   0xf   :  { %1749 = vmatpush1.bf16.msra.mxu1 %v2628_v14  ;;  %v2670_v42 = vld [vmem:[%s3951_s1 + $0xa0] ss:$8 sps:$4 sm:$0xff]   ;;  %v2672_v44 = vld [vmem:[%s3951_s1 + $0xb4] ss:$8 sps:$4 sm:$0xff]   ;;  %v2676_v46 = vld [vmem:[%s3951_s1 + $0xb0] ss:$8 sps:$4 sm:$0xff]  }
  0x10   :  { %1961 = vmatpush1.bf16.msra.mxu0 %v2629_v15  ;;  %1750 = vmatprep.subr.bf16.mxu1 %v2630_v16  ;;  %v2671_v43 = vld [vmem:[%s3951_s1 + $0x4a0] ss:$8 sps:$4 sm:$0xff]   ;;  %v2674_v45 = vld [vmem:[%s3951_s1 + $0x4b4] ss:$8 sps:$4 sm:$0xff]   ;;  %v2677_v47 = vld [vmem:[%s3951_s1 + $0x4b0] ss:$8 sps:$4 sm:$0xff]  }
  0x11   :  { %1962 = vmatprep.subr.bf16.mxu0 %v2632_v17  ;;  %v14_v48 = vld [vmem:[%s3952_s0] sm:$0xff]  ;;  %v2684_v58 = vld [vmem:[%s3951_s1 + $0xd4] ss:$8 sps:$4 sm:$0xff]   ;;  %v2688_v60 = vld [vmem:[%s3951_s1 + $0xd0] ss:$8 sps:$4 sm:$0xff]  }
  0x12   :  { %v22_v49 = vld [vmem:[%s3952_s0 + $0x40] sm:$0xff]  ;;  %v2686_v59 = vld [vmem:[%s3951_s1 + $0x4d4] ss:$8 sps:$4 sm:$0xff]   ;;  %v2689_v61 = vld [vmem:[%s3951_s1 + $0x4d0] ss:$8 sps:$4 sm:$0xff]  }
  0x13   :  { %1751 = vmatpush1.bf16.msra.mxu1 %v2634_v18  ;;  %v2678_v50 = vld [vmem:[%s3951_s1 + $0xc4] ss:$8 sps:$4 sm:$0xff]   ;;  %v2255_v52 = vcombine.high %v14_v48, %v22_v49  ;;  %v2682_v56 = vld [vmem:[%s3951_s1 + $0xc0] ss:$8 sps:$4 sm:$0xff]   ;;  %v2696_v2 = vld [vmem:[%s3951_s1 + $0xf4] ss:$8 sps:$4 sm:$0xff]   ;;  %v2254_v8 = vcombine.low %v14_v48, %v22_v49 }
  0x14   :  { %1963 = vmatpush1.bf16.msra.mxu0 %v2635_v19  ;;  %1752 = vmatprep.subr.bf16.mxu1 %v2636_v20  ;;  %v2680_v51 = vld [vmem:[%s3951_s1 + $0x4c4] ss:$8 sps:$4 sm:$0xff]   ;;  %v2683_v57 = vld [vmem:[%s3951_s1 + $0x4c0] ss:$8 sps:$4 sm:$0xff]   ;;  %v2698_v3 = vld [vmem:[%s3951_s1 + $0x4f4] ss:$8 sps:$4 sm:$0xff]  }
  0x15   :  { %1964 = vmatprep.subr.bf16.mxu0 %v2638_v21  ;;  %v18_v53 = vld [vmem:[%s3952_s0 + $0x20] sm:$0xff]  ;;  %1774 = vmatprep.mubr.bf16.mxu1 %v2255_v52  ;;  %v2700_v4 = vld [vmem:[%s3951_s1 + $0xf0] ss:$8 sps:$4 sm:$0xff]   ;;  %v2710_v12 = vld [vmem:[%s3951_s1 + $0x114] ss:$8 sps:$4 sm:$0xff]  }
  0x16   :  { %v26_v54 = vld [vmem:[%s3952_s0 + $0x60] sm:$0xff]  ;;  %v2701_v5 = vld [vmem:[%s3951_s1 + $0x4f0] ss:$8 sps:$4 sm:$0xff]   ;;  %v2713_v13 = vld [vmem:[%s3951_s1 + $0x514] ss:$8 sps:$4 sm:$0xff]  }
  0x17   :  { %1753 = vmatpush1.bf16.msra.mxu1 %v2640_v22  ;;  %v2263_v55 = vcombine.high %v18_v53, %v26_v54  ;;  %v2690_v62 = vld [vmem:[%s3951_s1 + $0xe4] ss:$8 sps:$4 sm:$0xff]   ;;  %v2694_v0 = vld [vmem:[%s3951_s1 + $0xe0] ss:$8 sps:$4 sm:$0xff]   ;;  %v2262_v10 = vcombine.low %v18_v53, %v26_v54  ;;  %v2708_v14 = vld [vmem:[%s3951_s1 + $0x110] ss:$8 sps:$4 sm:$0xff]  }
  0x18   :  { %1965 = vmatpush1.bf16.msra.mxu0 %v2641_v23  ;;  %1754 = vmatprep.subr.bf16.mxu1 %v2642_v24  ;;  %v2692_v63 = vld [vmem:[%s3951_s1 + $0x4e4] ss:$8 sps:$4 sm:$0xff]   ;;  %v2695_v1 = vld [vmem:[%s3951_s1 + $0x4e0] ss:$8 sps:$4 sm:$0xff]   ;;  %v2711_v15 = vld [vmem:[%s3951_s1 + $0x510] ss:$8 sps:$4 sm:$0xff]  }
  0x19   :  { %1966 = vmatprep.subr.bf16.mxu0 %v2644_v25  ;;  %1986 = vmatprep.mubr.bf16.mxu0 %v2263_v55  ;;  %v2704_v6 = vld [vmem:[%s3951_s1 + $0x104] ss:$8 sps:$4 sm:$0xff]   ;;  %v2702_v9 = vld [vmem:[%s3951_s1 + $0x100] ss:$8 sps:$4 sm:$0xff]   ;;  %v2722_v20 = vld [vmem:[%s3951_s1 + $0x134] ss:$8 sps:$4 sm:$0xff]  }
  0x1a   :  { %v2707_v7 = vld [vmem:[%s3951_s1 + $0x504] ss:$8 sps:$4 sm:$0xff]   ;;  %v2705_v11 = vld [vmem:[%s3951_s1 + $0x500] ss:$8 sps:$4 sm:$0xff]   ;;  %v2725_v21 = vld [vmem:[%s3951_s1 + $0x534] ss:$8 sps:$4 sm:$0xff]  }
  0x1b   :  { %1755 = vmatpush1.bf16.msra.mxu1 %v2646_v26  ;;  %v2716_v16 = vld [vmem:[%s3951_s1 + $0x124] ss:$8 sps:$4 sm:$0xff]   ;;  %v2714_v18 = vld [vmem:[%s3951_s1 + $0x120] ss:$8 sps:$4 sm:$0xff]   ;;  %v2720_v22 = vld [vmem:[%s3951_s1 + $0x130] ss:$8 sps:$4 sm:$0xff]  }
  0x1c   :  { %1967 = vmatpush1.bf16.msra.mxu0 %v2647_v27  ;;  %1756 = vmatprep.subr.bf16.mxu1 %v2648_v28  ;;  %v2719_v17 = vld [vmem:[%s3951_s1 + $0x524] ss:$8 sps:$4 sm:$0xff]   ;;  %v2717_v19 = vld [vmem:[%s3951_s1 + $0x520] ss:$8 sps:$4 sm:$0xff]   ;;  %v2723_v23 = vld [vmem:[%s3951_s1 + $0x530] ss:$8 sps:$4 sm:$0xff]  }
  0x1d   :  { %1968 = vmatprep.subr.bf16.mxu0 %v2650_v29  ;;  %v2728_v24 = vld [vmem:[%s3951_s1 + $0x144] ss:$8 sps:$4 sm:$0xff]   ;;  %v2726_v26 = vld [vmem:[%s3951_s1 + $0x140] ss:$8 sps:$4 sm:$0xff]   ;;  %v2734_v28 = vld [vmem:[%s3951_s1 + $0x154] ss:$8 sps:$4 sm:$0xff]  }
  0x1e   :  { %v2731_v25 = vld [vmem:[%s3951_s1 + $0x544] ss:$8 sps:$4 sm:$0xff]   ;;  %v2729_v27 = vld [vmem:[%s3951_s1 + $0x540] ss:$8 sps:$4 sm:$0xff]   ;;  %v2737_v29 = vld [vmem:[%s3951_s1 + $0x554] ss:$8 sps:$4 sm:$0xff]  }
  0x1f   :  { %1757 = vmatpush1.bf16.msra.mxu1 %v2652_v30  ;;  %v30_v30 = vld [vmem:[%s3952_s0 + $0x80] sm:$0xff]  ;;  %v3336_v49 = vld [vmem:[%s3952_s0 + $0x28] sm:$0xff]  ;;  %v2747_v52 = vld [vmem:[%s3951_s1 + $0x570] ss:$8 sps:$4 sm:$0xff]  }
  0x20   :  { %1969 = vmatpush1.bf16.msra.mxu0 %v2653_v31  ;;  %1758 = vmatprep.subr.bf16.mxu1 %v2654_v32  ;;  %v38_v31 = vld [vmem:[%s3952_s0 + $0xc0] sm:$0xff]  ;;  %v2732_v32 = vld [vmem:[%s3951_s1 + $0x150] ss:$8 sps:$4 sm:$0xff]  }
  0x21   :  { %1970 = vmatprep.subr.bf16.mxu0 %v2656_v33  ;;  %v2271_v33 = vcombine.high %v30_v30, %v38_v31  ;;  %v2752_v54 = vld [vmem:[%s3951_s1 + $0x184] ss:$8 sps:$4 sm:$0xff]  }
  0x22   :  { %v2755_v55 = vld [vmem:[%s3951_s1 + $0x584] ss:$8 sps:$4 sm:$0xff]  }
  0x23   :  { %1759 = vmatpush1.bf16.msra.mxu1 %v2658_v34  ;;  %v2735_v34 = vld [vmem:[%s3951_s1 + $0x550] ss:$8 sps:$4 sm:$0xff]  }
  0x24   :  { %1971 = vmatpush1.bf16.msra.mxu0 %v2659_v35  ;;  %1760 = vmatprep.subr.bf16.mxu1 %v2660_v36  ;;  %v34_v35 = vld [vmem:[%s3952_s0 + $0xa0] sm:$0xff] }
  0x25   :  { %1972 = vmatprep.subr.bf16.mxu0 %v2662_v37  ;;  %v42_v36 = vld [vmem:[%s3952_s0 + $0xe0] sm:$0xff]  ;;  %v2270_v37 = vcombine.low %v30_v30, %v38_v31  ;;  %v2806_v30 = vld [vmem:[%s3951_s1 + $0x214] ss:$8 sps:$4 sm:$0xff]  }
  0x26   :  { %v2809_v31 = vld [vmem:[%s3951_s1 + $0x614] ss:$8 sps:$4 sm:$0xff]  }
  0x27   :  { %1761 = vmatpush1.bf16.msra.mxu1 %v2664_v38  ;;  %v2740_v38 = vld [vmem:[%s3951_s1 + $0x164] ss:$8 sps:$4 sm:$0xff]  }
  0x28   :  { %1973 = vmatpush1.bf16.msra.mxu0 %v2665_v39  ;;  %1762 = vmatprep.subr.bf16.mxu1 %v2666_v40  ;;  %v2279_v39 = vcombine.high %v34_v35, %v42_v36  ;;  %v2278_v40 = vcombine.low %v34_v35, %v42_v36  ;;  %v2804_v36 = vld [vmem:[%s3951_s1 + $0x210] ss:$8 sps:$4 sm:$0xff]  }
  0x29   :  { %1974 = vmatprep.subr.bf16.mxu0 %v2668_v41  ;;  %v2743_v41 = vld [vmem:[%s3951_s1 + $0x564] ss:$8 sps:$4 sm:$0xff]  }
  0x2b   :  { %1763 = vmatpush1.bf16.msra.mxu1 %v2670_v42  ;;  %v2738_v42 = vld [vmem:[%s3951_s1 + $0x160] ss:$8 sps:$4 sm:$0xff]  }
  0x2c   :  { %1975 = vmatpush1.bf16.msra.mxu0 %v2671_v43  ;;  %1764 = vmatprep.subr.bf16.mxu1 %v2672_v44  ;;  %v2741_v43 = vld [vmem:[%s3951_s1 + $0x560] ss:$8 sps:$4 sm:$0xff]  }
  0x2d   :  { %1976 = vmatprep.subr.bf16.mxu0 %v2674_v45  ;;  %v3318_v44 = vld [vmem:[%s3952_s0 + $0x8] sm:$0xff] }
  0x2e   :  { %v3323_v45 = vld [vmem:[%s3952_s0 + $0x48] sm:$0xff] }
  0x2f   :  { %1765 = vmatpush1.bf16.msra.mxu1 %v2676_v46  ;;  %v2746_v46 = vld [vmem:[%s3951_s1 + $0x174] ss:$8 sps:$4 sm:$0xff]   ;;  %v2257_v48 = vcombine.high %v3318_v44, %v3323_v45 }
  0x30   :  { %1977 = vmatpush1.bf16.msra.mxu0 %v2677_v47  ;;  %1766 = vmatprep.subr.bf16.mxu1 %v2678_v50  ;;  %v2749_v47 = vld [vmem:[%s3951_s1 + $0x574] ss:$8 sps:$4 sm:$0xff]   ;;  %v3341_v50 = vld [vmem:[%s3952_s0 + $0x68] sm:$0xff] }
  0x31   :  { %1978 = vmatprep.subr.bf16.mxu0 %v2680_v51  ;;  %v2744_v51 = vld [vmem:[%s3951_s1 + $0x170] ss:$8 sps:$4 sm:$0xff]   ;;  %v2265_v53 = vcombine.high %v3336_v49, %v3341_v50 }
  0x33   :  { %1767 = vmatpush1.bf16.msra.mxu1 %v2682_v56  ;;  %v2750_v56 = vld [vmem:[%s3951_s1 + $0x180] ss:$8 sps:$4 sm:$0xff]  }
  0x34   :  { %1979 = vmatpush1.bf16.msra.mxu0 %v2683_v57  ;;  %1768 = vmatprep.subr.bf16.mxu1 %v2684_v58  ;;  %v2753_v57 = vld [vmem:[%s3951_s1 + $0x580] ss:$8 sps:$4 sm:$0xff]   ;;  %v2758_v58 = vld [vmem:[%s3951_s1 + $0x194] ss:$8 sps:$4 sm:$0xff]  }
  0x35   :  { %1980 = vmatprep.subr.bf16.mxu0 %v2686_v59  ;;  %v2761_v59 = vld [vmem:[%s3951_s1 + $0x594] ss:$8 sps:$4 sm:$0xff]  }
  0x37   :  { %1769 = vmatpush1.bf16.msra.mxu1 %v2688_v60  ;;  %v2756_v60 = vld [vmem:[%s3951_s1 + $0x190] ss:$8 sps:$4 sm:$0xff]  }
  0x38   :  { %1981 = vmatpush1.bf16.msra.mxu0 %v2689_v61  ;;  %1770 = vmatprep.subr.bf16.mxu1 %v2690_v62  ;;  %v2759_v61 = vld [vmem:[%s3951_s1 + $0x590] ss:$8 sps:$4 sm:$0xff]   ;;  %v2764_v62 = vld [vmem:[%s3951_s1 + $0x1a4] ss:$8 sps:$4 sm:$0xff]  }
  0x39   :  { %1982 = vmatprep.subr.bf16.mxu0 %v2692_v63  ;;  %v2767_v63 = vld [vmem:[%s3951_s1 + $0x5a4] ss:$8 sps:$4 sm:$0xff]  }
  0x3b   :  { %1771 = vmatpush1.bf16.msra.mxu1 %v2694_v0  ;;  %v2762_v0 = vld [vmem:[%s3951_s1 + $0x1a0] ss:$8 sps:$4 sm:$0xff]  }
  0x3c   :  { %1983 = vmatpush1.bf16.msra.mxu0 %v2695_v1  ;;  %1772 = vmatprep.subr.bf16.mxu1 %v2696_v2  ;;  %v2765_v1 = vld [vmem:[%s3951_s1 + $0x5a0] ss:$8 sps:$4 sm:$0xff]   ;;  %v2770_v2 = vld [vmem:[%s3951_s1 + $0x1b4] ss:$8 sps:$4 sm:$0xff]  }
  0x3d   :  { %1984 = vmatprep.subr.bf16.mxu0 %v2698_v3  ;;  %v2773_v3 = vld [vmem:[%s3951_s1 + $0x5b4] ss:$8 sps:$4 sm:$0xff]  }
  0x3f   :  { %1773 = vmatpush1.bf16.msra.mxu1 %v2700_v4  ;;  %v2768_v4 = vld [vmem:[%s3951_s1 + $0x1b0] ss:$8 sps:$4 sm:$0xff]  }
  0x40   :  { %1985 = vmatpush1.bf16.msra.mxu0 %v2701_v5  ;;  %1795 = vmatprep.subr.bf16.mxu1 %v2704_v6  ;;  %v2771_v5 = vld [vmem:[%s3951_s1 + $0x5b0] ss:$8 sps:$4 sm:$0xff]   ;;  %v2776_v6 = vld [vmem:[%s3951_s1 + $0x1c4] ss:$8 sps:$4 sm:$0xff]  }
  0x41   :  { %2007 = vmatprep.subr.bf16.mxu0 %v2707_v7  ;;  %v2779_v7 = vld [vmem:[%s3951_s1 + $0x5c4] ss:$8 sps:$4 sm:$0xff]  }
  0x42   :  { %1775 = vmatmul.mubr.bf16.vlgmr.msra.gmra.mrb[0].mxu1 %v2254_v8  ;;  %v2774_v8 = vld [vmem:[%s3951_s1 + $0x1c0] ss:$8 sps:$4 sm:$0xff]  }
  0x43   :  { %1987 = vmatmul.mubr.bf16.vlgmr.msra.gmra.mrb[0].mxu0 %v2262_v10  ;;  %1796 = vmatpush1.bf16.msra.mxu1 %v2702_v9  ;;  %v2777_v9 = vld [vmem:[%s3951_s1 + $0x5c0] ss:$8 sps:$4 sm:$0xff]   ;;  %v2782_v10 = vld [vmem:[%s3951_s1 + $0x1d4] ss:$8 sps:$4 sm:$0xff]  }
  0x44   :  { %2008 = vmatpush1.bf16.msra.mxu0 %v2705_v11  ;;  %1797 = vmatprep.subr.bf16.mxu1 %v2710_v12  ;;  %v2785_v11 = vld [vmem:[%s3951_s1 + $0x5d4] ss:$8 sps:$4 sm:$0xff]   ;;  %v2780_v12 = vld [vmem:[%s3951_s1 + $0x1d0] ss:$8 sps:$4 sm:$0xff]  }
  0x45   :  { %2009 = vmatprep.subr.bf16.mxu0 %v2713_v13  ;;  %1784 = vmatprep.mubr.bf16.mxu1 %v2271_v33  ;;  %v2783_v13 = vld [vmem:[%s3951_s1 + $0x5d0] ss:$8 sps:$4 sm:$0xff]   ;;  %v43_v33 = vld [vmem:[%s3952_s0 + $0xe8] sm:$0xff] }
  0x46   :  { %1996 = vmatprep.mubr.bf16.mxu0 %v2279_v39  ;;  %v2815_v39 = vld [vmem:[%s3951_s1 + $0x624] ss:$8 sps:$4 sm:$0xff]  }
  0x47   :  { %1798 = vmatpush1.bf16.msra.mxu1 %v2708_v14  ;;  %v2788_v14 = vld [vmem:[%s3951_s1 + $0x1e4] ss:$8 sps:$4 sm:$0xff]  }
  0x48   :  { %2010 = vmatpush1.bf16.msra.mxu0 %v2711_v15  ;;  %1799 = vmatprep.subr.bf16.mxu1 %v2716_v16  ;;  %v2791_v15 = vld [vmem:[%s3951_s1 + $0x5e4] ss:$8 sps:$4 sm:$0xff]   ;;  %v2786_v16 = vld [vmem:[%s3951_s1 + $0x1e0] ss:$8 sps:$4 sm:$0xff]  }
  0x49   :  { %2011 = vmatprep.subr.bf16.mxu0 %v2719_v17  ;;  %v2789_v17 = vld [vmem:[%s3951_s1 + $0x5e0] ss:$8 sps:$4 sm:$0xff]  }
  0x4a   :  { %1785 = vmatmul.mubr.bf16.gmra.mrb[4].mxu1 %v2270_v37  ;;  %v2807_v37 = vld [vmem:[%s3951_s1 + $0x610] ss:$8 sps:$4 sm:$0xff]  }
  0x4b   :  { %1800 = vmatpush1.bf16.msra.mxu1 %v2714_v18  ;;  %1997 = vmatmul.mubr.bf16.gmra.mrb[4].mxu0 %v2278_v40  ;;  %v2794_v18 = vld [vmem:[%s3951_s1 + $0x1f4] ss:$8 sps:$4 sm:$0xff]   ;;  %v2810_v40 = vld [vmem:[%s3951_s1 + $0x220] ss:$8 sps:$4 sm:$0xff]  }
  0x4c   :  { %2012 = vmatpush1.bf16.msra.mxu0 %v2717_v19  ;;  %1801 = vmatprep.subr.bf16.mxu1 %v2722_v20  ;;  %v2797_v19 = vld [vmem:[%s3951_s1 + $0x5f4] ss:$8 sps:$4 sm:$0xff]   ;;  %v2792_v20 = vld [vmem:[%s3951_s1 + $0x1f0] ss:$8 sps:$4 sm:$0xff]  }
  0x4d   :  { %2013 = vmatprep.subr.bf16.mxu0 %v2725_v21  ;;  %1827 = vmatprep.mubr.bf16.mxu1 %v2257_v48  ;;  %v2795_v21 = vld [vmem:[%s3951_s1 + $0x5f0] ss:$8 sps:$4 sm:$0xff]   ;;  %v2818_v48 = vld [vmem:[%s3951_s1 + $0x234] ss:$8 sps:$4 sm:$0xff]  }
  0x4e   :  { %2039 = vmatprep.mubr.bf16.mxu0 %v2265_v53  ;;  %v2819_v53 = vld [vmem:[%s3951_s1 + $0x630] ss:$8 sps:$4 sm:$0xff]  }
  0x4f   :  { %1802 = vmatpush1.bf16.msra.mxu1 %v2720_v22  ;;  %v2800_v22 = vld [vmem:[%s3951_s1 + $0x204] ss:$8 sps:$4 sm:$0xff]  }
  0x50   :  { %2014 = vmatpush1.bf16.msra.mxu0 %v2723_v23  ;;  %1803 = vmatprep.subr.bf16.mxu1 %v2728_v24  ;;  %v2803_v23 = vld [vmem:[%s3951_s1 + $0x604] ss:$8 sps:$4 sm:$0xff]   ;;  %v2798_v24 = vld [vmem:[%s3951_s1 + $0x200] ss:$8 sps:$4 sm:$0xff]  }
  0x51   :  { %2015 = vmatprep.subr.bf16.mxu0 %v2731_v25  ;;  %v2801_v25 = vld [vmem:[%s3951_s1 + $0x600] ss:$8 sps:$4 sm:$0xff]  }
  0x53   :  { %1804 = vmatpush1.bf16.msra.mxu1 %v2726_v26  ;;  %v31_v26 = vld [vmem:[%s3952_s0 + $0x88] sm:$0xff] }
  0x54   :  { %2016 = vmatpush1.bf16.msra.mxu0 %v2729_v27  ;;  %1805 = vmatprep.subr.bf16.mxu1 %v2734_v28  ;;  %v2256_v27 = vcombine.low %v3318_v44, %v3323_v45  ;;  %v2264_v28 = vcombine.low %v3336_v49, %v3341_v50  ;;  %v3507_v45 = vld [vmem:[%s3952_s0 + $0x50] sm:$0xff] }
  0x55   :  { %2017 = vmatprep.subr.bf16.mxu0 %v2737_v29  ;;  %v39_v29 = vld [vmem:[%s3952_s0 + $0xc8] sm:$0xff]  ;;  %v2821_v49 = vld [vmem:[%s3951_s1 + $0x634] ss:$8 sps:$4 sm:$0xff]  }
  0x57   :  { %1806 = vmatpush1.bf16.msra.mxu1 %v2732_v32  ;;  %v35_v32 = vld [vmem:[%s3952_s0 + $0xa8] sm:$0xff] }
  0x58   :  { %2018 = vmatpush1.bf16.msra.mxu0 %v2735_v34  ;;  %1807 = vmatprep.subr.bf16.mxu1 %v2740_v38  ;;  %v2273_v34 = vcombine.high %v31_v26, %v39_v29  ;;  %v2281_v35 = vcombine.high %v35_v32, %v43_v33  ;;  %v2812_v38 = vld [vmem:[%s3951_s1 + $0x224] ss:$8 sps:$4 sm:$0xff]   ;;  %v2280_v44 = vcombine.low %v35_v32, %v43_v33  ;;  %v2882_v32 = vld [vmem:[%s3951_s1 + $0x2e0] ss:$8 sps:$4 sm:$0xff]  }
  0x59   :  { %2019 = vmatprep.subr.bf16.mxu0 %v2743_v41  ;;  %v2813_v41 = vld [vmem:[%s3951_s1 + $0x620] ss:$8 sps:$4 sm:$0xff]  }
  0x5a   :  { %v2885_v33 = vld [vmem:[%s3951_s1 + $0x6e0] ss:$8 sps:$4 sm:$0xff]  }
  0x5b   :  { %1808 = vmatpush1.bf16.msra.mxu1 %v2738_v42  ;;  %v3502_v42 = vld [vmem:[%s3952_s0 + $0x10] sm:$0xff] }
  0x5c   :  { %2020 = vmatpush1.bf16.msra.mxu0 %v2741_v43  ;;  %1809 = vmatprep.subr.bf16.mxu1 %v2746_v46  ;;  %v2272_v43 = vcombine.low %v31_v26, %v39_v29  ;;  %v3512_v46 = vld [vmem:[%s3952_s0 + $0x30] sm:$0xff]  ;;  %v2259_v50 = vcombine.high %v3502_v42, %v3507_v45 }
  0x5d   :  { %2021 = vmatprep.subr.bf16.mxu0 %v2749_v47  ;;  %v3517_v47 = vld [vmem:[%s3952_s0 + $0x70] sm:$0xff] }
  0x5e   :  { %v2878_v26 = vld [vmem:[%s3951_s1 + $0x2d4] ss:$8 sps:$4 sm:$0xff]   ;;  %v2879_v29 = vld [vmem:[%s3951_s1 + $0x6d0] ss:$8 sps:$4 sm:$0xff]  }
  0x5f   :  { %1810 = vmatpush1.bf16.msra.mxu1 %v2744_v51  ;;  %v2267_v51 = vcombine.high %v3512_v46, %v3517_v47 }
  0x60   :  { %2022 = vmatpush1.bf16.msra.mxu0 %v2747_v52  ;;  %1811 = vmatprep.subr.bf16.mxu1 %v2752_v54  ;;  %v2816_v52 = vld [vmem:[%s3951_s1 + $0x230] ss:$8 sps:$4 sm:$0xff]   ;;  %v2824_v54 = vld [vmem:[%s3951_s1 + $0x244] ss:$8 sps:$4 sm:$0xff]  }
  0x61   :  { %2023 = vmatprep.subr.bf16.mxu0 %v2755_v55  ;;  %v2827_v55 = vld [vmem:[%s3951_s1 + $0x644] ss:$8 sps:$4 sm:$0xff]  }
  0x63   :  { %1812 = vmatpush1.bf16.msra.mxu1 %v2750_v56  ;;  %v2822_v56 = vld [vmem:[%s3951_s1 + $0x240] ss:$8 sps:$4 sm:$0xff]  }
  0x64   :  { %2024 = vmatpush1.bf16.msra.mxu0 %v2753_v57  ;;  %1813 = vmatprep.subr.bf16.mxu1 %v2758_v58  ;;  %v2825_v57 = vld [vmem:[%s3951_s1 + $0x640] ss:$8 sps:$4 sm:$0xff]   ;;  %v2830_v58 = vld [vmem:[%s3951_s1 + $0x254] ss:$8 sps:$4 sm:$0xff]  }
  0x65   :  { %2025 = vmatprep.subr.bf16.mxu0 %v2761_v59  ;;  %v2833_v59 = vld [vmem:[%s3951_s1 + $0x654] ss:$8 sps:$4 sm:$0xff]  }
  0x67   :  { %1814 = vmatpush1.bf16.msra.mxu1 %v2756_v60  ;;  %v2828_v60 = vld [vmem:[%s3951_s1 + $0x250] ss:$8 sps:$4 sm:$0xff]  }
  0x68   :  { %2026 = vmatpush1.bf16.msra.mxu0 %v2759_v61  ;;  %1815 = vmatprep.subr.bf16.mxu1 %v2764_v62  ;;  %v2831_v61 = vld [vmem:[%s3951_s1 + $0x650] ss:$8 sps:$4 sm:$0xff]   ;;  %v2836_v62 = vld [vmem:[%s3951_s1 + $0x264] ss:$8 sps:$4 sm:$0xff]  }
  0x69   :  { %2027 = vmatprep.subr.bf16.mxu0 %v2767_v63  ;;  %v2839_v63 = vld [vmem:[%s3951_s1 + $0x664] ss:$8 sps:$4 sm:$0xff]  }
  0x6b   :  { %1816 = vmatpush1.bf16.msra.mxu1 %v2762_v0  ;;  %v2834_v0 = vld [vmem:[%s3951_s1 + $0x260] ss:$8 sps:$4 sm:$0xff]  }
  0x6c   :  { %2028 = vmatpush1.bf16.msra.mxu0 %v2765_v1  ;;  %1817 = vmatprep.subr.bf16.mxu1 %v2770_v2  ;;  %v2837_v1 = vld [vmem:[%s3951_s1 + $0x660] ss:$8 sps:$4 sm:$0xff]   ;;  %v2842_v2 = vld [vmem:[%s3951_s1 + $0x274] ss:$8 sps:$4 sm:$0xff]  }
  0x6d   :  { %2029 = vmatprep.subr.bf16.mxu0 %v2773_v3  ;;  %v2845_v3 = vld [vmem:[%s3951_s1 + $0x674] ss:$8 sps:$4 sm:$0xff]  }
  0x6f   :  { %1818 = vmatpush1.bf16.msra.mxu1 %v2768_v4  ;;  %v2840_v4 = vld [vmem:[%s3951_s1 + $0x270] ss:$8 sps:$4 sm:$0xff]  }
  0x70   :  { %2030 = vmatpush1.bf16.msra.mxu0 %v2771_v5  ;;  %1819 = vmatprep.subr.bf16.mxu1 %v2776_v6  ;;  %v2843_v5 = vld [vmem:[%s3951_s1 + $0x670] ss:$8 sps:$4 sm:$0xff]   ;;  %v2848_v6 = vld [vmem:[%s3951_s1 + $0x284] ss:$8 sps:$4 sm:$0xff]  }
  0x71   :  { %2031 = vmatprep.subr.bf16.mxu0 %v2779_v7  ;;  %v2851_v7 = vld [vmem:[%s3951_s1 + $0x684] ss:$8 sps:$4 sm:$0xff]  }
  0x73   :  { %1820 = vmatpush1.bf16.msra.mxu1 %v2774_v8  ;;  %v2846_v8 = vld [vmem:[%s3951_s1 + $0x280] ss:$8 sps:$4 sm:$0xff]  }
  0x74   :  { %2032 = vmatpush1.bf16.msra.mxu0 %v2777_v9  ;;  %1821 = vmatprep.subr.bf16.mxu1 %v2782_v10  ;;  %v2849_v9 = vld [vmem:[%s3951_s1 + $0x680] ss:$8 sps:$4 sm:$0xff]   ;;  %v2854_v10 = vld [vmem:[%s3951_s1 + $0x294] ss:$8 sps:$4 sm:$0xff]  }
  0x75   :  { %2033 = vmatprep.subr.bf16.mxu0 %v2785_v11  ;;  %v2857_v11 = vld [vmem:[%s3951_s1 + $0x694] ss:$8 sps:$4 sm:$0xff]  }
  0x77   :  { %1822 = vmatpush1.bf16.msra.mxu1 %v2780_v12  ;;  %v2852_v12 = vld [vmem:[%s3951_s1 + $0x290] ss:$8 sps:$4 sm:$0xff]  }
  0x78   :  { %2034 = vmatpush1.bf16.msra.mxu0 %v2783_v13  ;;  %1823 = vmatprep.subr.bf16.mxu1 %v2788_v14  ;;  %v2855_v13 = vld [vmem:[%s3951_s1 + $0x690] ss:$8 sps:$4 sm:$0xff]   ;;  %v2860_v14 = vld [vmem:[%s3951_s1 + $0x2a4] ss:$8 sps:$4 sm:$0xff]  }
  0x79   :  { %2035 = vmatprep.subr.bf16.mxu0 %v2791_v15  ;;  %v2863_v15 = vld [vmem:[%s3951_s1 + $0x6a4] ss:$8 sps:$4 sm:$0xff]  }
  0x7b   :  { %1824 = vmatpush1.bf16.msra.mxu1 %v2786_v16  ;;  %v2858_v16 = vld [vmem:[%s3951_s1 + $0x2a0] ss:$8 sps:$4 sm:$0xff]  }
  0x7c   :  { %2036 = vmatpush1.bf16.msra.mxu0 %v2789_v17  ;;  %1825 = vmatprep.subr.bf16.mxu1 %v2794_v18  ;;  %v2861_v17 = vld [vmem:[%s3951_s1 + $0x6a0] ss:$8 sps:$4 sm:$0xff]   ;;  %v2866_v18 = vld [vmem:[%s3951_s1 + $0x2b4] ss:$8 sps:$4 sm:$0xff]  }
  0x7d   :  { %2037 = vmatprep.subr.bf16.mxu0 %v2797_v19  ;;  %v2869_v19 = vld [vmem:[%s3951_s1 + $0x6b4] ss:$8 sps:$4 sm:$0xff]  }
  0x7f   :  { %1826 = vmatpush1.bf16.msra.mxu1 %v2792_v20  ;;  %v2864_v20 = vld [vmem:[%s3951_s1 + $0x2b0] ss:$8 sps:$4 sm:$0xff]  }
  0x80   :  { %2038 = vmatpush1.bf16.msra.mxu0 %v2795_v21  ;;  %1848 = vmatprep.subr.bf16.mxu1 %v2800_v22  ;;  %v2867_v21 = vld [vmem:[%s3951_s1 + $0x6b0] ss:$8 sps:$4 sm:$0xff]   ;;  %v2872_v22 = vld [vmem:[%s3951_s1 + $0x2c4] ss:$8 sps:$4 sm:$0xff]  }
  0x81   :  { %2060 = vmatprep.subr.bf16.mxu0 %v2803_v23  ;;  %v2875_v23 = vld [vmem:[%s3951_s1 + $0x6c4] ss:$8 sps:$4 sm:$0xff]  }
  0x82   :  { %1828 = vmatmul.mubr.bf16.vlgmr.msra.gmra.mrb[0].mxu1 %v2256_v27  ;;  %v2881_v27 = vld [vmem:[%s3951_s1 + $0x6d4] ss:$8 sps:$4 sm:$0xff]  }
  0x83   :  { %2040 = vmatmul.mubr.bf16.vlgmr.msra.gmra.mrb[0].mxu0 %v2264_v28  ;;  %1849 = vmatpush1.bf16.msra.mxu1 %v2798_v24  ;;  %v2870_v24 = vld [vmem:[%s3951_s1 + $0x2c0] ss:$8 sps:$4 sm:$0xff]   ;;  %v2876_v28 = vld [vmem:[%s3951_s1 + $0x2d0] ss:$8 sps:$4 sm:$0xff]  }
  0x84   :  { %2061 = vmatpush1.bf16.msra.mxu0 %v2801_v25  ;;  %1850 = vmatprep.subr.bf16.mxu1 %v2806_v30  ;;  %v2873_v25 = vld [vmem:[%s3951_s1 + $0x6c0] ss:$8 sps:$4 sm:$0xff]   ;;  %v2884_v30 = vld [vmem:[%s3951_s1 + $0x2e4] ss:$8 sps:$4 sm:$0xff]  }
  0x85   :  { %2062 = vmatprep.subr.bf16.mxu0 %v2809_v31  ;;  %1837 = vmatprep.mubr.bf16.mxu1 %v2273_v34  ;;  %v2887_v31 = vld [vmem:[%s3951_s1 + $0x6e4] ss:$8 sps:$4 sm:$0xff]   ;;  %v2890_v34 = vld [vmem:[%s3951_s1 + $0x2f4] ss:$8 sps:$4 sm:$0xff]  }
  0x86   :  { %2049 = vmatprep.mubr.bf16.mxu0 %v2281_v35  ;;  %v2893_v35 = vld [vmem:[%s3951_s1 + $0x6f4] ss:$8 sps:$4 sm:$0xff]  }
  0x87   :  { %1851 = vmatpush1.bf16.msra.mxu1 %v2804_v36  ;;  %v2888_v36 = vld [vmem:[%s3951_s1 + $0x2f0] ss:$8 sps:$4 sm:$0xff]  }
  0x88   :  { %2063 = vmatpush1.bf16.msra.mxu0 %v2807_v37  ;;  %1852 = vmatprep.subr.bf16.mxu1 %v2812_v38  ;;  %v2891_v37 = vld [vmem:[%s3951_s1 + $0x6f0] ss:$8 sps:$4 sm:$0xff]   ;;  %v2896_v38 = vld [vmem:[%s3951_s1 + $0x304] ss:$8 sps:$4 sm:$0xff]  }
  0x89   :  { %2064 = vmatprep.subr.bf16.mxu0 %v2815_v39  ;;  %v2899_v39 = vld [vmem:[%s3951_s1 + $0x704] ss:$8 sps:$4 sm:$0xff]  }
  0x8a   :  { %1838 = vmatmul.mubr.bf16.gmra.mrb[4].mxu1 %v2272_v43  ;;  %v2266_v43 = vcombine.low %v3512_v46, %v3517_v47  ;;  %v2902_v46 = vld [vmem:[%s3951_s1 + $0x314] ss:$8 sps:$4 sm:$0xff]  }
  0x8b   :  { %2050 = vmatmul.mubr.bf16.gmra.mrb[4].mxu0 %v2280_v44  ;;  %1853 = vmatpush1.bf16.msra.mxu1 %v2810_v40  ;;  %v32_v40 = vld [vmem:[%s3952_s0 + $0x90] sm:$0xff] }
  0x8c   :  { %2065 = vmatpush1.bf16.msra.mxu0 %v2813_v41  ;;  %1854 = vmatprep.subr.bf16.mxu1 %v2818_v48  ;;  %v2258_v41 = vcombine.low %v3502_v42, %v3507_v45  ;;  %v40_v44 = vld [vmem:[%s3952_s0 + $0xd0] sm:$0xff]  ;;  %v2894_v42 = vld [vmem:[%s3951_s1 + $0x300] ss:$8 sps:$4 sm:$0xff]  }
  0x8d   :  { %2066 = vmatprep.subr.bf16.mxu0 %v2821_v49  ;;  %1880 = vmatprep.mubr.bf16.mxu1 %v2259_v50  ;;  %v36_v48 = vld [vmem:[%s3952_s0 + $0xb0] sm:$0xff]  ;;  %v2897_v45 = vld [vmem:[%s3951_s1 + $0x700] ss:$8 sps:$4 sm:$0xff]   ;;  %v2275_v50 = vcombine.high %v32_v40, %v40_v44 }
  0x8e   :  { %2092 = vmatprep.mubr.bf16.mxu0 %v2267_v51  ;;  %v44_v49 = vld [vmem:[%s3952_s0 + $0xf0] sm:$0xff] }
  0x8f   :  { %1855 = vmatpush1.bf16.msra.mxu1 %v2816_v52  ;;  %v2905_v47 = vld [vmem:[%s3951_s1 + $0x714] ss:$8 sps:$4 sm:$0xff]   ;;  %v2283_v51 = vcombine.high %v36_v48, %v44_v49  ;;  %v2900_v52 = vld [vmem:[%s3951_s1 + $0x310] ss:$8 sps:$4 sm:$0xff]  }
  0x90   :  { %2067 = vmatpush1.bf16.msra.mxu0 %v2819_v53  ;;  %1856 = vmatprep.subr.bf16.mxu1 %v2824_v54  ;;  %v2903_v53 = vld [vmem:[%s3951_s1 + $0x710] ss:$8 sps:$4 sm:$0xff]   ;;  %v2908_v54 = vld [vmem:[%s3951_s1 + $0x324] ss:$8 sps:$4 sm:$0xff]  }
  0x91   :  { %2068 = vmatprep.subr.bf16.mxu0 %v2827_v55  ;;  %v2911_v55 = vld [vmem:[%s3951_s1 + $0x724] ss:$8 sps:$4 sm:$0xff]  }
  0x93   :  { %1857 = vmatpush1.bf16.msra.mxu1 %v2822_v56  ;;  %v3728_v56 = vld [vmem:[%s3952_s0 + $0x18] sm:$0xff] }
  0x94   :  { %2069 = vmatpush1.bf16.msra.mxu0 %v2825_v57  ;;  %1858 = vmatprep.subr.bf16.mxu1 %v2830_v58  ;;  %v2274_v57 = vcombine.low %v32_v40, %v40_v44  ;;  %v2282_v58 = vcombine.low %v36_v48, %v44_v49  ;;  %v2966_v40 = vld [vmem:[%s3951_s1 + $0x3c0] ss:$8 sps:$4 sm:$0xff]   ;;  %v2977_v44 = vld [vmem:[%s3951_s1 + $0x7d4] ss:$8 sps:$4 sm:$0xff]   ;;  %v2972_v48 = vld [vmem:[%s3951_s1 + $0x3d0] ss:$8 sps:$4 sm:$0xff]  }
  0x95   :  { %2070 = vmatprep.subr.bf16.mxu0 %v2833_v59  ;;  %v3733_v59 = vld [vmem:[%s3952_s0 + $0x58] sm:$0xff] }
  0x96   :  { %v2975_v49 = vld [vmem:[%s3951_s1 + $0x7d0] ss:$8 sps:$4 sm:$0xff]  }
  0x97   :  { %1859 = vmatpush1.bf16.msra.mxu1 %v2828_v60  ;;  %v3738_v60 = vld [vmem:[%s3952_s0 + $0x38] sm:$0xff] }
  0x98   :  { %2071 = vmatpush1.bf16.msra.mxu0 %v2831_v61  ;;  %1860 = vmatprep.subr.bf16.mxu1 %v2836_v62  ;;  %v3743_v61 = vld [vmem:[%s3952_s0 + $0x78] sm:$0xff]  ;;  %v2906_v62 = vld [vmem:[%s3951_s1 + $0x320] ss:$8 sps:$4 sm:$0xff]  }
  0x99   :  { %2072 = vmatprep.subr.bf16.mxu0 %v2839_v63  ;;  %v2909_v63 = vld [vmem:[%s3951_s1 + $0x720] ss:$8 sps:$4 sm:$0xff]  }
  0x9b   :  { %1861 = vmatpush1.bf16.msra.mxu1 %v2834_v0  ;;  %v2914_v0 = vld [vmem:[%s3951_s1 + $0x334] ss:$8 sps:$4 sm:$0xff]  }
  0x9c   :  { %2073 = vmatpush1.bf16.msra.mxu0 %v2837_v1  ;;  %1862 = vmatprep.subr.bf16.mxu1 %v2842_v2  ;;  %v2917_v1 = vld [vmem:[%s3951_s1 + $0x734] ss:$8 sps:$4 sm:$0xff]   ;;  %v2261_v2 = vcombine.high %v3728_v56, %v3733_v59 }
  0x9d   :  { %2074 = vmatprep.subr.bf16.mxu0 %v2845_v3  ;;  %v2269_v3 = vcombine.high %v3738_v60, %v3743_v61 }
  0x9f   :  { %1863 = vmatpush1.bf16.msra.mxu1 %v2840_v4  ;;  %v2912_v4 = vld [vmem:[%s3951_s1 + $0x330] ss:$8 sps:$4 sm:$0xff]  }
  0xa0   :  { %2075 = vmatpush1.bf16.msra.mxu0 %v2843_v5  ;;  %1864 = vmatprep.subr.bf16.mxu1 %v2848_v6  ;;  %v2915_v5 = vld [vmem:[%s3951_s1 + $0x730] ss:$8 sps:$4 sm:$0xff]   ;;  %v2920_v6 = vld [vmem:[%s3951_s1 + $0x344] ss:$8 sps:$4 sm:$0xff]  }
  0xa1   :  { %2076 = vmatprep.subr.bf16.mxu0 %v2851_v7  ;;  %v2923_v7 = vld [vmem:[%s3951_s1 + $0x744] ss:$8 sps:$4 sm:$0xff]  }
  0xa3   :  { %1865 = vmatpush1.bf16.msra.mxu1 %v2846_v8  ;;  %v2918_v8 = vld [vmem:[%s3951_s1 + $0x340] ss:$8 sps:$4 sm:$0xff]  }
  0xa4   :  { %2077 = vmatpush1.bf16.msra.mxu0 %v2849_v9  ;;  %1866 = vmatprep.subr.bf16.mxu1 %v2854_v10  ;;  %v2921_v9 = vld [vmem:[%s3951_s1 + $0x740] ss:$8 sps:$4 sm:$0xff]   ;;  %v2926_v10 = vld [vmem:[%s3951_s1 + $0x354] ss:$8 sps:$4 sm:$0xff]  }
  0xa5   :  { %2078 = vmatprep.subr.bf16.mxu0 %v2857_v11  ;;  %v2929_v11 = vld [vmem:[%s3951_s1 + $0x754] ss:$8 sps:$4 sm:$0xff]  }
  0xa7   :  { %1867 = vmatpush1.bf16.msra.mxu1 %v2852_v12  ;;  %v2924_v12 = vld [vmem:[%s3951_s1 + $0x350] ss:$8 sps:$4 sm:$0xff]  }
  0xa8   :  { %2079 = vmatpush1.bf16.msra.mxu0 %v2855_v13  ;;  %1868 = vmatprep.subr.bf16.mxu1 %v2860_v14  ;;  %v2927_v13 = vld [vmem:[%s3951_s1 + $0x750] ss:$8 sps:$4 sm:$0xff]   ;;  %v2932_v14 = vld [vmem:[%s3951_s1 + $0x364] ss:$8 sps:$4 sm:$0xff]  }
  0xa9   :  { %2080 = vmatprep.subr.bf16.mxu0 %v2863_v15  ;;  %v2935_v15 = vld [vmem:[%s3951_s1 + $0x764] ss:$8 sps:$4 sm:$0xff]  }
  0xab   :  { %1869 = vmatpush1.bf16.msra.mxu1 %v2858_v16  ;;  %v2930_v16 = vld [vmem:[%s3951_s1 + $0x360] ss:$8 sps:$4 sm:$0xff]  }
  0xac   :  { %2081 = vmatpush1.bf16.msra.mxu0 %v2861_v17  ;;  %1870 = vmatprep.subr.bf16.mxu1 %v2866_v18  ;;  %v2933_v17 = vld [vmem:[%s3951_s1 + $0x760] ss:$8 sps:$4 sm:$0xff]   ;;  %v2938_v18 = vld [vmem:[%s3951_s1 + $0x374] ss:$8 sps:$4 sm:$0xff]  }
  0xad   :  { %2082 = vmatprep.subr.bf16.mxu0 %v2869_v19  ;;  %v2941_v19 = vld [vmem:[%s3951_s1 + $0x774] ss:$8 sps:$4 sm:$0xff]  }
  0xaf   :  { %1871 = vmatpush1.bf16.msra.mxu1 %v2864_v20  ;;  %v2936_v20 = vld [vmem:[%s3951_s1 + $0x370] ss:$8 sps:$4 sm:$0xff]  }
  0xb0   :  { %2083 = vmatpush1.bf16.msra.mxu0 %v2867_v21  ;;  %1872 = vmatprep.subr.bf16.mxu1 %v2872_v22  ;;  %v2939_v21 = vld [vmem:[%s3951_s1 + $0x770] ss:$8 sps:$4 sm:$0xff]   ;;  %v2944_v22 = vld [vmem:[%s3951_s1 + $0x384] ss:$8 sps:$4 sm:$0xff]  }
  0xb1   :  { %2084 = vmatprep.subr.bf16.mxu0 %v2875_v23  ;;  %v2947_v23 = vld [vmem:[%s3951_s1 + $0x784] ss:$8 sps:$4 sm:$0xff]  }
  0xb3   :  { %1873 = vmatpush1.bf16.msra.mxu1 %v2870_v24  ;;  %v2942_v24 = vld [vmem:[%s3951_s1 + $0x380] ss:$8 sps:$4 sm:$0xff]  }
  0xb4   :  { %2085 = vmatpush1.bf16.msra.mxu0 %v2873_v25  ;;  %1874 = vmatprep.subr.bf16.mxu1 %v2878_v26  ;;  %v2945_v25 = vld [vmem:[%s3951_s1 + $0x780] ss:$8 sps:$4 sm:$0xff]   ;;  %v2950_v26 = vld [vmem:[%s3951_s1 + $0x394] ss:$8 sps:$4 sm:$0xff]  }
  0xb5   :  { %2086 = vmatprep.subr.bf16.mxu0 %v2881_v27  ;;  %v2953_v27 = vld [vmem:[%s3951_s1 + $0x794] ss:$8 sps:$4 sm:$0xff]  }
  0xb7   :  { %1875 = vmatpush1.bf16.msra.mxu1 %v2876_v28  ;;  %v2948_v28 = vld [vmem:[%s3951_s1 + $0x390] ss:$8 sps:$4 sm:$0xff]  }
  0xb8   :  { %2087 = vmatpush1.bf16.msra.mxu0 %v2879_v29  ;;  %1876 = vmatprep.subr.bf16.mxu1 %v2884_v30  ;;  %v2951_v29 = vld [vmem:[%s3951_s1 + $0x790] ss:$8 sps:$4 sm:$0xff]   ;;  %v2956_v30 = vld [vmem:[%s3951_s1 + $0x3a4] ss:$8 sps:$4 sm:$0xff]  }
  0xb9   :  { %2088 = vmatprep.subr.bf16.mxu0 %v2887_v31  ;;  %v2959_v31 = vld [vmem:[%s3951_s1 + $0x7a4] ss:$8 sps:$4 sm:$0xff]  }
  0xbb   :  { %1877 = vmatpush1.bf16.msra.mxu1 %v2882_v32  ;;  %v2954_v32 = vld [vmem:[%s3951_s1 + $0x3a0] ss:$8 sps:$4 sm:$0xff]  }
  0xbc   :  { %2089 = vmatpush1.bf16.msra.mxu0 %v2885_v33  ;;  %1878 = vmatprep.subr.bf16.mxu1 %v2890_v34  ;;  %v2957_v33 = vld [vmem:[%s3951_s1 + $0x7a0] ss:$8 sps:$4 sm:$0xff]   ;;  %v2962_v34 = vld [vmem:[%s3951_s1 + $0x3b4] ss:$8 sps:$4 sm:$0xff]  }
  0xbd   :  { %2090 = vmatprep.subr.bf16.mxu0 %v2893_v35  ;;  %v2965_v35 = vld [vmem:[%s3951_s1 + $0x7b4] ss:$8 sps:$4 sm:$0xff]  }
  0xbf   :  { %1879 = vmatpush1.bf16.msra.mxu1 %v2888_v36  ;;  %v2960_v36 = vld [vmem:[%s3951_s1 + $0x3b0] ss:$8 sps:$4 sm:$0xff]  }
  0xc0   :  { %2091 = vmatpush1.bf16.msra.mxu0 %v2891_v37  ;;  %1901 = vmatprep.subr.bf16.mxu1 %v2896_v38  ;;  %v2963_v37 = vld [vmem:[%s3951_s1 + $0x7b0] ss:$8 sps:$4 sm:$0xff]   ;;  %v2968_v38 = vld [vmem:[%s3951_s1 + $0x3c4] ss:$8 sps:$4 sm:$0xff]  }
  0xc1   :  { %2113 = vmatprep.subr.bf16.mxu0 %v2899_v39  ;;  %v2971_v39 = vld [vmem:[%s3951_s1 + $0x7c4] ss:$8 sps:$4 sm:$0xff]  }
  0xc2   :  { %1881 = vmatmul.mubr.bf16.vlgmr.msra.gmra.mrb[0].mxu1 %v2258_v41  ;;  %v2969_v41 = vld [vmem:[%s3951_s1 + $0x7c0] ss:$8 sps:$4 sm:$0xff]  }
  0xc3   :  { %2093 = vmatmul.mubr.bf16.vlgmr.msra.gmra.mrb[0].mxu0 %v2266_v43  ;;  %1902 = vmatpush1.bf16.msra.mxu1 %v2894_v42  ;;  %v2974_v43 = vld [vmem:[%s3951_s1 + $0x3d4] ss:$8 sps:$4 sm:$0xff]   ;;  %v2980_v42 = vld [vmem:[%s3951_s1 + $0x3e4] ss:$8 sps:$4 sm:$0xff]  }
  0xc4   :  { %2114 = vmatpush1.bf16.msra.mxu0 %v2897_v45  ;;  %1903 = vmatprep.subr.bf16.mxu1 %v2902_v46  ;;  %v2983_v45 = vld [vmem:[%s3951_s1 + $0x7e4] ss:$8 sps:$4 sm:$0xff]   ;;  %v2978_v46 = vld [vmem:[%s3951_s1 + $0x3e0] ss:$8 sps:$4 sm:$0xff]  }
  0xc5   :  { %2115 = vmatprep.subr.bf16.mxu0 %v2905_v47  ;;  %1890 = vmatprep.mubr.bf16.mxu1 %v2275_v50  ;;  %v2981_v47 = vld [vmem:[%s3951_s1 + $0x7e0] ss:$8 sps:$4 sm:$0xff]   ;;  %v2986_v50 = vld [vmem:[%s3951_s1 + $0x3f4] ss:$8 sps:$4 sm:$0xff]  }
  0xc6   :  { %2102 = vmatprep.mubr.bf16.mxu0 %v2283_v51  ;;  %v2989_v51 = vld [vmem:[%s3951_s1 + $0x7f4] ss:$8 sps:$4 sm:$0xff]  }
  0xc7   :  { %1904 = vmatpush1.bf16.msra.mxu1 %v2900_v52  ;;  %v2984_v52 = vld [vmem:[%s3951_s1 + $0x3f0] ss:$8 sps:$4 sm:$0xff]  }
  0xc8   :  { %2116 = vmatpush1.bf16.msra.mxu0 %v2903_v53  ;;  %1905 = vmatprep.subr.bf16.mxu1 %v2908_v54  ;;  %v2987_v53 = vld [vmem:[%s3951_s1 + $0x7f0] ss:$8 sps:$4 sm:$0xff]  }
  0xc9   :  { %2117 = vmatprep.subr.bf16.mxu0 %v2911_v55  ;;  %v33_v54 = vld [vmem:[%s3952_s0 + $0x98] sm:$0xff] }
  0xca   :  { %1891 = vmatmul.mubr.bf16.gmra.mrb[4].mxu1 %v2274_v57  ;;  %v41_v55 = vld [vmem:[%s3952_s0 + $0xd8] sm:$0xff] }
  0xcb   :  { %2103 = vmatmul.mubr.bf16.gmra.mrb[4].mxu0 %v2282_v58  ;;  %1906 = vmatpush1.bf16.msra.mxu1 %v2906_v62  ;;  %v37_v57 = vld [vmem:[%s3952_s0 + $0xb8] sm:$0xff]  ;;  %v2260_v62 = vcombine.low %v3728_v56, %v3733_v59 }
  0xcc   :  { %2118 = vmatpush1.bf16.msra.mxu0 %v2909_v63  ;;  %1907 = vmatprep.subr.bf16.mxu1 %v2914_v0  ;;  %v45_v58 = vld [vmem:[%s3952_s0 + $0xf8] sm:$0xff]  ;;  %v2268_v63 = vcombine.low %v3738_v60, %v3743_v61  ;;  %v2277_v0 = vcombine.high %v33_v54, %v41_v55 }
  0xcd   :  { %2119 = vmatprep.subr.bf16.mxu0 %v2917_v1  ;;  %1933 = vmatprep.mubr.bf16.mxu1 %v2261_v2  ;;  %v2285_v1 = vcombine.high %v37_v57, %v45_v58  ;;  %v2276_v2 = vcombine.low %v33_v54, %v41_v55 }
  0xce   :  { %2145 = vmatprep.mubr.bf16.mxu0 %v2269_v3  ;;  %v2284_v3 = vcombine.low %v37_v57, %v45_v58 }
  0xcf   :  { %1908 = vmatpush1.bf16.msra.mxu1 %v2912_v4 }
  0xd0   :  { %2120 = vmatpush1.bf16.msra.mxu0 %v2915_v5  ;;  %1909 = vmatprep.subr.bf16.mxu1 %v2920_v6 }
  0xd1   :  { %2121 = vmatprep.subr.bf16.mxu0 %v2923_v7 }
  0xd3   :  { %1910 = vmatpush1.bf16.msra.mxu1 %v2918_v8 }
  0xd4   :  { %2122 = vmatpush1.bf16.msra.mxu0 %v2921_v9  ;;  %1911 = vmatprep.subr.bf16.mxu1 %v2926_v10 }
  0xd5   :  { %2123 = vmatprep.subr.bf16.mxu0 %v2929_v11 }
  0xd7   :  { %1912 = vmatpush1.bf16.msra.mxu1 %v2924_v12 }
  0xd8   :  { %2124 = vmatpush1.bf16.msra.mxu0 %v2927_v13  ;;  %1913 = vmatprep.subr.bf16.mxu1 %v2932_v14 }
  0xd9   :  { %2125 = vmatprep.subr.bf16.mxu0 %v2935_v15 }
  0xdb   :  { %1914 = vmatpush1.bf16.msra.mxu1 %v2930_v16 }
  0xdc   :  { %2126 = vmatpush1.bf16.msra.mxu0 %v2933_v17  ;;  %1915 = vmatprep.subr.bf16.mxu1 %v2938_v18 }
  0xdd   :  { %2127 = vmatprep.subr.bf16.mxu0 %v2941_v19 }
  0xdf   :  { %1916 = vmatpush1.bf16.msra.mxu1 %v2936_v20 }
  0xe0   :  { %2128 = vmatpush1.bf16.msra.mxu0 %v2939_v21  ;;  %1917 = vmatprep.subr.bf16.mxu1 %v2944_v22 }
  0xe1   :  { %2129 = vmatprep.subr.bf16.mxu0 %v2947_v23 }
  0xe3   :  { %1918 = vmatpush1.bf16.msra.mxu1 %v2942_v24 }
  0xe4   :  { %2130 = vmatpush1.bf16.msra.mxu0 %v2945_v25  ;;  %1919 = vmatprep.subr.bf16.mxu1 %v2950_v26 }
  0xe5   :  { %2131 = vmatprep.subr.bf16.mxu0 %v2953_v27 }
  0xe7   :  { %1920 = vmatpush1.bf16.msra.mxu1 %v2948_v28 }
  0xe8   :  { %2132 = vmatpush1.bf16.msra.mxu0 %v2951_v29  ;;  %1921 = vmatprep.subr.bf16.mxu1 %v2956_v30 }
  0xe9   :  { %2133 = vmatprep.subr.bf16.mxu0 %v2959_v31 }
  0xeb   :  { %1922 = vmatpush1.bf16.msra.mxu1 %v2954_v32 }
  0xec   :  { %2134 = vmatpush1.bf16.msra.mxu0 %v2957_v33  ;;  %1923 = vmatprep.subr.bf16.mxu1 %v2962_v34 }
  0xed   :  { %2135 = vmatprep.subr.bf16.mxu0 %v2965_v35 }
  0xef   :  { %1924 = vmatpush1.bf16.msra.mxu1 %v2960_v36 }
  0xf0   :  { %2136 = vmatpush1.bf16.msra.mxu0 %v2963_v37  ;;  %1925 = vmatprep.subr.bf16.mxu1 %v2968_v38 }
  0xf1   :  { %2137 = vmatprep.subr.bf16.mxu0 %v2971_v39 }
  0xf3   :  { %1926 = vmatpush1.bf16.msra.mxu1 %v2966_v40 }
  0xf4   :  { %2138 = vmatpush1.bf16.msra.mxu0 %v2969_v41  ;;  %1927 = vmatprep.subr.bf16.mxu1 %v2974_v43 }
  0xf5   :  { %2139 = vmatprep.subr.bf16.mxu0 %v2977_v44 }
  0xf7   :  { %1928 = vmatpush1.bf16.msra.mxu1 %v2972_v48 }
  0xf8   :  { %2140 = vmatpush1.bf16.msra.mxu0 %v2975_v49  ;;  %1929 = vmatprep.subr.bf16.mxu1 %v2980_v42 }
  0xf9   :  { %2141 = vmatprep.subr.bf16.mxu0 %v2983_v45 }
  0xfb   :  { %1930 = vmatpush1.bf16.msra.mxu1 %v2978_v46 }
  0xfc   :  { %2142 = vmatpush1.bf16.msra.mxu0 %v2981_v47  ;;  %1931 = vmatprep.subr.bf16.mxu1 %v2986_v50 }
  0xfd   :  { %2143 = vmatprep.subr.bf16.mxu0 %v2989_v51 }
  0xff   :  { %1932 = vmatpush1.bf16.msra.mxu1 %v2984_v52 }
 0x100   :  { %2144 = vmatpush1.bf16.msra.mxu0 %v2987_v53 }
 0x102   :  { %1934 = vmatmul.mubr.bf16.vlgmr.msra.gmra.mrb[0].mxu1 %v2260_v62 }
 0x103   :  { %2146 = vmatmul.mubr.bf16.vlgmr.msra.gmra.mrb[0].mxu0 %v2268_v63  ;;  %1943 = vmatprep.mubr.bf16.mxu1 %v2277_v0 }
 0x104   :  { %2155 = vmatprep.mubr.bf16.mxu0 %v2285_v1 }
 0x10a   :  { %1944 = vmatmul.mubr.bf16.gmra.mrb[4].mxu1 %v2276_v2 }
 0x10b   :  { %2156 = vmatmul.mubr.bf16.gmra.mrb[4].mxu0 %v2284_v3 }
 0x1d5   :  { %v1935_v4 = vpop.f32.mrb[0].mxu1 }
 0x1d6   :  { %v2147_v5 = vpop.f32.mrb[0].mxu0  ;;  %v1937_v7 = vpop.f32.mrb[1].mxu1 }
 0x1d7   :  { %v2550_v6 = vadd.f32 %v2147_v5, %v1935_v4  ;;  %v2149_v56 = vpop.f32.mrb[1].mxu0  ;;  %v1939_v8 = vpop.f32.mrb[2].mxu1 }
 0x1d8   :  { %v2551_v59 = vadd.f32 %v2149_v56, %v1937_v7  ;;  %v2151_v60 = vpop.f32.mrb[2].mxu0  ;;  %v1941_v9 = vpop.f32.mrb[3].mxu1 }
 0x1d9   :  { %v2552_v61 = vadd.f32 %v2151_v60, %v1939_v8  ;;  %v2153_v10 = vpop.f32.mrb[3].mxu0  ;;  %v2212_v13 = vmul.f32 %v2550_v6, %v2550_v6 }
 0x1da   :  { %v2546_v11 = vpack.c.bf16 %v2551_v59, %v2550_v6  ;;  %v2553_v12 = vadd.f32 %v2153_v10, %v1941_v9  ;;  %v2213_v16 = vmul.f32 %v2551_v59, %v2551_v59 }
 0x1db   :  { %v2194_v14 = vadd.f32 %v2552_v61, %v2550_v6  ;;  %v2214_v15 = vmul.f32 %v2552_v61, %v2552_v61 }
 0x1dc   :  { %2190 = vst [vmem:[%s3953_s2] sm:$0xff] %v2546_v11  ;;  %v2547_v17 = vpack.c.bf16 %v2553_v12, %v2552_v61  ;;  %v2203_v18 = vadd.f32 %v2553_v12, %v2551_v59  ;;  %v2215_v19 = vmul.f32 %v2553_v12, %v2553_v12 }
 0x1dd   :  { %v2220_v20 = vadd.f32 %v2214_v15, %v2212_v13  ;;  %v1945_v22 = vpop.f32.mrb[4].mxu1 }
 0x1de   :  { %2191 = vst [vmem:[%s3953_s2 + $0x8] sm:$0xff] %v2547_v17  ;;  %v2229_v21 = vadd.f32 %v2215_v19, %v2213_v16  ;;  %v2157_v23 = vpop.f32.mrb[4].mxu0  ;;  %v1947_v25 = vpop.f32.mrb[5].mxu1 }
 0x1df   :  { %v2554_v24 = vadd.f32 %v2157_v23, %v1945_v22  ;;  %v2159_v26 = vpop.f32.mrb[5].mxu0  ;;  %v1949_v28 = vpop.f32.mrb[6].mxu1 }
 0x1e0   :  { %v2555_v27 = vadd.f32 %v2159_v26, %v1947_v25  ;;  %v2161_v29 = vpop.f32.mrb[6].mxu0  ;;  %v1951_v33 = vpop.f32.mrb[7].mxu1 }
 0x1e1   :  { %v2195_v30 = vadd.f32 %v2554_v24, %v2194_v14  ;;  %v2216_v31 = vmul.f32 %v2554_v24, %v2554_v24  ;;  %v2556_v32 = vadd.f32 %v2161_v29, %v1949_v28  ;;  %v2163_v34 = vpop.f32.mrb[7].mxu0 }
 0x1e2   :  { %v2548_v35 = vpack.c.bf16 %v2555_v27, %v2554_v24  ;;  %v2204_v36 = vadd.f32 %v2555_v27, %v2203_v18  ;;  %v2217_v37 = vmul.f32 %v2555_v27, %v2555_v27  ;;  %v2557_v38 = vadd.f32 %v2163_v34, %v1951_v33 }
 0x1e3   :  { %v2221_v39 = vadd.f32 %v2220_v20, %v2216_v31  ;;  %v2196_v40 = vadd.f32 %v2556_v32, %v2195_v30  ;;  %v2218_v41 = vmul.f32 %v2556_v32, %v2556_v32 }
 0x1e4   :  { %2192 = vst [vmem:[%s3953_s2 + $0x10] sm:$0xff] %v2548_v35  ;;  %v2230_v43 = vadd.f32 %v2229_v21, %v2217_v37  ;;  %v2549_v44 = vpack.c.bf16 %v2557_v38, %v2556_v32  ;;  %v2205_v48 = vadd.f32 %v2557_v38, %v2204_v36  ;;  %v2219_v49 = vmul.f32 %v2557_v38, %v2557_v38 }
 0x1e5   :  { %v2197_v42 = vrot.slane %v2196_v40, 4  ;;  %v2222_v45 = vadd.f32 %v2221_v39, %v2218_v41 }
 0x1e6   :  { %2193 = vst [vmem:[%s3953_s2 + $0x18] sm:$0xff] %v2549_v44  ;;  %v2206_v46 = vrot.slane %v2205_v48, 4  ;;  %v2231_v47 = vadd.f32 %v2230_v43, %v2219_v49 }
 0x1e7   :  { %v2198_v50 = vadd.f32 %v2197_v42, %v2196_v40  ;;  %v2223_v51 = vrot.slane %v2222_v45, 4 }
 0x1e8   :  { %v2207_v52 = vadd.f32 %v2206_v46, %v2205_v48  ;;  %v2232_v53 = vrot.slane %v2231_v47, 4 }
 0x1e9   :  { %v2199_v54 = vrot.slane %v2198_v50, 2  ;;  %v2224_v55 = vadd.f32 %v2223_v51, %v2222_v45 }
 0x1ea   :  { %v2208_v57 = vrot.slane %v2207_v52, 2  ;;  %v2233_v58 = vadd.f32 %v2232_v53, %v2231_v47 }
 0x1eb   :  { %v2200_v62 = vadd.f32 %v2199_v54, %v2198_v50  ;;  %v2225_v63 = vrot.slane %v2224_v55, 2 }
 0x1ec   :  { %v2209_v0 = vadd.f32 %v2208_v57, %v2207_v52  ;;  %v2234_v1 = vrot.slane %v2233_v58, 2 }
 0x1ed   :  { %v2201_v2 = vrot.slane %v2200_v62, 1  ;;  %v2226_v3 = vadd.f32 %v2225_v63, %v2224_v55 }
 0x1ee   :  { %v2210_v4 = vrot.slane %v2209_v0, 1  ;;  %v2235_v5 = vadd.f32 %v2234_v1, %v2233_v58 }
 0x1ef   :  { %v2202_v6 = vadd.f32 %v2201_v2, %v2200_v62  ;;  %v2227_v7 = vrot.slane %v2226_v3, 1 }
 0x1f0   :  { %v2211_v56 = vadd.f32 %v2210_v4, %v2209_v0  ;;  %v2236_v59 = vrot.slane %v2235_v5, 1 }
 0x1f1   :  { %v2228_v8 = vadd.f32 %v2227_v7, %v2226_v3  ;;  %2238 = vst [vmem:[%s3954_s3] sm:$0xff] %v2202_v6 }
 0x1f2   :  { %v2237_v60 = vadd.f32 %v2236_v59, %v2235_v5  ;;  %2239 = vst [vmem:[%s3954_s3 + $0x8] sm:$0xff] %v2211_v56 }
 0x1f3   :  { %2240 = vst [vmem:[%s3955_s4] sm:$0xff] %v2228_v8 }
 0x1f4   :  { %2241 = vst [vmem:[%s3955_s4 + $0x8] sm:$0xff] %v2237_v60 }

// kernel: discriminator_forward.14
= control target key start
LH: loop header
LB: loop body
LE: loop exit
PB: predicated region body
PF: predicated region fallthrough
CT: control target
= control target key end

     0   :  { %s551_s1 = inlined_call_operand.vmem [shape: f32[8,512], index: 1, kind: input, shape index: {}]   ;;  %s552_s2 = inlined_call_operand.vmem [shape: f32[8,512], index: 2, kind: input, shape index: {}]   ;;  %s553_s3 = inlined_call_operand.vmem [shape: f32[1,512], index: 3, kind: input, shape index: {}]   ;;  %s554_s0 = inlined_call_operand.vmem [shape: bf16[32,512], index: 0, kind: input, shape index: {}]   ;;  %s555_s4 = inlined_call_operand.vmem [shape: f32[1,512], index: 4, kind: input, shape index: {}]   ;;  %s556_s5 = inlined_call_operand.vmem [shape: bf16[32,512], index: 5, kind: output, shape index: {}]  }
   0x1   :  { %v20_v0 = vld [vmem:[%s551_s1] sm:$0xff]  ;;  %v21_v1 = vld [vmem:[%s551_s1 + $0x8] sm:$0xff]  ;;  %v22_v2 = vld [vmem:[%s551_s1 + $0x10] sm:$0xff] }
   0x2   :  { %v23_v3 = vld [vmem:[%s551_s1 + $0x18] sm:$0xff]  ;;  %v24_v4 = vrot.slane %v20_v0, 4  ;;  %v30_v5 = vrot.slane %v21_v1, 4  ;;  %v36_v6 = vrot.slane %v22_v2, 4  ;;  %v52_v7 = vld [vmem:[%s552_s2] sm:$0xff]  ;;  %v53_v8 = vld [vmem:[%s552_s2 + $0x8] sm:$0xff] }
   0x3   :  { %v42_v9 = vrot.slane %v23_v3, 4  ;;  %v54_v10 = vld [vmem:[%s552_s2 + $0x10] sm:$0xff]  ;;  %v55_v11 = vld [vmem:[%s552_s2 + $0x18] sm:$0xff]  ;;  %v56_v12 = vrot.slane %v52_v7, 4  ;;  %v62_v13 = vrot.slane %v53_v8, 4 }
   0x4   :  { %v25_v14 = vadd.f32 %v24_v4, %v20_v0  ;;  %v31_v15 = vadd.f32 %v30_v5, %v21_v1  ;;  %v37_v16 = vadd.f32 %v36_v6, %v22_v2  ;;  %v68_v17 = vrot.slane %v54_v10, 4 }
   0x5   :  { %v43_v18 = vadd.f32 %v42_v9, %v23_v3  ;;  %v57_v19 = vadd.f32 %v56_v12, %v52_v7  ;;  %v63_v20 = vadd.f32 %v62_v13, %v53_v8  ;;  %v74_v21 = vrot.slane %v55_v11, 4 }
   0x6   :  { %v26_v22 = vrot.slane %v25_v14, 2  ;;  %v32_v23 = vrot.slane %v31_v15, 2  ;;  %v38_v24 = vrot.slane %v37_v16, 2  ;;  %v69_v25 = vadd.f32 %v68_v17, %v54_v10 }
   0x7   :  { %v44_v26 = vrot.slane %v43_v18, 2  ;;  %v58_v27 = vrot.slane %v57_v19, 2  ;;  %v64_v28 = vrot.slane %v63_v20, 2  ;;  %v75_v29 = vadd.f32 %v74_v21, %v55_v11 }
   0x8   :  { %v27_v30 = vadd.f32 %v26_v22, %v25_v14  ;;  %v33_v31 = vadd.f32 %v32_v23, %v31_v15  ;;  %v39_v32 = vadd.f32 %v38_v24, %v37_v16  ;;  %v70_v33 = vrot.slane %v69_v25, 2 }
   0x9   :  { %v45_v34 = vadd.f32 %v44_v26, %v43_v18  ;;  %v59_v35 = vadd.f32 %v58_v27, %v57_v19  ;;  %v65_v36 = vadd.f32 %v64_v28, %v63_v20  ;;  %v76_v37 = vrot.slane %v75_v29, 2 }
   0xa   :  { %v28_v38 = vrot.slane %v27_v30, 1  ;;  %v34_v39 = vrot.slane %v33_v31, 1  ;;  %v40_v40 = vrot.slane %v39_v32, 1  ;;  %v71_v41 = vadd.f32 %v70_v33, %v69_v25 }
   0xb   :  { %v46_v42 = vrot.slane %v45_v34, 1  ;;  %v60_v43 = vrot.slane %v59_v35, 1  ;;  %v66_v44 = vrot.slane %v65_v36, 1  ;;  %v77_v45 = vadd.f32 %v76_v37, %v75_v29 }
   0xc   :  { %v29_v46 = vadd.f32 %v28_v38, %v27_v30  ;;  %v35_v47 = vadd.f32 %v34_v39, %v33_v31  ;;  %v41_v48 = vadd.f32 %v40_v40, %v39_v32  ;;  %v72_v49 = vrot.slane %v71_v41, 1 }
   0xd   :  { %v47_v50 = vadd.f32 %v46_v42, %v45_v34  ;;  %v61_v51 = vadd.f32 %v60_v43, %v59_v35  ;;  %v67_v52 = vadd.f32 %v66_v44, %v65_v36  ;;  %v78_v53 = vrot.slane %v77_v45, 1  ;;  %v100_v35 = vld [vmem:[%s553_s3] sm:$0xf] }
   0xe   :  { %v48_v54 = vmul.f32 0.125, %v29_v46  ;;  %v49_v55 = vmul.f32 0.125, %v35_v47  ;;  %v50_v56 = vmul.f32 0.125, %v41_v48  ;;  %v73_v57 = vadd.f32 %v72_v49, %v71_v41 }
   0xf   :  { %v51_v58 = vmul.f32 0.125, %v47_v50  ;;  %v79_v59 = vadd.f32 %v78_v53, %v77_v45  ;;  %v80_v60 = vmul.f32 0.125, %v61_v51  ;;  %v81_v61 = vmul.f32 0.125, %v67_v52  ;;  %v195_v50 = vld [vmem:[%s554_s0] sm:$0xff]  ;;  %v196_v51 = vld [vmem:[%s554_s0 + $0x8] sm:$0xff] }
  0x10   :  { %v82_v62 = vmul.f32 0.125, %v73_v57  ;;  %v84_v63 = vmul.f32 0.055555556, %v48_v54  ;;  %v85_v0 = vmul.f32 0.055555556, %v49_v55  ;;  %v118_v22 = vlaneseq  ;;  %v197_v54 = vld [vmem:[%s554_s0 + $0x10] sm:$0xff] }
  0x11   :  { %v83_v1 = vmul.f32 0.125, %v79_v59  ;;  %v86_v2 = vmul.f32 0.055555556, %v50_v56  ;;  %v87_v3 = vmul.f32 0.055555556, %v51_v58  ;;  %v198_v55 = vld [vmem:[%s554_s0 + $0x18] sm:$0xff]  ;;  %v203_v56 = vunpack.c.l.bf16 %v195_v50 }
  0x12   :  { %v88_v4 = vmul.f32 0.055555556, %v80_v60  ;;  %v89_v5 = vmul.f32 0.055555556, %v81_v61  ;;  %v90_v6 = vmul.f32 0.055555556, %v82_v62  ;;  %v92_v7 = vmul.f32 %v84_v63, %v84_v63 }
  0x13   :  { %v91_v8 = vmul.f32 0.055555556, %v83_v1  ;;  %v93_v9 = vmul.f32 %v85_v0, %v85_v0  ;;  %v94_v10 = vmul.f32 %v86_v2, %v86_v2  ;;  %v95_v11 = vmul.f32 %v87_v3, %v87_v3  ;;  %v199_v57 = vld [vmem:[%s554_s0 + $0x20] sm:$0xff]  ;;  %v200_v62 = vld [vmem:[%s554_s0 + $0x28] sm:$0xff] }
  0x14   :  { %v96_v12 = vsub.f32 %v88_v4, %v92_v7  ;;  %v405_v20 = vmov 1966171168   ;;  %v460_v24 = vshrl.u32 %v118_v22, 7  ;;  %v204_v60 = vunpack.c.h.bf16 %v195_v50  ;;  %v202_v4 = vld [vmem:[%s554_s0 + $0x38] sm:$0xff] }
  0x15   :  { %v97_v13 = vsub.f32 %v89_v5, %v93_v9  ;;  %v98_v14 = vsub.f32 %v90_v6, %v94_v10  ;;  %v99_v15 = vsub.f32 %v91_v8, %v95_v11  ;;  %v116_v21 = vunpack.c.l.s4 %v405_v20  ;;  %v139_v9 = vld [vmem:[%s555_s4] sm:$0xf] }
  0x16   :  { %v101_v16 = vadd.f32 1e-05, %v96_v12  ;;  %v143_v36 = vsub.s32 0, %v460_v24  ;;  %v147_v38 = vsub.s32 1, %v460_v24  ;;  %v151_v39 = vsub.s32 2, %v460_v24 }
  0x17   :  { %v102_v17 = vadd.f32 1e-05, %v97_v13  ;;  %v103_v18 = vadd.f32 1e-05, %v98_v14  ;;  %v104_v19 = vadd.f32 1e-05, %v99_v15  ;;  %v117_v23 = vunpack.c.0.s8 %v116_v21 }
  0x18   :  { %397 = vrsqrt.f32 %v101_v16  ;;  %v155_v40 = vsub.s32 3, %v460_v24  ;;  %v205_v61 = vunpack.c.l.bf16 %v196_v51  ;;  %v207_v1 = vunpack.c.l.bf16 %v197_v54 }
  0x19   :  { %399 = vrsqrt.f32 %v102_v17  ;;  %v120_v26 = vsub.s32 %v117_v23, %v460_v24  ;;  %v210_v6 = vunpack.c.h.bf16 %v198_v55  ;;  %v211_v7 = vunpack.c.l.bf16 %v199_v57 }
  0x1a   :  { %401 = vrsqrt.f32 %v103_v18  ;;  %v212_v8 = vunpack.c.h.bf16 %v199_v57  ;;  %v213_v10 = vunpack.c.l.bf16 %v200_v62  ;;  %v214_v11 = vunpack.c.h.bf16 %v200_v62 }
  0x1b   :  { %403 = vrsqrt.f32 %v104_v19  ;;  %v217_v16 = vunpack.c.l.bf16 %v202_v4  ;;  %v218_v17 = vunpack.c.h.bf16 %v202_v4 }
  0x22   :  { %v398_v25 = vpop.eup %397 }
  0x23   :  { %v400_v27 = vpop.eup %399 }
  0x24   :  { %v402_v28 = vpop.eup %401  ;;  %v113_v29 = vcombine.low %v398_v25, %v400_v27 }
  0x25   :  { %v404_v30 = vpop.eup %403 }
  0x26   :  { %v114_v31 = vcombine.low %v402_v28, %v404_v30  ;;  %v121_v32 = vrot.slane %v113_v29, %v120_v26 }
  0x28   :  { %v128_v33 = vrot.slane %v114_v31, %v120_v26 }
  0x2a   :  { %v129_v34 = vcombine.low %v121_v32, %v128_v33 }
  0x2c   :  { %v136_v37 = vrot.slane %v129_v34, %v120_v26 }
  0x2e   :  { %v138_v41 = vmul.f32 %v136_v37, %v100_v35 }
  0x30   :  { %v144_v42 = vrot.slane %v138_v41, %v143_v36  ;;  %v148_v43 = vrot.slane %v138_v41, %v147_v38  ;;  %v152_v44 = vrot.slane %v138_v41, %v151_v39  ;;  %v156_v45 = vrot.slane %v138_v41, %v155_v40 }
  0x32   :  { %v161_v46 = vmul.f32 %v144_v42, %v84_v63  ;;  %v162_v47 = vmul.f32 %v148_v43, %v85_v0  ;;  %v163_v48 = vmul.f32 %v152_v44, %v86_v2  ;;  %v164_v49 = vmul.f32 %v156_v45, %v87_v3  ;;  %v201_v63 = vld [vmem:[%s554_s0 + $0x30] sm:$0xff] }
  0x33   :  { %v206_v0 = vunpack.c.h.bf16 %v196_v51  ;;  %v208_v2 = vunpack.c.h.bf16 %v197_v54  ;;  %v209_v3 = vunpack.c.l.bf16 %v198_v55  ;;  %v215_v12 = vunpack.c.l.bf16 %v201_v63 }
  0x34   :  { %v169_v52 = vcombine.low %v161_v46, %v162_v47  ;;  %v170_v53 = vcombine.low %v163_v48, %v164_v49  ;;  %v216_v13 = vunpack.c.h.bf16 %v201_v63  ;;  %v219_v15 = vmul.f32 %v203_v56, %v144_v42 }
  0x35   :  { %v220_v18 = vmul.f32 %v204_v60, %v148_v43  ;;  %v221_v19 = vmul.f32 %v205_v61, %v152_v44  ;;  %v222_v20 = vmul.f32 %v206_v0, %v156_v45  ;;  %v223_v21 = vmul.f32 %v207_v1, %v144_v42 }
  0x36   :  { %v177_v58 = vrot.slane %v169_v52, %v120_v26  ;;  %v184_v59 = vrot.slane %v170_v53, %v120_v26  ;;  %v224_v23 = vmul.f32 %v208_v2, %v148_v43  ;;  %v225_v24 = vmul.f32 %v209_v3, %v152_v44 }
  0x37   :  { %v226_v25 = vmul.f32 %v210_v6, %v156_v45  ;;  %v227_v27 = vmul.f32 %v211_v7, %v144_v42  ;;  %v228_v28 = vmul.f32 %v212_v8, %v148_v43  ;;  %v229_v29 = vmul.f32 %v213_v10, %v152_v44 }
  0x38   :  { %v185_v5 = vcombine.low %v177_v58, %v184_v59  ;;  %v230_v30 = vmul.f32 %v214_v11, %v156_v45  ;;  %v231_v34 = vmul.f32 %v215_v12, %v144_v42  ;;  %v232_v35 = vmul.f32 %v216_v13, %v148_v43 }
  0x39   :  { %v505_v37 = vmul.f32 %v217_v16, %v152_v44  ;;  %v507_v41 = vmul.f32 %v218_v17, %v156_v45 }
  0x3a   :  { %v192_v14 = vrot.slane %v185_v5, %v120_v26 }
  0x3c   :  { %v194_v22 = vsub.f32 %v139_v9, %v192_v14 }
  0x3e   :  { %v497_v31 = vrot.slane %v194_v22, %v143_v36  ;;  %v499_v32 = vrot.slane %v194_v22, %v147_v38  ;;  %v501_v26 = vrot.slane %v194_v22, %v151_v39  ;;  %v503_v33 = vrot.slane %v194_v22, %v155_v40 }
  0x40   :  { %v256_v46 = vadd.f32 %v497_v31, %v219_v15  ;;  %v257_v47 = vadd.f32 %v499_v32, %v220_v18  ;;  %v258_v48 = vadd.f32 %v501_v26, %v221_v19  ;;  %v259_v36 = vadd.f32 %v503_v33, %v222_v20 }
  0x41   :  { %v260_v38 = vadd.f32 %v497_v31, %v223_v21  ;;  %v261_v39 = vadd.f32 %v499_v32, %v224_v23  ;;  %v262_v40 = vadd.f32 %v501_v26, %v225_v24  ;;  %v263_v42 = vadd.f32 %v503_v33, %v226_v25 }
  0x42   :  { %vm272_vm0 = vcmp.gt.f32.partialorder %v256_v46, 0.0  ;;  %vm273_vm1 = vcmp.gt.f32.partialorder %v257_v47, 0.0  ;;  %v288_v43 = vmul.f32 0.2, %v256_v46  ;;  %v289_v44 = vmul.f32 0.2, %v257_v47 }
  0x43   :  { %vm274_vm2 = vcmp.gt.f32.partialorder %v258_v48, 0.0  ;;  %vm275_vm3 = vcmp.gt.f32.partialorder %v259_v36, 0.0  ;;  %v290_v45 = vmul.f32 0.2, %v258_v48  ;;  %v291_v49 = vmul.f32 0.2, %v259_v36 }
  0x44   :  { %v304_v50 = vsel %vm272_vm0, %v256_v46, %v288_v43  ;;  %v305_v51 = vsel %vm273_vm1, %v257_v47, %v289_v44  ;;  %vm276_vm4 = vcmp.gt.f32.partialorder %v260_v38, 0.0  ;;  %vm277_vm5 = vcmp.gt.f32.partialorder %v261_v39, 0.0 }
  0x45   :  { %v388_v52 = vpack.c.bf16 %v305_v51, %v304_v50  ;;  %v306_v53 = vsel %vm274_vm2, %v258_v48, %v290_v45  ;;  %v307_v54 = vsel %vm275_vm3, %v259_v36, %v291_v49  ;;  %v292_v55 = vmul.f32 0.2, %v260_v38 }
  0x46   :  { %v389_v56 = vpack.c.bf16 %v307_v54, %v306_v53  ;;  %v293_v57 = vmul.f32 0.2, %v261_v39  ;;  %vm278_vm6 = vcmp.gt.f32.partialorder %v262_v40, 0.0  ;;  %vm279_vm7 = vcmp.gt.f32.partialorder %v263_v42, 0.0 }
  0x47   :  { %368 = vst [vmem:[%s556_s5] sm:$0xff] %v388_v52  ;;  %v308_v58 = vsel %vm276_vm4, %v260_v38, %v292_v55  ;;  %v294_v59 = vmul.f32 0.2, %v262_v40  ;;  %v295_v60 = vmul.f32 0.2, %v263_v42  ;;  %v264_v61 = vadd.f32 %v497_v31, %v227_v27 }
  0x48   :  { %369 = vst [vmem:[%s556_s5 + $0x8] sm:$0xff] %v389_v56  ;;  %v309_v62 = vsel %vm277_vm5, %v261_v39, %v293_v57  ;;  %v265_v63 = vadd.f32 %v499_v32, %v228_v28  ;;  %v266_v0 = vadd.f32 %v501_v26, %v229_v29  ;;  %v267_v1 = vadd.f32 %v503_v33, %v230_v30 }
  0x49   :  { %v390_v2 = vpack.c.bf16 %v309_v62, %v308_v58  ;;  %v310_v3 = vsel %vm278_vm6, %v262_v40, %v294_v59  ;;  %v311_v4 = vsel %vm279_vm7, %v263_v42, %v295_v60  ;;  %vm280_vm8 = vcmp.gt.f32.partialorder %v264_v61, 0.0 }
  0x4a   :  { %v391_v5 = vpack.c.bf16 %v311_v4, %v310_v3  ;;  %vm281_vm9 = vcmp.gt.f32.partialorder %v265_v63, 0.0  ;;  %v296_v6 = vmul.f32 0.2, %v264_v61  ;;  %v297_v7 = vmul.f32 0.2, %v265_v63 }
  0x4b   :  { %370 = vst [vmem:[%s556_s5 + $0x10] sm:$0xff] %v390_v2  ;;  %vm282_vm10 = vcmp.gt.f32.partialorder %v266_v0, 0.0  ;;  %vm283_vm11 = vcmp.gt.f32.partialorder %v267_v1, 0.0  ;;  %v298_v8 = vmul.f32 0.2, %v266_v0  ;;  %v268_v12 = vadd.f32 %v497_v31, %v231_v34 }
  0x4c   :  { %v299_v9 = vmul.f32 0.2, %v267_v1  ;;  %371 = vst [vmem:[%s556_s5 + $0x18] sm:$0xff] %v391_v5  ;;  %v312_v10 = vsel %vm280_vm8, %v264_v61, %v296_v6  ;;  %v313_v11 = vsel %vm281_vm9, %v265_v63, %v297_v7  ;;  %v269_v13 = vadd.f32 %v499_v32, %v232_v35 }
  0x4d   :  { %v392_v14 = vpack.c.bf16 %v313_v11, %v312_v10  ;;  %v314_v15 = vsel %vm282_vm10, %v266_v0, %v298_v8  ;;  %v270_v17 = vadd.f32 %v501_v26, %v505_v37  ;;  %vm284_vm12 = vcmp.gt.f32.partialorder %v268_v12, 0.0 }
  0x4e   :  { %v315_v16 = vsel %vm283_vm11, %v267_v1, %v299_v9  ;;  %vm285_vm13 = vcmp.gt.f32.partialorder %v269_v13, 0.0  ;;  %v300_v19 = vmul.f32 0.2, %v268_v12  ;;  %v301_v20 = vmul.f32 0.2, %v269_v13 }
  0x4f   :  { %v393_v18 = vpack.c.bf16 %v315_v16, %v314_v15  ;;  %372 = vst [vmem:[%s556_s5 + $0x20] sm:$0xff] %v392_v14  ;;  %v271_v21 = vadd.f32 %v503_v33, %v507_v41  ;;  %vm286_vm14 = vcmp.gt.f32.partialorder %v270_v17, 0.0  ;;  %v302_v22 = vmul.f32 0.2, %v270_v17 }
  0x50   :  { %v316_v23 = vsel %vm284_vm12, %v268_v12, %v300_v19  ;;  %v317_v24 = vsel %vm285_vm13, %v269_v13, %v301_v20 }
  0x51   :  { %373 = vst [vmem:[%s556_s5 + $0x28] sm:$0xff] %v393_v18  ;;  %vm287_vm15 = vcmp.gt.f32.partialorder %v271_v21, 0.0  ;;  %v303_v25 = vmul.f32 0.2, %v271_v21  ;;  %v318_v27 = vsel %vm286_vm14, %v270_v17, %v302_v22  ;;  %v394_v28 = vpack.c.bf16 %v317_v24, %v316_v23 }
  0x53   :  { %v319_v29 = vsel %vm287_vm15, %v271_v21, %v303_v25  ;;  %374 = vst [vmem:[%s556_s5 + $0x30] sm:$0xff] %v394_v28 }
  0x54   :  { %v395_v30 = vpack.c.bf16 %v319_v29, %v318_v27 }
  0x56   :  { %375 = vst [vmem:[%s556_s5 + $0x38] sm:$0xff] %v395_v30 }

// kernel: discriminator_forward.13
= control target key start
LH: loop header
LB: loop body
LE: loop exit
PB: predicated region body
PF: predicated region fallthrough
CT: control target
= control target key end

     0   :  { %s14739_s1 = inlined_call_operand.vmem [shape: bf16[4096,512], index: 1, kind: input, shape index: {}]   ;;  %s14740_s0 = inlined_call_operand.vmem [shape: bf16[32,4096], index: 0, kind: input, shape index: {}]   ;;  %s14741_s2 = inlined_call_operand.vmem [shape: bf16[32,512], index: 2, kind: output, shape index: {0}]   ;;  %s14742_s3 = inlined_call_operand.vmem [shape: f32[8,512], index: 3, kind: output, shape index: {1}]   ;;  %s14743_s4 = inlined_call_operand.vmem [shape: f32[8,512], index: 4, kind: output, shape index: {2}]  }
   0x1   :  { %v9746_v0 = vld [vmem:[%s14739_s1 + $0x4] ss:$16 sps:$4 sm:$0xff]   ;;  %v9748_v1 = vld [vmem:[%s14739_s1 + $0xc] ss:$16 sps:$4 sm:$0xff]   ;;  %v9750_v2 = vld [vmem:[%s14739_s1] ss:$16 sps:$4 sm:$0xff]  }
   0x2   :  { %6542 = vmatprep.subr.bf16.mxu0 %v9746_v0  ;;  %v9751_v3 = vld [vmem:[%s14739_s1 + $0x8] ss:$16 sps:$4 sm:$0xff]   ;;  %7390 = vmatprep.subr.bf16.mxu1 %v9748_v1  ;;  %v9752_v4 = vld [vmem:[%s14739_s1 + $0x24] ss:$16 sps:$4 sm:$0xff]   ;;  %v9754_v5 = vld [vmem:[%s14739_s1 + $0x2c] ss:$16 sps:$4 sm:$0xff]  }
   0x3   :  { %6543 = vmatpush1.bf16.msra.mxu0 %v9750_v2  ;;  %7391 = vmatpush1.bf16.msra.mxu1 %v9751_v3  ;;  %v9756_v6 = vld [vmem:[%s14739_s1 + $0x20] ss:$16 sps:$4 sm:$0xff]   ;;  %v9757_v7 = vld [vmem:[%s14739_s1 + $0x28] ss:$16 sps:$4 sm:$0xff]   ;;  %v9758_v8 = vld [vmem:[%s14739_s1 + $0x44] ss:$16 sps:$4 sm:$0xff]  }
   0x4   :  { %6544 = vmatprep.subr.bf16.mxu0 %v9752_v4  ;;  %7392 = vmatprep.subr.bf16.mxu1 %v9754_v5  ;;  %v9760_v9 = vld [vmem:[%s14739_s1 + $0x4c] ss:$16 sps:$4 sm:$0xff]   ;;  %v9762_v10 = vld [vmem:[%s14739_s1 + $0x40] ss:$16 sps:$4 sm:$0xff]   ;;  %v9763_v11 = vld [vmem:[%s14739_s1 + $0x48] ss:$16 sps:$4 sm:$0xff]  }
   0x5   :  { %v9764_v12 = vld [vmem:[%s14739_s1 + $0x64] ss:$16 sps:$4 sm:$0xff]   ;;  %v9766_v13 = vld [vmem:[%s14739_s1 + $0x6c] ss:$16 sps:$4 sm:$0xff]   ;;  %v9768_v14 = vld [vmem:[%s14739_s1 + $0x60] ss:$16 sps:$4 sm:$0xff]  }
   0x6   :  { %v9769_v15 = vld [vmem:[%s14739_s1 + $0x68] ss:$16 sps:$4 sm:$0xff]   ;;  %v9770_v16 = vld [vmem:[%s14739_s1 + $0x84] ss:$16 sps:$4 sm:$0xff]   ;;  %v9772_v17 = vld [vmem:[%s14739_s1 + $0x8c] ss:$16 sps:$4 sm:$0xff]  }
   0x7   :  { %6545 = vmatpush1.bf16.msra.mxu0 %v9756_v6  ;;  %7393 = vmatpush1.bf16.msra.mxu1 %v9757_v7  ;;  %v9774_v18 = vld [vmem:[%s14739_s1 + $0x80] ss:$16 sps:$4 sm:$0xff]   ;;  %v9775_v19 = vld [vmem:[%s14739_s1 + $0x88] ss:$16 sps:$4 sm:$0xff]   ;;  %v9776_v20 = vld [vmem:[%s14739_s1 + $0xa4] ss:$16 sps:$4 sm:$0xff]  }
   0x8   :  { %6546 = vmatprep.subr.bf16.mxu0 %v9758_v8  ;;  %7394 = vmatprep.subr.bf16.mxu1 %v9760_v9  ;;  %v9778_v21 = vld [vmem:[%s14739_s1 + $0xac] ss:$16 sps:$4 sm:$0xff]   ;;  %v9780_v22 = vld [vmem:[%s14739_s1 + $0xa0] ss:$16 sps:$4 sm:$0xff]   ;;  %v9781_v23 = vld [vmem:[%s14739_s1 + $0xa8] ss:$16 sps:$4 sm:$0xff]  }
   0x9   :  { %v9782_v24 = vld [vmem:[%s14739_s1 + $0xc4] ss:$16 sps:$4 sm:$0xff]   ;;  %v9784_v25 = vld [vmem:[%s14739_s1 + $0xcc] ss:$16 sps:$4 sm:$0xff]   ;;  %v9786_v26 = vld [vmem:[%s14739_s1 + $0xc0] ss:$16 sps:$4 sm:$0xff]  }
   0xa   :  { %v9787_v27 = vld [vmem:[%s14739_s1 + $0xc8] ss:$16 sps:$4 sm:$0xff]   ;;  %v9788_v28 = vld [vmem:[%s14739_s1 + $0xe4] ss:$16 sps:$4 sm:$0xff]   ;;  %v9790_v29 = vld [vmem:[%s14739_s1 + $0xec] ss:$16 sps:$4 sm:$0xff]  }
   0xb   :  { %6547 = vmatpush1.bf16.msra.mxu0 %v9762_v10  ;;  %7395 = vmatpush1.bf16.msra.mxu1 %v9763_v11  ;;  %v9792_v30 = vld [vmem:[%s14739_s1 + $0xe0] ss:$16 sps:$4 sm:$0xff]   ;;  %v9793_v31 = vld [vmem:[%s14739_s1 + $0xe8] ss:$16 sps:$4 sm:$0xff]   ;;  %v9794_v32 = vld [vmem:[%s14739_s1 + $0x104] ss:$16 sps:$4 sm:$0xff]  }
   0xc   :  { %6548 = vmatprep.subr.bf16.mxu0 %v9764_v12  ;;  %7396 = vmatprep.subr.bf16.mxu1 %v9766_v13  ;;  %v9796_v33 = vld [vmem:[%s14739_s1 + $0x10c] ss:$16 sps:$4 sm:$0xff]   ;;  %v9798_v34 = vld [vmem:[%s14739_s1 + $0x100] ss:$16 sps:$4 sm:$0xff]   ;;  %v9799_v35 = vld [vmem:[%s14739_s1 + $0x108] ss:$16 sps:$4 sm:$0xff]  }
   0xd   :  { %v9800_v36 = vld [vmem:[%s14739_s1 + $0x124] ss:$16 sps:$4 sm:$0xff]   ;;  %v9802_v37 = vld [vmem:[%s14739_s1 + $0x12c] ss:$16 sps:$4 sm:$0xff]   ;;  %v9804_v38 = vld [vmem:[%s14739_s1 + $0x120] ss:$16 sps:$4 sm:$0xff]  }
   0xe   :  { %v9805_v39 = vld [vmem:[%s14739_s1 + $0x128] ss:$16 sps:$4 sm:$0xff]   ;;  %v9806_v40 = vld [vmem:[%s14739_s1 + $0x144] ss:$16 sps:$4 sm:$0xff]   ;;  %v9808_v41 = vld [vmem:[%s14739_s1 + $0x14c] ss:$16 sps:$4 sm:$0xff]  }
   0xf   :  { %6549 = vmatpush1.bf16.msra.mxu0 %v9768_v14  ;;  %7397 = vmatpush1.bf16.msra.mxu1 %v9769_v15  ;;  %v9810_v42 = vld [vmem:[%s14739_s1 + $0x140] ss:$16 sps:$4 sm:$0xff]   ;;  %v9811_v43 = vld [vmem:[%s14739_s1 + $0x148] ss:$16 sps:$4 sm:$0xff]   ;;  %v9812_v44 = vld [vmem:[%s14739_s1 + $0x164] ss:$16 sps:$4 sm:$0xff]  }
  0x10   :  { %6550 = vmatprep.subr.bf16.mxu0 %v9770_v16  ;;  %7398 = vmatprep.subr.bf16.mxu1 %v9772_v17  ;;  %v9814_v45 = vld [vmem:[%s14739_s1 + $0x16c] ss:$16 sps:$4 sm:$0xff]   ;;  %v14_v46 = vld [vmem:[%s14740_s0] sm:$0xff]  ;;  %v9817_v49 = vld [vmem:[%s14739_s1 + $0x168] ss:$16 sps:$4 sm:$0xff]  }
  0x11   :  { %v30_v47 = vld [vmem:[%s14740_s0 + $0x80] sm:$0xff]  ;;  %v9820_v52 = vld [vmem:[%s14739_s1 + $0x18c] ss:$16 sps:$4 sm:$0xff]   ;;  %v9823_v54 = vld [vmem:[%s14739_s1 + $0x188] ss:$16 sps:$4 sm:$0xff]  }
  0x12   :  { %v9816_v48 = vld [vmem:[%s14739_s1 + $0x160] ss:$16 sps:$4 sm:$0xff]   ;;  %v8403_v50 = vcombine.high %v14_v46, %v30_v47  ;;  %v9818_v51 = vld [vmem:[%s14739_s1 + $0x184] ss:$16 sps:$4 sm:$0xff]   ;;  %v9826_v56 = vld [vmem:[%s14739_s1 + $0x1ac] ss:$16 sps:$4 sm:$0xff]   ;;  %v8402_v5 = vcombine.low %v14_v46, %v30_v47 }
  0x13   :  { %6551 = vmatpush1.bf16.msra.mxu0 %v9774_v18  ;;  %7399 = vmatpush1.bf16.msra.mxu1 %v9775_v19  ;;  %v9822_v53 = vld [vmem:[%s14739_s1 + $0x180] ss:$16 sps:$4 sm:$0xff]   ;;  %v9824_v55 = vld [vmem:[%s14739_s1 + $0x1a4] ss:$16 sps:$4 sm:$0xff]   ;;  %v9829_v58 = vld [vmem:[%s14739_s1 + $0x1a8] ss:$16 sps:$4 sm:$0xff]  }
  0x14   :  { %6552 = vmatprep.subr.bf16.mxu0 %v9776_v20  ;;  %7400 = vmatprep.subr.bf16.mxu1 %v9778_v21  ;;  %v9828_v57 = vld [vmem:[%s14739_s1 + $0x1a0] ss:$16 sps:$4 sm:$0xff]   ;;  %v9830_v59 = vld [vmem:[%s14739_s1 + $0x1c4] ss:$16 sps:$4 sm:$0xff]   ;;  %v9832_v60 = vld [vmem:[%s14739_s1 + $0x1cc] ss:$16 sps:$4 sm:$0xff]  }
  0x15   :  { %6574 = vmatprep.mubr.bf16.mxu0 %v8403_v50  ;;  %7422 = vmatprep.mubr.bf16.mxu1 %v8403_v50  ;;  %v9834_v61 = vld [vmem:[%s14739_s1 + $0x1c0] ss:$16 sps:$4 sm:$0xff]   ;;  %v9835_v62 = vld [vmem:[%s14739_s1 + $0x1c8] ss:$16 sps:$4 sm:$0xff]   ;;  %v9836_v63 = vld [vmem:[%s14739_s1 + $0x1e4] ss:$16 sps:$4 sm:$0xff]  }
  0x16   :  { %v9838_v0 = vld [vmem:[%s14739_s1 + $0x1ec] ss:$16 sps:$4 sm:$0xff]   ;;  %v9840_v1 = vld [vmem:[%s14739_s1 + $0x1e0] ss:$16 sps:$4 sm:$0xff]   ;;  %v9841_v2 = vld [vmem:[%s14739_s1 + $0x1e8] ss:$16 sps:$4 sm:$0xff]  }
  0x17   :  { %6553 = vmatpush1.bf16.msra.mxu0 %v9780_v22  ;;  %7401 = vmatpush1.bf16.msra.mxu1 %v9781_v23  ;;  %v9844_v3 = vld [vmem:[%s14739_s1 + $0x204] ss:$16 sps:$4 sm:$0xff]   ;;  %v9847_v4 = vld [vmem:[%s14739_s1 + $0x20c] ss:$16 sps:$4 sm:$0xff]   ;;  %v9842_v6 = vld [vmem:[%s14739_s1 + $0x200] ss:$16 sps:$4 sm:$0xff]  }
  0x18   :  { %6554 = vmatprep.subr.bf16.mxu0 %v9782_v24  ;;  %7402 = vmatprep.subr.bf16.mxu1 %v9784_v25  ;;  %v9845_v7 = vld [vmem:[%s14739_s1 + $0x208] ss:$16 sps:$4 sm:$0xff]   ;;  %v9850_v8 = vld [vmem:[%s14739_s1 + $0x224] ss:$16 sps:$4 sm:$0xff]   ;;  %v9853_v9 = vld [vmem:[%s14739_s1 + $0x22c] ss:$16 sps:$4 sm:$0xff]  }
  0x19   :  { %v9848_v10 = vld [vmem:[%s14739_s1 + $0x220] ss:$16 sps:$4 sm:$0xff]   ;;  %v9851_v11 = vld [vmem:[%s14739_s1 + $0x228] ss:$16 sps:$4 sm:$0xff]   ;;  %v9856_v12 = vld [vmem:[%s14739_s1 + $0x244] ss:$16 sps:$4 sm:$0xff]  }
  0x1a   :  { %v9859_v13 = vld [vmem:[%s14739_s1 + $0x24c] ss:$16 sps:$4 sm:$0xff]   ;;  %v9854_v14 = vld [vmem:[%s14739_s1 + $0x240] ss:$16 sps:$4 sm:$0xff]   ;;  %v9857_v15 = vld [vmem:[%s14739_s1 + $0x248] ss:$16 sps:$4 sm:$0xff]  }
  0x1b   :  { %6555 = vmatpush1.bf16.msra.mxu0 %v9786_v26  ;;  %7403 = vmatpush1.bf16.msra.mxu1 %v9787_v27  ;;  %v9862_v16 = vld [vmem:[%s14739_s1 + $0x264] ss:$16 sps:$4 sm:$0xff]   ;;  %v9865_v17 = vld [vmem:[%s14739_s1 + $0x26c] ss:$16 sps:$4 sm:$0xff]   ;;  %v9860_v18 = vld [vmem:[%s14739_s1 + $0x260] ss:$16 sps:$4 sm:$0xff]  }
  0x1c   :  { %6556 = vmatprep.subr.bf16.mxu0 %v9788_v28  ;;  %7404 = vmatprep.subr.bf16.mxu1 %v9790_v29  ;;  %v9863_v19 = vld [vmem:[%s14739_s1 + $0x268] ss:$16 sps:$4 sm:$0xff]   ;;  %v9868_v20 = vld [vmem:[%s14739_s1 + $0x284] ss:$16 sps:$4 sm:$0xff]   ;;  %v9871_v21 = vld [vmem:[%s14739_s1 + $0x28c] ss:$16 sps:$4 sm:$0xff]  }
  0x1d   :  { %v9866_v22 = vld [vmem:[%s14739_s1 + $0x280] ss:$16 sps:$4 sm:$0xff]   ;;  %v9869_v23 = vld [vmem:[%s14739_s1 + $0x288] ss:$16 sps:$4 sm:$0xff]   ;;  %v9874_v24 = vld [vmem:[%s14739_s1 + $0x2a4] ss:$16 sps:$4 sm:$0xff]  }
  0x1e   :  { %v9877_v25 = vld [vmem:[%s14739_s1 + $0x2ac] ss:$16 sps:$4 sm:$0xff]   ;;  %v46_v26 = vld [vmem:[%s14740_s0 + $0x100] sm:$0xff]  ;;  %v9893_v46 = vld [vmem:[%s14739_s1 + $0x308] ss:$16 sps:$4 sm:$0xff]  }
  0x1f   :  { %6557 = vmatpush1.bf16.msra.mxu0 %v9792_v30  ;;  %7405 = vmatpush1.bf16.msra.mxu1 %v9793_v31  ;;  %v62_v27 = vld [vmem:[%s14740_s0 + $0x180] sm:$0xff]  ;;  %v9875_v30 = vld [vmem:[%s14739_s1 + $0x2a8] ss:$16 sps:$4 sm:$0xff]  }
  0x20   :  { %6558 = vmatprep.subr.bf16.mxu0 %v9794_v32  ;;  %7406 = vmatprep.subr.bf16.mxu1 %v9796_v33  ;;  %v8435_v28 = vcombine.high %v46_v26, %v62_v27  ;;  %v9872_v29 = vld [vmem:[%s14739_s1 + $0x2a0] ss:$16 sps:$4 sm:$0xff]   ;;  %v8434_v31 = vcombine.low %v46_v26, %v62_v27  ;;  %v9880_v32 = vld [vmem:[%s14739_s1 + $0x2c4] ss:$16 sps:$4 sm:$0xff]   ;;  %v9883_v33 = vld [vmem:[%s14739_s1 + $0x2cc] ss:$16 sps:$4 sm:$0xff]  }
  0x21   :  { %v9898_v47 = vld [vmem:[%s14739_s1 + $0x324] ss:$16 sps:$4 sm:$0xff]   ;;  %v9899_v50 = vld [vmem:[%s14739_s1 + $0x328] ss:$16 sps:$4 sm:$0xff]  }
  0x22   :  { %v11761_v27 = vld [vmem:[%s14740_s0 + $0x90] sm:$0xff] }
  0x23   :  { %6559 = vmatpush1.bf16.msra.mxu0 %v9798_v34  ;;  %7407 = vmatpush1.bf16.msra.mxu1 %v9799_v35  ;;  %v11592_v34 = vld [vmem:[%s14740_s0 + $0x8] sm:$0xff] }
  0x24   :  { %6560 = vmatprep.subr.bf16.mxu0 %v9800_v36  ;;  %7408 = vmatprep.subr.bf16.mxu1 %v9802_v37  ;;  %v11597_v35 = vld [vmem:[%s14740_s0 + $0x88] sm:$0xff]  ;;  %v9878_v36 = vld [vmem:[%s14739_s1 + $0x2c0] ss:$16 sps:$4 sm:$0xff]  }
  0x25   :  { %v9881_v37 = vld [vmem:[%s14739_s1 + $0x2c8] ss:$16 sps:$4 sm:$0xff]  }
  0x27   :  { %6561 = vmatpush1.bf16.msra.mxu0 %v9804_v38  ;;  %7409 = vmatpush1.bf16.msra.mxu1 %v9805_v39  ;;  %v8405_v38 = vcombine.high %v11592_v34, %v11597_v35  ;;  %v9886_v39 = vld [vmem:[%s14739_s1 + $0x2e4] ss:$16 sps:$4 sm:$0xff]  }
  0x28   :  { %6562 = vmatprep.subr.bf16.mxu0 %v9806_v40  ;;  %7410 = vmatprep.subr.bf16.mxu1 %v9808_v41  ;;  %v9889_v40 = vld [vmem:[%s14739_s1 + $0x2ec] ss:$16 sps:$4 sm:$0xff]   ;;  %v9884_v41 = vld [vmem:[%s14739_s1 + $0x2e0] ss:$16 sps:$4 sm:$0xff]  }
  0x2b   :  { %6563 = vmatpush1.bf16.msra.mxu0 %v9810_v42  ;;  %7411 = vmatpush1.bf16.msra.mxu1 %v9811_v43  ;;  %v9887_v42 = vld [vmem:[%s14739_s1 + $0x2e8] ss:$16 sps:$4 sm:$0xff]   ;;  %v9892_v43 = vld [vmem:[%s14739_s1 + $0x304] ss:$16 sps:$4 sm:$0xff]  }
  0x2c   :  { %6564 = vmatprep.subr.bf16.mxu0 %v9812_v44  ;;  %7412 = vmatprep.subr.bf16.mxu1 %v9814_v45  ;;  %v9895_v44 = vld [vmem:[%s14739_s1 + $0x30c] ss:$16 sps:$4 sm:$0xff]   ;;  %v9890_v45 = vld [vmem:[%s14739_s1 + $0x300] ss:$16 sps:$4 sm:$0xff]  }
  0x2f   :  { %6565 = vmatpush1.bf16.msra.mxu0 %v9816_v48  ;;  %7413 = vmatpush1.bf16.msra.mxu1 %v9817_v49  ;;  %v9901_v48 = vld [vmem:[%s14739_s1 + $0x32c] ss:$16 sps:$4 sm:$0xff]   ;;  %v9896_v49 = vld [vmem:[%s14739_s1 + $0x320] ss:$16 sps:$4 sm:$0xff]  }
  0x30   :  { %6566 = vmatprep.subr.bf16.mxu0 %v9818_v51  ;;  %7414 = vmatprep.subr.bf16.mxu1 %v9820_v52  ;;  %v9904_v51 = vld [vmem:[%s14739_s1 + $0x344] ss:$16 sps:$4 sm:$0xff]   ;;  %v9907_v52 = vld [vmem:[%s14739_s1 + $0x34c] ss:$16 sps:$4 sm:$0xff]  }
  0x33   :  { %6567 = vmatpush1.bf16.msra.mxu0 %v9822_v53  ;;  %7415 = vmatpush1.bf16.msra.mxu1 %v9823_v54  ;;  %v9902_v53 = vld [vmem:[%s14739_s1 + $0x340] ss:$16 sps:$4 sm:$0xff]   ;;  %v9905_v54 = vld [vmem:[%s14739_s1 + $0x348] ss:$16 sps:$4 sm:$0xff]  }
  0x34   :  { %6568 = vmatprep.subr.bf16.mxu0 %v9824_v55  ;;  %7416 = vmatprep.subr.bf16.mxu1 %v9826_v56  ;;  %v9910_v55 = vld [vmem:[%s14739_s1 + $0x364] ss:$16 sps:$4 sm:$0xff]   ;;  %v9913_v56 = vld [vmem:[%s14739_s1 + $0x36c] ss:$16 sps:$4 sm:$0xff]  }
  0x37   :  { %6569 = vmatpush1.bf16.msra.mxu0 %v9828_v57  ;;  %7417 = vmatpush1.bf16.msra.mxu1 %v9829_v58  ;;  %v9908_v57 = vld [vmem:[%s14739_s1 + $0x360] ss:$16 sps:$4 sm:$0xff]   ;;  %v9911_v58 = vld [vmem:[%s14739_s1 + $0x368] ss:$16 sps:$4 sm:$0xff]  }
  0x38   :  { %6570 = vmatprep.subr.bf16.mxu0 %v9830_v59  ;;  %7418 = vmatprep.subr.bf16.mxu1 %v9832_v60  ;;  %v9916_v59 = vld [vmem:[%s14739_s1 + $0x384] ss:$16 sps:$4 sm:$0xff]   ;;  %v9919_v60 = vld [vmem:[%s14739_s1 + $0x38c] ss:$16 sps:$4 sm:$0xff]  }
  0x3b   :  { %6571 = vmatpush1.bf16.msra.mxu0 %v9834_v61  ;;  %7419 = vmatpush1.bf16.msra.mxu1 %v9835_v62  ;;  %v9914_v61 = vld [vmem:[%s14739_s1 + $0x380] ss:$16 sps:$4 sm:$0xff]   ;;  %v9917_v62 = vld [vmem:[%s14739_s1 + $0x388] ss:$16 sps:$4 sm:$0xff]  }
  0x3c   :  { %6572 = vmatprep.subr.bf16.mxu0 %v9836_v63  ;;  %7420 = vmatprep.subr.bf16.mxu1 %v9838_v0  ;;  %v9922_v63 = vld [vmem:[%s14739_s1 + $0x3a4] ss:$16 sps:$4 sm:$0xff]   ;;  %v9925_v0 = vld [vmem:[%s14739_s1 + $0x3ac] ss:$16 sps:$4 sm:$0xff]  }
  0x3f   :  { %6573 = vmatpush1.bf16.msra.mxu0 %v9840_v1  ;;  %7421 = vmatpush1.bf16.msra.mxu1 %v9841_v2  ;;  %v9920_v1 = vld [vmem:[%s14739_s1 + $0x3a0] ss:$16 sps:$4 sm:$0xff]   ;;  %v9923_v2 = vld [vmem:[%s14739_s1 + $0x3a8] ss:$16 sps:$4 sm:$0xff]  }
  0x40   :  { %6595 = vmatprep.subr.bf16.mxu0 %v9844_v3  ;;  %7443 = vmatprep.subr.bf16.mxu1 %v9847_v4  ;;  %v9928_v3 = vld [vmem:[%s14739_s1 + $0x3c4] ss:$16 sps:$4 sm:$0xff]   ;;  %v9931_v4 = vld [vmem:[%s14739_s1 + $0x3cc] ss:$16 sps:$4 sm:$0xff]  }
  0x42   :  { %6575 = vmatmul.mubr.bf16.vlgmr.msra.gmra.mrb[0].mxu0 %v8402_v5  ;;  %7423 = vmatmul.mubr.bf16.vlgmr.msra.gmra.mrb[0].mxu1 %v8402_v5  ;;  %v9926_v5 = vld [vmem:[%s14739_s1 + $0x3c0] ss:$16 sps:$4 sm:$0xff]  }
  0x43   :  { %6596 = vmatpush1.bf16.msra.mxu0 %v9842_v6  ;;  %7444 = vmatpush1.bf16.msra.mxu1 %v9845_v7  ;;  %v9929_v6 = vld [vmem:[%s14739_s1 + $0x3c8] ss:$16 sps:$4 sm:$0xff]   ;;  %v9934_v7 = vld [vmem:[%s14739_s1 + $0x3e4] ss:$16 sps:$4 sm:$0xff]  }
  0x44   :  { %6597 = vmatprep.subr.bf16.mxu0 %v9850_v8  ;;  %7445 = vmatprep.subr.bf16.mxu1 %v9853_v9  ;;  %v9937_v8 = vld [vmem:[%s14739_s1 + $0x3ec] ss:$16 sps:$4 sm:$0xff]   ;;  %v9932_v9 = vld [vmem:[%s14739_s1 + $0x3e0] ss:$16 sps:$4 sm:$0xff]  }
  0x45   :  { %6584 = vmatprep.mubr.bf16.mxu0 %v8435_v28  ;;  %7432 = vmatprep.mubr.bf16.mxu1 %v8435_v28  ;;  %v9950_v28 = vld [vmem:[%s14739_s1 + $0x440] ss:$16 sps:$4 sm:$0xff]  }
  0x47   :  { %6598 = vmatpush1.bf16.msra.mxu0 %v9848_v10  ;;  %7446 = vmatpush1.bf16.msra.mxu1 %v9851_v11  ;;  %v9935_v10 = vld [vmem:[%s14739_s1 + $0x3e8] ss:$16 sps:$4 sm:$0xff]   ;;  %v9940_v11 = vld [vmem:[%s14739_s1 + $0x404] ss:$16 sps:$4 sm:$0xff]  }
  0x48   :  { %6599 = vmatprep.subr.bf16.mxu0 %v9856_v12  ;;  %7447 = vmatprep.subr.bf16.mxu1 %v9859_v13  ;;  %v9943_v12 = vld [vmem:[%s14739_s1 + $0x40c] ss:$16 sps:$4 sm:$0xff]   ;;  %v9938_v13 = vld [vmem:[%s14739_s1 + $0x400] ss:$16 sps:$4 sm:$0xff]  }
  0x4a   :  { %6585 = vmatmul.mubr.bf16.gmra.mrb[4].mxu0 %v8434_v31  ;;  %7433 = vmatmul.mubr.bf16.gmra.mrb[4].mxu1 %v8434_v31  ;;  %v9961_v31 = vld [vmem:[%s14739_s1 + $0x46c] ss:$16 sps:$4 sm:$0xff]  }
  0x4b   :  { %6600 = vmatpush1.bf16.msra.mxu0 %v9854_v14  ;;  %7448 = vmatpush1.bf16.msra.mxu1 %v9857_v15  ;;  %v9941_v14 = vld [vmem:[%s14739_s1 + $0x408] ss:$16 sps:$4 sm:$0xff]   ;;  %v8404_v15 = vcombine.low %v11592_v34, %v11597_v35  ;;  %v9964_v35 = vld [vmem:[%s14739_s1 + $0x484] ss:$16 sps:$4 sm:$0xff]  }
  0x4c   :  { %6601 = vmatprep.subr.bf16.mxu0 %v9862_v16  ;;  %7449 = vmatprep.subr.bf16.mxu1 %v9865_v17  ;;  %v47_v16 = vld [vmem:[%s14740_s0 + $0x108] sm:$0xff] }
  0x4d   :  { %6627 = vmatprep.mubr.bf16.mxu0 %v8405_v38  ;;  %7475 = vmatprep.mubr.bf16.mxu1 %v8405_v38  ;;  %v63_v17 = vld [vmem:[%s14740_s0 + $0x188] sm:$0xff] }
  0x4e   :  { %v8436_v26 = vcombine.low %v47_v16, %v63_v17  ;;  %v9959_v34 = vld [vmem:[%s14739_s1 + $0x468] ss:$16 sps:$4 sm:$0xff]  }
  0x4f   :  { %6602 = vmatpush1.bf16.msra.mxu0 %v9860_v18  ;;  %7450 = vmatpush1.bf16.msra.mxu1 %v9863_v19  ;;  %v9946_v18 = vld [vmem:[%s14739_s1 + $0x424] ss:$16 sps:$4 sm:$0xff]   ;;  %v9949_v19 = vld [vmem:[%s14739_s1 + $0x42c] ss:$16 sps:$4 sm:$0xff]   ;;  %v9965_v38 = vld [vmem:[%s14739_s1 + $0x488] ss:$16 sps:$4 sm:$0xff]  }
  0x50   :  { %6603 = vmatprep.subr.bf16.mxu0 %v9868_v20  ;;  %7451 = vmatprep.subr.bf16.mxu1 %v9871_v21  ;;  %v8437_v20 = vcombine.high %v47_v16, %v63_v17  ;;  %v9944_v21 = vld [vmem:[%s14739_s1 + $0x420] ss:$16 sps:$4 sm:$0xff]   ;;  %v10033_v16 = vld [vmem:[%s14739_s1 + $0x5ec] ss:$16 sps:$4 sm:$0xff]  }
  0x51   :  { %v10028_v17 = vld [vmem:[%s14739_s1 + $0x5e0] ss:$16 sps:$4 sm:$0xff]  }
  0x53   :  { %6604 = vmatpush1.bf16.msra.mxu0 %v9866_v22  ;;  %7452 = vmatpush1.bf16.msra.mxu1 %v9869_v23  ;;  %v9947_v22 = vld [vmem:[%s14739_s1 + $0x428] ss:$16 sps:$4 sm:$0xff]   ;;  %v9952_v23 = vld [vmem:[%s14739_s1 + $0x444] ss:$16 sps:$4 sm:$0xff]  }
  0x54   :  { %6605 = vmatprep.subr.bf16.mxu0 %v9874_v24  ;;  %7453 = vmatprep.subr.bf16.mxu1 %v9877_v25  ;;  %v9955_v24 = vld [vmem:[%s14739_s1 + $0x44c] ss:$16 sps:$4 sm:$0xff]   ;;  %v11756_v25 = vld [vmem:[%s14740_s0 + $0x10] sm:$0xff] }
  0x57   :  { %6606 = vmatpush1.bf16.msra.mxu0 %v9872_v29  ;;  %7454 = vmatpush1.bf16.msra.mxu1 %v9875_v30  ;;  %v9953_v29 = vld [vmem:[%s14739_s1 + $0x448] ss:$16 sps:$4 sm:$0xff]   ;;  %v9958_v30 = vld [vmem:[%s14739_s1 + $0x464] ss:$16 sps:$4 sm:$0xff]  }
  0x58   :  { %6607 = vmatprep.subr.bf16.mxu0 %v9880_v32  ;;  %7455 = vmatprep.subr.bf16.mxu1 %v9883_v33  ;;  %v8407_v32 = vcombine.high %v11756_v25, %v11761_v27  ;;  %v9956_v33 = vld [vmem:[%s14739_s1 + $0x460] ss:$16 sps:$4 sm:$0xff]  }
  0x5b   :  { %6608 = vmatpush1.bf16.msra.mxu0 %v9878_v36  ;;  %7456 = vmatpush1.bf16.msra.mxu1 %v9881_v37  ;;  %v9967_v36 = vld [vmem:[%s14739_s1 + $0x48c] ss:$16 sps:$4 sm:$0xff]   ;;  %v9962_v37 = vld [vmem:[%s14739_s1 + $0x480] ss:$16 sps:$4 sm:$0xff]  }
  0x5c   :  { %6609 = vmatprep.subr.bf16.mxu0 %v9886_v39  ;;  %7457 = vmatprep.subr.bf16.mxu1 %v9889_v40  ;;  %v9970_v39 = vld [vmem:[%s14739_s1 + $0x4a4] ss:$16 sps:$4 sm:$0xff]   ;;  %v9973_v40 = vld [vmem:[%s14739_s1 + $0x4ac] ss:$16 sps:$4 sm:$0xff]  }
  0x5f   :  { %6610 = vmatpush1.bf16.msra.mxu0 %v9884_v41  ;;  %7458 = vmatpush1.bf16.msra.mxu1 %v9887_v42  ;;  %v9968_v41 = vld [vmem:[%s14739_s1 + $0x4a0] ss:$16 sps:$4 sm:$0xff]   ;;  %v9971_v42 = vld [vmem:[%s14739_s1 + $0x4a8] ss:$16 sps:$4 sm:$0xff]  }
  0x60   :  { %6611 = vmatprep.subr.bf16.mxu0 %v9892_v43  ;;  %7459 = vmatprep.subr.bf16.mxu1 %v9895_v44  ;;  %v9976_v43 = vld [vmem:[%s14739_s1 + $0x4c4] ss:$16 sps:$4 sm:$0xff]   ;;  %v9979_v44 = vld [vmem:[%s14739_s1 + $0x4cc] ss:$16 sps:$4 sm:$0xff]  }
  0x63   :  { %6612 = vmatpush1.bf16.msra.mxu0 %v9890_v45  ;;  %7460 = vmatpush1.bf16.msra.mxu1 %v9893_v46  ;;  %v9974_v45 = vld [vmem:[%s14739_s1 + $0x4c0] ss:$16 sps:$4 sm:$0xff]   ;;  %v9977_v46 = vld [vmem:[%s14739_s1 + $0x4c8] ss:$16 sps:$4 sm:$0xff]  }
  0x64   :  { %6613 = vmatprep.subr.bf16.mxu0 %v9898_v47  ;;  %7461 = vmatprep.subr.bf16.mxu1 %v9901_v48  ;;  %v9982_v47 = vld [vmem:[%s14739_s1 + $0x4e4] ss:$16 sps:$4 sm:$0xff]   ;;  %v9985_v48 = vld [vmem:[%s14739_s1 + $0x4ec] ss:$16 sps:$4 sm:$0xff]  }
  0x67   :  { %6614 = vmatpush1.bf16.msra.mxu0 %v9896_v49  ;;  %7462 = vmatpush1.bf16.msra.mxu1 %v9899_v50  ;;  %v9980_v49 = vld [vmem:[%s14739_s1 + $0x4e0] ss:$16 sps:$4 sm:$0xff]   ;;  %v9983_v50 = vld [vmem:[%s14739_s1 + $0x4e8] ss:$16 sps:$4 sm:$0xff]  }
  0x68   :  { %6615 = vmatprep.subr.bf16.mxu0 %v9904_v51  ;;  %7463 = vmatprep.subr.bf16.mxu1 %v9907_v52  ;;  %v9988_v51 = vld [vmem:[%s14739_s1 + $0x504] ss:$16 sps:$4 sm:$0xff]   ;;  %v9991_v52 = vld [vmem:[%s14739_s1 + $0x50c] ss:$16 sps:$4 sm:$0xff]  }
  0x6b   :  { %6616 = vmatpush1.bf16.msra.mxu0 %v9902_v53  ;;  %7464 = vmatpush1.bf16.msra.mxu1 %v9905_v54  ;;  %v9986_v53 = vld [vmem:[%s14739_s1 + $0x500] ss:$16 sps:$4 sm:$0xff]   ;;  %v9989_v54 = vld [vmem:[%s14739_s1 + $0x508] ss:$16 sps:$4 sm:$0xff]  }
  0x6c   :  { %6617 = vmatprep.subr.bf16.mxu0 %v9910_v55  ;;  %7465 = vmatprep.subr.bf16.mxu1 %v9913_v56  ;;  %v9994_v55 = vld [vmem:[%s14739_s1 + $0x524] ss:$16 sps:$4 sm:$0xff]   ;;  %v9997_v56 = vld [vmem:[%s14739_s1 + $0x52c] ss:$16 sps:$4 sm:$0xff]  }
  0x6f   :  { %6618 = vmatpush1.bf16.msra.mxu0 %v9908_v57  ;;  %7466 = vmatpush1.bf16.msra.mxu1 %v9911_v58  ;;  %v9992_v57 = vld [vmem:[%s14739_s1 + $0x520] ss:$16 sps:$4 sm:$0xff]   ;;  %v9995_v58 = vld [vmem:[%s14739_s1 + $0x528] ss:$16 sps:$4 sm:$0xff]  }
  0x70   :  { %6619 = vmatprep.subr.bf16.mxu0 %v9916_v59  ;;  %7467 = vmatprep.subr.bf16.mxu1 %v9919_v60  ;;  %v10000_v59 = vld [vmem:[%s14739_s1 + $0x544] ss:$16 sps:$4 sm:$0xff]   ;;  %v10003_v60 = vld [vmem:[%s14739_s1 + $0x54c] ss:$16 sps:$4 sm:$0xff]  }
  0x73   :  { %6620 = vmatpush1.bf16.msra.mxu0 %v9914_v61  ;;  %7468 = vmatpush1.bf16.msra.mxu1 %v9917_v62  ;;  %v9998_v61 = vld [vmem:[%s14739_s1 + $0x540] ss:$16 sps:$4 sm:$0xff]   ;;  %v10001_v62 = vld [vmem:[%s14739_s1 + $0x548] ss:$16 sps:$4 sm:$0xff]  }
  0x74   :  { %6621 = vmatprep.subr.bf16.mxu0 %v9922_v63  ;;  %7469 = vmatprep.subr.bf16.mxu1 %v9925_v0  ;;  %v10006_v63 = vld [vmem:[%s14739_s1 + $0x564] ss:$16 sps:$4 sm:$0xff]   ;;  %v10009_v0 = vld [vmem:[%s14739_s1 + $0x56c] ss:$16 sps:$4 sm:$0xff]  }
  0x77   :  { %6622 = vmatpush1.bf16.msra.mxu0 %v9920_v1  ;;  %7470 = vmatpush1.bf16.msra.mxu1 %v9923_v2  ;;  %v10004_v1 = vld [vmem:[%s14739_s1 + $0x560] ss:$16 sps:$4 sm:$0xff]   ;;  %v10007_v2 = vld [vmem:[%s14739_s1 + $0x568] ss:$16 sps:$4 sm:$0xff]  }
  0x78   :  { %6623 = vmatprep.subr.bf16.mxu0 %v9928_v3  ;;  %7471 = vmatprep.subr.bf16.mxu1 %v9931_v4  ;;  %v10012_v3 = vld [vmem:[%s14739_s1 + $0x584] ss:$16 sps:$4 sm:$0xff]   ;;  %v10015_v4 = vld [vmem:[%s14739_s1 + $0x58c] ss:$16 sps:$4 sm:$0xff]  }
  0x7b   :  { %6624 = vmatpush1.bf16.msra.mxu0 %v9926_v5  ;;  %7472 = vmatpush1.bf16.msra.mxu1 %v9929_v6  ;;  %v10010_v5 = vld [vmem:[%s14739_s1 + $0x580] ss:$16 sps:$4 sm:$0xff]   ;;  %v10013_v6 = vld [vmem:[%s14739_s1 + $0x588] ss:$16 sps:$4 sm:$0xff]  }
  0x7c   :  { %6625 = vmatprep.subr.bf16.mxu0 %v9934_v7  ;;  %7473 = vmatprep.subr.bf16.mxu1 %v9937_v8  ;;  %v10018_v7 = vld [vmem:[%s14739_s1 + $0x5a4] ss:$16 sps:$4 sm:$0xff]   ;;  %v10021_v8 = vld [vmem:[%s14739_s1 + $0x5ac] ss:$16 sps:$4 sm:$0xff]  }
  0x7f   :  { %6626 = vmatpush1.bf16.msra.mxu0 %v9932_v9  ;;  %7474 = vmatpush1.bf16.msra.mxu1 %v9935_v10  ;;  %v10016_v9 = vld [vmem:[%s14739_s1 + $0x5a0] ss:$16 sps:$4 sm:$0xff]   ;;  %v10019_v10 = vld [vmem:[%s14739_s1 + $0x5a8] ss:$16 sps:$4 sm:$0xff]  }
  0x80   :  { %6648 = vmatprep.subr.bf16.mxu0 %v9940_v11  ;;  %7496 = vmatprep.subr.bf16.mxu1 %v9943_v12  ;;  %v10024_v11 = vld [vmem:[%s14739_s1 + $0x5c4] ss:$16 sps:$4 sm:$0xff]   ;;  %v10027_v12 = vld [vmem:[%s14739_s1 + $0x5cc] ss:$16 sps:$4 sm:$0xff]  }
  0x82   :  { %6628 = vmatmul.mubr.bf16.vlgmr.msra.gmra.mrb[0].mxu0 %v8404_v15  ;;  %7476 = vmatmul.mubr.bf16.vlgmr.msra.gmra.mrb[0].mxu1 %v8404_v15  ;;  %v10030_v15 = vld [vmem:[%s14739_s1 + $0x5e4] ss:$16 sps:$4 sm:$0xff]  }
  0x83   :  { %6649 = vmatpush1.bf16.msra.mxu0 %v9938_v13  ;;  %7497 = vmatpush1.bf16.msra.mxu1 %v9941_v14  ;;  %v10022_v13 = vld [vmem:[%s14739_s1 + $0x5c0] ss:$16 sps:$4 sm:$0xff]   ;;  %v10025_v14 = vld [vmem:[%s14739_s1 + $0x5c8] ss:$16 sps:$4 sm:$0xff]  }
  0x84   :  { %6650 = vmatprep.subr.bf16.mxu0 %v9946_v18  ;;  %7498 = vmatprep.subr.bf16.mxu1 %v9949_v19  ;;  %v10031_v18 = vld [vmem:[%s14739_s1 + $0x5e8] ss:$16 sps:$4 sm:$0xff]   ;;  %v10036_v19 = vld [vmem:[%s14739_s1 + $0x604] ss:$16 sps:$4 sm:$0xff]  }
  0x85   :  { %6637 = vmatprep.mubr.bf16.mxu0 %v8437_v20  ;;  %7485 = vmatprep.mubr.bf16.mxu1 %v8437_v20  ;;  %v10039_v20 = vld [vmem:[%s14739_s1 + $0x60c] ss:$16 sps:$4 sm:$0xff]  }
  0x87   :  { %6651 = vmatpush1.bf16.msra.mxu0 %v9944_v21  ;;  %7499 = vmatpush1.bf16.msra.mxu1 %v9947_v22  ;;  %v48_v21 = vld [vmem:[%s14740_s0 + $0x110] sm:$0xff]  ;;  %v8406_v22 = vcombine.low %v11756_v25, %v11761_v27  ;;  %v10045_v27 = vld [vmem:[%s14739_s1 + $0x62c] ss:$16 sps:$4 sm:$0xff]  }
  0x88   :  { %6652 = vmatprep.subr.bf16.mxu0 %v9952_v23  ;;  %7500 = vmatprep.subr.bf16.mxu1 %v9955_v24  ;;  %v64_v23 = vld [vmem:[%s14740_s0 + $0x190] sm:$0xff] }
  0x89   :  { %v10034_v24 = vld [vmem:[%s14739_s1 + $0x600] ss:$16 sps:$4 sm:$0xff]   ;;  %v10042_v25 = vld [vmem:[%s14739_s1 + $0x624] ss:$16 sps:$4 sm:$0xff]  }
  0x8a   :  { %6638 = vmatmul.mubr.bf16.gmra.mrb[4].mxu0 %v8436_v26  ;;  %7486 = vmatmul.mubr.bf16.gmra.mrb[4].mxu1 %v8436_v26  ;;  %v10037_v26 = vld [vmem:[%s14739_s1 + $0x608] ss:$16 sps:$4 sm:$0xff]  }
  0x8b   :  { %6653 = vmatpush1.bf16.msra.mxu0 %v9950_v28  ;;  %7501 = vmatpush1.bf16.msra.mxu1 %v9953_v29  ;;  %v8439_v28 = vcombine.high %v48_v21, %v64_v23  ;;  %v10040_v29 = vld [vmem:[%s14739_s1 + $0x620] ss:$16 sps:$4 sm:$0xff]  }
  0x8c   :  { %6654 = vmatprep.subr.bf16.mxu0 %v9958_v30  ;;  %7502 = vmatprep.subr.bf16.mxu1 %v9961_v31  ;;  %v10043_v30 = vld [vmem:[%s14739_s1 + $0x628] ss:$16 sps:$4 sm:$0xff]   ;;  %v10048_v31 = vld [vmem:[%s14739_s1 + $0x644] ss:$16 sps:$4 sm:$0xff]  }
  0x8d   :  { %6680 = vmatprep.mubr.bf16.mxu0 %v8407_v32  ;;  %7528 = vmatprep.mubr.bf16.mxu1 %v8407_v32  ;;  %v10051_v32 = vld [vmem:[%s14739_s1 + $0x64c] ss:$16 sps:$4 sm:$0xff]  }
  0x8f   :  { %6655 = vmatpush1.bf16.msra.mxu0 %v9956_v33  ;;  %7503 = vmatpush1.bf16.msra.mxu1 %v9959_v34  ;;  %v11968_v33 = vld [vmem:[%s14740_s0 + $0x18] sm:$0xff]  ;;  %v8438_v34 = vcombine.low %v48_v21, %v64_v23  ;;  %v10118_v21 = vld [vmem:[%s14739_s1 + $0x7c0] ss:$16 sps:$4 sm:$0xff]   ;;  %v10126_v23 = vld [vmem:[%s14739_s1 + $0x7e4] ss:$16 sps:$4 sm:$0xff]  }
  0x90   :  { %6656 = vmatprep.subr.bf16.mxu0 %v9964_v35  ;;  %7504 = vmatprep.subr.bf16.mxu1 %v9967_v36  ;;  %v11973_v35 = vld [vmem:[%s14740_s0 + $0x98] sm:$0xff]  ;;  %v10046_v36 = vld [vmem:[%s14739_s1 + $0x640] ss:$16 sps:$4 sm:$0xff]  }
  0x93   :  { %6657 = vmatpush1.bf16.msra.mxu0 %v9962_v37  ;;  %7505 = vmatpush1.bf16.msra.mxu1 %v9965_v38  ;;  %v10049_v37 = vld [vmem:[%s14739_s1 + $0x648] ss:$16 sps:$4 sm:$0xff]   ;;  %v10054_v38 = vld [vmem:[%s14739_s1 + $0x664] ss:$16 sps:$4 sm:$0xff]  }
  0x94   :  { %6658 = vmatprep.subr.bf16.mxu0 %v9970_v39  ;;  %7506 = vmatprep.subr.bf16.mxu1 %v9973_v40  ;;  %v10057_v39 = vld [vmem:[%s14739_s1 + $0x66c] ss:$16 sps:$4 sm:$0xff]   ;;  %v8409_v40 = vcombine.high %v11968_v33, %v11973_v35 }
  0x97   :  { %6659 = vmatpush1.bf16.msra.mxu0 %v9968_v41  ;;  %7507 = vmatpush1.bf16.msra.mxu1 %v9971_v42  ;;  %v10052_v41 = vld [vmem:[%s14739_s1 + $0x660] ss:$16 sps:$4 sm:$0xff]   ;;  %v10055_v42 = vld [vmem:[%s14739_s1 + $0x668] ss:$16 sps:$4 sm:$0xff]  }
  0x98   :  { %6660 = vmatprep.subr.bf16.mxu0 %v9976_v43  ;;  %7508 = vmatprep.subr.bf16.mxu1 %v9979_v44  ;;  %v10060_v43 = vld [vmem:[%s14739_s1 + $0x684] ss:$16 sps:$4 sm:$0xff]   ;;  %v10063_v44 = vld [vmem:[%s14739_s1 + $0x68c] ss:$16 sps:$4 sm:$0xff]  }
  0x9b   :  { %6661 = vmatpush1.bf16.msra.mxu0 %v9974_v45  ;;  %7509 = vmatpush1.bf16.msra.mxu1 %v9977_v46  ;;  %v10058_v45 = vld [vmem:[%s14739_s1 + $0x680] ss:$16 sps:$4 sm:$0xff]   ;;  %v10061_v46 = vld [vmem:[%s14739_s1 + $0x688] ss:$16 sps:$4 sm:$0xff]  }
  0x9c   :  { %6662 = vmatprep.subr.bf16.mxu0 %v9982_v47  ;;  %7510 = vmatprep.subr.bf16.mxu1 %v9985_v48  ;;  %v10066_v47 = vld [vmem:[%s14739_s1 + $0x6a4] ss:$16 sps:$4 sm:$0xff]   ;;  %v10069_v48 = vld [vmem:[%s14739_s1 + $0x6ac] ss:$16 sps:$4 sm:$0xff]  }
  0x9f   :  { %6663 = vmatpush1.bf16.msra.mxu0 %v9980_v49  ;;  %7511 = vmatpush1.bf16.msra.mxu1 %v9983_v50  ;;  %v10064_v49 = vld [vmem:[%s14739_s1 + $0x6a0] ss:$16 sps:$4 sm:$0xff]   ;;  %v10067_v50 = vld [vmem:[%s14739_s1 + $0x6a8] ss:$16 sps:$4 sm:$0xff]  }
  0xa0   :  { %6664 = vmatprep.subr.bf16.mxu0 %v9988_v51  ;;  %7512 = vmatprep.subr.bf16.mxu1 %v9991_v52  ;;  %v10072_v51 = vld [vmem:[%s14739_s1 + $0x6c4] ss:$16 sps:$4 sm:$0xff]   ;;  %v10075_v52 = vld [vmem:[%s14739_s1 + $0x6cc] ss:$16 sps:$4 sm:$0xff]  }
  0xa3   :  { %6665 = vmatpush1.bf16.msra.mxu0 %v9986_v53  ;;  %7513 = vmatpush1.bf16.msra.mxu1 %v9989_v54  ;;  %v10070_v53 = vld [vmem:[%s14739_s1 + $0x6c0] ss:$16 sps:$4 sm:$0xff]   ;;  %v10073_v54 = vld [vmem:[%s14739_s1 + $0x6c8] ss:$16 sps:$4 sm:$0xff]  }
  0xa4   :  { %6666 = vmatprep.subr.bf16.mxu0 %v9994_v55  ;;  %7514 = vmatprep.subr.bf16.mxu1 %v9997_v56  ;;  %v10078_v55 = vld [vmem:[%s14739_s1 + $0x6e4] ss:$16 sps:$4 sm:$0xff]   ;;  %v10081_v56 = vld [vmem:[%s14739_s1 + $0x6ec] ss:$16 sps:$4 sm:$0xff]  }
  0xa7   :  { %6667 = vmatpush1.bf16.msra.mxu0 %v9992_v57  ;;  %7515 = vmatpush1.bf16.msra.mxu1 %v9995_v58  ;;  %v10076_v57 = vld [vmem:[%s14739_s1 + $0x6e0] ss:$16 sps:$4 sm:$0xff]   ;;  %v10079_v58 = vld [vmem:[%s14739_s1 + $0x6e8] ss:$16 sps:$4 sm:$0xff]  }
  0xa8   :  { %6668 = vmatprep.subr.bf16.mxu0 %v10000_v59  ;;  %7516 = vmatprep.subr.bf16.mxu1 %v10003_v60  ;;  %v10084_v59 = vld [vmem:[%s14739_s1 + $0x704] ss:$16 sps:$4 sm:$0xff]   ;;  %v10087_v60 = vld [vmem:[%s14739_s1 + $0x70c] ss:$16 sps:$4 sm:$0xff]  }
  0xab   :  { %6669 = vmatpush1.bf16.msra.mxu0 %v9998_v61  ;;  %7517 = vmatpush1.bf16.msra.mxu1 %v10001_v62  ;;  %v10082_v61 = vld [vmem:[%s14739_s1 + $0x700] ss:$16 sps:$4 sm:$0xff]   ;;  %v10085_v62 = vld [vmem:[%s14739_s1 + $0x708] ss:$16 sps:$4 sm:$0xff]  }
  0xac   :  { %6670 = vmatprep.subr.bf16.mxu0 %v10006_v63  ;;  %7518 = vmatprep.subr.bf16.mxu1 %v10009_v0  ;;  %v10090_v63 = vld [vmem:[%s14739_s1 + $0x724] ss:$16 sps:$4 sm:$0xff]   ;;  %v10093_v0 = vld [vmem:[%s14739_s1 + $0x72c] ss:$16 sps:$4 sm:$0xff]  }
  0xaf   :  { %6671 = vmatpush1.bf16.msra.mxu0 %v10004_v1  ;;  %7519 = vmatpush1.bf16.msra.mxu1 %v10007_v2  ;;  %v10088_v1 = vld [vmem:[%s14739_s1 + $0x720] ss:$16 sps:$4 sm:$0xff]   ;;  %v10091_v2 = vld [vmem:[%s14739_s1 + $0x728] ss:$16 sps:$4 sm:$0xff]  }
  0xb0   :  { %6672 = vmatprep.subr.bf16.mxu0 %v10012_v3  ;;  %7520 = vmatprep.subr.bf16.mxu1 %v10015_v4  ;;  %v10096_v3 = vld [vmem:[%s14739_s1 + $0x744] ss:$16 sps:$4 sm:$0xff]   ;;  %v10099_v4 = vld [vmem:[%s14739_s1 + $0x74c] ss:$16 sps:$4 sm:$0xff]  }
  0xb3   :  { %6673 = vmatpush1.bf16.msra.mxu0 %v10010_v5  ;;  %7521 = vmatpush1.bf16.msra.mxu1 %v10013_v6  ;;  %v10094_v5 = vld [vmem:[%s14739_s1 + $0x740] ss:$16 sps:$4 sm:$0xff]   ;;  %v10097_v6 = vld [vmem:[%s14739_s1 + $0x748] ss:$16 sps:$4 sm:$0xff]  }
  0xb4   :  { %6674 = vmatprep.subr.bf16.mxu0 %v10018_v7  ;;  %7522 = vmatprep.subr.bf16.mxu1 %v10021_v8  ;;  %v10102_v7 = vld [vmem:[%s14739_s1 + $0x764] ss:$16 sps:$4 sm:$0xff]   ;;  %v10105_v8 = vld [vmem:[%s14739_s1 + $0x76c] ss:$16 sps:$4 sm:$0xff]  }
  0xb7   :  { %6675 = vmatpush1.bf16.msra.mxu0 %v10016_v9  ;;  %7523 = vmatpush1.bf16.msra.mxu1 %v10019_v10  ;;  %v10100_v9 = vld [vmem:[%s14739_s1 + $0x760] ss:$16 sps:$4 sm:$0xff]   ;;  %v10103_v10 = vld [vmem:[%s14739_s1 + $0x768] ss:$16 sps:$4 sm:$0xff]  }
  0xb8   :  { %6676 = vmatprep.subr.bf16.mxu0 %v10024_v11  ;;  %7524 = vmatprep.subr.bf16.mxu1 %v10027_v12  ;;  %v10108_v11 = vld [vmem:[%s14739_s1 + $0x784] ss:$16 sps:$4 sm:$0xff]   ;;  %v10111_v12 = vld [vmem:[%s14739_s1 + $0x78c] ss:$16 sps:$4 sm:$0xff]  }
  0xbb   :  { %6677 = vmatpush1.bf16.msra.mxu0 %v10022_v13  ;;  %7525 = vmatpush1.bf16.msra.mxu1 %v10025_v14  ;;  %v10106_v13 = vld [vmem:[%s14739_s1 + $0x780] ss:$16 sps:$4 sm:$0xff]   ;;  %v10109_v14 = vld [vmem:[%s14739_s1 + $0x788] ss:$16 sps:$4 sm:$0xff]  }
  0xbc   :  { %6678 = vmatprep.subr.bf16.mxu0 %v10030_v15  ;;  %7526 = vmatprep.subr.bf16.mxu1 %v10033_v16  ;;  %v10114_v15 = vld [vmem:[%s14739_s1 + $0x7a4] ss:$16 sps:$4 sm:$0xff]   ;;  %v10117_v16 = vld [vmem:[%s14739_s1 + $0x7ac] ss:$16 sps:$4 sm:$0xff]  }
  0xbf   :  { %6679 = vmatpush1.bf16.msra.mxu0 %v10028_v17  ;;  %7527 = vmatpush1.bf16.msra.mxu1 %v10031_v18  ;;  %v10112_v17 = vld [vmem:[%s14739_s1 + $0x7a0] ss:$16 sps:$4 sm:$0xff]   ;;  %v10115_v18 = vld [vmem:[%s14739_s1 + $0x7a8] ss:$16 sps:$4 sm:$0xff]  }
  0xc0   :  { %6701 = vmatprep.subr.bf16.mxu0 %v10036_v19  ;;  %7549 = vmatprep.subr.bf16.mxu1 %v10039_v20  ;;  %v10120_v19 = vld [vmem:[%s14739_s1 + $0x7c4] ss:$16 sps:$4 sm:$0xff]   ;;  %v10123_v20 = vld [vmem:[%s14739_s1 + $0x7cc] ss:$16 sps:$4 sm:$0xff]  }
  0xc2   :  { %6681 = vmatmul.mubr.bf16.vlgmr.msra.gmra.mrb[0].mxu0 %v8406_v22  ;;  %7529 = vmatmul.mubr.bf16.vlgmr.msra.gmra.mrb[0].mxu1 %v8406_v22  ;;  %v10121_v22 = vld [vmem:[%s14739_s1 + $0x7c8] ss:$16 sps:$4 sm:$0xff]  }
  0xc3   :  { %6702 = vmatpush1.bf16.msra.mxu0 %v10034_v24  ;;  %7550 = vmatpush1.bf16.msra.mxu1 %v10037_v26  ;;  %v10129_v24 = vld [vmem:[%s14739_s1 + $0x7ec] ss:$16 sps:$4 sm:$0xff]   ;;  %v10124_v26 = vld [vmem:[%s14739_s1 + $0x7e0] ss:$16 sps:$4 sm:$0xff]  }
  0xc4   :  { %6703 = vmatprep.subr.bf16.mxu0 %v10042_v25  ;;  %7551 = vmatprep.subr.bf16.mxu1 %v10045_v27  ;;  %v10127_v25 = vld [vmem:[%s14739_s1 + $0x7e8] ss:$16 sps:$4 sm:$0xff]   ;;  %v10132_v27 = vld [vmem:[%s14739_s1 + $0x804] ss:$16 sps:$4 sm:$0xff]  }
  0xc5   :  { %6690 = vmatprep.mubr.bf16.mxu0 %v8439_v28  ;;  %7538 = vmatprep.mubr.bf16.mxu1 %v8439_v28  ;;  %v10135_v28 = vld [vmem:[%s14739_s1 + $0x80c] ss:$16 sps:$4 sm:$0xff]  }
  0xc7   :  { %6704 = vmatpush1.bf16.msra.mxu0 %v10040_v29  ;;  %7552 = vmatpush1.bf16.msra.mxu1 %v10043_v30  ;;  %v49_v29 = vld [vmem:[%s14740_s0 + $0x118] sm:$0xff]  ;;  %v8408_v30 = vcombine.low %v11968_v33, %v11973_v35 }
  0xc8   :  { %6705 = vmatprep.subr.bf16.mxu0 %v10048_v31  ;;  %7553 = vmatprep.subr.bf16.mxu1 %v10051_v32  ;;  %v65_v31 = vld [vmem:[%s14740_s0 + $0x198] sm:$0xff]  ;;  %v10130_v32 = vld [vmem:[%s14739_s1 + $0x800] ss:$16 sps:$4 sm:$0xff]  }
  0xc9   :  { %v10141_v33 = vld [vmem:[%s14739_s1 + $0x82c] ss:$16 sps:$4 sm:$0xff]   ;;  %v8441_v35 = vcombine.high %v49_v29, %v65_v31 }
  0xca   :  { %6691 = vmatmul.mubr.bf16.gmra.mrb[4].mxu0 %v8438_v34  ;;  %7539 = vmatmul.mubr.bf16.gmra.mrb[4].mxu1 %v8438_v34  ;;  %v10133_v34 = vld [vmem:[%s14739_s1 + $0x808] ss:$16 sps:$4 sm:$0xff]  }
  0xcb   :  { %6706 = vmatpush1.bf16.msra.mxu0 %v10046_v36  ;;  %7554 = vmatpush1.bf16.msra.mxu1 %v10049_v37  ;;  %v10138_v36 = vld [vmem:[%s14739_s1 + $0x824] ss:$16 sps:$4 sm:$0xff]   ;;  %v10136_v37 = vld [vmem:[%s14739_s1 + $0x820] ss:$16 sps:$4 sm:$0xff]  }
  0xcc   :  { %6707 = vmatprep.subr.bf16.mxu0 %v10054_v38  ;;  %7555 = vmatprep.subr.bf16.mxu1 %v10057_v39  ;;  %v10139_v38 = vld [vmem:[%s14739_s1 + $0x828] ss:$16 sps:$4 sm:$0xff]   ;;  %v10144_v39 = vld [vmem:[%s14739_s1 + $0x844] ss:$16 sps:$4 sm:$0xff]  }
  0xcd   :  { %6733 = vmatprep.mubr.bf16.mxu0 %v8409_v40  ;;  %7581 = vmatprep.mubr.bf16.mxu1 %v8409_v40  ;;  %v10147_v40 = vld [vmem:[%s14739_s1 + $0x84c] ss:$16 sps:$4 sm:$0xff]  }
  0xcf   :  { %6708 = vmatpush1.bf16.msra.mxu0 %v10052_v41  ;;  %7556 = vmatpush1.bf16.msra.mxu1 %v10055_v42  ;;  %v12180_v41 = vld [vmem:[%s14740_s0 + $0x20] sm:$0xff]  ;;  %v8440_v42 = vcombine.low %v49_v29, %v65_v31 }
  0xd0   :  { %6709 = vmatprep.subr.bf16.mxu0 %v10060_v43  ;;  %7557 = vmatprep.subr.bf16.mxu1 %v10063_v44  ;;  %v12185_v43 = vld [vmem:[%s14740_s0 + $0xa0] sm:$0xff] }
  0xd1   :  { %v10142_v44 = vld [vmem:[%s14739_s1 + $0x840] ss:$16 sps:$4 sm:$0xff]   ;;  %v10222_v31 = vld [vmem:[%s14739_s1 + $0x9e4] ss:$16 sps:$4 sm:$0xff]  }
  0xd2   :  { %v10214_v29 = vld [vmem:[%s14739_s1 + $0x9c0] ss:$16 sps:$4 sm:$0xff]  }
  0xd3   :  { %6710 = vmatpush1.bf16.msra.mxu0 %v10058_v45  ;;  %7558 = vmatpush1.bf16.msra.mxu1 %v10061_v46  ;;  %v10145_v45 = vld [vmem:[%s14739_s1 + $0x848] ss:$16 sps:$4 sm:$0xff]   ;;  %v10150_v46 = vld [vmem:[%s14739_s1 + $0x864] ss:$16 sps:$4 sm:$0xff]  }
  0xd4   :  { %6711 = vmatprep.subr.bf16.mxu0 %v10066_v47  ;;  %7559 = vmatprep.subr.bf16.mxu1 %v10069_v48  ;;  %v10153_v47 = vld [vmem:[%s14739_s1 + $0x86c] ss:$16 sps:$4 sm:$0xff]   ;;  %v8411_v48 = vcombine.high %v12180_v41, %v12185_v43 }
  0xd7   :  { %6712 = vmatpush1.bf16.msra.mxu0 %v10064_v49  ;;  %7560 = vmatpush1.bf16.msra.mxu1 %v10067_v50  ;;  %v10148_v49 = vld [vmem:[%s14739_s1 + $0x860] ss:$16 sps:$4 sm:$0xff]   ;;  %v10151_v50 = vld [vmem:[%s14739_s1 + $0x868] ss:$16 sps:$4 sm:$0xff]  }
  0xd8   :  { %6713 = vmatprep.subr.bf16.mxu0 %v10072_v51  ;;  %7561 = vmatprep.subr.bf16.mxu1 %v10075_v52  ;;  %v10156_v51 = vld [vmem:[%s14739_s1 + $0x884] ss:$16 sps:$4 sm:$0xff]   ;;  %v10159_v52 = vld [vmem:[%s14739_s1 + $0x88c] ss:$16 sps:$4 sm:$0xff]  }
  0xdb   :  { %6714 = vmatpush1.bf16.msra.mxu0 %v10070_v53  ;;  %7562 = vmatpush1.bf16.msra.mxu1 %v10073_v54  ;;  %v10154_v53 = vld [vmem:[%s14739_s1 + $0x880] ss:$16 sps:$4 sm:$0xff]   ;;  %v10157_v54 = vld [vmem:[%s14739_s1 + $0x888] ss:$16 sps:$4 sm:$0xff]  }
  0xdc   :  { %6715 = vmatprep.subr.bf16.mxu0 %v10078_v55  ;;  %7563 = vmatprep.subr.bf16.mxu1 %v10081_v56  ;;  %v10162_v55 = vld [vmem:[%s14739_s1 + $0x8a4] ss:$16 sps:$4 sm:$0xff]   ;;  %v10165_v56 = vld [vmem:[%s14739_s1 + $0x8ac] ss:$16 sps:$4 sm:$0xff]  }
  0xdf   :  { %6716 = vmatpush1.bf16.msra.mxu0 %v10076_v57  ;;  %7564 = vmatpush1.bf16.msra.mxu1 %v10079_v58  ;;  %v10160_v57 = vld [vmem:[%s14739_s1 + $0x8a0] ss:$16 sps:$4 sm:$0xff]   ;;  %v10163_v58 = vld [vmem:[%s14739_s1 + $0x8a8] ss:$16 sps:$4 sm:$0xff]  }
  0xe0   :  { %6717 = vmatprep.subr.bf16.mxu0 %v10084_v59  ;;  %7565 = vmatprep.subr.bf16.mxu1 %v10087_v60  ;;  %v10168_v59 = vld [vmem:[%s14739_s1 + $0x8c4] ss:$16 sps:$4 sm:$0xff]   ;;  %v10171_v60 = vld [vmem:[%s14739_s1 + $0x8cc] ss:$16 sps:$4 sm:$0xff]  }
  0xe3   :  { %6718 = vmatpush1.bf16.msra.mxu0 %v10082_v61  ;;  %7566 = vmatpush1.bf16.msra.mxu1 %v10085_v62  ;;  %v10166_v61 = vld [vmem:[%s14739_s1 + $0x8c0] ss:$16 sps:$4 sm:$0xff]   ;;  %v10169_v62 = vld [vmem:[%s14739_s1 + $0x8c8] ss:$16 sps:$4 sm:$0xff]  }
  0xe4   :  { %6719 = vmatprep.subr.bf16.mxu0 %v10090_v63  ;;  %7567 = vmatprep.subr.bf16.mxu1 %v10093_v0  ;;  %v10174_v63 = vld [vmem:[%s14739_s1 + $0x8e4] ss:$16 sps:$4 sm:$0xff]   ;;  %v10177_v0 = vld [vmem:[%s14739_s1 + $0x8ec] ss:$16 sps:$4 sm:$0xff]  }
  0xe7   :  { %6720 = vmatpush1.bf16.msra.mxu0 %v10088_v1  ;;  %7568 = vmatpush1.bf16.msra.mxu1 %v10091_v2  ;;  %v10172_v1 = vld [vmem:[%s14739_s1 + $0x8e0] ss:$16 sps:$4 sm:$0xff]   ;;  %v10175_v2 = vld [vmem:[%s14739_s1 + $0x8e8] ss:$16 sps:$4 sm:$0xff]  }
  0xe8   :  { %6721 = vmatprep.subr.bf16.mxu0 %v10096_v3  ;;  %7569 = vmatprep.subr.bf16.mxu1 %v10099_v4  ;;  %v10180_v3 = vld [vmem:[%s14739_s1 + $0x904] ss:$16 sps:$4 sm:$0xff]   ;;  %v10183_v4 = vld [vmem:[%s14739_s1 + $0x90c] ss:$16 sps:$4 sm:$0xff]  }
  0xeb   :  { %6722 = vmatpush1.bf16.msra.mxu0 %v10094_v5  ;;  %7570 = vmatpush1.bf16.msra.mxu1 %v10097_v6  ;;  %v10178_v5 = vld [vmem:[%s14739_s1 + $0x900] ss:$16 sps:$4 sm:$0xff]   ;;  %v10181_v6 = vld [vmem:[%s14739_s1 + $0x908] ss:$16 sps:$4 sm:$0xff]  }
  0xec   :  { %6723 = vmatprep.subr.bf16.mxu0 %v10102_v7  ;;  %7571 = vmatprep.subr.bf16.mxu1 %v10105_v8  ;;  %v10186_v7 = vld [vmem:[%s14739_s1 + $0x924] ss:$16 sps:$4 sm:$0xff]   ;;  %v10189_v8 = vld [vmem:[%s14739_s1 + $0x92c] ss:$16 sps:$4 sm:$0xff]  }
  0xef   :  { %6724 = vmatpush1.bf16.msra.mxu0 %v10100_v9  ;;  %7572 = vmatpush1.bf16.msra.mxu1 %v10103_v10  ;;  %v10184_v9 = vld [vmem:[%s14739_s1 + $0x920] ss:$16 sps:$4 sm:$0xff]   ;;  %v10187_v10 = vld [vmem:[%s14739_s1 + $0x928] ss:$16 sps:$4 sm:$0xff]  }
  0xf0   :  { %6725 = vmatprep.subr.bf16.mxu0 %v10108_v11  ;;  %7573 = vmatprep.subr.bf16.mxu1 %v10111_v12  ;;  %v10192_v11 = vld [vmem:[%s14739_s1 + $0x944] ss:$16 sps:$4 sm:$0xff]   ;;  %v10195_v12 = vld [vmem:[%s14739_s1 + $0x94c] ss:$16 sps:$4 sm:$0xff]  }
  0xf3   :  { %6726 = vmatpush1.bf16.msra.mxu0 %v10106_v13  ;;  %7574 = vmatpush1.bf16.msra.mxu1 %v10109_v14  ;;  %v10190_v13 = vld [vmem:[%s14739_s1 + $0x940] ss:$16 sps:$4 sm:$0xff]   ;;  %v10193_v14 = vld [vmem:[%s14739_s1 + $0x948] ss:$16 sps:$4 sm:$0xff]  }
  0xf4   :  { %6727 = vmatprep.subr.bf16.mxu0 %v10114_v15  ;;  %7575 = vmatprep.subr.bf16.mxu1 %v10117_v16  ;;  %v10198_v15 = vld [vmem:[%s14739_s1 + $0x964] ss:$16 sps:$4 sm:$0xff]   ;;  %v10201_v16 = vld [vmem:[%s14739_s1 + $0x96c] ss:$16 sps:$4 sm:$0xff]  }
  0xf7   :  { %6728 = vmatpush1.bf16.msra.mxu0 %v10112_v17  ;;  %7576 = vmatpush1.bf16.msra.mxu1 %v10115_v18  ;;  %v10196_v17 = vld [vmem:[%s14739_s1 + $0x960] ss:$16 sps:$4 sm:$0xff]   ;;  %v10199_v18 = vld [vmem:[%s14739_s1 + $0x968] ss:$16 sps:$4 sm:$0xff]  }
  0xf8   :  { %6729 = vmatprep.subr.bf16.mxu0 %v10120_v19  ;;  %7577 = vmatprep.subr.bf16.mxu1 %v10123_v20  ;;  %v10204_v19 = vld [vmem:[%s14739_s1 + $0x984] ss:$16 sps:$4 sm:$0xff]   ;;  %v10207_v20 = vld [vmem:[%s14739_s1 + $0x98c] ss:$16 sps:$4 sm:$0xff]  }
  0xfb   :  { %6730 = vmatpush1.bf16.msra.mxu0 %v10118_v21  ;;  %7578 = vmatpush1.bf16.msra.mxu1 %v10121_v22  ;;  %v10202_v21 = vld [vmem:[%s14739_s1 + $0x980] ss:$16 sps:$4 sm:$0xff]   ;;  %v10205_v22 = vld [vmem:[%s14739_s1 + $0x988] ss:$16 sps:$4 sm:$0xff]  }
  0xfc   :  { %6731 = vmatprep.subr.bf16.mxu0 %v10126_v23  ;;  %7579 = vmatprep.subr.bf16.mxu1 %v10129_v24  ;;  %v10210_v23 = vld [vmem:[%s14739_s1 + $0x9a4] ss:$16 sps:$4 sm:$0xff]   ;;  %v10213_v24 = vld [vmem:[%s14739_s1 + $0x9ac] ss:$16 sps:$4 sm:$0xff]  }
  0xff   :  { %6732 = vmatpush1.bf16.msra.mxu0 %v10124_v26  ;;  %7580 = vmatpush1.bf16.msra.mxu1 %v10127_v25  ;;  %v10208_v26 = vld [vmem:[%s14739_s1 + $0x9a0] ss:$16 sps:$4 sm:$0xff]   ;;  %v10211_v25 = vld [vmem:[%s14739_s1 + $0x9a8] ss:$16 sps:$4 sm:$0xff]  }
 0x100   :  { %6754 = vmatprep.subr.bf16.mxu0 %v10132_v27  ;;  %7602 = vmatprep.subr.bf16.mxu1 %v10135_v28  ;;  %v10216_v27 = vld [vmem:[%s14739_s1 + $0x9c4] ss:$16 sps:$4 sm:$0xff]   ;;  %v10219_v28 = vld [vmem:[%s14739_s1 + $0x9cc] ss:$16 sps:$4 sm:$0xff]  }
 0x102   :  { %6734 = vmatmul.mubr.bf16.vlgmr.msra.gmra.mrb[0].mxu0 %v8408_v30  ;;  %7582 = vmatmul.mubr.bf16.vlgmr.msra.gmra.mrb[0].mxu1 %v8408_v30  ;;  %v10217_v30 = vld [vmem:[%s14739_s1 + $0x9c8] ss:$16 sps:$4 sm:$0xff]  }
 0x103   :  { %6755 = vmatpush1.bf16.msra.mxu0 %v10130_v32  ;;  %7603 = vmatpush1.bf16.msra.mxu1 %v10133_v34  ;;  %v10225_v32 = vld [vmem:[%s14739_s1 + $0x9ec] ss:$16 sps:$4 sm:$0xff]   ;;  %v10220_v34 = vld [vmem:[%s14739_s1 + $0x9e0] ss:$16 sps:$4 sm:$0xff]  }
 0x104   :  { %6756 = vmatprep.subr.bf16.mxu0 %v10138_v36  ;;  %7604 = vmatprep.subr.bf16.mxu1 %v10141_v33  ;;  %v10223_v36 = vld [vmem:[%s14739_s1 + $0x9e8] ss:$16 sps:$4 sm:$0xff]   ;;  %v10228_v33 = vld [vmem:[%s14739_s1 + $0xa04] ss:$16 sps:$4 sm:$0xff]  }
 0x105   :  { %6743 = vmatprep.mubr.bf16.mxu0 %v8441_v35  ;;  %7591 = vmatprep.mubr.bf16.mxu1 %v8441_v35  ;;  %v10231_v35 = vld [vmem:[%s14739_s1 + $0xa0c] ss:$16 sps:$4 sm:$0xff]  }
 0x107   :  { %6757 = vmatpush1.bf16.msra.mxu0 %v10136_v37  ;;  %7605 = vmatpush1.bf16.msra.mxu1 %v10139_v38  ;;  %v50_v37 = vld [vmem:[%s14740_s0 + $0x120] sm:$0xff] }
 0x108   :  { %6758 = vmatprep.subr.bf16.mxu0 %v10144_v39  ;;  %7606 = vmatprep.subr.bf16.mxu1 %v10147_v40  ;;  %v66_v38 = vld [vmem:[%s14740_s0 + $0x1a0] sm:$0xff]  ;;  %v8410_v39 = vcombine.low %v12180_v41, %v12185_v43  ;;  %v10237_v41 = vld [vmem:[%s14739_s1 + $0xa2c] ss:$16 sps:$4 sm:$0xff]  }
 0x109   :  { %v10226_v40 = vld [vmem:[%s14739_s1 + $0xa00] ss:$16 sps:$4 sm:$0xff]  }
 0x10a   :  { %6744 = vmatmul.mubr.bf16.gmra.mrb[4].mxu0 %v8440_v42  ;;  %7592 = vmatmul.mubr.bf16.gmra.mrb[4].mxu1 %v8440_v42  ;;  %v10229_v42 = vld [vmem:[%s14739_s1 + $0xa08] ss:$16 sps:$4 sm:$0xff]   ;;  %v10232_v43 = vld [vmem:[%s14739_s1 + $0xa20] ss:$16 sps:$4 sm:$0xff]  }
 0x10b   :  { %6759 = vmatpush1.bf16.msra.mxu0 %v10142_v44  ;;  %7607 = vmatpush1.bf16.msra.mxu1 %v10145_v45  ;;  %v10234_v44 = vld [vmem:[%s14739_s1 + $0xa24] ss:$16 sps:$4 sm:$0xff]   ;;  %v10235_v45 = vld [vmem:[%s14739_s1 + $0xa28] ss:$16 sps:$4 sm:$0xff]  }
 0x10c   :  { %6760 = vmatprep.subr.bf16.mxu0 %v10150_v46  ;;  %7608 = vmatprep.subr.bf16.mxu1 %v10153_v47  ;;  %v8443_v46 = vcombine.high %v50_v37, %v66_v38  ;;  %v10240_v47 = vld [vmem:[%s14739_s1 + $0xa44] ss:$16 sps:$4 sm:$0xff]  }
 0x10d   :  { %6786 = vmatprep.mubr.bf16.mxu0 %v8411_v48  ;;  %7634 = vmatprep.mubr.bf16.mxu1 %v8411_v48  ;;  %v10243_v48 = vld [vmem:[%s14739_s1 + $0xa4c] ss:$16 sps:$4 sm:$0xff]  }
 0x10f   :  { %6761 = vmatpush1.bf16.msra.mxu0 %v10148_v49  ;;  %7609 = vmatpush1.bf16.msra.mxu1 %v10151_v50  ;;  %v12392_v49 = vld [vmem:[%s14740_s0 + $0x28] sm:$0xff] }
 0x110   :  { %6762 = vmatprep.subr.bf16.mxu0 %v10156_v51  ;;  %7610 = vmatprep.subr.bf16.mxu1 %v10159_v52  ;;  %v12397_v50 = vld [vmem:[%s14740_s0 + $0xa8] sm:$0xff]  ;;  %v8442_v51 = vcombine.low %v50_v37, %v66_v38  ;;  %v10238_v52 = vld [vmem:[%s14739_s1 + $0xa40] ss:$16 sps:$4 sm:$0xff]  }
 0x111   :  { %v10310_v37 = vld [vmem:[%s14739_s1 + $0xbc0] ss:$16 sps:$4 sm:$0xff]   ;;  %v10313_v38 = vld [vmem:[%s14739_s1 + $0xbc8] ss:$16 sps:$4 sm:$0xff]  }
 0x113   :  { %6763 = vmatpush1.bf16.msra.mxu0 %v10154_v53  ;;  %7611 = vmatpush1.bf16.msra.mxu1 %v10157_v54  ;;  %v10241_v53 = vld [vmem:[%s14739_s1 + $0xa48] ss:$16 sps:$4 sm:$0xff]   ;;  %v10246_v54 = vld [vmem:[%s14739_s1 + $0xa64] ss:$16 sps:$4 sm:$0xff]  }
 0x114   :  { %6764 = vmatprep.subr.bf16.mxu0 %v10162_v55  ;;  %7612 = vmatprep.subr.bf16.mxu1 %v10165_v56  ;;  %v10249_v55 = vld [vmem:[%s14739_s1 + $0xa6c] ss:$16 sps:$4 sm:$0xff]   ;;  %v8413_v56 = vcombine.high %v12392_v49, %v12397_v50 }
 0x117   :  { %6765 = vmatpush1.bf16.msra.mxu0 %v10160_v57  ;;  %7613 = vmatpush1.bf16.msra.mxu1 %v10163_v58  ;;  %v10244_v57 = vld [vmem:[%s14739_s1 + $0xa60] ss:$16 sps:$4 sm:$0xff]   ;;  %v10247_v58 = vld [vmem:[%s14739_s1 + $0xa68] ss:$16 sps:$4 sm:$0xff]  }
 0x118   :  { %6766 = vmatprep.subr.bf16.mxu0 %v10168_v59  ;;  %7614 = vmatprep.subr.bf16.mxu1 %v10171_v60  ;;  %v10252_v59 = vld [vmem:[%s14739_s1 + $0xa84] ss:$16 sps:$4 sm:$0xff]   ;;  %v10255_v60 = vld [vmem:[%s14739_s1 + $0xa8c] ss:$16 sps:$4 sm:$0xff]  }
 0x11b   :  { %6767 = vmatpush1.bf16.msra.mxu0 %v10166_v61  ;;  %7615 = vmatpush1.bf16.msra.mxu1 %v10169_v62  ;;  %v10250_v61 = vld [vmem:[%s14739_s1 + $0xa80] ss:$16 sps:$4 sm:$0xff]   ;;  %v10253_v62 = vld [vmem:[%s14739_s1 + $0xa88] ss:$16 sps:$4 sm:$0xff]  }
 0x11c   :  { %6768 = vmatprep.subr.bf16.mxu0 %v10174_v63  ;;  %7616 = vmatprep.subr.bf16.mxu1 %v10177_v0  ;;  %v10258_v63 = vld [vmem:[%s14739_s1 + $0xaa4] ss:$16 sps:$4 sm:$0xff]   ;;  %v10261_v0 = vld [vmem:[%s14739_s1 + $0xaac] ss:$16 sps:$4 sm:$0xff]  }
 0x11f   :  { %6769 = vmatpush1.bf16.msra.mxu0 %v10172_v1  ;;  %7617 = vmatpush1.bf16.msra.mxu1 %v10175_v2  ;;  %v10256_v1 = vld [vmem:[%s14739_s1 + $0xaa0] ss:$16 sps:$4 sm:$0xff]   ;;  %v10259_v2 = vld [vmem:[%s14739_s1 + $0xaa8] ss:$16 sps:$4 sm:$0xff]  }
 0x120   :  { %6770 = vmatprep.subr.bf16.mxu0 %v10180_v3  ;;  %7618 = vmatprep.subr.bf16.mxu1 %v10183_v4  ;;  %v10264_v3 = vld [vmem:[%s14739_s1 + $0xac4] ss:$16 sps:$4 sm:$0xff]   ;;  %v10267_v4 = vld [vmem:[%s14739_s1 + $0xacc] ss:$16 sps:$4 sm:$0xff]  }
 0x123   :  { %6771 = vmatpush1.bf16.msra.mxu0 %v10178_v5  ;;  %7619 = vmatpush1.bf16.msra.mxu1 %v10181_v6  ;;  %v10262_v5 = vld [vmem:[%s14739_s1 + $0xac0] ss:$16 sps:$4 sm:$0xff]   ;;  %v10265_v6 = vld [vmem:[%s14739_s1 + $0xac8] ss:$16 sps:$4 sm:$0xff]  }
 0x124   :  { %6772 = vmatprep.subr.bf16.mxu0 %v10186_v7  ;;  %7620 = vmatprep.subr.bf16.mxu1 %v10189_v8  ;;  %v10270_v7 = vld [vmem:[%s14739_s1 + $0xae4] ss:$16 sps:$4 sm:$0xff]   ;;  %v10273_v8 = vld [vmem:[%s14739_s1 + $0xaec] ss:$16 sps:$4 sm:$0xff]  }
 0x127   :  { %6773 = vmatpush1.bf16.msra.mxu0 %v10184_v9  ;;  %7621 = vmatpush1.bf16.msra.mxu1 %v10187_v10  ;;  %v10268_v9 = vld [vmem:[%s14739_s1 + $0xae0] ss:$16 sps:$4 sm:$0xff]   ;;  %v10271_v10 = vld [vmem:[%s14739_s1 + $0xae8] ss:$16 sps:$4 sm:$0xff]  }
 0x128   :  { %6774 = vmatprep.subr.bf16.mxu0 %v10192_v11  ;;  %7622 = vmatprep.subr.bf16.mxu1 %v10195_v12  ;;  %v10276_v11 = vld [vmem:[%s14739_s1 + $0xb04] ss:$16 sps:$4 sm:$0xff]   ;;  %v10279_v12 = vld [vmem:[%s14739_s1 + $0xb0c] ss:$16 sps:$4 sm:$0xff]  }
 0x12b   :  { %6775 = vmatpush1.bf16.msra.mxu0 %v10190_v13  ;;  %7623 = vmatpush1.bf16.msra.mxu1 %v10193_v14  ;;  %v10274_v13 = vld [vmem:[%s14739_s1 + $0xb00] ss:$16 sps:$4 sm:$0xff]   ;;  %v10277_v14 = vld [vmem:[%s14739_s1 + $0xb08] ss:$16 sps:$4 sm:$0xff]  }
 0x12c   :  { %6776 = vmatprep.subr.bf16.mxu0 %v10198_v15  ;;  %7624 = vmatprep.subr.bf16.mxu1 %v10201_v16  ;;  %v10282_v15 = vld [vmem:[%s14739_s1 + $0xb24] ss:$16 sps:$4 sm:$0xff]   ;;  %v10285_v16 = vld [vmem:[%s14739_s1 + $0xb2c] ss:$16 sps:$4 sm:$0xff]  }
 0x12f   :  { %6777 = vmatpush1.bf16.msra.mxu0 %v10196_v17  ;;  %7625 = vmatpush1.bf16.msra.mxu1 %v10199_v18  ;;  %v10280_v17 = vld [vmem:[%s14739_s1 + $0xb20] ss:$16 sps:$4 sm:$0xff]   ;;  %v10283_v18 = vld [vmem:[%s14739_s1 + $0xb28] ss:$16 sps:$4 sm:$0xff]  }
 0x130   :  { %6778 = vmatprep.subr.bf16.mxu0 %v10204_v19  ;;  %7626 = vmatprep.subr.bf16.mxu1 %v10207_v20  ;;  %v10288_v19 = vld [vmem:[%s14739_s1 + $0xb44] ss:$16 sps:$4 sm:$0xff]   ;;  %v10291_v20 = vld [vmem:[%s14739_s1 + $0xb4c] ss:$16 sps:$4 sm:$0xff]  }
 0x133   :  { %6779 = vmatpush1.bf16.msra.mxu0 %v10202_v21  ;;  %7627 = vmatpush1.bf16.msra.mxu1 %v10205_v22  ;;  %v10286_v21 = vld [vmem:[%s14739_s1 + $0xb40] ss:$16 sps:$4 sm:$0xff]   ;;  %v10289_v22 = vld [vmem:[%s14739_s1 + $0xb48] ss:$16 sps:$4 sm:$0xff]  }
 0x134   :  { %6780 = vmatprep.subr.bf16.mxu0 %v10210_v23  ;;  %7628 = vmatprep.subr.bf16.mxu1 %v10213_v24  ;;  %v10294_v23 = vld [vmem:[%s14739_s1 + $0xb64] ss:$16 sps:$4 sm:$0xff]   ;;  %v10297_v24 = vld [vmem:[%s14739_s1 + $0xb6c] ss:$16 sps:$4 sm:$0xff]  }
 0x137   :  { %6781 = vmatpush1.bf16.msra.mxu0 %v10208_v26  ;;  %7629 = vmatpush1.bf16.msra.mxu1 %v10211_v25  ;;  %v10292_v26 = vld [vmem:[%s14739_s1 + $0xb60] ss:$16 sps:$4 sm:$0xff]   ;;  %v10295_v25 = vld [vmem:[%s14739_s1 + $0xb68] ss:$16 sps:$4 sm:$0xff]  }
 0x138   :  { %6782 = vmatprep.subr.bf16.mxu0 %v10216_v27  ;;  %7630 = vmatprep.subr.bf16.mxu1 %v10219_v28  ;;  %v10300_v27 = vld [vmem:[%s14739_s1 + $0xb84] ss:$16 sps:$4 sm:$0xff]   ;;  %v10303_v28 = vld [vmem:[%s14739_s1 + $0xb8c] ss:$16 sps:$4 sm:$0xff]  }
 0x13b   :  { %6783 = vmatpush1.bf16.msra.mxu0 %v10214_v29  ;;  %7631 = vmatpush1.bf16.msra.mxu1 %v10217_v30  ;;  %v10298_v29 = vld [vmem:[%s14739_s1 + $0xb80] ss:$16 sps:$4 sm:$0xff]   ;;  %v10301_v30 = vld [vmem:[%s14739_s1 + $0xb88] ss:$16 sps:$4 sm:$0xff]  }
 0x13c   :  { %6784 = vmatprep.subr.bf16.mxu0 %v10222_v31  ;;  %7632 = vmatprep.subr.bf16.mxu1 %v10225_v32  ;;  %v10306_v31 = vld [vmem:[%s14739_s1 + $0xba4] ss:$16 sps:$4 sm:$0xff]   ;;  %v10309_v32 = vld [vmem:[%s14739_s1 + $0xbac] ss:$16 sps:$4 sm:$0xff]  }
 0x13f   :  { %6785 = vmatpush1.bf16.msra.mxu0 %v10220_v34  ;;  %7633 = vmatpush1.bf16.msra.mxu1 %v10223_v36  ;;  %v10304_v34 = vld [vmem:[%s14739_s1 + $0xba0] ss:$16 sps:$4 sm:$0xff]   ;;  %v10307_v36 = vld [vmem:[%s14739_s1 + $0xba8] ss:$16 sps:$4 sm:$0xff]  }
 0x140   :  { %6807 = vmatprep.subr.bf16.mxu0 %v10228_v33  ;;  %7655 = vmatprep.subr.bf16.mxu1 %v10231_v35  ;;  %v10312_v33 = vld [vmem:[%s14739_s1 + $0xbc4] ss:$16 sps:$4 sm:$0xff]   ;;  %v10315_v35 = vld [vmem:[%s14739_s1 + $0xbcc] ss:$16 sps:$4 sm:$0xff]  }
 0x142   :  { %6787 = vmatmul.mubr.bf16.vlgmr.msra.gmra.mrb[0].mxu0 %v8410_v39  ;;  %7635 = vmatmul.mubr.bf16.vlgmr.msra.gmra.mrb[0].mxu1 %v8410_v39  ;;  %v10318_v39 = vld [vmem:[%s14739_s1 + $0xbe4] ss:$16 sps:$4 sm:$0xff]  }
 0x143   :  { %6808 = vmatpush1.bf16.msra.mxu0 %v10226_v40  ;;  %7656 = vmatpush1.bf16.msra.mxu1 %v10229_v42  ;;  %v10321_v40 = vld [vmem:[%s14739_s1 + $0xbec] ss:$16 sps:$4 sm:$0xff]   ;;  %v10316_v42 = vld [vmem:[%s14739_s1 + $0xbe0] ss:$16 sps:$4 sm:$0xff]  }
 0x144   :  { %6809 = vmatprep.subr.bf16.mxu0 %v10234_v44  ;;  %7657 = vmatprep.subr.bf16.mxu1 %v10237_v41  ;;  %v10319_v44 = vld [vmem:[%s14739_s1 + $0xbe8] ss:$16 sps:$4 sm:$0xff]   ;;  %v10324_v41 = vld [vmem:[%s14739_s1 + $0xc04] ss:$16 sps:$4 sm:$0xff]  }
 0x145   :  { %6796 = vmatprep.mubr.bf16.mxu0 %v8443_v46  ;;  %7644 = vmatprep.mubr.bf16.mxu1 %v8443_v46  ;;  %v67_v46 = vld [vmem:[%s14740_s0 + $0x1a8] sm:$0xff] }
 0x147   :  { %6810 = vmatpush1.bf16.msra.mxu0 %v10232_v43  ;;  %7658 = vmatpush1.bf16.msra.mxu1 %v10235_v45  ;;  %v10327_v43 = vld [vmem:[%s14739_s1 + $0xc0c] ss:$16 sps:$4 sm:$0xff]  }
 0x148   :  { %6811 = vmatprep.subr.bf16.mxu0 %v10240_v47  ;;  %7659 = vmatprep.subr.bf16.mxu1 %v10243_v48  ;;  %v51_v45 = vld [vmem:[%s14740_s0 + $0x128] sm:$0xff]  ;;  %v8412_v47 = vcombine.low %v12392_v49, %v12397_v50  ;;  %v10322_v48 = vld [vmem:[%s14739_s1 + $0xc00] ss:$16 sps:$4 sm:$0xff]  }
 0x149   :  { %v10333_v49 = vld [vmem:[%s14739_s1 + $0xc2c] ss:$16 sps:$4 sm:$0xff]   ;;  %v10328_v50 = vld [vmem:[%s14739_s1 + $0xc20] ss:$16 sps:$4 sm:$0xff]  }
 0x14a   :  { %6797 = vmatmul.mubr.bf16.gmra.mrb[4].mxu0 %v8442_v51  ;;  %7645 = vmatmul.mubr.bf16.gmra.mrb[4].mxu1 %v8442_v51  ;;  %v10325_v51 = vld [vmem:[%s14739_s1 + $0xc08] ss:$16 sps:$4 sm:$0xff]  }
 0x14b   :  { %6812 = vmatpush1.bf16.msra.mxu0 %v10238_v52  ;;  %7660 = vmatpush1.bf16.msra.mxu1 %v10241_v53  ;;  %v10330_v52 = vld [vmem:[%s14739_s1 + $0xc24] ss:$16 sps:$4 sm:$0xff]   ;;  %v10331_v53 = vld [vmem:[%s14739_s1 + $0xc28] ss:$16 sps:$4 sm:$0xff]  }
 0x14c   :  { %6813 = vmatprep.subr.bf16.mxu0 %v10246_v54  ;;  %7661 = vmatprep.subr.bf16.mxu1 %v10249_v55  ;;  %v8445_v54 = vcombine.high %v51_v45, %v67_v46  ;;  %v10336_v55 = vld [vmem:[%s14739_s1 + $0xc44] ss:$16 sps:$4 sm:$0xff]  }
 0x14d   :  { %6839 = vmatprep.mubr.bf16.mxu0 %v8413_v56  ;;  %7687 = vmatprep.mubr.bf16.mxu1 %v8413_v56  ;;  %v10339_v56 = vld [vmem:[%s14739_s1 + $0xc4c] ss:$16 sps:$4 sm:$0xff]  }
 0x14f   :  { %6814 = vmatpush1.bf16.msra.mxu0 %v10244_v57  ;;  %7662 = vmatpush1.bf16.msra.mxu1 %v10247_v58  ;;  %v12604_v57 = vld [vmem:[%s14740_s0 + $0x30] sm:$0xff] }
 0x150   :  { %6815 = vmatprep.subr.bf16.mxu0 %v10252_v59  ;;  %7663 = vmatprep.subr.bf16.mxu1 %v10255_v60  ;;  %v12609_v58 = vld [vmem:[%s14740_s0 + $0xb0] sm:$0xff]  ;;  %v8444_v59 = vcombine.low %v51_v45, %v67_v46  ;;  %v10409_v46 = vld [vmem:[%s14739_s1 + $0xdc8] ss:$16 sps:$4 sm:$0xff]  }
 0x151   :  { %v10334_v60 = vld [vmem:[%s14739_s1 + $0xc40] ss:$16 sps:$4 sm:$0xff]  }
 0x152   :  { %v10406_v45 = vld [vmem:[%s14739_s1 + $0xdc0] ss:$16 sps:$4 sm:$0xff]  }
 0x153   :  { %6816 = vmatpush1.bf16.msra.mxu0 %v10250_v61  ;;  %7664 = vmatpush1.bf16.msra.mxu1 %v10253_v62  ;;  %v10337_v61 = vld [vmem:[%s14739_s1 + $0xc48] ss:$16 sps:$4 sm:$0xff]   ;;  %v10342_v62 = vld [vmem:[%s14739_s1 + $0xc64] ss:$16 sps:$4 sm:$0xff]  }
 0x154   :  { %6817 = vmatprep.subr.bf16.mxu0 %v10258_v63  ;;  %7665 = vmatprep.subr.bf16.mxu1 %v10261_v0  ;;  %v10345_v63 = vld [vmem:[%s14739_s1 + $0xc6c] ss:$16 sps:$4 sm:$0xff]   ;;  %v8415_v0 = vcombine.high %v12604_v57, %v12609_v58 }
 0x157   :  { %6818 = vmatpush1.bf16.msra.mxu0 %v10256_v1  ;;  %7666 = vmatpush1.bf16.msra.mxu1 %v10259_v2  ;;  %v10340_v1 = vld [vmem:[%s14739_s1 + $0xc60] ss:$16 sps:$4 sm:$0xff]   ;;  %v10343_v2 = vld [vmem:[%s14739_s1 + $0xc68] ss:$16 sps:$4 sm:$0xff]  }
 0x158   :  { %6819 = vmatprep.subr.bf16.mxu0 %v10264_v3  ;;  %7667 = vmatprep.subr.bf16.mxu1 %v10267_v4  ;;  %v10348_v3 = vld [vmem:[%s14739_s1 + $0xc84] ss:$16 sps:$4 sm:$0xff]   ;;  %v10351_v4 = vld [vmem:[%s14739_s1 + $0xc8c] ss:$16 sps:$4 sm:$0xff]  }
 0x15b   :  { %6820 = vmatpush1.bf16.msra.mxu0 %v10262_v5  ;;  %7668 = vmatpush1.bf16.msra.mxu1 %v10265_v6  ;;  %v10346_v5 = vld [vmem:[%s14739_s1 + $0xc80] ss:$16 sps:$4 sm:$0xff]   ;;  %v10349_v6 = vld [vmem:[%s14739_s1 + $0xc88] ss:$16 sps:$4 sm:$0xff]  }
 0x15c   :  { %6821 = vmatprep.subr.bf16.mxu0 %v10270_v7  ;;  %7669 = vmatprep.subr.bf16.mxu1 %v10273_v8  ;;  %v10354_v7 = vld [vmem:[%s14739_s1 + $0xca4] ss:$16 sps:$4 sm:$0xff]   ;;  %v10357_v8 = vld [vmem:[%s14739_s1 + $0xcac] ss:$16 sps:$4 sm:$0xff]  }
 0x15f   :  { %6822 = vmatpush1.bf16.msra.mxu0 %v10268_v9  ;;  %7670 = vmatpush1.bf16.msra.mxu1 %v10271_v10  ;;  %v10352_v9 = vld [vmem:[%s14739_s1 + $0xca0] ss:$16 sps:$4 sm:$0xff]   ;;  %v10355_v10 = vld [vmem:[%s14739_s1 + $0xca8] ss:$16 sps:$4 sm:$0xff]  }
 0x160   :  { %6823 = vmatprep.subr.bf16.mxu0 %v10276_v11  ;;  %7671 = vmatprep.subr.bf16.mxu1 %v10279_v12  ;;  %v10360_v11 = vld [vmem:[%s14739_s1 + $0xcc4] ss:$16 sps:$4 sm:$0xff]   ;;  %v10363_v12 = vld [vmem:[%s14739_s1 + $0xccc] ss:$16 sps:$4 sm:$0xff]  }
 0x163   :  { %6824 = vmatpush1.bf16.msra.mxu0 %v10274_v13  ;;  %7672 = vmatpush1.bf16.msra.mxu1 %v10277_v14  ;;  %v10358_v13 = vld [vmem:[%s14739_s1 + $0xcc0] ss:$16 sps:$4 sm:$0xff]   ;;  %v10361_v14 = vld [vmem:[%s14739_s1 + $0xcc8] ss:$16 sps:$4 sm:$0xff]  }
 0x164   :  { %6825 = vmatprep.subr.bf16.mxu0 %v10282_v15  ;;  %7673 = vmatprep.subr.bf16.mxu1 %v10285_v16  ;;  %v10366_v15 = vld [vmem:[%s14739_s1 + $0xce4] ss:$16 sps:$4 sm:$0xff]   ;;  %v10369_v16 = vld [vmem:[%s14739_s1 + $0xcec] ss:$16 sps:$4 sm:$0xff]  }
 0x167   :  { %6826 = vmatpush1.bf16.msra.mxu0 %v10280_v17  ;;  %7674 = vmatpush1.bf16.msra.mxu1 %v10283_v18  ;;  %v10364_v17 = vld [vmem:[%s14739_s1 + $0xce0] ss:$16 sps:$4 sm:$0xff]   ;;  %v10367_v18 = vld [vmem:[%s14739_s1 + $0xce8] ss:$16 sps:$4 sm:$0xff]  }
 0x168   :  { %6827 = vmatprep.subr.bf16.mxu0 %v10288_v19  ;;  %7675 = vmatprep.subr.bf16.mxu1 %v10291_v20  ;;  %v10372_v19 = vld [vmem:[%s14739_s1 + $0xd04] ss:$16 sps:$4 sm:$0xff]   ;;  %v10375_v20 = vld [vmem:[%s14739_s1 + $0xd0c] ss:$16 sps:$4 sm:$0xff]  }
 0x16b   :  { %6828 = vmatpush1.bf16.msra.mxu0 %v10286_v21  ;;  %7676 = vmatpush1.bf16.msra.mxu1 %v10289_v22  ;;  %v10370_v21 = vld [vmem:[%s14739_s1 + $0xd00] ss:$16 sps:$4 sm:$0xff]   ;;  %v10373_v22 = vld [vmem:[%s14739_s1 + $0xd08] ss:$16 sps:$4 sm:$0xff]  }
 0x16c   :  { %6829 = vmatprep.subr.bf16.mxu0 %v10294_v23  ;;  %7677 = vmatprep.subr.bf16.mxu1 %v10297_v24  ;;  %v10378_v23 = vld [vmem:[%s14739_s1 + $0xd24] ss:$16 sps:$4 sm:$0xff]   ;;  %v10381_v24 = vld [vmem:[%s14739_s1 + $0xd2c] ss:$16 sps:$4 sm:$0xff]  }
 0x16f   :  { %6830 = vmatpush1.bf16.msra.mxu0 %v10292_v26  ;;  %7678 = vmatpush1.bf16.msra.mxu1 %v10295_v25  ;;  %v10376_v26 = vld [vmem:[%s14739_s1 + $0xd20] ss:$16 sps:$4 sm:$0xff]   ;;  %v10379_v25 = vld [vmem:[%s14739_s1 + $0xd28] ss:$16 sps:$4 sm:$0xff]  }
 0x170   :  { %6831 = vmatprep.subr.bf16.mxu0 %v10300_v27  ;;  %7679 = vmatprep.subr.bf16.mxu1 %v10303_v28  ;;  %v10384_v27 = vld [vmem:[%s14739_s1 + $0xd44] ss:$16 sps:$4 sm:$0xff]   ;;  %v10387_v28 = vld [vmem:[%s14739_s1 + $0xd4c] ss:$16 sps:$4 sm:$0xff]  }
 0x173   :  { %6832 = vmatpush1.bf16.msra.mxu0 %v10298_v29  ;;  %7680 = vmatpush1.bf16.msra.mxu1 %v10301_v30  ;;  %v10382_v29 = vld [vmem:[%s14739_s1 + $0xd40] ss:$16 sps:$4 sm:$0xff]   ;;  %v10385_v30 = vld [vmem:[%s14739_s1 + $0xd48] ss:$16 sps:$4 sm:$0xff]  }
 0x174   :  { %6833 = vmatprep.subr.bf16.mxu0 %v10306_v31  ;;  %7681 = vmatprep.subr.bf16.mxu1 %v10309_v32  ;;  %v10390_v31 = vld [vmem:[%s14739_s1 + $0xd64] ss:$16 sps:$4 sm:$0xff]   ;;  %v10393_v32 = vld [vmem:[%s14739_s1 + $0xd6c] ss:$16 sps:$4 sm:$0xff]  }
 0x177   :  { %6834 = vmatpush1.bf16.msra.mxu0 %v10304_v34  ;;  %7682 = vmatpush1.bf16.msra.mxu1 %v10307_v36  ;;  %v10388_v34 = vld [vmem:[%s14739_s1 + $0xd60] ss:$16 sps:$4 sm:$0xff]   ;;  %v10391_v36 = vld [vmem:[%s14739_s1 + $0xd68] ss:$16 sps:$4 sm:$0xff]  }
 0x178   :  { %6835 = vmatprep.subr.bf16.mxu0 %v10312_v33  ;;  %7683 = vmatprep.subr.bf16.mxu1 %v10315_v35  ;;  %v10396_v33 = vld [vmem:[%s14739_s1 + $0xd84] ss:$16 sps:$4 sm:$0xff]   ;;  %v10399_v35 = vld [vmem:[%s14739_s1 + $0xd8c] ss:$16 sps:$4 sm:$0xff]  }
 0x17b   :  { %6836 = vmatpush1.bf16.msra.mxu0 %v10310_v37  ;;  %7684 = vmatpush1.bf16.msra.mxu1 %v10313_v38  ;;  %v10394_v37 = vld [vmem:[%s14739_s1 + $0xd80] ss:$16 sps:$4 sm:$0xff]   ;;  %v10397_v38 = vld [vmem:[%s14739_s1 + $0xd88] ss:$16 sps:$4 sm:$0xff]  }
 0x17c   :  { %6837 = vmatprep.subr.bf16.mxu0 %v10318_v39  ;;  %7685 = vmatprep.subr.bf16.mxu1 %v10321_v40  ;;  %v10402_v39 = vld [vmem:[%s14739_s1 + $0xda4] ss:$16 sps:$4 sm:$0xff]   ;;  %v10405_v40 = vld [vmem:[%s14739_s1 + $0xdac] ss:$16 sps:$4 sm:$0xff]  }
 0x17f   :  { %6838 = vmatpush1.bf16.msra.mxu0 %v10316_v42  ;;  %7686 = vmatpush1.bf16.msra.mxu1 %v10319_v44  ;;  %v10400_v42 = vld [vmem:[%s14739_s1 + $0xda0] ss:$16 sps:$4 sm:$0xff]   ;;  %v10403_v44 = vld [vmem:[%s14739_s1 + $0xda8] ss:$16 sps:$4 sm:$0xff]  }
 0x180   :  { %6860 = vmatprep.subr.bf16.mxu0 %v10324_v41  ;;  %7708 = vmatprep.subr.bf16.mxu1 %v10327_v43  ;;  %v10408_v41 = vld [vmem:[%s14739_s1 + $0xdc4] ss:$16 sps:$4 sm:$0xff]   ;;  %v10411_v43 = vld [vmem:[%s14739_s1 + $0xdcc] ss:$16 sps:$4 sm:$0xff]  }
 0x182   :  { %6840 = vmatmul.mubr.bf16.vlgmr.msra.gmra.mrb[0].mxu0 %v8412_v47  ;;  %7688 = vmatmul.mubr.bf16.vlgmr.msra.gmra.mrb[0].mxu1 %v8412_v47  ;;  %v10414_v47 = vld [vmem:[%s14739_s1 + $0xde4] ss:$16 sps:$4 sm:$0xff]  }
 0x183   :  { %6861 = vmatpush1.bf16.msra.mxu0 %v10322_v48  ;;  %7709 = vmatpush1.bf16.msra.mxu1 %v10325_v51  ;;  %v10417_v48 = vld [vmem:[%s14739_s1 + $0xdec] ss:$16 sps:$4 sm:$0xff]   ;;  %v10412_v51 = vld [vmem:[%s14739_s1 + $0xde0] ss:$16 sps:$4 sm:$0xff]  }
 0x184   :  { %6862 = vmatprep.subr.bf16.mxu0 %v10330_v52  ;;  %7710 = vmatprep.subr.bf16.mxu1 %v10333_v49  ;;  %v10415_v52 = vld [vmem:[%s14739_s1 + $0xde8] ss:$16 sps:$4 sm:$0xff]   ;;  %v10420_v49 = vld [vmem:[%s14739_s1 + $0xe04] ss:$16 sps:$4 sm:$0xff]  }
 0x185   :  { %6849 = vmatprep.mubr.bf16.mxu0 %v8445_v54  ;;  %7697 = vmatprep.mubr.bf16.mxu1 %v8445_v54  ;;  %v68_v54 = vld [vmem:[%s14740_s0 + $0x1b0] sm:$0xff] }
 0x187   :  { %6863 = vmatpush1.bf16.msra.mxu0 %v10328_v50  ;;  %7711 = vmatpush1.bf16.msra.mxu1 %v10331_v53  ;;  %v10423_v50 = vld [vmem:[%s14739_s1 + $0xe0c] ss:$16 sps:$4 sm:$0xff]   ;;  %v52_v53 = vld [vmem:[%s14740_s0 + $0x130] sm:$0xff] }
 0x188   :  { %6864 = vmatprep.subr.bf16.mxu0 %v10336_v55  ;;  %7712 = vmatprep.subr.bf16.mxu1 %v10339_v56  ;;  %v8414_v55 = vcombine.low %v12604_v57, %v12609_v58  ;;  %v10418_v56 = vld [vmem:[%s14739_s1 + $0xe00] ss:$16 sps:$4 sm:$0xff]   ;;  %v10429_v57 = vld [vmem:[%s14739_s1 + $0xe2c] ss:$16 sps:$4 sm:$0xff]  }
 0x189   :  { %v10424_v58 = vld [vmem:[%s14739_s1 + $0xe20] ss:$16 sps:$4 sm:$0xff]  }
 0x18a   :  { %6850 = vmatmul.mubr.bf16.gmra.mrb[4].mxu0 %v8444_v59  ;;  %7698 = vmatmul.mubr.bf16.gmra.mrb[4].mxu1 %v8444_v59  ;;  %v10421_v59 = vld [vmem:[%s14739_s1 + $0xe08] ss:$16 sps:$4 sm:$0xff]  }
 0x18b   :  { %6865 = vmatpush1.bf16.msra.mxu0 %v10334_v60  ;;  %7713 = vmatpush1.bf16.msra.mxu1 %v10337_v61  ;;  %v10426_v60 = vld [vmem:[%s14739_s1 + $0xe24] ss:$16 sps:$4 sm:$0xff]   ;;  %v10427_v61 = vld [vmem:[%s14739_s1 + $0xe28] ss:$16 sps:$4 sm:$0xff]  }
 0x18c   :  { %6866 = vmatprep.subr.bf16.mxu0 %v10342_v62  ;;  %7714 = vmatprep.subr.bf16.mxu1 %v10345_v63  ;;  %v8447_v62 = vcombine.high %v52_v53, %v68_v54  ;;  %v10432_v63 = vld [vmem:[%s14739_s1 + $0xe44] ss:$16 sps:$4 sm:$0xff]  }
 0x18d   :  { %6892 = vmatprep.mubr.bf16.mxu0 %v8415_v0  ;;  %7740 = vmatprep.mubr.bf16.mxu1 %v8415_v0  ;;  %v10435_v0 = vld [vmem:[%s14739_s1 + $0xe4c] ss:$16 sps:$4 sm:$0xff]  }
 0x18f   :  { %6867 = vmatpush1.bf16.msra.mxu0 %v10340_v1  ;;  %7715 = vmatpush1.bf16.msra.mxu1 %v10343_v2  ;;  %v12816_v1 = vld [vmem:[%s14740_s0 + $0x38] sm:$0xff] }
 0x190   :  { %6868 = vmatprep.subr.bf16.mxu0 %v10348_v3  ;;  %7716 = vmatprep.subr.bf16.mxu1 %v10351_v4  ;;  %v12821_v2 = vld [vmem:[%s14740_s0 + $0xb8] sm:$0xff]  ;;  %v8446_v3 = vcombine.low %v52_v53, %v68_v54  ;;  %v10430_v4 = vld [vmem:[%s14739_s1 + $0xe40] ss:$16 sps:$4 sm:$0xff]  }
 0x191   :  { %v10502_v53 = vld [vmem:[%s14739_s1 + $0xfc0] ss:$16 sps:$4 sm:$0xff]   ;;  %v10505_v54 = vld [vmem:[%s14739_s1 + $0xfc8] ss:$16 sps:$4 sm:$0xff]  }
 0x193   :  { %6869 = vmatpush1.bf16.msra.mxu0 %v10346_v5  ;;  %7717 = vmatpush1.bf16.msra.mxu1 %v10349_v6  ;;  %v10433_v5 = vld [vmem:[%s14739_s1 + $0xe48] ss:$16 sps:$4 sm:$0xff]   ;;  %v10438_v6 = vld [vmem:[%s14739_s1 + $0xe64] ss:$16 sps:$4 sm:$0xff]  }
 0x194   :  { %6870 = vmatprep.subr.bf16.mxu0 %v10354_v7  ;;  %7718 = vmatprep.subr.bf16.mxu1 %v10357_v8  ;;  %v10441_v7 = vld [vmem:[%s14739_s1 + $0xe6c] ss:$16 sps:$4 sm:$0xff]   ;;  %v8417_v8 = vcombine.high %v12816_v1, %v12821_v2 }
 0x197   :  { %6871 = vmatpush1.bf16.msra.mxu0 %v10352_v9  ;;  %7719 = vmatpush1.bf16.msra.mxu1 %v10355_v10  ;;  %v10436_v9 = vld [vmem:[%s14739_s1 + $0xe60] ss:$16 sps:$4 sm:$0xff]   ;;  %v10439_v10 = vld [vmem:[%s14739_s1 + $0xe68] ss:$16 sps:$4 sm:$0xff]  }
 0x198   :  { %6872 = vmatprep.subr.bf16.mxu0 %v10360_v11  ;;  %7720 = vmatprep.subr.bf16.mxu1 %v10363_v12  ;;  %v10444_v11 = vld [vmem:[%s14739_s1 + $0xe84] ss:$16 sps:$4 sm:$0xff]   ;;  %v10447_v12 = vld [vmem:[%s14739_s1 + $0xe8c] ss:$16 sps:$4 sm:$0xff]  }
 0x19b   :  { %6873 = vmatpush1.bf16.msra.mxu0 %v10358_v13  ;;  %7721 = vmatpush1.bf16.msra.mxu1 %v10361_v14  ;;  %v10442_v13 = vld [vmem:[%s14739_s1 + $0xe80] ss:$16 sps:$4 sm:$0xff]   ;;  %v10445_v14 = vld [vmem:[%s14739_s1 + $0xe88] ss:$16 sps:$4 sm:$0xff]  }
 0x19c   :  { %6874 = vmatprep.subr.bf16.mxu0 %v10366_v15  ;;  %7722 = vmatprep.subr.bf16.mxu1 %v10369_v16  ;;  %v10450_v15 = vld [vmem:[%s14739_s1 + $0xea4] ss:$16 sps:$4 sm:$0xff]   ;;  %v10453_v16 = vld [vmem:[%s14739_s1 + $0xeac] ss:$16 sps:$4 sm:$0xff]  }
 0x19f   :  { %6875 = vmatpush1.bf16.msra.mxu0 %v10364_v17  ;;  %7723 = vmatpush1.bf16.msra.mxu1 %v10367_v18  ;;  %v10448_v17 = vld [vmem:[%s14739_s1 + $0xea0] ss:$16 sps:$4 sm:$0xff]   ;;  %v10451_v18 = vld [vmem:[%s14739_s1 + $0xea8] ss:$16 sps:$4 sm:$0xff]  }
 0x1a0   :  { %6876 = vmatprep.subr.bf16.mxu0 %v10372_v19  ;;  %7724 = vmatprep.subr.bf16.mxu1 %v10375_v20  ;;  %v10456_v19 = vld [vmem:[%s14739_s1 + $0xec4] ss:$16 sps:$4 sm:$0xff]   ;;  %v10459_v20 = vld [vmem:[%s14739_s1 + $0xecc] ss:$16 sps:$4 sm:$0xff]  }
 0x1a3   :  { %6877 = vmatpush1.bf16.msra.mxu0 %v10370_v21  ;;  %7725 = vmatpush1.bf16.msra.mxu1 %v10373_v22  ;;  %v10454_v21 = vld [vmem:[%s14739_s1 + $0xec0] ss:$16 sps:$4 sm:$0xff]   ;;  %v10457_v22 = vld [vmem:[%s14739_s1 + $0xec8] ss:$16 sps:$4 sm:$0xff]  }
 0x1a4   :  { %6878 = vmatprep.subr.bf16.mxu0 %v10378_v23  ;;  %7726 = vmatprep.subr.bf16.mxu1 %v10381_v24  ;;  %v10462_v23 = vld [vmem:[%s14739_s1 + $0xee4] ss:$16 sps:$4 sm:$0xff]   ;;  %v10465_v24 = vld [vmem:[%s14739_s1 + $0xeec] ss:$16 sps:$4 sm:$0xff]  }
 0x1a7   :  { %6879 = vmatpush1.bf16.msra.mxu0 %v10376_v26  ;;  %7727 = vmatpush1.bf16.msra.mxu1 %v10379_v25  ;;  %v10460_v26 = vld [vmem:[%s14739_s1 + $0xee0] ss:$16 sps:$4 sm:$0xff]   ;;  %v10463_v25 = vld [vmem:[%s14739_s1 + $0xee8] ss:$16 sps:$4 sm:$0xff]  }
 0x1a8   :  { %6880 = vmatprep.subr.bf16.mxu0 %v10384_v27  ;;  %7728 = vmatprep.subr.bf16.mxu1 %v10387_v28  ;;  %v10468_v27 = vld [vmem:[%s14739_s1 + $0xf04] ss:$16 sps:$4 sm:$0xff]   ;;  %v10471_v28 = vld [vmem:[%s14739_s1 + $0xf0c] ss:$16 sps:$4 sm:$0xff]  }
 0x1ab   :  { %6881 = vmatpush1.bf16.msra.mxu0 %v10382_v29  ;;  %7729 = vmatpush1.bf16.msra.mxu1 %v10385_v30  ;;  %v10466_v29 = vld [vmem:[%s14739_s1 + $0xf00] ss:$16 sps:$4 sm:$0xff]   ;;  %v10469_v30 = vld [vmem:[%s14739_s1 + $0xf08] ss:$16 sps:$4 sm:$0xff]  }
 0x1ac   :  { %6882 = vmatprep.subr.bf16.mxu0 %v10390_v31  ;;  %7730 = vmatprep.subr.bf16.mxu1 %v10393_v32  ;;  %v10474_v31 = vld [vmem:[%s14739_s1 + $0xf24] ss:$16 sps:$4 sm:$0xff]   ;;  %v10477_v32 = vld [vmem:[%s14739_s1 + $0xf2c] ss:$16 sps:$4 sm:$0xff]  }
 0x1af   :  { %6883 = vmatpush1.bf16.msra.mxu0 %v10388_v34  ;;  %7731 = vmatpush1.bf16.msra.mxu1 %v10391_v36  ;;  %v10472_v34 = vld [vmem:[%s14739_s1 + $0xf20] ss:$16 sps:$4 sm:$0xff]   ;;  %v10475_v36 = vld [vmem:[%s14739_s1 + $0xf28] ss:$16 sps:$4 sm:$0xff]  }
 0x1b0   :  { %6884 = vmatprep.subr.bf16.mxu0 %v10396_v33  ;;  %7732 = vmatprep.subr.bf16.mxu1 %v10399_v35  ;;  %v10480_v33 = vld [vmem:[%s14739_s1 + $0xf44] ss:$16 sps:$4 sm:$0xff]   ;;  %v10483_v35 = vld [vmem:[%s14739_s1 + $0xf4c] ss:$16 sps:$4 sm:$0xff]  }
 0x1b3   :  { %6885 = vmatpush1.bf16.msra.mxu0 %v10394_v37  ;;  %7733 = vmatpush1.bf16.msra.mxu1 %v10397_v38  ;;  %v10478_v37 = vld [vmem:[%s14739_s1 + $0xf40] ss:$16 sps:$4 sm:$0xff]   ;;  %v10481_v38 = vld [vmem:[%s14739_s1 + $0xf48] ss:$16 sps:$4 sm:$0xff]  }
 0x1b4   :  { %6886 = vmatprep.subr.bf16.mxu0 %v10402_v39  ;;  %7734 = vmatprep.subr.bf16.mxu1 %v10405_v40  ;;  %v10486_v39 = vld [vmem:[%s14739_s1 + $0xf64] ss:$16 sps:$4 sm:$0xff]   ;;  %v10489_v40 = vld [vmem:[%s14739_s1 + $0xf6c] ss:$16 sps:$4 sm:$0xff]  }
 0x1b7   :  { %6887 = vmatpush1.bf16.msra.mxu0 %v10400_v42  ;;  %7735 = vmatpush1.bf16.msra.mxu1 %v10403_v44  ;;  %v10484_v42 = vld [vmem:[%s14739_s1 + $0xf60] ss:$16 sps:$4 sm:$0xff]   ;;  %v10487_v44 = vld [vmem:[%s14739_s1 + $0xf68] ss:$16 sps:$4 sm:$0xff]  }
 0x1b8   :  { %6888 = vmatprep.subr.bf16.mxu0 %v10408_v41  ;;  %7736 = vmatprep.subr.bf16.mxu1 %v10411_v43  ;;  %v10492_v41 = vld [vmem:[%s14739_s1 + $0xf84] ss:$16 sps:$4 sm:$0xff]   ;;  %v10495_v43 = vld [vmem:[%s14739_s1 + $0xf8c] ss:$16 sps:$4 sm:$0xff]  }
 0x1bb   :  { %6889 = vmatpush1.bf16.msra.mxu0 %v10406_v45  ;;  %7737 = vmatpush1.bf16.msra.mxu1 %v10409_v46  ;;  %v10490_v45 = vld [vmem:[%s14739_s1 + $0xf80] ss:$16 sps:$4 sm:$0xff]   ;;  %v10493_v46 = vld [vmem:[%s14739_s1 + $0xf88] ss:$16 sps:$4 sm:$0xff]  }
 0x1bc   :  { %6890 = vmatprep.subr.bf16.mxu0 %v10414_v47  ;;  %7738 = vmatprep.subr.bf16.mxu1 %v10417_v48  ;;  %v10498_v47 = vld [vmem:[%s14739_s1 + $0xfa4] ss:$16 sps:$4 sm:$0xff]   ;;  %v10501_v48 = vld [vmem:[%s14739_s1 + $0xfac] ss:$16 sps:$4 sm:$0xff]  }
 0x1bf   :  { %6891 = vmatpush1.bf16.msra.mxu0 %v10412_v51  ;;  %7739 = vmatpush1.bf16.msra.mxu1 %v10415_v52  ;;  %v10496_v51 = vld [vmem:[%s14739_s1 + $0xfa0] ss:$16 sps:$4 sm:$0xff]   ;;  %v10499_v52 = vld [vmem:[%s14739_s1 + $0xfa8] ss:$16 sps:$4 sm:$0xff]  }
 0x1c0   :  { %6913 = vmatprep.subr.bf16.mxu0 %v10420_v49  ;;  %7761 = vmatprep.subr.bf16.mxu1 %v10423_v50  ;;  %v10504_v49 = vld [vmem:[%s14739_s1 + $0xfc4] ss:$16 sps:$4 sm:$0xff]   ;;  %v10507_v50 = vld [vmem:[%s14739_s1 + $0xfcc] ss:$16 sps:$4 sm:$0xff]  }
 0x1c2   :  { %6893 = vmatmul.mubr.bf16.vlgmr.msra.gmra.mrb[0].mxu0 %v8414_v55  ;;  %7741 = vmatmul.mubr.bf16.vlgmr.msra.gmra.mrb[0].mxu1 %v8414_v55  ;;  %v10510_v55 = vld [vmem:[%s14739_s1 + $0xfe4] ss:$16 sps:$4 sm:$0xff]  }
 0x1c3   :  { %6914 = vmatpush1.bf16.msra.mxu0 %v10418_v56  ;;  %7762 = vmatpush1.bf16.msra.mxu1 %v10421_v59  ;;  %v10513_v56 = vld [vmem:[%s14739_s1 + $0xfec] ss:$16 sps:$4 sm:$0xff]   ;;  %v10508_v59 = vld [vmem:[%s14739_s1 + $0xfe0] ss:$16 sps:$4 sm:$0xff]  }
 0x1c4   :  { %6915 = vmatprep.subr.bf16.mxu0 %v10426_v60  ;;  %7763 = vmatprep.subr.bf16.mxu1 %v10429_v57  ;;  %v10511_v60 = vld [vmem:[%s14739_s1 + $0xfe8] ss:$16 sps:$4 sm:$0xff]   ;;  %v10516_v57 = vld [vmem:[%s14739_s1 + $0x1004] ss:$16 sps:$4 sm:$0xff]  }
 0x1c5   :  { %6902 = vmatprep.mubr.bf16.mxu0 %v8447_v62  ;;  %7750 = vmatprep.mubr.bf16.mxu1 %v8447_v62  ;;  %v69_v62 = vld [vmem:[%s14740_s0 + $0x1b8] sm:$0xff] }
 0x1c7   :  { %6916 = vmatpush1.bf16.msra.mxu0 %v10424_v58  ;;  %7764 = vmatpush1.bf16.msra.mxu1 %v10427_v61  ;;  %v10519_v58 = vld [vmem:[%s14739_s1 + $0x100c] ss:$16 sps:$4 sm:$0xff]  }
 0x1c8   :  { %6917 = vmatprep.subr.bf16.mxu0 %v10432_v63  ;;  %7765 = vmatprep.subr.bf16.mxu1 %v10435_v0  ;;  %v53_v61 = vld [vmem:[%s14740_s0 + $0x138] sm:$0xff]  ;;  %v8416_v63 = vcombine.low %v12816_v1, %v12821_v2  ;;  %v10514_v0 = vld [vmem:[%s14739_s1 + $0x1000] ss:$16 sps:$4 sm:$0xff]  }
 0x1c9   :  { %v10525_v1 = vld [vmem:[%s14739_s1 + $0x102c] ss:$16 sps:$4 sm:$0xff]   ;;  %v10520_v2 = vld [vmem:[%s14739_s1 + $0x1020] ss:$16 sps:$4 sm:$0xff]  }
 0x1ca   :  { %6903 = vmatmul.mubr.bf16.gmra.mrb[4].mxu0 %v8446_v3  ;;  %7751 = vmatmul.mubr.bf16.gmra.mrb[4].mxu1 %v8446_v3  ;;  %v10517_v3 = vld [vmem:[%s14739_s1 + $0x1008] ss:$16 sps:$4 sm:$0xff]  }
 0x1cb   :  { %6918 = vmatpush1.bf16.msra.mxu0 %v10430_v4  ;;  %7766 = vmatpush1.bf16.msra.mxu1 %v10433_v5  ;;  %v10522_v4 = vld [vmem:[%s14739_s1 + $0x1024] ss:$16 sps:$4 sm:$0xff]   ;;  %v10523_v5 = vld [vmem:[%s14739_s1 + $0x1028] ss:$16 sps:$4 sm:$0xff]  }
 0x1cc   :  { %6919 = vmatprep.subr.bf16.mxu0 %v10438_v6  ;;  %7767 = vmatprep.subr.bf16.mxu1 %v10441_v7  ;;  %v8449_v6 = vcombine.high %v53_v61, %v69_v62  ;;  %v10528_v7 = vld [vmem:[%s14739_s1 + $0x1044] ss:$16 sps:$4 sm:$0xff]  }
 0x1cd   :  { %6945 = vmatprep.mubr.bf16.mxu0 %v8417_v8  ;;  %7793 = vmatprep.mubr.bf16.mxu1 %v8417_v8  ;;  %v10531_v8 = vld [vmem:[%s14739_s1 + $0x104c] ss:$16 sps:$4 sm:$0xff]  }
 0x1cf   :  { %6920 = vmatpush1.bf16.msra.mxu0 %v10436_v9  ;;  %7768 = vmatpush1.bf16.msra.mxu1 %v10439_v10  ;;  %v13028_v9 = vld [vmem:[%s14740_s0 + $0x40] sm:$0xff] }
 0x1d0   :  { %6921 = vmatprep.subr.bf16.mxu0 %v10444_v11  ;;  %7769 = vmatprep.subr.bf16.mxu1 %v10447_v12  ;;  %v13033_v10 = vld [vmem:[%s14740_s0 + $0xc0] sm:$0xff]  ;;  %v8448_v11 = vcombine.low %v53_v61, %v69_v62  ;;  %v10601_v62 = vld [vmem:[%s14739_s1 + $0x11c8] ss:$16 sps:$4 sm:$0xff]  }
 0x1d1   :  { %v10526_v12 = vld [vmem:[%s14739_s1 + $0x1040] ss:$16 sps:$4 sm:$0xff]  }
 0x1d2   :  { %v10598_v61 = vld [vmem:[%s14739_s1 + $0x11c0] ss:$16 sps:$4 sm:$0xff]  }
 0x1d3   :  { %6922 = vmatpush1.bf16.msra.mxu0 %v10442_v13  ;;  %7770 = vmatpush1.bf16.msra.mxu1 %v10445_v14  ;;  %v10529_v13 = vld [vmem:[%s14739_s1 + $0x1048] ss:$16 sps:$4 sm:$0xff]   ;;  %v10534_v14 = vld [vmem:[%s14739_s1 + $0x1064] ss:$16 sps:$4 sm:$0xff]  }
 0x1d4   :  { %6923 = vmatprep.subr.bf16.mxu0 %v10450_v15  ;;  %7771 = vmatprep.subr.bf16.mxu1 %v10453_v16  ;;  %v10537_v15 = vld [vmem:[%s14739_s1 + $0x106c] ss:$16 sps:$4 sm:$0xff]   ;;  %v8419_v16 = vcombine.high %v13028_v9, %v13033_v10 }
 0x1d7   :  { %6924 = vmatpush1.bf16.msra.mxu0 %v10448_v17  ;;  %7772 = vmatpush1.bf16.msra.mxu1 %v10451_v18  ;;  %v10532_v17 = vld [vmem:[%s14739_s1 + $0x1060] ss:$16 sps:$4 sm:$0xff]   ;;  %v10535_v18 = vld [vmem:[%s14739_s1 + $0x1068] ss:$16 sps:$4 sm:$0xff]  }
 0x1d8   :  { %6925 = vmatprep.subr.bf16.mxu0 %v10456_v19  ;;  %7773 = vmatprep.subr.bf16.mxu1 %v10459_v20  ;;  %v10540_v19 = vld [vmem:[%s14739_s1 + $0x1084] ss:$16 sps:$4 sm:$0xff]   ;;  %v10543_v20 = vld [vmem:[%s14739_s1 + $0x108c] ss:$16 sps:$4 sm:$0xff]  }
 0x1db   :  { %6926 = vmatpush1.bf16.msra.mxu0 %v10454_v21  ;;  %7774 = vmatpush1.bf16.msra.mxu1 %v10457_v22  ;;  %v10538_v21 = vld [vmem:[%s14739_s1 + $0x1080] ss:$16 sps:$4 sm:$0xff]   ;;  %v10541_v22 = vld [vmem:[%s14739_s1 + $0x1088] ss:$16 sps:$4 sm:$0xff]  }
 0x1dc   :  { %6927 = vmatprep.subr.bf16.mxu0 %v10462_v23  ;;  %7775 = vmatprep.subr.bf16.mxu1 %v10465_v24  ;;  %v10546_v23 = vld [vmem:[%s14739_s1 + $0x10a4] ss:$16 sps:$4 sm:$0xff]   ;;  %v10549_v24 = vld [vmem:[%s14739_s1 + $0x10ac] ss:$16 sps:$4 sm:$0xff]  }
 0x1df   :  { %6928 = vmatpush1.bf16.msra.mxu0 %v10460_v26  ;;  %7776 = vmatpush1.bf16.msra.mxu1 %v10463_v25  ;;  %v10544_v26 = vld [vmem:[%s14739_s1 + $0x10a0] ss:$16 sps:$4 sm:$0xff]   ;;  %v10547_v25 = vld [vmem:[%s14739_s1 + $0x10a8] ss:$16 sps:$4 sm:$0xff]  }
 0x1e0   :  { %6929 = vmatprep.subr.bf16.mxu0 %v10468_v27  ;;  %7777 = vmatprep.subr.bf16.mxu1 %v10471_v28  ;;  %v10552_v27 = vld [vmem:[%s14739_s1 + $0x10c4] ss:$16 sps:$4 sm:$0xff]   ;;  %v10555_v28 = vld [vmem:[%s14739_s1 + $0x10cc] ss:$16 sps:$4 sm:$0xff]  }
 0x1e3   :  { %6930 = vmatpush1.bf16.msra.mxu0 %v10466_v29  ;;  %7778 = vmatpush1.bf16.msra.mxu1 %v10469_v30  ;;  %v10550_v29 = vld [vmem:[%s14739_s1 + $0x10c0] ss:$16 sps:$4 sm:$0xff]   ;;  %v10553_v30 = vld [vmem:[%s14739_s1 + $0x10c8] ss:$16 sps:$4 sm:$0xff]  }
 0x1e4   :  { %6931 = vmatprep.subr.bf16.mxu0 %v10474_v31  ;;  %7779 = vmatprep.subr.bf16.mxu1 %v10477_v32  ;;  %v10558_v31 = vld [vmem:[%s14739_s1 + $0x10e4] ss:$16 sps:$4 sm:$0xff]   ;;  %v10561_v32 = vld [vmem:[%s14739_s1 + $0x10ec] ss:$16 sps:$4 sm:$0xff]  }
 0x1e7   :  { %6932 = vmatpush1.bf16.msra.mxu0 %v10472_v34  ;;  %7780 = vmatpush1.bf16.msra.mxu1 %v10475_v36  ;;  %v10556_v34 = vld [vmem:[%s14739_s1 + $0x10e0] ss:$16 sps:$4 sm:$0xff]   ;;  %v10559_v36 = vld [vmem:[%s14739_s1 + $0x10e8] ss:$16 sps:$4 sm:$0xff]  }
 0x1e8   :  { %6933 = vmatprep.subr.bf16.mxu0 %v10480_v33  ;;  %7781 = vmatprep.subr.bf16.mxu1 %v10483_v35  ;;  %v10564_v33 = vld [vmem:[%s14739_s1 + $0x1104] ss:$16 sps:$4 sm:$0xff]   ;;  %v10567_v35 = vld [vmem:[%s14739_s1 + $0x110c] ss:$16 sps:$4 sm:$0xff]  }
 0x1eb   :  { %6934 = vmatpush1.bf16.msra.mxu0 %v10478_v37  ;;  %7782 = vmatpush1.bf16.msra.mxu1 %v10481_v38  ;;  %v10562_v37 = vld [vmem:[%s14739_s1 + $0x1100] ss:$16 sps:$4 sm:$0xff]   ;;  %v10565_v38 = vld [vmem:[%s14739_s1 + $0x1108] ss:$16 sps:$4 sm:$0xff]  }
 0x1ec   :  { %6935 = vmatprep.subr.bf16.mxu0 %v10486_v39  ;;  %7783 = vmatprep.subr.bf16.mxu1 %v10489_v40  ;;  %v10570_v39 = vld [vmem:[%s14739_s1 + $0x1124] ss:$16 sps:$4 sm:$0xff]   ;;  %v10573_v40 = vld [vmem:[%s14739_s1 + $0x112c] ss:$16 sps:$4 sm:$0xff]  }
 0x1ef   :  { %6936 = vmatpush1.bf16.msra.mxu0 %v10484_v42  ;;  %7784 = vmatpush1.bf16.msra.mxu1 %v10487_v44  ;;  %v10568_v42 = vld [vmem:[%s14739_s1 + $0x1120] ss:$16 sps:$4 sm:$0xff]   ;;  %v10571_v44 = vld [vmem:[%s14739_s1 + $0x1128] ss:$16 sps:$4 sm:$0xff]  }
 0x1f0   :  { %6937 = vmatprep.subr.bf16.mxu0 %v10492_v41  ;;  %7785 = vmatprep.subr.bf16.mxu1 %v10495_v43  ;;  %v10576_v41 = vld [vmem:[%s14739_s1 + $0x1144] ss:$16 sps:$4 sm:$0xff]   ;;  %v10579_v43 = vld [vmem:[%s14739_s1 + $0x114c] ss:$16 sps:$4 sm:$0xff]  }
 0x1f3   :  { %6938 = vmatpush1.bf16.msra.mxu0 %v10490_v45  ;;  %7786 = vmatpush1.bf16.msra.mxu1 %v10493_v46  ;;  %v10574_v45 = vld [vmem:[%s14739_s1 + $0x1140] ss:$16 sps:$4 sm:$0xff]   ;;  %v10577_v46 = vld [vmem:[%s14739_s1 + $0x1148] ss:$16 sps:$4 sm:$0xff]  }
 0x1f4   :  { %6939 = vmatprep.subr.bf16.mxu0 %v10498_v47  ;;  %7787 = vmatprep.subr.bf16.mxu1 %v10501_v48  ;;  %v10582_v47 = vld [vmem:[%s14739_s1 + $0x1164] ss:$16 sps:$4 sm:$0xff]   ;;  %v10585_v48 = vld [vmem:[%s14739_s1 + $0x116c] ss:$16 sps:$4 sm:$0xff]  }
 0x1f7   :  { %6940 = vmatpush1.bf16.msra.mxu0 %v10496_v51  ;;  %7788 = vmatpush1.bf16.msra.mxu1 %v10499_v52  ;;  %v10580_v51 = vld [vmem:[%s14739_s1 + $0x1160] ss:$16 sps:$4 sm:$0xff]   ;;  %v10583_v52 = vld [vmem:[%s14739_s1 + $0x1168] ss:$16 sps:$4 sm:$0xff]  }
 0x1f8   :  { %6941 = vmatprep.subr.bf16.mxu0 %v10504_v49  ;;  %7789 = vmatprep.subr.bf16.mxu1 %v10507_v50  ;;  %v10588_v49 = vld [vmem:[%s14739_s1 + $0x1184] ss:$16 sps:$4 sm:$0xff]   ;;  %v10591_v50 = vld [vmem:[%s14739_s1 + $0x118c] ss:$16 sps:$4 sm:$0xff]  }
 0x1fb   :  { %6942 = vmatpush1.bf16.msra.mxu0 %v10502_v53  ;;  %7790 = vmatpush1.bf16.msra.mxu1 %v10505_v54  ;;  %v10586_v53 = vld [vmem:[%s14739_s1 + $0x1180] ss:$16 sps:$4 sm:$0xff]   ;;  %v10589_v54 = vld [vmem:[%s14739_s1 + $0x1188] ss:$16 sps:$4 sm:$0xff]  }
 0x1fc   :  { %6943 = vmatprep.subr.bf16.mxu0 %v10510_v55  ;;  %7791 = vmatprep.subr.bf16.mxu1 %v10513_v56  ;;  %v10594_v55 = vld [vmem:[%s14739_s1 + $0x11a4] ss:$16 sps:$4 sm:$0xff]   ;;  %v10597_v56 = vld [vmem:[%s14739_s1 + $0x11ac] ss:$16 sps:$4 sm:$0xff]  }
 0x1ff   :  { %6944 = vmatpush1.bf16.msra.mxu0 %v10508_v59  ;;  %7792 = vmatpush1.bf16.msra.mxu1 %v10511_v60  ;;  %v10592_v59 = vld [vmem:[%s14739_s1 + $0x11a0] ss:$16 sps:$4 sm:$0xff]   ;;  %v10595_v60 = vld [vmem:[%s14739_s1 + $0x11a8] ss:$16 sps:$4 sm:$0xff]  }
 0x200   :  { %6966 = vmatprep.subr.bf16.mxu0 %v10516_v57  ;;  %7814 = vmatprep.subr.bf16.mxu1 %v10519_v58  ;;  %v10600_v57 = vld [vmem:[%s14739_s1 + $0x11c4] ss:$16 sps:$4 sm:$0xff]   ;;  %v10603_v58 = vld [vmem:[%s14739_s1 + $0x11cc] ss:$16 sps:$4 sm:$0xff]  }
 0x202   :  { %6946 = vmatmul.mubr.bf16.vlgmr.msra.gmra.mrb[0].mxu0 %v8416_v63  ;;  %7794 = vmatmul.mubr.bf16.vlgmr.msra.gmra.mrb[0].mxu1 %v8416_v63  ;;  %v10606_v63 = vld [vmem:[%s14739_s1 + $0x11e4] ss:$16 sps:$4 sm:$0xff]  }
 0x203   :  { %6967 = vmatpush1.bf16.msra.mxu0 %v10514_v0  ;;  %7815 = vmatpush1.bf16.msra.mxu1 %v10517_v3  ;;  %v10609_v0 = vld [vmem:[%s14739_s1 + $0x11ec] ss:$16 sps:$4 sm:$0xff]   ;;  %v10604_v3 = vld [vmem:[%s14739_s1 + $0x11e0] ss:$16 sps:$4 sm:$0xff]  }
 0x204   :  { %6968 = vmatprep.subr.bf16.mxu0 %v10522_v4  ;;  %7816 = vmatprep.subr.bf16.mxu1 %v10525_v1  ;;  %v10607_v4 = vld [vmem:[%s14739_s1 + $0x11e8] ss:$16 sps:$4 sm:$0xff]   ;;  %v10612_v1 = vld [vmem:[%s14739_s1 + $0x1204] ss:$16 sps:$4 sm:$0xff]  }
 0x205   :  { %6955 = vmatprep.mubr.bf16.mxu0 %v8449_v6  ;;  %7803 = vmatprep.mubr.bf16.mxu1 %v8449_v6  ;;  %v70_v6 = vld [vmem:[%s14740_s0 + $0x1c0] sm:$0xff] }
 0x207   :  { %6969 = vmatpush1.bf16.msra.mxu0 %v10520_v2  ;;  %7817 = vmatpush1.bf16.msra.mxu1 %v10523_v5  ;;  %v10615_v2 = vld [vmem:[%s14739_s1 + $0x120c] ss:$16 sps:$4 sm:$0xff]   ;;  %v54_v5 = vld [vmem:[%s14740_s0 + $0x140] sm:$0xff] }
 0x208   :  { %6970 = vmatprep.subr.bf16.mxu0 %v10528_v7  ;;  %7818 = vmatprep.subr.bf16.mxu1 %v10531_v8  ;;  %v8418_v7 = vcombine.low %v13028_v9, %v13033_v10  ;;  %v10610_v8 = vld [vmem:[%s14739_s1 + $0x1200] ss:$16 sps:$4 sm:$0xff]   ;;  %v10621_v9 = vld [vmem:[%s14739_s1 + $0x122c] ss:$16 sps:$4 sm:$0xff]  }
 0x209   :  { %v10616_v10 = vld [vmem:[%s14739_s1 + $0x1220] ss:$16 sps:$4 sm:$0xff]  }
 0x20a   :  { %6956 = vmatmul.mubr.bf16.gmra.mrb[4].mxu0 %v8448_v11  ;;  %7804 = vmatmul.mubr.bf16.gmra.mrb[4].mxu1 %v8448_v11  ;;  %v10613_v11 = vld [vmem:[%s14739_s1 + $0x1208] ss:$16 sps:$4 sm:$0xff]  }
 0x20b   :  { %6971 = vmatpush1.bf16.msra.mxu0 %v10526_v12  ;;  %7819 = vmatpush1.bf16.msra.mxu1 %v10529_v13  ;;  %v10618_v12 = vld [vmem:[%s14739_s1 + $0x1224] ss:$16 sps:$4 sm:$0xff]   ;;  %v10619_v13 = vld [vmem:[%s14739_s1 + $0x1228] ss:$16 sps:$4 sm:$0xff]  }
 0x20c   :  { %6972 = vmatprep.subr.bf16.mxu0 %v10534_v14  ;;  %7820 = vmatprep.subr.bf16.mxu1 %v10537_v15  ;;  %v8451_v14 = vcombine.high %v54_v5, %v70_v6  ;;  %v10624_v15 = vld [vmem:[%s14739_s1 + $0x1244] ss:$16 sps:$4 sm:$0xff]  }
 0x20d   :  { %6998 = vmatprep.mubr.bf16.mxu0 %v8419_v16  ;;  %7846 = vmatprep.mubr.bf16.mxu1 %v8419_v16  ;;  %v10627_v16 = vld [vmem:[%s14739_s1 + $0x124c] ss:$16 sps:$4 sm:$0xff]  }
 0x20f   :  { %6973 = vmatpush1.bf16.msra.mxu0 %v10532_v17  ;;  %7821 = vmatpush1.bf16.msra.mxu1 %v10535_v18  ;;  %v13240_v17 = vld [vmem:[%s14740_s0 + $0x48] sm:$0xff] }
 0x210   :  { %6974 = vmatprep.subr.bf16.mxu0 %v10540_v19  ;;  %7822 = vmatprep.subr.bf16.mxu1 %v10543_v20  ;;  %v13245_v18 = vld [vmem:[%s14740_s0 + $0xc8] sm:$0xff]  ;;  %v8450_v19 = vcombine.low %v54_v5, %v70_v6  ;;  %v10622_v20 = vld [vmem:[%s14739_s1 + $0x1240] ss:$16 sps:$4 sm:$0xff]  }
 0x211   :  { %v10694_v5 = vld [vmem:[%s14739_s1 + $0x13c0] ss:$16 sps:$4 sm:$0xff]   ;;  %v10697_v6 = vld [vmem:[%s14739_s1 + $0x13c8] ss:$16 sps:$4 sm:$0xff]  }
 0x213   :  { %6975 = vmatpush1.bf16.msra.mxu0 %v10538_v21  ;;  %7823 = vmatpush1.bf16.msra.mxu1 %v10541_v22  ;;  %v10625_v21 = vld [vmem:[%s14739_s1 + $0x1248] ss:$16 sps:$4 sm:$0xff]   ;;  %v10630_v22 = vld [vmem:[%s14739_s1 + $0x1264] ss:$16 sps:$4 sm:$0xff]  }
 0x214   :  { %6976 = vmatprep.subr.bf16.mxu0 %v10546_v23  ;;  %7824 = vmatprep.subr.bf16.mxu1 %v10549_v24  ;;  %v10633_v23 = vld [vmem:[%s14739_s1 + $0x126c] ss:$16 sps:$4 sm:$0xff]   ;;  %v8421_v24 = vcombine.high %v13240_v17, %v13245_v18 }
 0x217   :  { %6977 = vmatpush1.bf16.msra.mxu0 %v10544_v26  ;;  %7825 = vmatpush1.bf16.msra.mxu1 %v10547_v25  ;;  %v10628_v26 = vld [vmem:[%s14739_s1 + $0x1260] ss:$16 sps:$4 sm:$0xff]   ;;  %v10631_v25 = vld [vmem:[%s14739_s1 + $0x1268] ss:$16 sps:$4 sm:$0xff]  }
 0x218   :  { %6978 = vmatprep.subr.bf16.mxu0 %v10552_v27  ;;  %7826 = vmatprep.subr.bf16.mxu1 %v10555_v28  ;;  %v10636_v27 = vld [vmem:[%s14739_s1 + $0x1284] ss:$16 sps:$4 sm:$0xff]   ;;  %v10639_v28 = vld [vmem:[%s14739_s1 + $0x128c] ss:$16 sps:$4 sm:$0xff]  }
 0x21b   :  { %6979 = vmatpush1.bf16.msra.mxu0 %v10550_v29  ;;  %7827 = vmatpush1.bf16.msra.mxu1 %v10553_v30  ;;  %v10634_v29 = vld [vmem:[%s14739_s1 + $0x1280] ss:$16 sps:$4 sm:$0xff]   ;;  %v10637_v30 = vld [vmem:[%s14739_s1 + $0x1288] ss:$16 sps:$4 sm:$0xff]  }
 0x21c   :  { %6980 = vmatprep.subr.bf16.mxu0 %v10558_v31  ;;  %7828 = vmatprep.subr.bf16.mxu1 %v10561_v32  ;;  %v10642_v31 = vld [vmem:[%s14739_s1 + $0x12a4] ss:$16 sps:$4 sm:$0xff]   ;;  %v10645_v32 = vld [vmem:[%s14739_s1 + $0x12ac] ss:$16 sps:$4 sm:$0xff]  }
 0x21f   :  { %6981 = vmatpush1.bf16.msra.mxu0 %v10556_v34  ;;  %7829 = vmatpush1.bf16.msra.mxu1 %v10559_v36  ;;  %v10640_v34 = vld [vmem:[%s14739_s1 + $0x12a0] ss:$16 sps:$4 sm:$0xff]   ;;  %v10643_v36 = vld [vmem:[%s14739_s1 + $0x12a8] ss:$16 sps:$4 sm:$0xff]  }
 0x220   :  { %6982 = vmatprep.subr.bf16.mxu0 %v10564_v33  ;;  %7830 = vmatprep.subr.bf16.mxu1 %v10567_v35  ;;  %v10648_v33 = vld [vmem:[%s14739_s1 + $0x12c4] ss:$16 sps:$4 sm:$0xff]   ;;  %v10651_v35 = vld [vmem:[%s14739_s1 + $0x12cc] ss:$16 sps:$4 sm:$0xff]  }
 0x223   :  { %6983 = vmatpush1.bf16.msra.mxu0 %v10562_v37  ;;  %7831 = vmatpush1.bf16.msra.mxu1 %v10565_v38  ;;  %v10646_v37 = vld [vmem:[%s14739_s1 + $0x12c0] ss:$16 sps:$4 sm:$0xff]   ;;  %v10649_v38 = vld [vmem:[%s14739_s1 + $0x12c8] ss:$16 sps:$4 sm:$0xff]  }
 0x224   :  { %6984 = vmatprep.subr.bf16.mxu0 %v10570_v39  ;;  %7832 = vmatprep.subr.bf16.mxu1 %v10573_v40  ;;  %v10654_v39 = vld [vmem:[%s14739_s1 + $0x12e4] ss:$16 sps:$4 sm:$0xff]   ;;  %v10657_v40 = vld [vmem:[%s14739_s1 + $0x12ec] ss:$16 sps:$4 sm:$0xff]  }
 0x227   :  { %6985 = vmatpush1.bf16.msra.mxu0 %v10568_v42  ;;  %7833 = vmatpush1.bf16.msra.mxu1 %v10571_v44  ;;  %v10652_v42 = vld [vmem:[%s14739_s1 + $0x12e0] ss:$16 sps:$4 sm:$0xff]   ;;  %v10655_v44 = vld [vmem:[%s14739_s1 + $0x12e8] ss:$16 sps:$4 sm:$0xff]  }
 0x228   :  { %6986 = vmatprep.subr.bf16.mxu0 %v10576_v41  ;;  %7834 = vmatprep.subr.bf16.mxu1 %v10579_v43  ;;  %v10660_v41 = vld [vmem:[%s14739_s1 + $0x1304] ss:$16 sps:$4 sm:$0xff]   ;;  %v10663_v43 = vld [vmem:[%s14739_s1 + $0x130c] ss:$16 sps:$4 sm:$0xff]  }
 0x22b   :  { %6987 = vmatpush1.bf16.msra.mxu0 %v10574_v45  ;;  %7835 = vmatpush1.bf16.msra.mxu1 %v10577_v46  ;;  %v10658_v45 = vld [vmem:[%s14739_s1 + $0x1300] ss:$16 sps:$4 sm:$0xff]   ;;  %v10661_v46 = vld [vmem:[%s14739_s1 + $0x1308] ss:$16 sps:$4 sm:$0xff]  }
 0x22c   :  { %6988 = vmatprep.subr.bf16.mxu0 %v10582_v47  ;;  %7836 = vmatprep.subr.bf16.mxu1 %v10585_v48  ;;  %v10666_v47 = vld [vmem:[%s14739_s1 + $0x1324] ss:$16 sps:$4 sm:$0xff]   ;;  %v10669_v48 = vld [vmem:[%s14739_s1 + $0x132c] ss:$16 sps:$4 sm:$0xff]  }
 0x22f   :  { %6989 = vmatpush1.bf16.msra.mxu0 %v10580_v51  ;;  %7837 = vmatpush1.bf16.msra.mxu1 %v10583_v52  ;;  %v10664_v51 = vld [vmem:[%s14739_s1 + $0x1320] ss:$16 sps:$4 sm:$0xff]   ;;  %v10667_v52 = vld [vmem:[%s14739_s1 + $0x1328] ss:$16 sps:$4 sm:$0xff]  }
 0x230   :  { %6990 = vmatprep.subr.bf16.mxu0 %v10588_v49  ;;  %7838 = vmatprep.subr.bf16.mxu1 %v10591_v50  ;;  %v10672_v49 = vld [vmem:[%s14739_s1 + $0x1344] ss:$16 sps:$4 sm:$0xff]   ;;  %v10675_v50 = vld [vmem:[%s14739_s1 + $0x134c] ss:$16 sps:$4 sm:$0xff]  }
 0x233   :  { %6991 = vmatpush1.bf16.msra.mxu0 %v10586_v53  ;;  %7839 = vmatpush1.bf16.msra.mxu1 %v10589_v54  ;;  %v10670_v53 = vld [vmem:[%s14739_s1 + $0x1340] ss:$16 sps:$4 sm:$0xff]   ;;  %v10673_v54 = vld [vmem:[%s14739_s1 + $0x1348] ss:$16 sps:$4 sm:$0xff]  }
 0x234   :  { %6992 = vmatprep.subr.bf16.mxu0 %v10594_v55  ;;  %7840 = vmatprep.subr.bf16.mxu1 %v10597_v56  ;;  %v10678_v55 = vld [vmem:[%s14739_s1 + $0x1364] ss:$16 sps:$4 sm:$0xff]   ;;  %v10681_v56 = vld [vmem:[%s14739_s1 + $0x136c] ss:$16 sps:$4 sm:$0xff]  }
 0x237   :  { %6993 = vmatpush1.bf16.msra.mxu0 %v10592_v59  ;;  %7841 = vmatpush1.bf16.msra.mxu1 %v10595_v60  ;;  %v10676_v59 = vld [vmem:[%s14739_s1 + $0x1360] ss:$16 sps:$4 sm:$0xff]   ;;  %v10679_v60 = vld [vmem:[%s14739_s1 + $0x1368] ss:$16 sps:$4 sm:$0xff]  }
 0x238   :  { %6994 = vmatprep.subr.bf16.mxu0 %v10600_v57  ;;  %7842 = vmatprep.subr.bf16.mxu1 %v10603_v58  ;;  %v10684_v57 = vld [vmem:[%s14739_s1 + $0x1384] ss:$16 sps:$4 sm:$0xff]   ;;  %v10687_v58 = vld [vmem:[%s14739_s1 + $0x138c] ss:$16 sps:$4 sm:$0xff]  }
 0x23b   :  { %6995 = vmatpush1.bf16.msra.mxu0 %v10598_v61  ;;  %7843 = vmatpush1.bf16.msra.mxu1 %v10601_v62  ;;  %v10682_v61 = vld [vmem:[%s14739_s1 + $0x1380] ss:$16 sps:$4 sm:$0xff]   ;;  %v10685_v62 = vld [vmem:[%s14739_s1 + $0x1388] ss:$16 sps:$4 sm:$0xff]  }
 0x23c   :  { %6996 = vmatprep.subr.bf16.mxu0 %v10606_v63  ;;  %7844 = vmatprep.subr.bf16.mxu1 %v10609_v0  ;;  %v10690_v63 = vld [vmem:[%s14739_s1 + $0x13a4] ss:$16 sps:$4 sm:$0xff]   ;;  %v10693_v0 = vld [vmem:[%s14739_s1 + $0x13ac] ss:$16 sps:$4 sm:$0xff]  }
 0x23f   :  { %6997 = vmatpush1.bf16.msra.mxu0 %v10604_v3  ;;  %7845 = vmatpush1.bf16.msra.mxu1 %v10607_v4  ;;  %v10688_v3 = vld [vmem:[%s14739_s1 + $0x13a0] ss:$16 sps:$4 sm:$0xff]   ;;  %v10691_v4 = vld [vmem:[%s14739_s1 + $0x13a8] ss:$16 sps:$4 sm:$0xff]  }
 0x240   :  { %7019 = vmatprep.subr.bf16.mxu0 %v10612_v1  ;;  %7867 = vmatprep.subr.bf16.mxu1 %v10615_v2  ;;  %v10696_v1 = vld [vmem:[%s14739_s1 + $0x13c4] ss:$16 sps:$4 sm:$0xff]   ;;  %v10699_v2 = vld [vmem:[%s14739_s1 + $0x13cc] ss:$16 sps:$4 sm:$0xff]  }
 0x242   :  { %6999 = vmatmul.mubr.bf16.vlgmr.msra.gmra.mrb[0].mxu0 %v8418_v7  ;;  %7847 = vmatmul.mubr.bf16.vlgmr.msra.gmra.mrb[0].mxu1 %v8418_v7  ;;  %v10702_v7 = vld [vmem:[%s14739_s1 + $0x13e4] ss:$16 sps:$4 sm:$0xff]  }
 0x243   :  { %7020 = vmatpush1.bf16.msra.mxu0 %v10610_v8  ;;  %7868 = vmatpush1.bf16.msra.mxu1 %v10613_v11  ;;  %v10705_v8 = vld [vmem:[%s14739_s1 + $0x13ec] ss:$16 sps:$4 sm:$0xff]   ;;  %v10700_v11 = vld [vmem:[%s14739_s1 + $0x13e0] ss:$16 sps:$4 sm:$0xff]  }
 0x244   :  { %7021 = vmatprep.subr.bf16.mxu0 %v10618_v12  ;;  %7869 = vmatprep.subr.bf16.mxu1 %v10621_v9  ;;  %v10703_v12 = vld [vmem:[%s14739_s1 + $0x13e8] ss:$16 sps:$4 sm:$0xff]   ;;  %v10708_v9 = vld [vmem:[%s14739_s1 + $0x1404] ss:$16 sps:$4 sm:$0xff]  }
 0x245   :  { %7008 = vmatprep.mubr.bf16.mxu0 %v8451_v14  ;;  %7856 = vmatprep.mubr.bf16.mxu1 %v8451_v14  ;;  %v55_v14 = vld [vmem:[%s14740_s0 + $0x148] sm:$0xff] }
 0x247   :  { %7022 = vmatpush1.bf16.msra.mxu0 %v10616_v10  ;;  %7870 = vmatpush1.bf16.msra.mxu1 %v10619_v13  ;;  %v10711_v10 = vld [vmem:[%s14739_s1 + $0x140c] ss:$16 sps:$4 sm:$0xff]   ;;  %v8420_v13 = vcombine.low %v13240_v17, %v13245_v18  ;;  %v10714_v17 = vld [vmem:[%s14739_s1 + $0x1424] ss:$16 sps:$4 sm:$0xff]  }
 0x248   :  { %7023 = vmatprep.subr.bf16.mxu0 %v10624_v15  ;;  %7871 = vmatprep.subr.bf16.mxu1 %v10627_v16  ;;  %v71_v15 = vld [vmem:[%s14740_s0 + $0x1c8] sm:$0xff]  ;;  %v10706_v16 = vld [vmem:[%s14739_s1 + $0x1400] ss:$16 sps:$4 sm:$0xff]  }
 0x249   :  { %v10717_v18 = vld [vmem:[%s14739_s1 + $0x142c] ss:$16 sps:$4 sm:$0xff]  }
 0x24a   :  { %7009 = vmatmul.mubr.bf16.gmra.mrb[4].mxu0 %v8450_v19  ;;  %7857 = vmatmul.mubr.bf16.gmra.mrb[4].mxu1 %v8450_v19  ;;  %v10709_v19 = vld [vmem:[%s14739_s1 + $0x1408] ss:$16 sps:$4 sm:$0xff]  }
 0x24b   :  { %7024 = vmatpush1.bf16.msra.mxu0 %v10622_v20  ;;  %7872 = vmatpush1.bf16.msra.mxu1 %v10625_v21  ;;  %v8453_v20 = vcombine.high %v55_v14, %v71_v15  ;;  %v10712_v21 = vld [vmem:[%s14739_s1 + $0x1420] ss:$16 sps:$4 sm:$0xff]  }
 0x24c   :  { %7025 = vmatprep.subr.bf16.mxu0 %v10630_v22  ;;  %7873 = vmatprep.subr.bf16.mxu1 %v10633_v23  ;;  %v10715_v22 = vld [vmem:[%s14739_s1 + $0x1428] ss:$16 sps:$4 sm:$0xff]   ;;  %v10720_v23 = vld [vmem:[%s14739_s1 + $0x1444] ss:$16 sps:$4 sm:$0xff]  }
 0x24d   :  { %7051 = vmatprep.mubr.bf16.mxu0 %v8421_v24  ;;  %7899 = vmatprep.mubr.bf16.mxu1 %v8421_v24  ;;  %v10723_v24 = vld [vmem:[%s14739_s1 + $0x144c] ss:$16 sps:$4 sm:$0xff]  }
 0x24f   :  { %7026 = vmatpush1.bf16.msra.mxu0 %v10628_v26  ;;  %7874 = vmatpush1.bf16.msra.mxu1 %v10631_v25  ;;  %v8452_v26 = vcombine.low %v55_v14, %v71_v15  ;;  %v13452_v25 = vld [vmem:[%s14740_s0 + $0x50] sm:$0xff]  ;;  %v10793_v14 = vld [vmem:[%s14739_s1 + $0x15c8] ss:$16 sps:$4 sm:$0xff]  }
 0x250   :  { %7027 = vmatprep.subr.bf16.mxu0 %v10636_v27  ;;  %7875 = vmatprep.subr.bf16.mxu1 %v10639_v28  ;;  %v13457_v27 = vld [vmem:[%s14740_s0 + $0xd0] sm:$0xff] }
 0x251   :  { %v10718_v28 = vld [vmem:[%s14739_s1 + $0x1440] ss:$16 sps:$4 sm:$0xff]   ;;  %v10798_v15 = vld [vmem:[%s14739_s1 + $0x15e4] ss:$16 sps:$4 sm:$0xff]  }
 0x253   :  { %7028 = vmatpush1.bf16.msra.mxu0 %v10634_v29  ;;  %7876 = vmatpush1.bf16.msra.mxu1 %v10637_v30  ;;  %v10721_v29 = vld [vmem:[%s14739_s1 + $0x1448] ss:$16 sps:$4 sm:$0xff]   ;;  %v10726_v30 = vld [vmem:[%s14739_s1 + $0x1464] ss:$16 sps:$4 sm:$0xff]  }
 0x254   :  { %7029 = vmatprep.subr.bf16.mxu0 %v10642_v31  ;;  %7877 = vmatprep.subr.bf16.mxu1 %v10645_v32  ;;  %v10729_v31 = vld [vmem:[%s14739_s1 + $0x146c] ss:$16 sps:$4 sm:$0xff]   ;;  %v8423_v32 = vcombine.high %v13452_v25, %v13457_v27 }
 0x257   :  { %7030 = vmatpush1.bf16.msra.mxu0 %v10640_v34  ;;  %7878 = vmatpush1.bf16.msra.mxu1 %v10643_v36  ;;  %v10724_v34 = vld [vmem:[%s14739_s1 + $0x1460] ss:$16 sps:$4 sm:$0xff]   ;;  %v10727_v36 = vld [vmem:[%s14739_s1 + $0x1468] ss:$16 sps:$4 sm:$0xff]  }
 0x258   :  { %7031 = vmatprep.subr.bf16.mxu0 %v10648_v33  ;;  %7879 = vmatprep.subr.bf16.mxu1 %v10651_v35  ;;  %v10732_v33 = vld [vmem:[%s14739_s1 + $0x1484] ss:$16 sps:$4 sm:$0xff]   ;;  %v10735_v35 = vld [vmem:[%s14739_s1 + $0x148c] ss:$16 sps:$4 sm:$0xff]  }
 0x25b   :  { %7032 = vmatpush1.bf16.msra.mxu0 %v10646_v37  ;;  %7880 = vmatpush1.bf16.msra.mxu1 %v10649_v38  ;;  %v10730_v37 = vld [vmem:[%s14739_s1 + $0x1480] ss:$16 sps:$4 sm:$0xff]   ;;  %v10733_v38 = vld [vmem:[%s14739_s1 + $0x1488] ss:$16 sps:$4 sm:$0xff]  }
 0x25c   :  { %7033 = vmatprep.subr.bf16.mxu0 %v10654_v39  ;;  %7881 = vmatprep.subr.bf16.mxu1 %v10657_v40  ;;  %v10738_v39 = vld [vmem:[%s14739_s1 + $0x14a4] ss:$16 sps:$4 sm:$0xff]   ;;  %v10741_v40 = vld [vmem:[%s14739_s1 + $0x14ac] ss:$16 sps:$4 sm:$0xff]  }
 0x25f   :  { %7034 = vmatpush1.bf16.msra.mxu0 %v10652_v42  ;;  %7882 = vmatpush1.bf16.msra.mxu1 %v10655_v44  ;;  %v10736_v42 = vld [vmem:[%s14739_s1 + $0x14a0] ss:$16 sps:$4 sm:$0xff]   ;;  %v10739_v44 = vld [vmem:[%s14739_s1 + $0x14a8] ss:$16 sps:$4 sm:$0xff]  }
 0x260   :  { %7035 = vmatprep.subr.bf16.mxu0 %v10660_v41  ;;  %7883 = vmatprep.subr.bf16.mxu1 %v10663_v43  ;;  %v10744_v41 = vld [vmem:[%s14739_s1 + $0x14c4] ss:$16 sps:$4 sm:$0xff]   ;;  %v10747_v43 = vld [vmem:[%s14739_s1 + $0x14cc] ss:$16 sps:$4 sm:$0xff]  }
 0x263   :  { %7036 = vmatpush1.bf16.msra.mxu0 %v10658_v45  ;;  %7884 = vmatpush1.bf16.msra.mxu1 %v10661_v46  ;;  %v10742_v45 = vld [vmem:[%s14739_s1 + $0x14c0] ss:$16 sps:$4 sm:$0xff]   ;;  %v10745_v46 = vld [vmem:[%s14739_s1 + $0x14c8] ss:$16 sps:$4 sm:$0xff]  }
 0x264   :  { %7037 = vmatprep.subr.bf16.mxu0 %v10666_v47  ;;  %7885 = vmatprep.subr.bf16.mxu1 %v10669_v48  ;;  %v10750_v47 = vld [vmem:[%s14739_s1 + $0x14e4] ss:$16 sps:$4 sm:$0xff]   ;;  %v10753_v48 = vld [vmem:[%s14739_s1 + $0x14ec] ss:$16 sps:$4 sm:$0xff]  }
 0x267   :  { %7038 = vmatpush1.bf16.msra.mxu0 %v10664_v51  ;;  %7886 = vmatpush1.bf16.msra.mxu1 %v10667_v52  ;;  %v10748_v51 = vld [vmem:[%s14739_s1 + $0x14e0] ss:$16 sps:$4 sm:$0xff]   ;;  %v10751_v52 = vld [vmem:[%s14739_s1 + $0x14e8] ss:$16 sps:$4 sm:$0xff]  }
 0x268   :  { %7039 = vmatprep.subr.bf16.mxu0 %v10672_v49  ;;  %7887 = vmatprep.subr.bf16.mxu1 %v10675_v50  ;;  %v10756_v49 = vld [vmem:[%s14739_s1 + $0x1504] ss:$16 sps:$4 sm:$0xff]   ;;  %v10759_v50 = vld [vmem:[%s14739_s1 + $0x150c] ss:$16 sps:$4 sm:$0xff]  }
 0x26b   :  { %7040 = vmatpush1.bf16.msra.mxu0 %v10670_v53  ;;  %7888 = vmatpush1.bf16.msra.mxu1 %v10673_v54  ;;  %v10754_v53 = vld [vmem:[%s14739_s1 + $0x1500] ss:$16 sps:$4 sm:$0xff]   ;;  %v10757_v54 = vld [vmem:[%s14739_s1 + $0x1508] ss:$16 sps:$4 sm:$0xff]  }
 0x26c   :  { %7041 = vmatprep.subr.bf16.mxu0 %v10678_v55  ;;  %7889 = vmatprep.subr.bf16.mxu1 %v10681_v56  ;;  %v10762_v55 = vld [vmem:[%s14739_s1 + $0x1524] ss:$16 sps:$4 sm:$0xff]   ;;  %v10765_v56 = vld [vmem:[%s14739_s1 + $0x152c] ss:$16 sps:$4 sm:$0xff]  }
 0x26f   :  { %7042 = vmatpush1.bf16.msra.mxu0 %v10676_v59  ;;  %7890 = vmatpush1.bf16.msra.mxu1 %v10679_v60  ;;  %v10760_v59 = vld [vmem:[%s14739_s1 + $0x1520] ss:$16 sps:$4 sm:$0xff]   ;;  %v10763_v60 = vld [vmem:[%s14739_s1 + $0x1528] ss:$16 sps:$4 sm:$0xff]  }
 0x270   :  { %7043 = vmatprep.subr.bf16.mxu0 %v10684_v57  ;;  %7891 = vmatprep.subr.bf16.mxu1 %v10687_v58  ;;  %v10768_v57 = vld [vmem:[%s14739_s1 + $0x1544] ss:$16 sps:$4 sm:$0xff]   ;;  %v10771_v58 = vld [vmem:[%s14739_s1 + $0x154c] ss:$16 sps:$4 sm:$0xff]  }
 0x273   :  { %7044 = vmatpush1.bf16.msra.mxu0 %v10682_v61  ;;  %7892 = vmatpush1.bf16.msra.mxu1 %v10685_v62  ;;  %v10766_v61 = vld [vmem:[%s14739_s1 + $0x1540] ss:$16 sps:$4 sm:$0xff]   ;;  %v10769_v62 = vld [vmem:[%s14739_s1 + $0x1548] ss:$16 sps:$4 sm:$0xff]  }
 0x274   :  { %7045 = vmatprep.subr.bf16.mxu0 %v10690_v63  ;;  %7893 = vmatprep.subr.bf16.mxu1 %v10693_v0  ;;  %v10774_v63 = vld [vmem:[%s14739_s1 + $0x1564] ss:$16 sps:$4 sm:$0xff]   ;;  %v10777_v0 = vld [vmem:[%s14739_s1 + $0x156c] ss:$16 sps:$4 sm:$0xff]  }
 0x277   :  { %7046 = vmatpush1.bf16.msra.mxu0 %v10688_v3  ;;  %7894 = vmatpush1.bf16.msra.mxu1 %v10691_v4  ;;  %v10772_v3 = vld [vmem:[%s14739_s1 + $0x1560] ss:$16 sps:$4 sm:$0xff]   ;;  %v10775_v4 = vld [vmem:[%s14739_s1 + $0x1568] ss:$16 sps:$4 sm:$0xff]  }
 0x278   :  { %7047 = vmatprep.subr.bf16.mxu0 %v10696_v1  ;;  %7895 = vmatprep.subr.bf16.mxu1 %v10699_v2  ;;  %v10780_v1 = vld [vmem:[%s14739_s1 + $0x1584] ss:$16 sps:$4 sm:$0xff]   ;;  %v10783_v2 = vld [vmem:[%s14739_s1 + $0x158c] ss:$16 sps:$4 sm:$0xff]  }
 0x27b   :  { %7048 = vmatpush1.bf16.msra.mxu0 %v10694_v5  ;;  %7896 = vmatpush1.bf16.msra.mxu1 %v10697_v6  ;;  %v10778_v5 = vld [vmem:[%s14739_s1 + $0x1580] ss:$16 sps:$4 sm:$0xff]   ;;  %v10781_v6 = vld [vmem:[%s14739_s1 + $0x1588] ss:$16 sps:$4 sm:$0xff]  }
 0x27c   :  { %7049 = vmatprep.subr.bf16.mxu0 %v10702_v7  ;;  %7897 = vmatprep.subr.bf16.mxu1 %v10705_v8  ;;  %v10786_v7 = vld [vmem:[%s14739_s1 + $0x15a4] ss:$16 sps:$4 sm:$0xff]   ;;  %v10789_v8 = vld [vmem:[%s14739_s1 + $0x15ac] ss:$16 sps:$4 sm:$0xff]  }
 0x27f   :  { %7050 = vmatpush1.bf16.msra.mxu0 %v10700_v11  ;;  %7898 = vmatpush1.bf16.msra.mxu1 %v10703_v12  ;;  %v10784_v11 = vld [vmem:[%s14739_s1 + $0x15a0] ss:$16 sps:$4 sm:$0xff]   ;;  %v10787_v12 = vld [vmem:[%s14739_s1 + $0x15a8] ss:$16 sps:$4 sm:$0xff]  }
 0x280   :  { %7072 = vmatprep.subr.bf16.mxu0 %v10708_v9  ;;  %7920 = vmatprep.subr.bf16.mxu1 %v10711_v10  ;;  %v10792_v9 = vld [vmem:[%s14739_s1 + $0x15c4] ss:$16 sps:$4 sm:$0xff]   ;;  %v10795_v10 = vld [vmem:[%s14739_s1 + $0x15cc] ss:$16 sps:$4 sm:$0xff]  }
 0x282   :  { %7052 = vmatmul.mubr.bf16.vlgmr.msra.gmra.mrb[0].mxu0 %v8420_v13  ;;  %7900 = vmatmul.mubr.bf16.vlgmr.msra.gmra.mrb[0].mxu1 %v8420_v13  ;;  %v10790_v13 = vld [vmem:[%s14739_s1 + $0x15c0] ss:$16 sps:$4 sm:$0xff]  }
 0x283   :  { %7073 = vmatpush1.bf16.msra.mxu0 %v10706_v16  ;;  %7921 = vmatpush1.bf16.msra.mxu1 %v10709_v19  ;;  %v10801_v16 = vld [vmem:[%s14739_s1 + $0x15ec] ss:$16 sps:$4 sm:$0xff]   ;;  %v10796_v19 = vld [vmem:[%s14739_s1 + $0x15e0] ss:$16 sps:$4 sm:$0xff]  }
 0x284   :  { %7074 = vmatprep.subr.bf16.mxu0 %v10714_v17  ;;  %7922 = vmatprep.subr.bf16.mxu1 %v10717_v18  ;;  %v10799_v17 = vld [vmem:[%s14739_s1 + $0x15e8] ss:$16 sps:$4 sm:$0xff]   ;;  %v10804_v18 = vld [vmem:[%s14739_s1 + $0x1604] ss:$16 sps:$4 sm:$0xff]  }
 0x285   :  { %7061 = vmatprep.mubr.bf16.mxu0 %v8453_v20  ;;  %7909 = vmatprep.mubr.bf16.mxu1 %v8453_v20  ;;  %v10807_v20 = vld [vmem:[%s14739_s1 + $0x160c] ss:$16 sps:$4 sm:$0xff]  }
 0x287   :  { %7075 = vmatpush1.bf16.msra.mxu0 %v10712_v21  ;;  %7923 = vmatpush1.bf16.msra.mxu1 %v10715_v22  ;;  %v8422_v21 = vcombine.low %v13452_v25, %v13457_v27  ;;  %v56_v22 = vld [vmem:[%s14740_s0 + $0x150] sm:$0xff]  ;;  %v10813_v27 = vld [vmem:[%s14739_s1 + $0x162c] ss:$16 sps:$4 sm:$0xff]  }
 0x288   :  { %7076 = vmatprep.subr.bf16.mxu0 %v10720_v23  ;;  %7924 = vmatprep.subr.bf16.mxu1 %v10723_v24  ;;  %v72_v23 = vld [vmem:[%s14740_s0 + $0x1d0] sm:$0xff] }
 0x289   :  { %v10802_v24 = vld [vmem:[%s14739_s1 + $0x1600] ss:$16 sps:$4 sm:$0xff]   ;;  %v10810_v25 = vld [vmem:[%s14739_s1 + $0x1624] ss:$16 sps:$4 sm:$0xff]  }
 0x28a   :  { %7062 = vmatmul.mubr.bf16.gmra.mrb[4].mxu0 %v8452_v26  ;;  %7910 = vmatmul.mubr.bf16.gmra.mrb[4].mxu1 %v8452_v26  ;;  %v10805_v26 = vld [vmem:[%s14739_s1 + $0x1608] ss:$16 sps:$4 sm:$0xff]  }
 0x28b   :  { %7077 = vmatpush1.bf16.msra.mxu0 %v10718_v28  ;;  %7925 = vmatpush1.bf16.msra.mxu1 %v10721_v29  ;;  %v8455_v28 = vcombine.high %v56_v22, %v72_v23  ;;  %v10808_v29 = vld [vmem:[%s14739_s1 + $0x1620] ss:$16 sps:$4 sm:$0xff]  }
 0x28c   :  { %7078 = vmatprep.subr.bf16.mxu0 %v10726_v30  ;;  %7926 = vmatprep.subr.bf16.mxu1 %v10729_v31  ;;  %v10811_v30 = vld [vmem:[%s14739_s1 + $0x1628] ss:$16 sps:$4 sm:$0xff]   ;;  %v10816_v31 = vld [vmem:[%s14739_s1 + $0x1644] ss:$16 sps:$4 sm:$0xff]  }
 0x28d   :  { %7104 = vmatprep.mubr.bf16.mxu0 %v8423_v32  ;;  %7952 = vmatprep.mubr.bf16.mxu1 %v8423_v32  ;;  %v10819_v32 = vld [vmem:[%s14739_s1 + $0x164c] ss:$16 sps:$4 sm:$0xff]  }
 0x28f   :  { %7079 = vmatpush1.bf16.msra.mxu0 %v10724_v34  ;;  %7927 = vmatpush1.bf16.msra.mxu1 %v10727_v36  ;;  %v8454_v34 = vcombine.low %v56_v22, %v72_v23  ;;  %v13664_v36 = vld [vmem:[%s14740_s0 + $0x58] sm:$0xff]  ;;  %v10894_v23 = vld [vmem:[%s14739_s1 + $0x17e4] ss:$16 sps:$4 sm:$0xff]  }
 0x290   :  { %7080 = vmatprep.subr.bf16.mxu0 %v10732_v33  ;;  %7928 = vmatprep.subr.bf16.mxu1 %v10735_v35  ;;  %v13669_v33 = vld [vmem:[%s14740_s0 + $0xd8] sm:$0xff]  ;;  %v10814_v35 = vld [vmem:[%s14739_s1 + $0x1640] ss:$16 sps:$4 sm:$0xff]  }
 0x291   :  { %v10889_v22 = vld [vmem:[%s14739_s1 + $0x17c8] ss:$16 sps:$4 sm:$0xff]  }
 0x293   :  { %7081 = vmatpush1.bf16.msra.mxu0 %v10730_v37  ;;  %7929 = vmatpush1.bf16.msra.mxu1 %v10733_v38  ;;  %v10817_v37 = vld [vmem:[%s14739_s1 + $0x1648] ss:$16 sps:$4 sm:$0xff]   ;;  %v10822_v38 = vld [vmem:[%s14739_s1 + $0x1664] ss:$16 sps:$4 sm:$0xff]  }
 0x294   :  { %7082 = vmatprep.subr.bf16.mxu0 %v10738_v39  ;;  %7930 = vmatprep.subr.bf16.mxu1 %v10741_v40  ;;  %v10825_v39 = vld [vmem:[%s14739_s1 + $0x166c] ss:$16 sps:$4 sm:$0xff]   ;;  %v8425_v40 = vcombine.high %v13664_v36, %v13669_v33 }
 0x297   :  { %7083 = vmatpush1.bf16.msra.mxu0 %v10736_v42  ;;  %7931 = vmatpush1.bf16.msra.mxu1 %v10739_v44  ;;  %v10820_v42 = vld [vmem:[%s14739_s1 + $0x1660] ss:$16 sps:$4 sm:$0xff]   ;;  %v10823_v44 = vld [vmem:[%s14739_s1 + $0x1668] ss:$16 sps:$4 sm:$0xff]  }
 0x298   :  { %7084 = vmatprep.subr.bf16.mxu0 %v10744_v41  ;;  %7932 = vmatprep.subr.bf16.mxu1 %v10747_v43  ;;  %v10828_v41 = vld [vmem:[%s14739_s1 + $0x1684] ss:$16 sps:$4 sm:$0xff]   ;;  %v10831_v43 = vld [vmem:[%s14739_s1 + $0x168c] ss:$16 sps:$4 sm:$0xff]  }
 0x29b   :  { %7085 = vmatpush1.bf16.msra.mxu0 %v10742_v45  ;;  %7933 = vmatpush1.bf16.msra.mxu1 %v10745_v46  ;;  %v10826_v45 = vld [vmem:[%s14739_s1 + $0x1680] ss:$16 sps:$4 sm:$0xff]   ;;  %v10829_v46 = vld [vmem:[%s14739_s1 + $0x1688] ss:$16 sps:$4 sm:$0xff]  }
 0x29c   :  { %7086 = vmatprep.subr.bf16.mxu0 %v10750_v47  ;;  %7934 = vmatprep.subr.bf16.mxu1 %v10753_v48  ;;  %v10834_v47 = vld [vmem:[%s14739_s1 + $0x16a4] ss:$16 sps:$4 sm:$0xff]   ;;  %v10837_v48 = vld [vmem:[%s14739_s1 + $0x16ac] ss:$16 sps:$4 sm:$0xff]  }
 0x29f   :  { %7087 = vmatpush1.bf16.msra.mxu0 %v10748_v51  ;;  %7935 = vmatpush1.bf16.msra.mxu1 %v10751_v52  ;;  %v10832_v51 = vld [vmem:[%s14739_s1 + $0x16a0] ss:$16 sps:$4 sm:$0xff]   ;;  %v10835_v52 = vld [vmem:[%s14739_s1 + $0x16a8] ss:$16 sps:$4 sm:$0xff]  }
 0x2a0   :  { %7088 = vmatprep.subr.bf16.mxu0 %v10756_v49  ;;  %7936 = vmatprep.subr.bf16.mxu1 %v10759_v50  ;;  %v10840_v49 = vld [vmem:[%s14739_s1 + $0x16c4] ss:$16 sps:$4 sm:$0xff]   ;;  %v10843_v50 = vld [vmem:[%s14739_s1 + $0x16cc] ss:$16 sps:$4 sm:$0xff]  }
 0x2a3   :  { %7089 = vmatpush1.bf16.msra.mxu0 %v10754_v53  ;;  %7937 = vmatpush1.bf16.msra.mxu1 %v10757_v54  ;;  %v10838_v53 = vld [vmem:[%s14739_s1 + $0x16c0] ss:$16 sps:$4 sm:$0xff]   ;;  %v10841_v54 = vld [vmem:[%s14739_s1 + $0x16c8] ss:$16 sps:$4 sm:$0xff]  }
 0x2a4   :  { %7090 = vmatprep.subr.bf16.mxu0 %v10762_v55  ;;  %7938 = vmatprep.subr.bf16.mxu1 %v10765_v56  ;;  %v10846_v55 = vld [vmem:[%s14739_s1 + $0x16e4] ss:$16 sps:$4 sm:$0xff]   ;;  %v10849_v56 = vld [vmem:[%s14739_s1 + $0x16ec] ss:$16 sps:$4 sm:$0xff]  }
 0x2a7   :  { %7091 = vmatpush1.bf16.msra.mxu0 %v10760_v59  ;;  %7939 = vmatpush1.bf16.msra.mxu1 %v10763_v60  ;;  %v10844_v59 = vld [vmem:[%s14739_s1 + $0x16e0] ss:$16 sps:$4 sm:$0xff]   ;;  %v10847_v60 = vld [vmem:[%s14739_s1 + $0x16e8] ss:$16 sps:$4 sm:$0xff]  }
 0x2a8   :  { %7092 = vmatprep.subr.bf16.mxu0 %v10768_v57  ;;  %7940 = vmatprep.subr.bf16.mxu1 %v10771_v58  ;;  %v10852_v57 = vld [vmem:[%s14739_s1 + $0x1704] ss:$16 sps:$4 sm:$0xff]   ;;  %v10855_v58 = vld [vmem:[%s14739_s1 + $0x170c] ss:$16 sps:$4 sm:$0xff]  }
 0x2ab   :  { %7093 = vmatpush1.bf16.msra.mxu0 %v10766_v61  ;;  %7941 = vmatpush1.bf16.msra.mxu1 %v10769_v62  ;;  %v10850_v61 = vld [vmem:[%s14739_s1 + $0x1700] ss:$16 sps:$4 sm:$0xff]   ;;  %v10853_v62 = vld [vmem:[%s14739_s1 + $0x1708] ss:$16 sps:$4 sm:$0xff]  }
 0x2ac   :  { %7094 = vmatprep.subr.bf16.mxu0 %v10774_v63  ;;  %7942 = vmatprep.subr.bf16.mxu1 %v10777_v0  ;;  %v10858_v63 = vld [vmem:[%s14739_s1 + $0x1724] ss:$16 sps:$4 sm:$0xff]   ;;  %v10861_v0 = vld [vmem:[%s14739_s1 + $0x172c] ss:$16 sps:$4 sm:$0xff]  }
 0x2af   :  { %7095 = vmatpush1.bf16.msra.mxu0 %v10772_v3  ;;  %7943 = vmatpush1.bf16.msra.mxu1 %v10775_v4  ;;  %v10856_v3 = vld [vmem:[%s14739_s1 + $0x1720] ss:$16 sps:$4 sm:$0xff]   ;;  %v10859_v4 = vld [vmem:[%s14739_s1 + $0x1728] ss:$16 sps:$4 sm:$0xff]  }
 0x2b0   :  { %7096 = vmatprep.subr.bf16.mxu0 %v10780_v1  ;;  %7944 = vmatprep.subr.bf16.mxu1 %v10783_v2  ;;  %v10864_v1 = vld [vmem:[%s14739_s1 + $0x1744] ss:$16 sps:$4 sm:$0xff]   ;;  %v10867_v2 = vld [vmem:[%s14739_s1 + $0x174c] ss:$16 sps:$4 sm:$0xff]  }
 0x2b3   :  { %7097 = vmatpush1.bf16.msra.mxu0 %v10778_v5  ;;  %7945 = vmatpush1.bf16.msra.mxu1 %v10781_v6  ;;  %v10862_v5 = vld [vmem:[%s14739_s1 + $0x1740] ss:$16 sps:$4 sm:$0xff]   ;;  %v10865_v6 = vld [vmem:[%s14739_s1 + $0x1748] ss:$16 sps:$4 sm:$0xff]  }
 0x2b4   :  { %7098 = vmatprep.subr.bf16.mxu0 %v10786_v7  ;;  %7946 = vmatprep.subr.bf16.mxu1 %v10789_v8  ;;  %v10870_v7 = vld [vmem:[%s14739_s1 + $0x1764] ss:$16 sps:$4 sm:$0xff]   ;;  %v10873_v8 = vld [vmem:[%s14739_s1 + $0x176c] ss:$16 sps:$4 sm:$0xff]  }
 0x2b7   :  { %7099 = vmatpush1.bf16.msra.mxu0 %v10784_v11  ;;  %7947 = vmatpush1.bf16.msra.mxu1 %v10787_v12  ;;  %v10868_v11 = vld [vmem:[%s14739_s1 + $0x1760] ss:$16 sps:$4 sm:$0xff]   ;;  %v10871_v12 = vld [vmem:[%s14739_s1 + $0x1768] ss:$16 sps:$4 sm:$0xff]  }
 0x2b8   :  { %7100 = vmatprep.subr.bf16.mxu0 %v10792_v9  ;;  %7948 = vmatprep.subr.bf16.mxu1 %v10795_v10  ;;  %v10876_v9 = vld [vmem:[%s14739_s1 + $0x1784] ss:$16 sps:$4 sm:$0xff]   ;;  %v10879_v10 = vld [vmem:[%s14739_s1 + $0x178c] ss:$16 sps:$4 sm:$0xff]  }
 0x2bb   :  { %7101 = vmatpush1.bf16.msra.mxu0 %v10790_v13  ;;  %7949 = vmatpush1.bf16.msra.mxu1 %v10793_v14  ;;  %v10874_v13 = vld [vmem:[%s14739_s1 + $0x1780] ss:$16 sps:$4 sm:$0xff]   ;;  %v10877_v14 = vld [vmem:[%s14739_s1 + $0x1788] ss:$16 sps:$4 sm:$0xff]  }
 0x2bc   :  { %7102 = vmatprep.subr.bf16.mxu0 %v10798_v15  ;;  %7950 = vmatprep.subr.bf16.mxu1 %v10801_v16  ;;  %v10882_v15 = vld [vmem:[%s14739_s1 + $0x17a4] ss:$16 sps:$4 sm:$0xff]   ;;  %v10885_v16 = vld [vmem:[%s14739_s1 + $0x17ac] ss:$16 sps:$4 sm:$0xff]  }
 0x2bf   :  { %7103 = vmatpush1.bf16.msra.mxu0 %v10796_v19  ;;  %7951 = vmatpush1.bf16.msra.mxu1 %v10799_v17  ;;  %v10880_v19 = vld [vmem:[%s14739_s1 + $0x17a0] ss:$16 sps:$4 sm:$0xff]   ;;  %v10883_v17 = vld [vmem:[%s14739_s1 + $0x17a8] ss:$16 sps:$4 sm:$0xff]  }
 0x2c0   :  { %7125 = vmatprep.subr.bf16.mxu0 %v10804_v18  ;;  %7973 = vmatprep.subr.bf16.mxu1 %v10807_v20  ;;  %v10888_v18 = vld [vmem:[%s14739_s1 + $0x17c4] ss:$16 sps:$4 sm:$0xff]   ;;  %v10891_v20 = vld [vmem:[%s14739_s1 + $0x17cc] ss:$16 sps:$4 sm:$0xff]  }
 0x2c2   :  { %7105 = vmatmul.mubr.bf16.vlgmr.msra.gmra.mrb[0].mxu0 %v8422_v21  ;;  %7953 = vmatmul.mubr.bf16.vlgmr.msra.gmra.mrb[0].mxu1 %v8422_v21  ;;  %v10886_v21 = vld [vmem:[%s14739_s1 + $0x17c0] ss:$16 sps:$4 sm:$0xff]  }
 0x2c3   :  { %7126 = vmatpush1.bf16.msra.mxu0 %v10802_v24  ;;  %7974 = vmatpush1.bf16.msra.mxu1 %v10805_v26  ;;  %v10897_v24 = vld [vmem:[%s14739_s1 + $0x17ec] ss:$16 sps:$4 sm:$0xff]   ;;  %v10892_v26 = vld [vmem:[%s14739_s1 + $0x17e0] ss:$16 sps:$4 sm:$0xff]  }
 0x2c4   :  { %7127 = vmatprep.subr.bf16.mxu0 %v10810_v25  ;;  %7975 = vmatprep.subr.bf16.mxu1 %v10813_v27  ;;  %v10895_v25 = vld [vmem:[%s14739_s1 + $0x17e8] ss:$16 sps:$4 sm:$0xff]   ;;  %v10900_v27 = vld [vmem:[%s14739_s1 + $0x1804] ss:$16 sps:$4 sm:$0xff]  }
 0x2c5   :  { %7114 = vmatprep.mubr.bf16.mxu0 %v8455_v28  ;;  %7962 = vmatprep.mubr.bf16.mxu1 %v8455_v28  ;;  %v10903_v28 = vld [vmem:[%s14739_s1 + $0x180c] ss:$16 sps:$4 sm:$0xff]  }
 0x2c7   :  { %7128 = vmatpush1.bf16.msra.mxu0 %v10808_v29  ;;  %7976 = vmatpush1.bf16.msra.mxu1 %v10811_v30  ;;  %v8424_v29 = vcombine.low %v13664_v36, %v13669_v33  ;;  %v57_v30 = vld [vmem:[%s14740_s0 + $0x158] sm:$0xff]  ;;  %v10906_v36 = vld [vmem:[%s14739_s1 + $0x1824] ss:$16 sps:$4 sm:$0xff]  }
 0x2c8   :  { %7129 = vmatprep.subr.bf16.mxu0 %v10816_v31  ;;  %7977 = vmatprep.subr.bf16.mxu1 %v10819_v32  ;;  %v73_v31 = vld [vmem:[%s14740_s0 + $0x1d8] sm:$0xff]  ;;  %v10898_v32 = vld [vmem:[%s14739_s1 + $0x1800] ss:$16 sps:$4 sm:$0xff]  }
 0x2c9   :  { %v10909_v33 = vld [vmem:[%s14739_s1 + $0x182c] ss:$16 sps:$4 sm:$0xff]  }
 0x2ca   :  { %7115 = vmatmul.mubr.bf16.gmra.mrb[4].mxu0 %v8454_v34  ;;  %7963 = vmatmul.mubr.bf16.gmra.mrb[4].mxu1 %v8454_v34  ;;  %v10901_v34 = vld [vmem:[%s14739_s1 + $0x1808] ss:$16 sps:$4 sm:$0xff]  }
 0x2cb   :  { %7130 = vmatpush1.bf16.msra.mxu0 %v10814_v35  ;;  %7978 = vmatpush1.bf16.msra.mxu1 %v10817_v37  ;;  %v8457_v35 = vcombine.high %v57_v30, %v73_v31  ;;  %v10904_v37 = vld [vmem:[%s14739_s1 + $0x1820] ss:$16 sps:$4 sm:$0xff]  }
 0x2cc   :  { %7131 = vmatprep.subr.bf16.mxu0 %v10822_v38  ;;  %7979 = vmatprep.subr.bf16.mxu1 %v10825_v39  ;;  %v10907_v38 = vld [vmem:[%s14739_s1 + $0x1828] ss:$16 sps:$4 sm:$0xff]   ;;  %v10912_v39 = vld [vmem:[%s14739_s1 + $0x1844] ss:$16 sps:$4 sm:$0xff]  }
 0x2cd   :  { %7157 = vmatprep.mubr.bf16.mxu0 %v8425_v40  ;;  %8005 = vmatprep.mubr.bf16.mxu1 %v8425_v40  ;;  %v10915_v40 = vld [vmem:[%s14739_s1 + $0x184c] ss:$16 sps:$4 sm:$0xff]  }
 0x2cf   :  { %7132 = vmatpush1.bf16.msra.mxu0 %v10820_v42  ;;  %7980 = vmatpush1.bf16.msra.mxu1 %v10823_v44  ;;  %v8456_v42 = vcombine.low %v57_v30, %v73_v31  ;;  %v13876_v44 = vld [vmem:[%s14740_s0 + $0x60] sm:$0xff]  ;;  %v10985_v30 = vld [vmem:[%s14739_s1 + $0x19c8] ss:$16 sps:$4 sm:$0xff]  }
 0x2d0   :  { %7133 = vmatprep.subr.bf16.mxu0 %v10828_v41  ;;  %7981 = vmatprep.subr.bf16.mxu1 %v10831_v43  ;;  %v13881_v41 = vld [vmem:[%s14740_s0 + $0xe0] sm:$0xff] }
 0x2d1   :  { %v10910_v43 = vld [vmem:[%s14739_s1 + $0x1840] ss:$16 sps:$4 sm:$0xff]   ;;  %v10990_v31 = vld [vmem:[%s14739_s1 + $0x19e4] ss:$16 sps:$4 sm:$0xff]  }
 0x2d3   :  { %7134 = vmatpush1.bf16.msra.mxu0 %v10826_v45  ;;  %7982 = vmatpush1.bf16.msra.mxu1 %v10829_v46  ;;  %v10913_v45 = vld [vmem:[%s14739_s1 + $0x1848] ss:$16 sps:$4 sm:$0xff]   ;;  %v10918_v46 = vld [vmem:[%s14739_s1 + $0x1864] ss:$16 sps:$4 sm:$0xff]  }
 0x2d4   :  { %7135 = vmatprep.subr.bf16.mxu0 %v10834_v47  ;;  %7983 = vmatprep.subr.bf16.mxu1 %v10837_v48  ;;  %v10921_v47 = vld [vmem:[%s14739_s1 + $0x186c] ss:$16 sps:$4 sm:$0xff]   ;;  %v8427_v48 = vcombine.high %v13876_v44, %v13881_v41 }
 0x2d7   :  { %7136 = vmatpush1.bf16.msra.mxu0 %v10832_v51  ;;  %7984 = vmatpush1.bf16.msra.mxu1 %v10835_v52  ;;  %v10916_v51 = vld [vmem:[%s14739_s1 + $0x1860] ss:$16 sps:$4 sm:$0xff]   ;;  %v10919_v52 = vld [vmem:[%s14739_s1 + $0x1868] ss:$16 sps:$4 sm:$0xff]  }
 0x2d8   :  { %7137 = vmatprep.subr.bf16.mxu0 %v10840_v49  ;;  %7985 = vmatprep.subr.bf16.mxu1 %v10843_v50  ;;  %v10924_v49 = vld [vmem:[%s14739_s1 + $0x1884] ss:$16 sps:$4 sm:$0xff]   ;;  %v10927_v50 = vld [vmem:[%s14739_s1 + $0x188c] ss:$16 sps:$4 sm:$0xff]  }
 0x2db   :  { %7138 = vmatpush1.bf16.msra.mxu0 %v10838_v53  ;;  %7986 = vmatpush1.bf16.msra.mxu1 %v10841_v54  ;;  %v10922_v53 = vld [vmem:[%s14739_s1 + $0x1880] ss:$16 sps:$4 sm:$0xff]   ;;  %v10925_v54 = vld [vmem:[%s14739_s1 + $0x1888] ss:$16 sps:$4 sm:$0xff]  }
 0x2dc   :  { %7139 = vmatprep.subr.bf16.mxu0 %v10846_v55  ;;  %7987 = vmatprep.subr.bf16.mxu1 %v10849_v56  ;;  %v10930_v55 = vld [vmem:[%s14739_s1 + $0x18a4] ss:$16 sps:$4 sm:$0xff]   ;;  %v10933_v56 = vld [vmem:[%s14739_s1 + $0x18ac] ss:$16 sps:$4 sm:$0xff]  }
 0x2df   :  { %7140 = vmatpush1.bf16.msra.mxu0 %v10844_v59  ;;  %7988 = vmatpush1.bf16.msra.mxu1 %v10847_v60  ;;  %v10928_v59 = vld [vmem:[%s14739_s1 + $0x18a0] ss:$16 sps:$4 sm:$0xff]   ;;  %v10931_v60 = vld [vmem:[%s14739_s1 + $0x18a8] ss:$16 sps:$4 sm:$0xff]  }
 0x2e0   :  { %7141 = vmatprep.subr.bf16.mxu0 %v10852_v57  ;;  %7989 = vmatprep.subr.bf16.mxu1 %v10855_v58  ;;  %v10936_v57 = vld [vmem:[%s14739_s1 + $0x18c4] ss:$16 sps:$4 sm:$0xff]   ;;  %v10939_v58 = vld [vmem:[%s14739_s1 + $0x18cc] ss:$16 sps:$4 sm:$0xff]  }
 0x2e3   :  { %7142 = vmatpush1.bf16.msra.mxu0 %v10850_v61  ;;  %7990 = vmatpush1.bf16.msra.mxu1 %v10853_v62  ;;  %v10934_v61 = vld [vmem:[%s14739_s1 + $0x18c0] ss:$16 sps:$4 sm:$0xff]   ;;  %v10937_v62 = vld [vmem:[%s14739_s1 + $0x18c8] ss:$16 sps:$4 sm:$0xff]  }
 0x2e4   :  { %7143 = vmatprep.subr.bf16.mxu0 %v10858_v63  ;;  %7991 = vmatprep.subr.bf16.mxu1 %v10861_v0  ;;  %v10942_v63 = vld [vmem:[%s14739_s1 + $0x18e4] ss:$16 sps:$4 sm:$0xff]   ;;  %v10945_v0 = vld [vmem:[%s14739_s1 + $0x18ec] ss:$16 sps:$4 sm:$0xff]  }
 0x2e7   :  { %7144 = vmatpush1.bf16.msra.mxu0 %v10856_v3  ;;  %7992 = vmatpush1.bf16.msra.mxu1 %v10859_v4  ;;  %v10940_v3 = vld [vmem:[%s14739_s1 + $0x18e0] ss:$16 sps:$4 sm:$0xff]   ;;  %v10943_v4 = vld [vmem:[%s14739_s1 + $0x18e8] ss:$16 sps:$4 sm:$0xff]  }
 0x2e8   :  { %7145 = vmatprep.subr.bf16.mxu0 %v10864_v1  ;;  %7993 = vmatprep.subr.bf16.mxu1 %v10867_v2  ;;  %v10948_v1 = vld [vmem:[%s14739_s1 + $0x1904] ss:$16 sps:$4 sm:$0xff]   ;;  %v10951_v2 = vld [vmem:[%s14739_s1 + $0x190c] ss:$16 sps:$4 sm:$0xff]  }
 0x2eb   :  { %7146 = vmatpush1.bf16.msra.mxu0 %v10862_v5  ;;  %7994 = vmatpush1.bf16.msra.mxu1 %v10865_v6  ;;  %v10946_v5 = vld [vmem:[%s14739_s1 + $0x1900] ss:$16 sps:$4 sm:$0xff]   ;;  %v10949_v6 = vld [vmem:[%s14739_s1 + $0x1908] ss:$16 sps:$4 sm:$0xff]  }
 0x2ec   :  { %7147 = vmatprep.subr.bf16.mxu0 %v10870_v7  ;;  %7995 = vmatprep.subr.bf16.mxu1 %v10873_v8  ;;  %v10954_v7 = vld [vmem:[%s14739_s1 + $0x1924] ss:$16 sps:$4 sm:$0xff]   ;;  %v10957_v8 = vld [vmem:[%s14739_s1 + $0x192c] ss:$16 sps:$4 sm:$0xff]  }
 0x2ef   :  { %7148 = vmatpush1.bf16.msra.mxu0 %v10868_v11  ;;  %7996 = vmatpush1.bf16.msra.mxu1 %v10871_v12  ;;  %v10952_v11 = vld [vmem:[%s14739_s1 + $0x1920] ss:$16 sps:$4 sm:$0xff]   ;;  %v10955_v12 = vld [vmem:[%s14739_s1 + $0x1928] ss:$16 sps:$4 sm:$0xff]  }
 0x2f0   :  { %7149 = vmatprep.subr.bf16.mxu0 %v10876_v9  ;;  %7997 = vmatprep.subr.bf16.mxu1 %v10879_v10  ;;  %v10960_v9 = vld [vmem:[%s14739_s1 + $0x1944] ss:$16 sps:$4 sm:$0xff]   ;;  %v10963_v10 = vld [vmem:[%s14739_s1 + $0x194c] ss:$16 sps:$4 sm:$0xff]  }
 0x2f3   :  { %7150 = vmatpush1.bf16.msra.mxu0 %v10874_v13  ;;  %7998 = vmatpush1.bf16.msra.mxu1 %v10877_v14  ;;  %v10958_v13 = vld [vmem:[%s14739_s1 + $0x1940] ss:$16 sps:$4 sm:$0xff]   ;;  %v10961_v14 = vld [vmem:[%s14739_s1 + $0x1948] ss:$16 sps:$4 sm:$0xff]  }
 0x2f4   :  { %7151 = vmatprep.subr.bf16.mxu0 %v10882_v15  ;;  %7999 = vmatprep.subr.bf16.mxu1 %v10885_v16  ;;  %v10966_v15 = vld [vmem:[%s14739_s1 + $0x1964] ss:$16 sps:$4 sm:$0xff]   ;;  %v10969_v16 = vld [vmem:[%s14739_s1 + $0x196c] ss:$16 sps:$4 sm:$0xff]  }
 0x2f7   :  { %7152 = vmatpush1.bf16.msra.mxu0 %v10880_v19  ;;  %8000 = vmatpush1.bf16.msra.mxu1 %v10883_v17  ;;  %v10964_v19 = vld [vmem:[%s14739_s1 + $0x1960] ss:$16 sps:$4 sm:$0xff]   ;;  %v10967_v17 = vld [vmem:[%s14739_s1 + $0x1968] ss:$16 sps:$4 sm:$0xff]  }
 0x2f8   :  { %7153 = vmatprep.subr.bf16.mxu0 %v10888_v18  ;;  %8001 = vmatprep.subr.bf16.mxu1 %v10891_v20  ;;  %v10972_v18 = vld [vmem:[%s14739_s1 + $0x1984] ss:$16 sps:$4 sm:$0xff]   ;;  %v10975_v20 = vld [vmem:[%s14739_s1 + $0x198c] ss:$16 sps:$4 sm:$0xff]  }
 0x2fb   :  { %7154 = vmatpush1.bf16.msra.mxu0 %v10886_v21  ;;  %8002 = vmatpush1.bf16.msra.mxu1 %v10889_v22  ;;  %v10970_v21 = vld [vmem:[%s14739_s1 + $0x1980] ss:$16 sps:$4 sm:$0xff]   ;;  %v10973_v22 = vld [vmem:[%s14739_s1 + $0x1988] ss:$16 sps:$4 sm:$0xff]  }
 0x2fc   :  { %7155 = vmatprep.subr.bf16.mxu0 %v10894_v23  ;;  %8003 = vmatprep.subr.bf16.mxu1 %v10897_v24  ;;  %v10978_v23 = vld [vmem:[%s14739_s1 + $0x19a4] ss:$16 sps:$4 sm:$0xff]   ;;  %v10981_v24 = vld [vmem:[%s14739_s1 + $0x19ac] ss:$16 sps:$4 sm:$0xff]  }
 0x2ff   :  { %7156 = vmatpush1.bf16.msra.mxu0 %v10892_v26  ;;  %8004 = vmatpush1.bf16.msra.mxu1 %v10895_v25  ;;  %v10976_v26 = vld [vmem:[%s14739_s1 + $0x19a0] ss:$16 sps:$4 sm:$0xff]   ;;  %v10979_v25 = vld [vmem:[%s14739_s1 + $0x19a8] ss:$16 sps:$4 sm:$0xff]  }
 0x300   :  { %7178 = vmatprep.subr.bf16.mxu0 %v10900_v27  ;;  %8026 = vmatprep.subr.bf16.mxu1 %v10903_v28  ;;  %v10984_v27 = vld [vmem:[%s14739_s1 + $0x19c4] ss:$16 sps:$4 sm:$0xff]   ;;  %v10987_v28 = vld [vmem:[%s14739_s1 + $0x19cc] ss:$16 sps:$4 sm:$0xff]  }
 0x302   :  { %7158 = vmatmul.mubr.bf16.vlgmr.msra.gmra.mrb[0].mxu0 %v8424_v29  ;;  %8006 = vmatmul.mubr.bf16.vlgmr.msra.gmra.mrb[0].mxu1 %v8424_v29  ;;  %v10982_v29 = vld [vmem:[%s14739_s1 + $0x19c0] ss:$16 sps:$4 sm:$0xff]  }
 0x303   :  { %7179 = vmatpush1.bf16.msra.mxu0 %v10898_v32  ;;  %8027 = vmatpush1.bf16.msra.mxu1 %v10901_v34  ;;  %v10993_v32 = vld [vmem:[%s14739_s1 + $0x19ec] ss:$16 sps:$4 sm:$0xff]   ;;  %v10988_v34 = vld [vmem:[%s14739_s1 + $0x19e0] ss:$16 sps:$4 sm:$0xff]  }
 0x304   :  { %7180 = vmatprep.subr.bf16.mxu0 %v10906_v36  ;;  %8028 = vmatprep.subr.bf16.mxu1 %v10909_v33  ;;  %v10991_v36 = vld [vmem:[%s14739_s1 + $0x19e8] ss:$16 sps:$4 sm:$0xff]   ;;  %v10996_v33 = vld [vmem:[%s14739_s1 + $0x1a04] ss:$16 sps:$4 sm:$0xff]  }
 0x305   :  { %7167 = vmatprep.mubr.bf16.mxu0 %v8457_v35  ;;  %8015 = vmatprep.mubr.bf16.mxu1 %v8457_v35  ;;  %v10999_v35 = vld [vmem:[%s14739_s1 + $0x1a0c] ss:$16 sps:$4 sm:$0xff]  }
 0x307   :  { %7181 = vmatpush1.bf16.msra.mxu0 %v10904_v37  ;;  %8029 = vmatpush1.bf16.msra.mxu1 %v10907_v38  ;;  %v8426_v37 = vcombine.low %v13876_v44, %v13881_v41  ;;  %v58_v38 = vld [vmem:[%s14740_s0 + $0x160] sm:$0xff]  ;;  %v11005_v41 = vld [vmem:[%s14739_s1 + $0x1a2c] ss:$16 sps:$4 sm:$0xff]  }
 0x308   :  { %7182 = vmatprep.subr.bf16.mxu0 %v10912_v39  ;;  %8030 = vmatprep.subr.bf16.mxu1 %v10915_v40  ;;  %v74_v39 = vld [vmem:[%s14740_s0 + $0x1e0] sm:$0xff] }
 0x309   :  { %v10994_v40 = vld [vmem:[%s14739_s1 + $0x1a00] ss:$16 sps:$4 sm:$0xff]   ;;  %v11002_v44 = vld [vmem:[%s14739_s1 + $0x1a24] ss:$16 sps:$4 sm:$0xff]  }
 0x30a   :  { %7168 = vmatmul.mubr.bf16.gmra.mrb[4].mxu0 %v8456_v42  ;;  %8016 = vmatmul.mubr.bf16.gmra.mrb[4].mxu1 %v8456_v42  ;;  %v10997_v42 = vld [vmem:[%s14739_s1 + $0x1a08] ss:$16 sps:$4 sm:$0xff]  }
 0x30b   :  { %7183 = vmatpush1.bf16.msra.mxu0 %v10910_v43  ;;  %8031 = vmatpush1.bf16.msra.mxu1 %v10913_v45  ;;  %v8459_v43 = vcombine.high %v58_v38, %v74_v39  ;;  %v11000_v45 = vld [vmem:[%s14739_s1 + $0x1a20] ss:$16 sps:$4 sm:$0xff]  }
 0x30c   :  { %7184 = vmatprep.subr.bf16.mxu0 %v10918_v46  ;;  %8032 = vmatprep.subr.bf16.mxu1 %v10921_v47  ;;  %v11003_v46 = vld [vmem:[%s14739_s1 + $0x1a28] ss:$16 sps:$4 sm:$0xff]   ;;  %v11008_v47 = vld [vmem:[%s14739_s1 + $0x1a44] ss:$16 sps:$4 sm:$0xff]  }
 0x30d   :  { %7210 = vmatprep.mubr.bf16.mxu0 %v8427_v48  ;;  %8058 = vmatprep.mubr.bf16.mxu1 %v8427_v48  ;;  %v11011_v48 = vld [vmem:[%s14739_s1 + $0x1a4c] ss:$16 sps:$4 sm:$0xff]  }
 0x30f   :  { %7185 = vmatpush1.bf16.msra.mxu0 %v10916_v51  ;;  %8033 = vmatpush1.bf16.msra.mxu1 %v10919_v52  ;;  %v8458_v51 = vcombine.low %v58_v38, %v74_v39  ;;  %v14088_v52 = vld [vmem:[%s14740_s0 + $0x68] sm:$0xff]  ;;  %v11086_v39 = vld [vmem:[%s14739_s1 + $0x1be4] ss:$16 sps:$4 sm:$0xff]  }
 0x310   :  { %7186 = vmatprep.subr.bf16.mxu0 %v10924_v49  ;;  %8034 = vmatprep.subr.bf16.mxu1 %v10927_v50  ;;  %v14093_v49 = vld [vmem:[%s14740_s0 + $0xe8] sm:$0xff]  ;;  %v11006_v50 = vld [vmem:[%s14739_s1 + $0x1a40] ss:$16 sps:$4 sm:$0xff]  }
 0x311   :  { %v11081_v38 = vld [vmem:[%s14739_s1 + $0x1bc8] ss:$16 sps:$4 sm:$0xff]  }
 0x313   :  { %7187 = vmatpush1.bf16.msra.mxu0 %v10922_v53  ;;  %8035 = vmatpush1.bf16.msra.mxu1 %v10925_v54  ;;  %v11009_v53 = vld [vmem:[%s14739_s1 + $0x1a48] ss:$16 sps:$4 sm:$0xff]   ;;  %v11014_v54 = vld [vmem:[%s14739_s1 + $0x1a64] ss:$16 sps:$4 sm:$0xff]  }
 0x314   :  { %7188 = vmatprep.subr.bf16.mxu0 %v10930_v55  ;;  %8036 = vmatprep.subr.bf16.mxu1 %v10933_v56  ;;  %v11017_v55 = vld [vmem:[%s14739_s1 + $0x1a6c] ss:$16 sps:$4 sm:$0xff]   ;;  %v8429_v56 = vcombine.high %v14088_v52, %v14093_v49 }
 0x317   :  { %7189 = vmatpush1.bf16.msra.mxu0 %v10928_v59  ;;  %8037 = vmatpush1.bf16.msra.mxu1 %v10931_v60  ;;  %v11012_v59 = vld [vmem:[%s14739_s1 + $0x1a60] ss:$16 sps:$4 sm:$0xff]   ;;  %v11015_v60 = vld [vmem:[%s14739_s1 + $0x1a68] ss:$16 sps:$4 sm:$0xff]  }
 0x318   :  { %7190 = vmatprep.subr.bf16.mxu0 %v10936_v57  ;;  %8038 = vmatprep.subr.bf16.mxu1 %v10939_v58  ;;  %v11020_v57 = vld [vmem:[%s14739_s1 + $0x1a84] ss:$16 sps:$4 sm:$0xff]   ;;  %v11023_v58 = vld [vmem:[%s14739_s1 + $0x1a8c] ss:$16 sps:$4 sm:$0xff]  }
 0x31b   :  { %7191 = vmatpush1.bf16.msra.mxu0 %v10934_v61  ;;  %8039 = vmatpush1.bf16.msra.mxu1 %v10937_v62  ;;  %v11018_v61 = vld [vmem:[%s14739_s1 + $0x1a80] ss:$16 sps:$4 sm:$0xff]   ;;  %v11021_v62 = vld [vmem:[%s14739_s1 + $0x1a88] ss:$16 sps:$4 sm:$0xff]  }
 0x31c   :  { %7192 = vmatprep.subr.bf16.mxu0 %v10942_v63  ;;  %8040 = vmatprep.subr.bf16.mxu1 %v10945_v0  ;;  %v11026_v63 = vld [vmem:[%s14739_s1 + $0x1aa4] ss:$16 sps:$4 sm:$0xff]   ;;  %v11029_v0 = vld [vmem:[%s14739_s1 + $0x1aac] ss:$16 sps:$4 sm:$0xff]  }
 0x31f   :  { %7193 = vmatpush1.bf16.msra.mxu0 %v10940_v3  ;;  %8041 = vmatpush1.bf16.msra.mxu1 %v10943_v4  ;;  %v11024_v3 = vld [vmem:[%s14739_s1 + $0x1aa0] ss:$16 sps:$4 sm:$0xff]   ;;  %v11027_v4 = vld [vmem:[%s14739_s1 + $0x1aa8] ss:$16 sps:$4 sm:$0xff]  }
 0x320   :  { %7194 = vmatprep.subr.bf16.mxu0 %v10948_v1  ;;  %8042 = vmatprep.subr.bf16.mxu1 %v10951_v2  ;;  %v11032_v1 = vld [vmem:[%s14739_s1 + $0x1ac4] ss:$16 sps:$4 sm:$0xff]   ;;  %v11035_v2 = vld [vmem:[%s14739_s1 + $0x1acc] ss:$16 sps:$4 sm:$0xff]  }
 0x323   :  { %7195 = vmatpush1.bf16.msra.mxu0 %v10946_v5  ;;  %8043 = vmatpush1.bf16.msra.mxu1 %v10949_v6  ;;  %v11030_v5 = vld [vmem:[%s14739_s1 + $0x1ac0] ss:$16 sps:$4 sm:$0xff]   ;;  %v11033_v6 = vld [vmem:[%s14739_s1 + $0x1ac8] ss:$16 sps:$4 sm:$0xff]  }
 0x324   :  { %7196 = vmatprep.subr.bf16.mxu0 %v10954_v7  ;;  %8044 = vmatprep.subr.bf16.mxu1 %v10957_v8  ;;  %v11038_v7 = vld [vmem:[%s14739_s1 + $0x1ae4] ss:$16 sps:$4 sm:$0xff]   ;;  %v11041_v8 = vld [vmem:[%s14739_s1 + $0x1aec] ss:$16 sps:$4 sm:$0xff]  }
 0x327   :  { %7197 = vmatpush1.bf16.msra.mxu0 %v10952_v11  ;;  %8045 = vmatpush1.bf16.msra.mxu1 %v10955_v12  ;;  %v11036_v11 = vld [vmem:[%s14739_s1 + $0x1ae0] ss:$16 sps:$4 sm:$0xff]   ;;  %v11039_v12 = vld [vmem:[%s14739_s1 + $0x1ae8] ss:$16 sps:$4 sm:$0xff]  }
 0x328   :  { %7198 = vmatprep.subr.bf16.mxu0 %v10960_v9  ;;  %8046 = vmatprep.subr.bf16.mxu1 %v10963_v10  ;;  %v11044_v9 = vld [vmem:[%s14739_s1 + $0x1b04] ss:$16 sps:$4 sm:$0xff]   ;;  %v11047_v10 = vld [vmem:[%s14739_s1 + $0x1b0c] ss:$16 sps:$4 sm:$0xff]  }
 0x32b   :  { %7199 = vmatpush1.bf16.msra.mxu0 %v10958_v13  ;;  %8047 = vmatpush1.bf16.msra.mxu1 %v10961_v14  ;;  %v11042_v13 = vld [vmem:[%s14739_s1 + $0x1b00] ss:$16 sps:$4 sm:$0xff]   ;;  %v11045_v14 = vld [vmem:[%s14739_s1 + $0x1b08] ss:$16 sps:$4 sm:$0xff]  }
 0x32c   :  { %7200 = vmatprep.subr.bf16.mxu0 %v10966_v15  ;;  %8048 = vmatprep.subr.bf16.mxu1 %v10969_v16  ;;  %v11050_v15 = vld [vmem:[%s14739_s1 + $0x1b24] ss:$16 sps:$4 sm:$0xff]   ;;  %v11053_v16 = vld [vmem:[%s14739_s1 + $0x1b2c] ss:$16 sps:$4 sm:$0xff]  }
 0x32f   :  { %7201 = vmatpush1.bf16.msra.mxu0 %v10964_v19  ;;  %8049 = vmatpush1.bf16.msra.mxu1 %v10967_v17  ;;  %v11048_v19 = vld [vmem:[%s14739_s1 + $0x1b20] ss:$16 sps:$4 sm:$0xff]   ;;  %v11051_v17 = vld [vmem:[%s14739_s1 + $0x1b28] ss:$16 sps:$4 sm:$0xff]  }
 0x330   :  { %7202 = vmatprep.subr.bf16.mxu0 %v10972_v18  ;;  %8050 = vmatprep.subr.bf16.mxu1 %v10975_v20  ;;  %v11056_v18 = vld [vmem:[%s14739_s1 + $0x1b44] ss:$16 sps:$4 sm:$0xff]   ;;  %v11059_v20 = vld [vmem:[%s14739_s1 + $0x1b4c] ss:$16 sps:$4 sm:$0xff]  }
 0x333   :  { %7203 = vmatpush1.bf16.msra.mxu0 %v10970_v21  ;;  %8051 = vmatpush1.bf16.msra.mxu1 %v10973_v22  ;;  %v11054_v21 = vld [vmem:[%s14739_s1 + $0x1b40] ss:$16 sps:$4 sm:$0xff]   ;;  %v11057_v22 = vld [vmem:[%s14739_s1 + $0x1b48] ss:$16 sps:$4 sm:$0xff]  }
 0x334   :  { %7204 = vmatprep.subr.bf16.mxu0 %v10978_v23  ;;  %8052 = vmatprep.subr.bf16.mxu1 %v10981_v24  ;;  %v11062_v23 = vld [vmem:[%s14739_s1 + $0x1b64] ss:$16 sps:$4 sm:$0xff]   ;;  %v11065_v24 = vld [vmem:[%s14739_s1 + $0x1b6c] ss:$16 sps:$4 sm:$0xff]  }
 0x337   :  { %7205 = vmatpush1.bf16.msra.mxu0 %v10976_v26  ;;  %8053 = vmatpush1.bf16.msra.mxu1 %v10979_v25  ;;  %v11060_v26 = vld [vmem:[%s14739_s1 + $0x1b60] ss:$16 sps:$4 sm:$0xff]   ;;  %v11063_v25 = vld [vmem:[%s14739_s1 + $0x1b68] ss:$16 sps:$4 sm:$0xff]  }
 0x338   :  { %7206 = vmatprep.subr.bf16.mxu0 %v10984_v27  ;;  %8054 = vmatprep.subr.bf16.mxu1 %v10987_v28  ;;  %v11068_v27 = vld [vmem:[%s14739_s1 + $0x1b84] ss:$16 sps:$4 sm:$0xff]   ;;  %v11071_v28 = vld [vmem:[%s14739_s1 + $0x1b8c] ss:$16 sps:$4 sm:$0xff]  }
 0x33b   :  { %7207 = vmatpush1.bf16.msra.mxu0 %v10982_v29  ;;  %8055 = vmatpush1.bf16.msra.mxu1 %v10985_v30  ;;  %v11066_v29 = vld [vmem:[%s14739_s1 + $0x1b80] ss:$16 sps:$4 sm:$0xff]   ;;  %v11069_v30 = vld [vmem:[%s14739_s1 + $0x1b88] ss:$16 sps:$4 sm:$0xff]  }
 0x33c   :  { %7208 = vmatprep.subr.bf16.mxu0 %v10990_v31  ;;  %8056 = vmatprep.subr.bf16.mxu1 %v10993_v32  ;;  %v11074_v31 = vld [vmem:[%s14739_s1 + $0x1ba4] ss:$16 sps:$4 sm:$0xff]   ;;  %v11077_v32 = vld [vmem:[%s14739_s1 + $0x1bac] ss:$16 sps:$4 sm:$0xff]  }
 0x33f   :  { %7209 = vmatpush1.bf16.msra.mxu0 %v10988_v34  ;;  %8057 = vmatpush1.bf16.msra.mxu1 %v10991_v36  ;;  %v11072_v34 = vld [vmem:[%s14739_s1 + $0x1ba0] ss:$16 sps:$4 sm:$0xff]   ;;  %v11075_v36 = vld [vmem:[%s14739_s1 + $0x1ba8] ss:$16 sps:$4 sm:$0xff]  }
 0x340   :  { %7231 = vmatprep.subr.bf16.mxu0 %v10996_v33  ;;  %8079 = vmatprep.subr.bf16.mxu1 %v10999_v35  ;;  %v11080_v33 = vld [vmem:[%s14739_s1 + $0x1bc4] ss:$16 sps:$4 sm:$0xff]   ;;  %v11083_v35 = vld [vmem:[%s14739_s1 + $0x1bcc] ss:$16 sps:$4 sm:$0xff]  }
 0x342   :  { %7211 = vmatmul.mubr.bf16.vlgmr.msra.gmra.mrb[0].mxu0 %v8426_v37  ;;  %8059 = vmatmul.mubr.bf16.vlgmr.msra.gmra.mrb[0].mxu1 %v8426_v37  ;;  %v11078_v37 = vld [vmem:[%s14739_s1 + $0x1bc0] ss:$16 sps:$4 sm:$0xff]  }
 0x343   :  { %7232 = vmatpush1.bf16.msra.mxu0 %v10994_v40  ;;  %8080 = vmatpush1.bf16.msra.mxu1 %v10997_v42  ;;  %v11089_v40 = vld [vmem:[%s14739_s1 + $0x1bec] ss:$16 sps:$4 sm:$0xff]   ;;  %v11084_v42 = vld [vmem:[%s14739_s1 + $0x1be0] ss:$16 sps:$4 sm:$0xff]  }
 0x344   :  { %7233 = vmatprep.subr.bf16.mxu0 %v11002_v44  ;;  %8081 = vmatprep.subr.bf16.mxu1 %v11005_v41  ;;  %v11087_v44 = vld [vmem:[%s14739_s1 + $0x1be8] ss:$16 sps:$4 sm:$0xff]   ;;  %v11092_v41 = vld [vmem:[%s14739_s1 + $0x1c04] ss:$16 sps:$4 sm:$0xff]  }
 0x345   :  { %7220 = vmatprep.mubr.bf16.mxu0 %v8459_v43  ;;  %8068 = vmatprep.mubr.bf16.mxu1 %v8459_v43  ;;  %v11095_v43 = vld [vmem:[%s14739_s1 + $0x1c0c] ss:$16 sps:$4 sm:$0xff]  }
 0x347   :  { %7234 = vmatpush1.bf16.msra.mxu0 %v11000_v45  ;;  %8082 = vmatpush1.bf16.msra.mxu1 %v11003_v46  ;;  %v8428_v45 = vcombine.low %v14088_v52, %v14093_v49  ;;  %v59_v46 = vld [vmem:[%s14740_s0 + $0x168] sm:$0xff]  ;;  %v11098_v52 = vld [vmem:[%s14739_s1 + $0x1c24] ss:$16 sps:$4 sm:$0xff]  }
 0x348   :  { %7235 = vmatprep.subr.bf16.mxu0 %v11008_v47  ;;  %8083 = vmatprep.subr.bf16.mxu1 %v11011_v48  ;;  %v75_v47 = vld [vmem:[%s14740_s0 + $0x1e8] sm:$0xff]  ;;  %v11090_v48 = vld [vmem:[%s14739_s1 + $0x1c00] ss:$16 sps:$4 sm:$0xff]  }
 0x349   :  { %v11101_v49 = vld [vmem:[%s14739_s1 + $0x1c2c] ss:$16 sps:$4 sm:$0xff]  }
 0x34a   :  { %7221 = vmatmul.mubr.bf16.gmra.mrb[4].mxu0 %v8458_v51  ;;  %8069 = vmatmul.mubr.bf16.gmra.mrb[4].mxu1 %v8458_v51  ;;  %v11093_v51 = vld [vmem:[%s14739_s1 + $0x1c08] ss:$16 sps:$4 sm:$0xff]  }
 0x34b   :  { %7236 = vmatpush1.bf16.msra.mxu0 %v11006_v50  ;;  %8084 = vmatpush1.bf16.msra.mxu1 %v11009_v53  ;;  %v8461_v50 = vcombine.high %v59_v46, %v75_v47  ;;  %v11096_v53 = vld [vmem:[%s14739_s1 + $0x1c20] ss:$16 sps:$4 sm:$0xff]  }
 0x34c   :  { %7237 = vmatprep.subr.bf16.mxu0 %v11014_v54  ;;  %8085 = vmatprep.subr.bf16.mxu1 %v11017_v55  ;;  %v11099_v54 = vld [vmem:[%s14739_s1 + $0x1c28] ss:$16 sps:$4 sm:$0xff]   ;;  %v11104_v55 = vld [vmem:[%s14739_s1 + $0x1c44] ss:$16 sps:$4 sm:$0xff]  }
 0x34d   :  { %7263 = vmatprep.mubr.bf16.mxu0 %v8429_v56  ;;  %8111 = vmatprep.mubr.bf16.mxu1 %v8429_v56  ;;  %v11107_v56 = vld [vmem:[%s14739_s1 + $0x1c4c] ss:$16 sps:$4 sm:$0xff]  }
 0x34f   :  { %7238 = vmatpush1.bf16.msra.mxu0 %v11012_v59  ;;  %8086 = vmatpush1.bf16.msra.mxu1 %v11015_v60  ;;  %v8460_v59 = vcombine.low %v59_v46, %v75_v47  ;;  %v14300_v60 = vld [vmem:[%s14740_s0 + $0x70] sm:$0xff]  ;;  %v11177_v46 = vld [vmem:[%s14739_s1 + $0x1dc8] ss:$16 sps:$4 sm:$0xff]  }
 0x350   :  { %7239 = vmatprep.subr.bf16.mxu0 %v11020_v57  ;;  %8087 = vmatprep.subr.bf16.mxu1 %v11023_v58  ;;  %v14305_v57 = vld [vmem:[%s14740_s0 + $0xf0] sm:$0xff] }
 0x351   :  { %v11102_v58 = vld [vmem:[%s14739_s1 + $0x1c40] ss:$16 sps:$4 sm:$0xff]   ;;  %v11182_v47 = vld [vmem:[%s14739_s1 + $0x1de4] ss:$16 sps:$4 sm:$0xff]  }
 0x353   :  { %7240 = vmatpush1.bf16.msra.mxu0 %v11018_v61  ;;  %8088 = vmatpush1.bf16.msra.mxu1 %v11021_v62  ;;  %v11105_v61 = vld [vmem:[%s14739_s1 + $0x1c48] ss:$16 sps:$4 sm:$0xff]   ;;  %v11110_v62 = vld [vmem:[%s14739_s1 + $0x1c64] ss:$16 sps:$4 sm:$0xff]  }
 0x354   :  { %7241 = vmatprep.subr.bf16.mxu0 %v11026_v63  ;;  %8089 = vmatprep.subr.bf16.mxu1 %v11029_v0  ;;  %v11113_v63 = vld [vmem:[%s14739_s1 + $0x1c6c] ss:$16 sps:$4 sm:$0xff]   ;;  %v8431_v0 = vcombine.high %v14300_v60, %v14305_v57 }
 0x357   :  { %7242 = vmatpush1.bf16.msra.mxu0 %v11024_v3  ;;  %8090 = vmatpush1.bf16.msra.mxu1 %v11027_v4  ;;  %v11108_v3 = vld [vmem:[%s14739_s1 + $0x1c60] ss:$16 sps:$4 sm:$0xff]   ;;  %v11111_v4 = vld [vmem:[%s14739_s1 + $0x1c68] ss:$16 sps:$4 sm:$0xff]  }
 0x358   :  { %7243 = vmatprep.subr.bf16.mxu0 %v11032_v1  ;;  %8091 = vmatprep.subr.bf16.mxu1 %v11035_v2  ;;  %v11116_v1 = vld [vmem:[%s14739_s1 + $0x1c84] ss:$16 sps:$4 sm:$0xff]   ;;  %v11119_v2 = vld [vmem:[%s14739_s1 + $0x1c8c] ss:$16 sps:$4 sm:$0xff]  }
 0x35b   :  { %7244 = vmatpush1.bf16.msra.mxu0 %v11030_v5  ;;  %8092 = vmatpush1.bf16.msra.mxu1 %v11033_v6  ;;  %v11114_v5 = vld [vmem:[%s14739_s1 + $0x1c80] ss:$16 sps:$4 sm:$0xff]   ;;  %v11117_v6 = vld [vmem:[%s14739_s1 + $0x1c88] ss:$16 sps:$4 sm:$0xff]  }
 0x35c   :  { %7245 = vmatprep.subr.bf16.mxu0 %v11038_v7  ;;  %8093 = vmatprep.subr.bf16.mxu1 %v11041_v8  ;;  %v11122_v7 = vld [vmem:[%s14739_s1 + $0x1ca4] ss:$16 sps:$4 sm:$0xff]   ;;  %v11125_v8 = vld [vmem:[%s14739_s1 + $0x1cac] ss:$16 sps:$4 sm:$0xff]  }
 0x35f   :  { %7246 = vmatpush1.bf16.msra.mxu0 %v11036_v11  ;;  %8094 = vmatpush1.bf16.msra.mxu1 %v11039_v12  ;;  %v11120_v11 = vld [vmem:[%s14739_s1 + $0x1ca0] ss:$16 sps:$4 sm:$0xff]   ;;  %v11123_v12 = vld [vmem:[%s14739_s1 + $0x1ca8] ss:$16 sps:$4 sm:$0xff]  }
 0x360   :  { %7247 = vmatprep.subr.bf16.mxu0 %v11044_v9  ;;  %8095 = vmatprep.subr.bf16.mxu1 %v11047_v10  ;;  %v11128_v9 = vld [vmem:[%s14739_s1 + $0x1cc4] ss:$16 sps:$4 sm:$0xff]   ;;  %v11131_v10 = vld [vmem:[%s14739_s1 + $0x1ccc] ss:$16 sps:$4 sm:$0xff]  }
 0x363   :  { %7248 = vmatpush1.bf16.msra.mxu0 %v11042_v13  ;;  %8096 = vmatpush1.bf16.msra.mxu1 %v11045_v14  ;;  %v11126_v13 = vld [vmem:[%s14739_s1 + $0x1cc0] ss:$16 sps:$4 sm:$0xff]   ;;  %v11129_v14 = vld [vmem:[%s14739_s1 + $0x1cc8] ss:$16 sps:$4 sm:$0xff]  }
 0x364   :  { %7249 = vmatprep.subr.bf16.mxu0 %v11050_v15  ;;  %8097 = vmatprep.subr.bf16.mxu1 %v11053_v16  ;;  %v11134_v15 = vld [vmem:[%s14739_s1 + $0x1ce4] ss:$16 sps:$4 sm:$0xff]   ;;  %v11137_v16 = vld [vmem:[%s14739_s1 + $0x1cec] ss:$16 sps:$4 sm:$0xff]  }
 0x367   :  { %7250 = vmatpush1.bf16.msra.mxu0 %v11048_v19  ;;  %8098 = vmatpush1.bf16.msra.mxu1 %v11051_v17  ;;  %v11132_v19 = vld [vmem:[%s14739_s1 + $0x1ce0] ss:$16 sps:$4 sm:$0xff]   ;;  %v11135_v17 = vld [vmem:[%s14739_s1 + $0x1ce8] ss:$16 sps:$4 sm:$0xff]  }
 0x368   :  { %7251 = vmatprep.subr.bf16.mxu0 %v11056_v18  ;;  %8099 = vmatprep.subr.bf16.mxu1 %v11059_v20  ;;  %v11140_v18 = vld [vmem:[%s14739_s1 + $0x1d04] ss:$16 sps:$4 sm:$0xff]   ;;  %v11143_v20 = vld [vmem:[%s14739_s1 + $0x1d0c] ss:$16 sps:$4 sm:$0xff]  }
 0x36b   :  { %7252 = vmatpush1.bf16.msra.mxu0 %v11054_v21  ;;  %8100 = vmatpush1.bf16.msra.mxu1 %v11057_v22  ;;  %v11138_v21 = vld [vmem:[%s14739_s1 + $0x1d00] ss:$16 sps:$4 sm:$0xff]   ;;  %v11141_v22 = vld [vmem:[%s14739_s1 + $0x1d08] ss:$16 sps:$4 sm:$0xff]  }
 0x36c   :  { %7253 = vmatprep.subr.bf16.mxu0 %v11062_v23  ;;  %8101 = vmatprep.subr.bf16.mxu1 %v11065_v24  ;;  %v11146_v23 = vld [vmem:[%s14739_s1 + $0x1d24] ss:$16 sps:$4 sm:$0xff]   ;;  %v11149_v24 = vld [vmem:[%s14739_s1 + $0x1d2c] ss:$16 sps:$4 sm:$0xff]  }
 0x36f   :  { %7254 = vmatpush1.bf16.msra.mxu0 %v11060_v26  ;;  %8102 = vmatpush1.bf16.msra.mxu1 %v11063_v25  ;;  %v11144_v26 = vld [vmem:[%s14739_s1 + $0x1d20] ss:$16 sps:$4 sm:$0xff]   ;;  %v11147_v25 = vld [vmem:[%s14739_s1 + $0x1d28] ss:$16 sps:$4 sm:$0xff]  }
 0x370   :  { %7255 = vmatprep.subr.bf16.mxu0 %v11068_v27  ;;  %8103 = vmatprep.subr.bf16.mxu1 %v11071_v28  ;;  %v11152_v27 = vld [vmem:[%s14739_s1 + $0x1d44] ss:$16 sps:$4 sm:$0xff]   ;;  %v11155_v28 = vld [vmem:[%s14739_s1 + $0x1d4c] ss:$16 sps:$4 sm:$0xff]  }
 0x373   :  { %7256 = vmatpush1.bf16.msra.mxu0 %v11066_v29  ;;  %8104 = vmatpush1.bf16.msra.mxu1 %v11069_v30  ;;  %v11150_v29 = vld [vmem:[%s14739_s1 + $0x1d40] ss:$16 sps:$4 sm:$0xff]   ;;  %v11153_v30 = vld [vmem:[%s14739_s1 + $0x1d48] ss:$16 sps:$4 sm:$0xff]  }
 0x374   :  { %7257 = vmatprep.subr.bf16.mxu0 %v11074_v31  ;;  %8105 = vmatprep.subr.bf16.mxu1 %v11077_v32  ;;  %v11158_v31 = vld [vmem:[%s14739_s1 + $0x1d64] ss:$16 sps:$4 sm:$0xff]   ;;  %v11161_v32 = vld [vmem:[%s14739_s1 + $0x1d6c] ss:$16 sps:$4 sm:$0xff]  }
 0x377   :  { %7258 = vmatpush1.bf16.msra.mxu0 %v11072_v34  ;;  %8106 = vmatpush1.bf16.msra.mxu1 %v11075_v36  ;;  %v11156_v34 = vld [vmem:[%s14739_s1 + $0x1d60] ss:$16 sps:$4 sm:$0xff]   ;;  %v11159_v36 = vld [vmem:[%s14739_s1 + $0x1d68] ss:$16 sps:$4 sm:$0xff]  }
 0x378   :  { %7259 = vmatprep.subr.bf16.mxu0 %v11080_v33  ;;  %8107 = vmatprep.subr.bf16.mxu1 %v11083_v35  ;;  %v11164_v33 = vld [vmem:[%s14739_s1 + $0x1d84] ss:$16 sps:$4 sm:$0xff]   ;;  %v11167_v35 = vld [vmem:[%s14739_s1 + $0x1d8c] ss:$16 sps:$4 sm:$0xff]  }
 0x37b   :  { %7260 = vmatpush1.bf16.msra.mxu0 %v11078_v37  ;;  %8108 = vmatpush1.bf16.msra.mxu1 %v11081_v38  ;;  %v11162_v37 = vld [vmem:[%s14739_s1 + $0x1d80] ss:$16 sps:$4 sm:$0xff]   ;;  %v11165_v38 = vld [vmem:[%s14739_s1 + $0x1d88] ss:$16 sps:$4 sm:$0xff]  }
 0x37c   :  { %7261 = vmatprep.subr.bf16.mxu0 %v11086_v39  ;;  %8109 = vmatprep.subr.bf16.mxu1 %v11089_v40  ;;  %v11170_v39 = vld [vmem:[%s14739_s1 + $0x1da4] ss:$16 sps:$4 sm:$0xff]   ;;  %v11173_v40 = vld [vmem:[%s14739_s1 + $0x1dac] ss:$16 sps:$4 sm:$0xff]  }
 0x37f   :  { %7262 = vmatpush1.bf16.msra.mxu0 %v11084_v42  ;;  %8110 = vmatpush1.bf16.msra.mxu1 %v11087_v44  ;;  %v11168_v42 = vld [vmem:[%s14739_s1 + $0x1da0] ss:$16 sps:$4 sm:$0xff]   ;;  %v11171_v44 = vld [vmem:[%s14739_s1 + $0x1da8] ss:$16 sps:$4 sm:$0xff]  }
 0x380   :  { %7284 = vmatprep.subr.bf16.mxu0 %v11092_v41  ;;  %8132 = vmatprep.subr.bf16.mxu1 %v11095_v43  ;;  %v11176_v41 = vld [vmem:[%s14739_s1 + $0x1dc4] ss:$16 sps:$4 sm:$0xff]   ;;  %v11179_v43 = vld [vmem:[%s14739_s1 + $0x1dcc] ss:$16 sps:$4 sm:$0xff]  }
 0x382   :  { %7264 = vmatmul.mubr.bf16.vlgmr.msra.gmra.mrb[0].mxu0 %v8428_v45  ;;  %8112 = vmatmul.mubr.bf16.vlgmr.msra.gmra.mrb[0].mxu1 %v8428_v45  ;;  %v11174_v45 = vld [vmem:[%s14739_s1 + $0x1dc0] ss:$16 sps:$4 sm:$0xff]  }
 0x383   :  { %7285 = vmatpush1.bf16.msra.mxu0 %v11090_v48  ;;  %8133 = vmatpush1.bf16.msra.mxu1 %v11093_v51  ;;  %v11185_v48 = vld [vmem:[%s14739_s1 + $0x1dec] ss:$16 sps:$4 sm:$0xff]   ;;  %v11180_v51 = vld [vmem:[%s14739_s1 + $0x1de0] ss:$16 sps:$4 sm:$0xff]  }
 0x384   :  { %7286 = vmatprep.subr.bf16.mxu0 %v11098_v52  ;;  %8134 = vmatprep.subr.bf16.mxu1 %v11101_v49  ;;  %v11183_v52 = vld [vmem:[%s14739_s1 + $0x1de8] ss:$16 sps:$4 sm:$0xff]   ;;  %v11188_v49 = vld [vmem:[%s14739_s1 + $0x1e04] ss:$16 sps:$4 sm:$0xff]  }
 0x385   :  { %7273 = vmatprep.mubr.bf16.mxu0 %v8461_v50  ;;  %8121 = vmatprep.mubr.bf16.mxu1 %v8461_v50  ;;  %v11191_v50 = vld [vmem:[%s14739_s1 + $0x1e0c] ss:$16 sps:$4 sm:$0xff]  }
 0x387   :  { %7287 = vmatpush1.bf16.msra.mxu0 %v11096_v53  ;;  %8135 = vmatpush1.bf16.msra.mxu1 %v11099_v54  ;;  %v8430_v53 = vcombine.low %v14300_v60, %v14305_v57  ;;  %v60_v54 = vld [vmem:[%s14740_s0 + $0x170] sm:$0xff]  ;;  %v11197_v57 = vld [vmem:[%s14739_s1 + $0x1e2c] ss:$16 sps:$4 sm:$0xff]  }
 0x388   :  { %7288 = vmatprep.subr.bf16.mxu0 %v11104_v55  ;;  %8136 = vmatprep.subr.bf16.mxu1 %v11107_v56  ;;  %v76_v55 = vld [vmem:[%s14740_s0 + $0x1f0] sm:$0xff] }
 0x389   :  { %v11186_v56 = vld [vmem:[%s14739_s1 + $0x1e00] ss:$16 sps:$4 sm:$0xff]   ;;  %v11194_v60 = vld [vmem:[%s14739_s1 + $0x1e24] ss:$16 sps:$4 sm:$0xff]  }
 0x38a   :  { %7274 = vmatmul.mubr.bf16.gmra.mrb[4].mxu0 %v8460_v59  ;;  %8122 = vmatmul.mubr.bf16.gmra.mrb[4].mxu1 %v8460_v59  ;;  %v11189_v59 = vld [vmem:[%s14739_s1 + $0x1e08] ss:$16 sps:$4 sm:$0xff]  }
 0x38b   :  { %7289 = vmatpush1.bf16.msra.mxu0 %v11102_v58  ;;  %8137 = vmatpush1.bf16.msra.mxu1 %v11105_v61  ;;  %v8463_v58 = vcombine.high %v60_v54, %v76_v55  ;;  %v11192_v61 = vld [vmem:[%s14739_s1 + $0x1e20] ss:$16 sps:$4 sm:$0xff]  }
 0x38c   :  { %7290 = vmatprep.subr.bf16.mxu0 %v11110_v62  ;;  %8138 = vmatprep.subr.bf16.mxu1 %v11113_v63  ;;  %v11195_v62 = vld [vmem:[%s14739_s1 + $0x1e28] ss:$16 sps:$4 sm:$0xff]   ;;  %v11200_v63 = vld [vmem:[%s14739_s1 + $0x1e44] ss:$16 sps:$4 sm:$0xff]  }
 0x38d   :  { %7316 = vmatprep.mubr.bf16.mxu0 %v8431_v0  ;;  %8164 = vmatprep.mubr.bf16.mxu1 %v8431_v0  ;;  %v11203_v0 = vld [vmem:[%s14739_s1 + $0x1e4c] ss:$16 sps:$4 sm:$0xff]  }
 0x38f   :  { %7291 = vmatpush1.bf16.msra.mxu0 %v11108_v3  ;;  %8139 = vmatpush1.bf16.msra.mxu1 %v11111_v4  ;;  %v8462_v3 = vcombine.low %v60_v54, %v76_v55  ;;  %v14512_v4 = vld [vmem:[%s14740_s0 + $0x78] sm:$0xff]  ;;  %v11278_v55 = vld [vmem:[%s14739_s1 + $0x1fe4] ss:$16 sps:$4 sm:$0xff]  }
 0x390   :  { %7292 = vmatprep.subr.bf16.mxu0 %v11116_v1  ;;  %8140 = vmatprep.subr.bf16.mxu1 %v11119_v2  ;;  %v14517_v1 = vld [vmem:[%s14740_s0 + $0xf8] sm:$0xff]  ;;  %v11198_v2 = vld [vmem:[%s14739_s1 + $0x1e40] ss:$16 sps:$4 sm:$0xff]  }
 0x391   :  { %v11273_v54 = vld [vmem:[%s14739_s1 + $0x1fc8] ss:$16 sps:$4 sm:$0xff]  }
 0x393   :  { %7293 = vmatpush1.bf16.msra.mxu0 %v11114_v5  ;;  %8141 = vmatpush1.bf16.msra.mxu1 %v11117_v6  ;;  %v11201_v5 = vld [vmem:[%s14739_s1 + $0x1e48] ss:$16 sps:$4 sm:$0xff]   ;;  %v11206_v6 = vld [vmem:[%s14739_s1 + $0x1e64] ss:$16 sps:$4 sm:$0xff]  }
 0x394   :  { %7294 = vmatprep.subr.bf16.mxu0 %v11122_v7  ;;  %8142 = vmatprep.subr.bf16.mxu1 %v11125_v8  ;;  %v11209_v7 = vld [vmem:[%s14739_s1 + $0x1e6c] ss:$16 sps:$4 sm:$0xff]   ;;  %v8433_v8 = vcombine.high %v14512_v4, %v14517_v1 }
 0x397   :  { %7295 = vmatpush1.bf16.msra.mxu0 %v11120_v11  ;;  %8143 = vmatpush1.bf16.msra.mxu1 %v11123_v12  ;;  %v11204_v11 = vld [vmem:[%s14739_s1 + $0x1e60] ss:$16 sps:$4 sm:$0xff]   ;;  %v11207_v12 = vld [vmem:[%s14739_s1 + $0x1e68] ss:$16 sps:$4 sm:$0xff]  }
 0x398   :  { %7296 = vmatprep.subr.bf16.mxu0 %v11128_v9  ;;  %8144 = vmatprep.subr.bf16.mxu1 %v11131_v10  ;;  %v11212_v9 = vld [vmem:[%s14739_s1 + $0x1e84] ss:$16 sps:$4 sm:$0xff]   ;;  %v11215_v10 = vld [vmem:[%s14739_s1 + $0x1e8c] ss:$16 sps:$4 sm:$0xff]  }
 0x39b   :  { %7297 = vmatpush1.bf16.msra.mxu0 %v11126_v13  ;;  %8145 = vmatpush1.bf16.msra.mxu1 %v11129_v14  ;;  %v11210_v13 = vld [vmem:[%s14739_s1 + $0x1e80] ss:$16 sps:$4 sm:$0xff]   ;;  %v11213_v14 = vld [vmem:[%s14739_s1 + $0x1e88] ss:$16 sps:$4 sm:$0xff]  }
 0x39c   :  { %7298 = vmatprep.subr.bf16.mxu0 %v11134_v15  ;;  %8146 = vmatprep.subr.bf16.mxu1 %v11137_v16  ;;  %v11218_v15 = vld [vmem:[%s14739_s1 + $0x1ea4] ss:$16 sps:$4 sm:$0xff]   ;;  %v11221_v16 = vld [vmem:[%s14739_s1 + $0x1eac] ss:$16 sps:$4 sm:$0xff]  }
 0x39f   :  { %7299 = vmatpush1.bf16.msra.mxu0 %v11132_v19  ;;  %8147 = vmatpush1.bf16.msra.mxu1 %v11135_v17  ;;  %v11216_v19 = vld [vmem:[%s14739_s1 + $0x1ea0] ss:$16 sps:$4 sm:$0xff]   ;;  %v11219_v17 = vld [vmem:[%s14739_s1 + $0x1ea8] ss:$16 sps:$4 sm:$0xff]  }
 0x3a0   :  { %7300 = vmatprep.subr.bf16.mxu0 %v11140_v18  ;;  %8148 = vmatprep.subr.bf16.mxu1 %v11143_v20  ;;  %v11224_v18 = vld [vmem:[%s14739_s1 + $0x1ec4] ss:$16 sps:$4 sm:$0xff]   ;;  %v11227_v20 = vld [vmem:[%s14739_s1 + $0x1ecc] ss:$16 sps:$4 sm:$0xff]  }
 0x3a3   :  { %7301 = vmatpush1.bf16.msra.mxu0 %v11138_v21  ;;  %8149 = vmatpush1.bf16.msra.mxu1 %v11141_v22  ;;  %v11222_v21 = vld [vmem:[%s14739_s1 + $0x1ec0] ss:$16 sps:$4 sm:$0xff]   ;;  %v11225_v22 = vld [vmem:[%s14739_s1 + $0x1ec8] ss:$16 sps:$4 sm:$0xff]  }
 0x3a4   :  { %7302 = vmatprep.subr.bf16.mxu0 %v11146_v23  ;;  %8150 = vmatprep.subr.bf16.mxu1 %v11149_v24  ;;  %v11230_v23 = vld [vmem:[%s14739_s1 + $0x1ee4] ss:$16 sps:$4 sm:$0xff]   ;;  %v11233_v24 = vld [vmem:[%s14739_s1 + $0x1eec] ss:$16 sps:$4 sm:$0xff]  }
 0x3a7   :  { %7303 = vmatpush1.bf16.msra.mxu0 %v11144_v26  ;;  %8151 = vmatpush1.bf16.msra.mxu1 %v11147_v25  ;;  %v11228_v26 = vld [vmem:[%s14739_s1 + $0x1ee0] ss:$16 sps:$4 sm:$0xff]   ;;  %v11231_v25 = vld [vmem:[%s14739_s1 + $0x1ee8] ss:$16 sps:$4 sm:$0xff]  }
 0x3a8   :  { %7304 = vmatprep.subr.bf16.mxu0 %v11152_v27  ;;  %8152 = vmatprep.subr.bf16.mxu1 %v11155_v28  ;;  %v11236_v27 = vld [vmem:[%s14739_s1 + $0x1f04] ss:$16 sps:$4 sm:$0xff]   ;;  %v11239_v28 = vld [vmem:[%s14739_s1 + $0x1f0c] ss:$16 sps:$4 sm:$0xff]  }
 0x3ab   :  { %7305 = vmatpush1.bf16.msra.mxu0 %v11150_v29  ;;  %8153 = vmatpush1.bf16.msra.mxu1 %v11153_v30  ;;  %v11234_v29 = vld [vmem:[%s14739_s1 + $0x1f00] ss:$16 sps:$4 sm:$0xff]   ;;  %v11237_v30 = vld [vmem:[%s14739_s1 + $0x1f08] ss:$16 sps:$4 sm:$0xff]  }
 0x3ac   :  { %7306 = vmatprep.subr.bf16.mxu0 %v11158_v31  ;;  %8154 = vmatprep.subr.bf16.mxu1 %v11161_v32  ;;  %v11242_v31 = vld [vmem:[%s14739_s1 + $0x1f24] ss:$16 sps:$4 sm:$0xff]   ;;  %v11245_v32 = vld [vmem:[%s14739_s1 + $0x1f2c] ss:$16 sps:$4 sm:$0xff]  }
 0x3af   :  { %7307 = vmatpush1.bf16.msra.mxu0 %v11156_v34  ;;  %8155 = vmatpush1.bf16.msra.mxu1 %v11159_v36  ;;  %v11240_v34 = vld [vmem:[%s14739_s1 + $0x1f20] ss:$16 sps:$4 sm:$0xff]   ;;  %v11243_v36 = vld [vmem:[%s14739_s1 + $0x1f28] ss:$16 sps:$4 sm:$0xff]  }
 0x3b0   :  { %7308 = vmatprep.subr.bf16.mxu0 %v11164_v33  ;;  %8156 = vmatprep.subr.bf16.mxu1 %v11167_v35  ;;  %v11248_v33 = vld [vmem:[%s14739_s1 + $0x1f44] ss:$16 sps:$4 sm:$0xff]   ;;  %v11251_v35 = vld [vmem:[%s14739_s1 + $0x1f4c] ss:$16 sps:$4 sm:$0xff]  }
 0x3b3   :  { %7309 = vmatpush1.bf16.msra.mxu0 %v11162_v37  ;;  %8157 = vmatpush1.bf16.msra.mxu1 %v11165_v38  ;;  %v11246_v37 = vld [vmem:[%s14739_s1 + $0x1f40] ss:$16 sps:$4 sm:$0xff]   ;;  %v11249_v38 = vld [vmem:[%s14739_s1 + $0x1f48] ss:$16 sps:$4 sm:$0xff]  }
 0x3b4   :  { %7310 = vmatprep.subr.bf16.mxu0 %v11170_v39  ;;  %8158 = vmatprep.subr.bf16.mxu1 %v11173_v40  ;;  %v11254_v39 = vld [vmem:[%s14739_s1 + $0x1f64] ss:$16 sps:$4 sm:$0xff]   ;;  %v11257_v40 = vld [vmem:[%s14739_s1 + $0x1f6c] ss:$16 sps:$4 sm:$0xff]  }
 0x3b7   :  { %7311 = vmatpush1.bf16.msra.mxu0 %v11168_v42  ;;  %8159 = vmatpush1.bf16.msra.mxu1 %v11171_v44  ;;  %v11252_v42 = vld [vmem:[%s14739_s1 + $0x1f60] ss:$16 sps:$4 sm:$0xff]   ;;  %v11255_v44 = vld [vmem:[%s14739_s1 + $0x1f68] ss:$16 sps:$4 sm:$0xff]  }
 0x3b8   :  { %7312 = vmatprep.subr.bf16.mxu0 %v11176_v41  ;;  %8160 = vmatprep.subr.bf16.mxu1 %v11179_v43  ;;  %v11260_v41 = vld [vmem:[%s14739_s1 + $0x1f84] ss:$16 sps:$4 sm:$0xff]   ;;  %v11263_v43 = vld [vmem:[%s14739_s1 + $0x1f8c] ss:$16 sps:$4 sm:$0xff]  }
 0x3bb   :  { %7313 = vmatpush1.bf16.msra.mxu0 %v11174_v45  ;;  %8161 = vmatpush1.bf16.msra.mxu1 %v11177_v46  ;;  %v11258_v45 = vld [vmem:[%s14739_s1 + $0x1f80] ss:$16 sps:$4 sm:$0xff]   ;;  %v11261_v46 = vld [vmem:[%s14739_s1 + $0x1f88] ss:$16 sps:$4 sm:$0xff]  }
 0x3bc   :  { %7314 = vmatprep.subr.bf16.mxu0 %v11182_v47  ;;  %8162 = vmatprep.subr.bf16.mxu1 %v11185_v48  ;;  %v11266_v47 = vld [vmem:[%s14739_s1 + $0x1fa4] ss:$16 sps:$4 sm:$0xff]   ;;  %v11269_v48 = vld [vmem:[%s14739_s1 + $0x1fac] ss:$16 sps:$4 sm:$0xff]  }
 0x3bf   :  { %7315 = vmatpush1.bf16.msra.mxu0 %v11180_v51  ;;  %8163 = vmatpush1.bf16.msra.mxu1 %v11183_v52  ;;  %v11264_v51 = vld [vmem:[%s14739_s1 + $0x1fa0] ss:$16 sps:$4 sm:$0xff]   ;;  %v11267_v52 = vld [vmem:[%s14739_s1 + $0x1fa8] ss:$16 sps:$4 sm:$0xff]  }
 0x3c0   :  { %7337 = vmatprep.subr.bf16.mxu0 %v11188_v49  ;;  %8185 = vmatprep.subr.bf16.mxu1 %v11191_v50  ;;  %v11272_v49 = vld [vmem:[%s14739_s1 + $0x1fc4] ss:$16 sps:$4 sm:$0xff]   ;;  %v11275_v50 = vld [vmem:[%s14739_s1 + $0x1fcc] ss:$16 sps:$4 sm:$0xff]  }
 0x3c2   :  { %7317 = vmatmul.mubr.bf16.vlgmr.msra.gmra.mrb[0].mxu0 %v8430_v53  ;;  %8165 = vmatmul.mubr.bf16.vlgmr.msra.gmra.mrb[0].mxu1 %v8430_v53  ;;  %v11270_v53 = vld [vmem:[%s14739_s1 + $0x1fc0] ss:$16 sps:$4 sm:$0xff]  }
 0x3c3   :  { %7338 = vmatpush1.bf16.msra.mxu0 %v11186_v56  ;;  %8186 = vmatpush1.bf16.msra.mxu1 %v11189_v59  ;;  %v11281_v56 = vld [vmem:[%s14739_s1 + $0x1fec] ss:$16 sps:$4 sm:$0xff]   ;;  %v11276_v59 = vld [vmem:[%s14739_s1 + $0x1fe0] ss:$16 sps:$4 sm:$0xff]  }
 0x3c4   :  { %7339 = vmatprep.subr.bf16.mxu0 %v11194_v60  ;;  %8187 = vmatprep.subr.bf16.mxu1 %v11197_v57  ;;  %v11279_v60 = vld [vmem:[%s14739_s1 + $0x1fe8] ss:$16 sps:$4 sm:$0xff]  }
 0x3c5   :  { %7326 = vmatprep.mubr.bf16.mxu0 %v8463_v58  ;;  %8174 = vmatprep.mubr.bf16.mxu1 %v8463_v58  ;;  %v61_v57 = vld [vmem:[%s14740_s0 + $0x178] sm:$0xff] }
 0x3c6   :  { %v77_v58 = vld [vmem:[%s14740_s0 + $0x1f8] sm:$0xff] }
 0x3c7   :  { %7340 = vmatpush1.bf16.msra.mxu0 %v11192_v61  ;;  %8188 = vmatpush1.bf16.msra.mxu1 %v11195_v62  ;;  %v8432_v61 = vcombine.low %v14512_v4, %v14517_v1  ;;  %v8465_v62 = vcombine.high %v61_v57, %v77_v58 }
 0x3c8   :  { %7341 = vmatprep.subr.bf16.mxu0 %v11200_v63  ;;  %8189 = vmatprep.subr.bf16.mxu1 %v11203_v0  ;;  %v8464_v63 = vcombine.low %v61_v57, %v77_v58 }
 0x3ca   :  { %7327 = vmatmul.mubr.bf16.gmra.mrb[4].mxu0 %v8462_v3  ;;  %8175 = vmatmul.mubr.bf16.gmra.mrb[4].mxu1 %v8462_v3 }
 0x3cb   :  { %7342 = vmatpush1.bf16.msra.mxu0 %v11198_v2  ;;  %8190 = vmatpush1.bf16.msra.mxu1 %v11201_v5 }
 0x3cc   :  { %7343 = vmatprep.subr.bf16.mxu0 %v11206_v6  ;;  %8191 = vmatprep.subr.bf16.mxu1 %v11209_v7 }
 0x3cd   :  { %7369 = vmatprep.mubr.bf16.mxu0 %v8433_v8  ;;  %8217 = vmatprep.mubr.bf16.mxu1 %v8433_v8 }
 0x3cf   :  { %7344 = vmatpush1.bf16.msra.mxu0 %v11204_v11  ;;  %8192 = vmatpush1.bf16.msra.mxu1 %v11207_v12 }
 0x3d0   :  { %7345 = vmatprep.subr.bf16.mxu0 %v11212_v9  ;;  %8193 = vmatprep.subr.bf16.mxu1 %v11215_v10 }
 0x3d3   :  { %7346 = vmatpush1.bf16.msra.mxu0 %v11210_v13  ;;  %8194 = vmatpush1.bf16.msra.mxu1 %v11213_v14 }
 0x3d4   :  { %7347 = vmatprep.subr.bf16.mxu0 %v11218_v15  ;;  %8195 = vmatprep.subr.bf16.mxu1 %v11221_v16 }
 0x3d7   :  { %7348 = vmatpush1.bf16.msra.mxu0 %v11216_v19  ;;  %8196 = vmatpush1.bf16.msra.mxu1 %v11219_v17 }
 0x3d8   :  { %7349 = vmatprep.subr.bf16.mxu0 %v11224_v18  ;;  %8197 = vmatprep.subr.bf16.mxu1 %v11227_v20 }
 0x3db   :  { %7350 = vmatpush1.bf16.msra.mxu0 %v11222_v21  ;;  %8198 = vmatpush1.bf16.msra.mxu1 %v11225_v22 }
 0x3dc   :  { %7351 = vmatprep.subr.bf16.mxu0 %v11230_v23  ;;  %8199 = vmatprep.subr.bf16.mxu1 %v11233_v24 }
 0x3df   :  { %7352 = vmatpush1.bf16.msra.mxu0 %v11228_v26  ;;  %8200 = vmatpush1.bf16.msra.mxu1 %v11231_v25 }
 0x3e0   :  { %7353 = vmatprep.subr.bf16.mxu0 %v11236_v27  ;;  %8201 = vmatprep.subr.bf16.mxu1 %v11239_v28 }
 0x3e3   :  { %7354 = vmatpush1.bf16.msra.mxu0 %v11234_v29  ;;  %8202 = vmatpush1.bf16.msra.mxu1 %v11237_v30 }
 0x3e4   :  { %7355 = vmatprep.subr.bf16.mxu0 %v11242_v31  ;;  %8203 = vmatprep.subr.bf16.mxu1 %v11245_v32 }
 0x3e7   :  { %7356 = vmatpush1.bf16.msra.mxu0 %v11240_v34  ;;  %8204 = vmatpush1.bf16.msra.mxu1 %v11243_v36 }
 0x3e8   :  { %7357 = vmatprep.subr.bf16.mxu0 %v11248_v33  ;;  %8205 = vmatprep.subr.bf16.mxu1 %v11251_v35 }
 0x3eb   :  { %7358 = vmatpush1.bf16.msra.mxu0 %v11246_v37  ;;  %8206 = vmatpush1.bf16.msra.mxu1 %v11249_v38 }
 0x3ec   :  { %7359 = vmatprep.subr.bf16.mxu0 %v11254_v39  ;;  %8207 = vmatprep.subr.bf16.mxu1 %v11257_v40 }
 0x3ef   :  { %7360 = vmatpush1.bf16.msra.mxu0 %v11252_v42  ;;  %8208 = vmatpush1.bf16.msra.mxu1 %v11255_v44 }
 0x3f0   :  { %7361 = vmatprep.subr.bf16.mxu0 %v11260_v41  ;;  %8209 = vmatprep.subr.bf16.mxu1 %v11263_v43 }
 0x3f3   :  { %7362 = vmatpush1.bf16.msra.mxu0 %v11258_v45  ;;  %8210 = vmatpush1.bf16.msra.mxu1 %v11261_v46 }
 0x3f4   :  { %7363 = vmatprep.subr.bf16.mxu0 %v11266_v47  ;;  %8211 = vmatprep.subr.bf16.mxu1 %v11269_v48 }
 0x3f7   :  { %7364 = vmatpush1.bf16.msra.mxu0 %v11264_v51  ;;  %8212 = vmatpush1.bf16.msra.mxu1 %v11267_v52 }
 0x3f8   :  { %7365 = vmatprep.subr.bf16.mxu0 %v11272_v49  ;;  %8213 = vmatprep.subr.bf16.mxu1 %v11275_v50 }
 0x3fb   :  { %7366 = vmatpush1.bf16.msra.mxu0 %v11270_v53  ;;  %8214 = vmatpush1.bf16.msra.mxu1 %v11273_v54 }
 0x3fc   :  { %7367 = vmatprep.subr.bf16.mxu0 %v11278_v55  ;;  %8215 = vmatprep.subr.bf16.mxu1 %v11281_v56 }
 0x3ff   :  { %7368 = vmatpush1.bf16.msra.mxu0 %v11276_v59  ;;  %8216 = vmatpush1.bf16.msra.mxu1 %v11279_v60 }
 0x402   :  { %7370 = vmatmul.mubr.bf16.vlgmr.msra.gmra.mrb[0].mxu0 %v8432_v61  ;;  %8218 = vmatmul.mubr.bf16.vlgmr.msra.gmra.mrb[0].mxu1 %v8432_v61 }
 0x403   :  { %7379 = vmatprep.mubr.bf16.mxu0 %v8465_v62  ;;  %8227 = vmatprep.mubr.bf16.mxu1 %v8465_v62 }
 0x40a   :  { %7380 = vmatmul.mubr.bf16.gmra.mrb[4].mxu0 %v8464_v63  ;;  %8228 = vmatmul.mubr.bf16.gmra.mrb[4].mxu1 %v8464_v63 }
 0x4d5   :  { %v7371_v0 = vpop.f32.mrb[0].mxu0  ;;  %v8219_v3 = vpop.f32.mrb[0].mxu1 }
 0x4d6   :  { %v8330_v2 = vmul.f32 %v7371_v0, %v7371_v0  ;;  %v8332_v5 = vmul.f32 %v8219_v3, %v8219_v3  ;;  %v7373_v6 = vpop.f32.mrb[1].mxu0  ;;  %v8221_v7 = vpop.f32.mrb[1].mxu1 }
 0x4d7   :  { %v9498_v8 = vpack.c.bf16 %v7373_v6, %v7371_v0  ;;  %v8331_v11 = vmul.f32 %v7373_v6, %v7373_v6  ;;  %v9499_v12 = vpack.c.bf16 %v8221_v7, %v8219_v3  ;;  %v8333_v4 = vmul.f32 %v8221_v7, %v8221_v7  ;;  %v7375_v1 = vpop.f32.mrb[2].mxu0  ;;  %v8223_v9 = vpop.f32.mrb[2].mxu1 }
 0x4d8   :  { %v8294_v10 = vadd.f32 %v7375_v1, %v7371_v0  ;;  %v8334_v13 = vmul.f32 %v7375_v1, %v7375_v1  ;;  %v8312_v14 = vadd.f32 %v8223_v9, %v8219_v3  ;;  %v8336_v15 = vmul.f32 %v8223_v9, %v8223_v9  ;;  %v7377_v16 = vpop.f32.mrb[3].mxu0  ;;  %v8225_v19 = vpop.f32.mrb[3].mxu1 }
 0x4d9   :  { %8286 = vst [vmem:[%s14741_s2] sm:$0xff] %v9498_v8  ;;  %8287 = vst [vmem:[%s14741_s2 + $0x8] sm:$0xff] %v9499_v12  ;;  %v9500_v17 = vpack.c.bf16 %v7377_v16, %v7375_v1  ;;  %v8303_v18 = vadd.f32 %v7377_v16, %v7373_v6  ;;  %v8335_v20 = vmul.f32 %v7377_v16, %v7377_v16 }
 0x4da   :  { %v9501_v21 = vpack.c.bf16 %v8225_v19, %v8223_v9  ;;  %v8346_v22 = vadd.f32 %v8334_v13, %v8330_v2  ;;  %v8364_v23 = vadd.f32 %v8336_v15, %v8332_v5  ;;  %v8321_v24 = vadd.f32 %v8225_v19, %v8221_v7 }
 0x4db   :  { %v8337_v26 = vmul.f32 %v8225_v19, %v8225_v19  ;;  %8288 = vst [vmem:[%s14741_s2 + $0x10] sm:$0xff] %v9500_v17  ;;  %v8355_v25 = vadd.f32 %v8335_v20, %v8331_v11 }
 0x4dc   :  { %8289 = vst [vmem:[%s14741_s2 + $0x18] sm:$0xff] %v9501_v21 }
 0x4dd   :  { %v8373_v27 = vadd.f32 %v8337_v26, %v8333_v4  ;;  %v7381_v28 = vpop.f32.mrb[4].mxu0  ;;  %v8229_v29 = vpop.f32.mrb[4].mxu1 }
 0x4de   :  { %v8295_v30 = vadd.f32 %v8294_v10, %v7381_v28  ;;  %v8338_v31 = vmul.f32 %v7381_v28, %v7381_v28  ;;  %v8313_v32 = vadd.f32 %v8312_v14, %v8229_v29  ;;  %v8340_v34 = vmul.f32 %v8229_v29, %v8229_v29  ;;  %v7383_v36 = vpop.f32.mrb[5].mxu0  ;;  %v8231_v33 = vpop.f32.mrb[5].mxu1 }
 0x4df   :  { %v9502_v35 = vpack.c.bf16 %v7383_v36, %v7381_v28  ;;  %v8304_v37 = vadd.f32 %v8303_v18, %v7383_v36  ;;  %v8339_v38 = vmul.f32 %v7383_v36, %v7383_v36  ;;  %v9503_v39 = vpack.c.bf16 %v8231_v33, %v8229_v29  ;;  %v7385_v40 = vpop.f32.mrb[6].mxu0  ;;  %v8233_v42 = vpop.f32.mrb[6].mxu1 }
 0x4e0   :  { %v8347_v44 = vadd.f32 %v8346_v22, %v8338_v31  ;;  %v8365_v41 = vadd.f32 %v8364_v23, %v8340_v34  ;;  %v8322_v43 = vadd.f32 %v8321_v24, %v8231_v33  ;;  %v8341_v45 = vmul.f32 %v8231_v33, %v8231_v33  ;;  %v7387_v46 = vpop.f32.mrb[7].mxu0  ;;  %v8235_v47 = vpop.f32.mrb[7].mxu1 }
 0x4e1   :  { %8290 = vst [vmem:[%s14741_s2 + $0x20] sm:$0xff] %v9502_v35  ;;  %v8356_v48 = vadd.f32 %v8355_v25, %v8339_v38  ;;  %8291 = vst [vmem:[%s14741_s2 + $0x28] sm:$0xff] %v9503_v39  ;;  %v8296_v51 = vadd.f32 %v8295_v30, %v7385_v40  ;;  %v8342_v52 = vmul.f32 %v7385_v40, %v7385_v40 }
 0x4e2   :  { %v8314_v49 = vadd.f32 %v8313_v32, %v8233_v42  ;;  %v8374_v50 = vadd.f32 %v8373_v27, %v8341_v45  ;;  %v8344_v53 = vmul.f32 %v8233_v42, %v8233_v42  ;;  %v9504_v54 = vpack.c.bf16 %v7387_v46, %v7385_v40 }
 0x4e3   :  { %v8305_v55 = vadd.f32 %v8304_v37, %v7387_v46  ;;  %v8297_v56 = vrot.slane %v8296_v51, 4  ;;  %v8348_v59 = vadd.f32 %v8347_v44, %v8342_v52  ;;  %v8343_v57 = vmul.f32 %v7387_v46, %v7387_v46 }
 0x4e4   :  { %v8315_v60 = vrot.slane %v8314_v49, 4  ;;  %v8366_v58 = vadd.f32 %v8365_v41, %v8344_v53  ;;  %8292 = vst [vmem:[%s14741_s2 + $0x30] sm:$0xff] %v9504_v54  ;;  %v9505_v62 = vpack.c.bf16 %v8235_v47, %v8233_v42  ;;  %v8323_v63 = vadd.f32 %v8322_v43, %v8235_v47 }
 0x4e5   :  { %v8306_v61 = vrot.slane %v8305_v55, 4  ;;  %v8298_v0 = vadd.f32 %v8297_v56, %v8296_v51  ;;  %v8349_v3 = vrot.slane %v8348_v59, 4  ;;  %v8357_v5 = vadd.f32 %v8356_v48, %v8343_v57 }
 0x4e6   :  { %v8316_v2 = vadd.f32 %v8315_v60, %v8314_v49  ;;  %v8367_v6 = vrot.slane %v8366_v58, 4  ;;  %8293 = vst [vmem:[%s14741_s2 + $0x38] sm:$0xff] %v9505_v62  ;;  %v8324_v8 = vrot.slane %v8323_v63, 4  ;;  %v8345_v11 = vmul.f32 %v8235_v47, %v8235_v47 }
 0x4e7   :  { %v8307_v7 = vadd.f32 %v8306_v61, %v8305_v55  ;;  %v8299_v12 = vrot.slane %v8298_v0, 2  ;;  %v8350_v4 = vadd.f32 %v8349_v3, %v8348_v59  ;;  %v8358_v9 = vrot.slane %v8357_v5, 4 }
 0x4e8   :  { %v8317_v1 = vrot.slane %v8316_v2, 2  ;;  %v8368_v10 = vadd.f32 %v8367_v6, %v8366_v58  ;;  %v8325_v14 = vadd.f32 %v8324_v8, %v8323_v63  ;;  %v8375_v15 = vadd.f32 %v8374_v50, %v8345_v11 }
 0x4e9   :  { %v8308_v13 = vrot.slane %v8307_v7, 2  ;;  %v8300_v16 = vadd.f32 %v8299_v12, %v8298_v0  ;;  %v8351_v19 = vrot.slane %v8350_v4, 2  ;;  %v8359_v18 = vadd.f32 %v8358_v9, %v8357_v5 }
 0x4ea   :  { %v8318_v17 = vadd.f32 %v8317_v1, %v8316_v2  ;;  %v8369_v20 = vrot.slane %v8368_v10, 2  ;;  %v8326_v22 = vrot.slane %v8325_v14, 2  ;;  %v8376_v23 = vrot.slane %v8375_v15, 4 }
 0x4eb   :  { %v8309_v21 = vadd.f32 %v8308_v13, %v8307_v7  ;;  %v8301_v24 = vrot.slane %v8300_v16, 1  ;;  %v8352_v26 = vadd.f32 %v8351_v19, %v8350_v4  ;;  %v8360_v27 = vrot.slane %v8359_v18, 2 }
 0x4ec   :  { %v8319_v25 = vrot.slane %v8318_v17, 1  ;;  %v8370_v28 = vadd.f32 %v8369_v20, %v8368_v10  ;;  %v8327_v30 = vadd.f32 %v8326_v22, %v8325_v14  ;;  %v8377_v31 = vadd.f32 %v8376_v23, %v8375_v15 }
 0x4ed   :  { %v8310_v29 = vrot.slane %v8309_v21, 1  ;;  %v8302_v32 = vadd.f32 %v8301_v24, %v8300_v16  ;;  %v8353_v34 = vrot.slane %v8352_v26, 1  ;;  %v8361_v33 = vadd.f32 %v8360_v27, %v8359_v18 }
 0x4ee   :  { %v8320_v36 = vadd.f32 %v8319_v25, %v8318_v17  ;;  %v8371_v35 = vrot.slane %v8370_v28, 1  ;;  %v8328_v38 = vrot.slane %v8327_v30, 1  ;;  %v8378_v39 = vrot.slane %v8377_v31, 2 }
 0x4ef   :  { %v8311_v37 = vadd.f32 %v8310_v29, %v8309_v21  ;;  %v8354_v40 = vadd.f32 %v8353_v34, %v8352_v26  ;;  %8382 = vst [vmem:[%s14742_s3] sm:$0xff] %v8302_v32  ;;  %v8362_v42 = vrot.slane %v8361_v33, 1 }
 0x4f0   :  { %8384 = vst [vmem:[%s14742_s3 + $0x10] sm:$0xff] %v8320_v36  ;;  %v8372_v44 = vadd.f32 %v8371_v35, %v8370_v28  ;;  %v8329_v41 = vadd.f32 %v8328_v38, %v8327_v30  ;;  %v8379_v43 = vadd.f32 %v8378_v39, %v8377_v31 }
 0x4f1   :  { %8383 = vst [vmem:[%s14742_s3 + $0x8] sm:$0xff] %v8311_v37  ;;  %8386 = vst [vmem:[%s14743_s4] sm:$0xff] %v8354_v40  ;;  %v8363_v45 = vadd.f32 %v8362_v42, %v8361_v33 }
 0x4f2   :  { %8388 = vst [vmem:[%s14743_s4 + $0x10] sm:$0xff] %v8372_v44  ;;  %v8380_v46 = vrot.slane %v8379_v43, 1  ;;  %8385 = vst [vmem:[%s14742_s3 + $0x18] sm:$0xff] %v8329_v41 }
 0x4f3   :  { %8387 = vst [vmem:[%s14743_s4 + $0x8] sm:$0xff] %v8363_v45 }
 0x4f4   :  { %v8381_v47 = vadd.f32 %v8380_v46, %v8379_v43 }
 0x4f6   :  { %8389 = vst [vmem:[%s14743_s4 + $0x18] sm:$0xff] %v8381_v47 }

// kernel: discriminator_forward.15
= control target key start
LH: loop header
LB: loop body
LE: loop exit
PB: predicated region body
PF: predicated region fallthrough
CT: control target
= control target key end

     0   :  { %s9452_s1 = inlined_call_operand.vmem [shape: bf16[8192,128], index: 1, kind: input, shape index: {}]   ;;  %s9453_s0 = inlined_call_operand.vmem [shape: bf16[16,8192], index: 0, kind: input, shape index: {}]   ;;  %s9454_s2 = inlined_call_operand.vmem [shape: f32[1,128], index: 2, kind: input, shape index: {}]   ;;  %s9455_s3 = inlined_call_operand.vmem [shape: bf16[16,128], index: 3, kind: output, shape index: {}]  }
   0x1   :  { %v7130_v0 = vld [vmem:[%s9452_s1 + $0x40] sm:$0xff]   ;;  %v7134_v4 = vld [vmem:[%s9452_s1 + $0x48] sm:$0xff]   ;;  %v7138_v8 = vld [vmem:[%s9452_s1 + $0x50] sm:$0xff]  }
   0x2   :  { %v7131_v1 = vld [vmem:[%s9452_s1 + $0xc0] sm:$0xff]   ;;  %6426 = vmatprep.subr.bf16.mxu0 %v7130_v0  ;;  %v7135_v5 = vld [vmem:[%s9452_s1 + $0xc8] sm:$0xff]   ;;  %v7139_v9 = vld [vmem:[%s9452_s1 + $0xd0] sm:$0xff]  }
   0x3   :  { %v7132_v2 = vld [vmem:[%s9452_s1] sm:$0xff]   ;;  %6448 = vmatprep.subr.bf16.mxu1 %v7131_v1  ;;  %v7136_v6 = vld [vmem:[%s9452_s1 + $0x8] sm:$0xff]   ;;  %v7140_v10 = vld [vmem:[%s9452_s1 + $0x10] sm:$0xff]  }
   0x4   :  { %v7133_v3 = vld [vmem:[%s9452_s1 + $0x80] sm:$0xff]   ;;  %6427 = vmatpush3.bf16.msra.mxu0 %v7132_v2  ;;  %v7137_v7 = vld [vmem:[%s9452_s1 + $0x88] sm:$0xff]   ;;  %v7141_v11 = vld [vmem:[%s9452_s1 + $0x90] sm:$0xff]  }
   0x5   :  { %6449 = vmatpush3.bf16.msra.mxu1 %v7133_v3  ;;  %6428 = vmatprep.subr.bf16.mxu0 %v7134_v4  ;;  %v7142_v12 = vld [vmem:[%s9452_s1 + $0x58] sm:$0xff]   ;;  %v7146_v16 = vld [vmem:[%s9452_s1 + $0x60] sm:$0xff]   ;;  %v7150_v20 = vld [vmem:[%s9452_s1 + $0x68] sm:$0xff]  }
   0x6   :  { %6450 = vmatprep.subr.bf16.mxu1 %v7135_v5  ;;  %v7143_v13 = vld [vmem:[%s9452_s1 + $0xd8] sm:$0xff]   ;;  %v7147_v17 = vld [vmem:[%s9452_s1 + $0xe0] sm:$0xff]   ;;  %v7151_v21 = vld [vmem:[%s9452_s1 + $0xe8] sm:$0xff]  }
   0x7   :  { %v7144_v14 = vld [vmem:[%s9452_s1 + $0x18] sm:$0xff]   ;;  %v7148_v18 = vld [vmem:[%s9452_s1 + $0x20] sm:$0xff]   ;;  %v7152_v22 = vld [vmem:[%s9452_s1 + $0x28] sm:$0xff]  }
   0x8   :  { %6429 = vmatpush3.bf16.msra.mxu0 %v7136_v6  ;;  %v7145_v15 = vld [vmem:[%s9452_s1 + $0x98] sm:$0xff]   ;;  %v7149_v19 = vld [vmem:[%s9452_s1 + $0xa0] sm:$0xff]   ;;  %v7153_v23 = vld [vmem:[%s9452_s1 + $0xa8] sm:$0xff]  }
   0x9   :  { %6451 = vmatpush3.bf16.msra.mxu1 %v7137_v7  ;;  %6430 = vmatprep.subr.bf16.mxu0 %v7138_v8  ;;  %v7154_v24 = vld [vmem:[%s9452_s1 + $0x70] sm:$0xff]   ;;  %v7158_v28 = vld [vmem:[%s9452_s1 + $0x78] sm:$0xff]   ;;  %v15_v32 = vld [vmem:[%s9453_s0] sm:$0xff] }
   0xa   :  { %6452 = vmatprep.subr.bf16.mxu1 %v7139_v9  ;;  %v7155_v25 = vld [vmem:[%s9452_s1 + $0xf0] sm:$0xff]   ;;  %v7159_v29 = vld [vmem:[%s9452_s1 + $0xf8] sm:$0xff]   ;;  %v47_v33 = vld [vmem:[%s9453_s0 + $0x100] sm:$0xff] }
   0xb   :  { %v7156_v26 = vld [vmem:[%s9452_s1 + $0x30] sm:$0xff]   ;;  %v7160_v30 = vld [vmem:[%s9452_s1 + $0x38] sm:$0xff]   ;;  %v16_v34 = vld [vmem:[%s9453_s0 + $0x8] sm:$0xff]  ;;  %v5841_v35 = vcombine.low %v15_v32, %v47_v33  ;;  %v5842_v36 = vcombine.high %v15_v32, %v47_v33 }
   0xc   :  { %6431 = vmatpush3.bf16.msra.mxu0 %v7140_v10  ;;  %v7157_v27 = vld [vmem:[%s9452_s1 + $0xb0] sm:$0xff]   ;;  %v7161_v31 = vld [vmem:[%s9452_s1 + $0xb8] sm:$0xff]   ;;  %v48_v37 = vld [vmem:[%s9453_s0 + $0x108] sm:$0xff] }
   0xd   :  { %6453 = vmatpush3.bf16.msra.mxu1 %v7141_v11  ;;  %6432 = vmatprep.subr.bf16.mxu0 %v7142_v12  ;;  %v5843_v38 = vcombine.low %v16_v34, %v48_v37  ;;  %v5844_v39 = vcombine.high %v16_v34, %v48_v37  ;;  %v7162_v40 = vld [vmem:[%s9452_s1 + $0x140] sm:$0xff]   ;;  %v7166_v44 = vld [vmem:[%s9452_s1 + $0x148] sm:$0xff]   ;;  %v7170_v48 = vld [vmem:[%s9452_s1 + $0x150] sm:$0xff]  }
   0xe   :  { %6454 = vmatprep.subr.bf16.mxu1 %v7143_v13  ;;  %4534 = vmatprep.mubr.bf16.mxu0 %v5842_v36  ;;  %v7163_v41 = vld [vmem:[%s9452_s1 + $0x1c0] sm:$0xff]   ;;  %v7167_v45 = vld [vmem:[%s9452_s1 + $0x1c8] sm:$0xff]   ;;  %v7171_v49 = vld [vmem:[%s9452_s1 + $0x1d0] sm:$0xff]  }
   0xf   :  { %4575 = vmatprep.mubr.bf16.mxu1 %v5844_v39  ;;  %v7164_v42 = vld [vmem:[%s9452_s1 + $0x100] sm:$0xff]   ;;  %v7168_v46 = vld [vmem:[%s9452_s1 + $0x108] sm:$0xff]   ;;  %v7172_v50 = vld [vmem:[%s9452_s1 + $0x110] sm:$0xff]  }
  0x10   :  { %6433 = vmatpush3.bf16.msra.mxu0 %v7144_v14  ;;  %v7165_v43 = vld [vmem:[%s9452_s1 + $0x180] sm:$0xff]   ;;  %v7169_v47 = vld [vmem:[%s9452_s1 + $0x188] sm:$0xff]   ;;  %v7173_v51 = vld [vmem:[%s9452_s1 + $0x190] sm:$0xff]  }
  0x11   :  { %6455 = vmatpush3.bf16.msra.mxu1 %v7145_v15  ;;  %6434 = vmatprep.subr.bf16.mxu0 %v7146_v16  ;;  %v7174_v52 = vld [vmem:[%s9452_s1 + $0x158] sm:$0xff]   ;;  %v7178_v56 = vld [vmem:[%s9452_s1 + $0x160] sm:$0xff]   ;;  %v7182_v60 = vld [vmem:[%s9452_s1 + $0x168] sm:$0xff]  }
  0x12   :  { %6456 = vmatprep.subr.bf16.mxu1 %v7147_v17  ;;  %v7175_v53 = vld [vmem:[%s9452_s1 + $0x1d8] sm:$0xff]   ;;  %v7179_v57 = vld [vmem:[%s9452_s1 + $0x1e0] sm:$0xff]   ;;  %v7183_v61 = vld [vmem:[%s9452_s1 + $0x1e8] sm:$0xff]  }
  0x13   :  { %v7176_v54 = vld [vmem:[%s9452_s1 + $0x118] sm:$0xff]   ;;  %v7180_v58 = vld [vmem:[%s9452_s1 + $0x120] sm:$0xff]   ;;  %v7184_v62 = vld [vmem:[%s9452_s1 + $0x128] sm:$0xff]  }
  0x14   :  { %6435 = vmatpush3.bf16.msra.mxu0 %v7148_v18  ;;  %v7177_v55 = vld [vmem:[%s9452_s1 + $0x198] sm:$0xff]   ;;  %v7181_v59 = vld [vmem:[%s9452_s1 + $0x1a0] sm:$0xff]   ;;  %v7185_v63 = vld [vmem:[%s9452_s1 + $0x1a8] sm:$0xff]  }
  0x15   :  { %6457 = vmatpush3.bf16.msra.mxu1 %v7149_v19  ;;  %6436 = vmatprep.subr.bf16.mxu0 %v7150_v20  ;;  %v7186_v0 = vld [vmem:[%s9452_s1 + $0x170] sm:$0xff]   ;;  %v7190_v4 = vld [vmem:[%s9452_s1 + $0x178] sm:$0xff]   ;;  %v7194_v16 = vld [vmem:[%s9452_s1 + $0x240] sm:$0xff]  }
  0x16   :  { %6458 = vmatprep.subr.bf16.mxu1 %v7151_v21  ;;  %v7187_v1 = vld [vmem:[%s9452_s1 + $0x1f0] sm:$0xff]   ;;  %v7191_v5 = vld [vmem:[%s9452_s1 + $0x1f8] sm:$0xff]   ;;  %v7195_v17 = vld [vmem:[%s9452_s1 + $0x2c0] sm:$0xff]  }
  0x17   :  { %v7188_v2 = vld [vmem:[%s9452_s1 + $0x130] sm:$0xff]   ;;  %v7192_v6 = vld [vmem:[%s9452_s1 + $0x138] sm:$0xff]   ;;  %v7196_v18 = vld [vmem:[%s9452_s1 + $0x200] sm:$0xff]  }
  0x18   :  { %6437 = vmatpush3.bf16.msra.mxu0 %v7152_v22  ;;  %v7189_v3 = vld [vmem:[%s9452_s1 + $0x1b0] sm:$0xff]   ;;  %v7193_v7 = vld [vmem:[%s9452_s1 + $0x1b8] sm:$0xff]   ;;  %v7197_v19 = vld [vmem:[%s9452_s1 + $0x280] sm:$0xff]  }
  0x19   :  { %6459 = vmatpush3.bf16.msra.mxu1 %v7153_v23  ;;  %6438 = vmatprep.subr.bf16.mxu0 %v7154_v24  ;;  %v17_v8 = vld [vmem:[%s9453_s0 + $0x10] sm:$0xff]  ;;  %v18_v12 = vld [vmem:[%s9453_s0 + $0x18] sm:$0xff]  ;;  %v7198_v20 = vld [vmem:[%s9452_s1 + $0x248] sm:$0xff]  }
  0x1a   :  { %6460 = vmatprep.subr.bf16.mxu1 %v7155_v25  ;;  %v49_v9 = vld [vmem:[%s9453_s0 + $0x110] sm:$0xff]  ;;  %v50_v13 = vld [vmem:[%s9453_s0 + $0x118] sm:$0xff]  ;;  %v7199_v21 = vld [vmem:[%s9452_s1 + $0x2c8] sm:$0xff]  }
  0x1b   :  { %v5845_v10 = vcombine.low %v17_v8, %v49_v9  ;;  %v5846_v11 = vcombine.high %v17_v8, %v49_v9  ;;  %v5847_v14 = vcombine.low %v18_v12, %v50_v13  ;;  %v5848_v15 = vcombine.high %v18_v12, %v50_v13  ;;  %v7200_v22 = vld [vmem:[%s9452_s1 + $0x208] sm:$0xff]   ;;  %v7202_v24 = vld [vmem:[%s9452_s1 + $0x250] sm:$0xff]   ;;  %v7210_v32 = vld [vmem:[%s9452_s1 + $0x260] sm:$0xff]  }
  0x1c   :  { %6439 = vmatpush3.bf16.msra.mxu0 %v7156_v26  ;;  %v7201_v23 = vld [vmem:[%s9452_s1 + $0x288] sm:$0xff]   ;;  %v7203_v25 = vld [vmem:[%s9452_s1 + $0x2d0] sm:$0xff]   ;;  %v7211_v33 = vld [vmem:[%s9452_s1 + $0x2e0] sm:$0xff]  }
  0x1d   :  { %6461 = vmatpush3.bf16.msra.mxu1 %v7157_v27  ;;  %6440 = vmatprep.subr.bf16.mxu0 %v7158_v28  ;;  %v7204_v26 = vld [vmem:[%s9452_s1 + $0x210] sm:$0xff]   ;;  %v7206_v28 = vld [vmem:[%s9452_s1 + $0x258] sm:$0xff]   ;;  %v7212_v34 = vld [vmem:[%s9452_s1 + $0x220] sm:$0xff]  }
  0x1e   :  { %6462 = vmatprep.subr.bf16.mxu1 %v7159_v29  ;;  %v7205_v27 = vld [vmem:[%s9452_s1 + $0x290] sm:$0xff]   ;;  %v7207_v29 = vld [vmem:[%s9452_s1 + $0x2d8] sm:$0xff]   ;;  %v7214_v36 = vld [vmem:[%s9452_s1 + $0x268] sm:$0xff]  }
  0x1f   :  { %v7215_v37 = vld [vmem:[%s9452_s1 + $0x2e8] sm:$0xff]   ;;  %v7242_v8 = vld [vmem:[%s9452_s1 + $0x360] sm:$0xff]  }
  0x20   :  { %6441 = vmatpush3.bf16.msra.mxu0 %v7160_v30  ;;  %v7208_v30 = vld [vmem:[%s9452_s1 + $0x218] sm:$0xff]   ;;  %v7217_v39 = vld [vmem:[%s9452_s1 + $0x2a8] sm:$0xff]   ;;  %v7243_v9 = vld [vmem:[%s9452_s1 + $0x3e0] sm:$0xff]  }
  0x21   :  { %6463 = vmatpush3.bf16.msra.mxu1 %v7161_v31  ;;  %6470 = vmatprep.subr.bf16.mxu0 %v7162_v40  ;;  %v7209_v31 = vld [vmem:[%s9452_s1 + $0x298] sm:$0xff]   ;;  %v7218_v40 = vld [vmem:[%s9452_s1 + $0x270] sm:$0xff]   ;;  %v7246_v12 = vld [vmem:[%s9452_s1 + $0x368] sm:$0xff]  }
  0x22   :  { %6492 = vmatprep.subr.bf16.mxu1 %v7163_v41  ;;  %v7219_v41 = vld [vmem:[%s9452_s1 + $0x2f0] sm:$0xff]   ;;  %v7247_v13 = vld [vmem:[%s9452_s1 + $0x3e8] sm:$0xff]  }
  0x23   :  { %4535 = vmatmul.mubr.bf16.vlgmr.msra.gmra.mrb[0].mxu0 %v5841_v35  ;;  %v7213_v35 = vld [vmem:[%s9452_s1 + $0x2a0] sm:$0xff]  }
  0x24   :  { %4576 = vmatmul.mubr.bf16.vlgmr.msra.gmra.mrb[0].mxu1 %v5843_v38  ;;  %6471 = vmatpush3.bf16.msra.mxu0 %v7164_v42  ;;  %v7216_v38 = vld [vmem:[%s9452_s1 + $0x228] sm:$0xff]   ;;  %v7220_v42 = vld [vmem:[%s9452_s1 + $0x230] sm:$0xff]  }
  0x25   :  { %6493 = vmatpush3.bf16.msra.mxu1 %v7165_v43  ;;  %6472 = vmatprep.subr.bf16.mxu0 %v7166_v44  ;;  %v7221_v43 = vld [vmem:[%s9452_s1 + $0x2b0] sm:$0xff]   ;;  %v7222_v44 = vld [vmem:[%s9452_s1 + $0x278] sm:$0xff]  }
  0x26   :  { %6494 = vmatprep.subr.bf16.mxu1 %v7167_v45  ;;  %4616 = vmatprep.mubr.bf16.mxu0 %v5846_v11  ;;  %v7223_v45 = vld [vmem:[%s9452_s1 + $0x2f8] sm:$0xff]   ;;  %v7245_v11 = vld [vmem:[%s9452_s1 + $0x3a0] sm:$0xff]  }
  0x27   :  { %4657 = vmatprep.mubr.bf16.mxu1 %v5848_v15  ;;  %v7249_v15 = vld [vmem:[%s9452_s1 + $0x3a8] sm:$0xff]  }
  0x28   :  { %6473 = vmatpush3.bf16.msra.mxu0 %v7168_v46  ;;  %v7224_v46 = vld [vmem:[%s9452_s1 + $0x238] sm:$0xff]  }
  0x29   :  { %6495 = vmatpush3.bf16.msra.mxu1 %v7169_v47  ;;  %6474 = vmatprep.subr.bf16.mxu0 %v7170_v48  ;;  %v7225_v47 = vld [vmem:[%s9452_s1 + $0x2b8] sm:$0xff]   ;;  %v19_v48 = vld [vmem:[%s9453_s0 + $0x20] sm:$0xff] }
  0x2a   :  { %6496 = vmatprep.subr.bf16.mxu1 %v7171_v49  ;;  %v51_v49 = vld [vmem:[%s9453_s0 + $0x120] sm:$0xff] }
  0x2c   :  { %6475 = vmatpush3.bf16.msra.mxu0 %v7172_v50  ;;  %v20_v50 = vld [vmem:[%s9453_s0 + $0x28] sm:$0xff] }
  0x2d   :  { %6497 = vmatpush3.bf16.msra.mxu1 %v7173_v51  ;;  %6476 = vmatprep.subr.bf16.mxu0 %v7174_v52  ;;  %v52_v51 = vld [vmem:[%s9453_s0 + $0x128] sm:$0xff]  ;;  %v5849_v52 = vcombine.low %v19_v48, %v51_v49 }
  0x2e   :  { %6498 = vmatprep.subr.bf16.mxu1 %v7175_v53  ;;  %v5850_v53 = vcombine.high %v19_v48, %v51_v49  ;;  %v7274_v48 = vld [vmem:[%s9452_s1 + $0x460] sm:$0xff]  }
  0x2f   :  { %v7275_v49 = vld [vmem:[%s9452_s1 + $0x4e0] sm:$0xff]  }
  0x30   :  { %6477 = vmatpush3.bf16.msra.mxu0 %v7176_v54  ;;  %v5851_v54 = vcombine.low %v20_v50, %v52_v51 }
  0x31   :  { %6499 = vmatpush3.bf16.msra.mxu1 %v7177_v55  ;;  %6478 = vmatprep.subr.bf16.mxu0 %v7178_v56  ;;  %v5852_v55 = vcombine.high %v20_v50, %v52_v51  ;;  %v7226_v56 = vld [vmem:[%s9452_s1 + $0x340] sm:$0xff]  }
  0x32   :  { %6500 = vmatprep.subr.bf16.mxu1 %v7179_v57  ;;  %v7227_v57 = vld [vmem:[%s9452_s1 + $0x3c0] sm:$0xff]  }
  0x33   :  { %v7276_v50 = vld [vmem:[%s9452_s1 + $0x420] sm:$0xff]  }
  0x34   :  { %6479 = vmatpush3.bf16.msra.mxu0 %v7180_v58  ;;  %v7228_v58 = vld [vmem:[%s9452_s1 + $0x300] sm:$0xff]  }
  0x35   :  { %6501 = vmatpush3.bf16.msra.mxu1 %v7181_v59  ;;  %6480 = vmatprep.subr.bf16.mxu0 %v7182_v60  ;;  %v7229_v59 = vld [vmem:[%s9452_s1 + $0x380] sm:$0xff]   ;;  %v7230_v60 = vld [vmem:[%s9452_s1 + $0x348] sm:$0xff]  }
  0x36   :  { %6502 = vmatprep.subr.bf16.mxu1 %v7183_v61  ;;  %v7231_v61 = vld [vmem:[%s9452_s1 + $0x3c8] sm:$0xff]   ;;  %v7277_v51 = vld [vmem:[%s9452_s1 + $0x4a0] sm:$0xff]  }
  0x38   :  { %6481 = vmatpush3.bf16.msra.mxu0 %v7184_v62  ;;  %v7232_v62 = vld [vmem:[%s9452_s1 + $0x308] sm:$0xff]  }
  0x39   :  { %6503 = vmatpush3.bf16.msra.mxu1 %v7185_v63  ;;  %6482 = vmatprep.subr.bf16.mxu0 %v7186_v0  ;;  %v7233_v63 = vld [vmem:[%s9452_s1 + $0x388] sm:$0xff]   ;;  %v7234_v0 = vld [vmem:[%s9452_s1 + $0x350] sm:$0xff]  }
  0x3a   :  { %6504 = vmatprep.subr.bf16.mxu1 %v7187_v1  ;;  %v7235_v1 = vld [vmem:[%s9452_s1 + $0x3d0] sm:$0xff]  }
  0x3c   :  { %6483 = vmatpush3.bf16.msra.mxu0 %v7188_v2  ;;  %v7236_v2 = vld [vmem:[%s9452_s1 + $0x310] sm:$0xff]  }
  0x3d   :  { %6505 = vmatpush3.bf16.msra.mxu1 %v7189_v3  ;;  %6484 = vmatprep.subr.bf16.mxu0 %v7190_v4  ;;  %v7237_v3 = vld [vmem:[%s9452_s1 + $0x390] sm:$0xff]   ;;  %v7238_v4 = vld [vmem:[%s9452_s1 + $0x358] sm:$0xff]  }
  0x3e   :  { %6506 = vmatprep.subr.bf16.mxu1 %v7191_v5  ;;  %v7239_v5 = vld [vmem:[%s9452_s1 + $0x3d8] sm:$0xff]  }
  0x40   :  { %6485 = vmatpush3.bf16.msra.mxu0 %v7192_v6  ;;  %v7240_v6 = vld [vmem:[%s9452_s1 + $0x318] sm:$0xff]  }
  0x41   :  { %6507 = vmatpush3.bf16.msra.mxu1 %v7193_v7  ;;  %6514 = vmatprep.subr.bf16.mxu0 %v7194_v16  ;;  %v7241_v7 = vld [vmem:[%s9452_s1 + $0x398] sm:$0xff]   ;;  %v7250_v16 = vld [vmem:[%s9452_s1 + $0x370] sm:$0xff]  }
  0x42   :  { %6536 = vmatprep.subr.bf16.mxu1 %v7195_v17  ;;  %v7251_v17 = vld [vmem:[%s9452_s1 + $0x3f0] sm:$0xff]  }
  0x43   :  { %4617 = vmatmul.mubr.bf16.vlgmr.msra.gmra.mrb[4].mxu0 %v5845_v10  ;;  %v7244_v10 = vld [vmem:[%s9452_s1 + $0x320] sm:$0xff]  }
  0x44   :  { %4658 = vmatmul.mubr.bf16.vlgmr.msra.gmra.mrb[4].mxu1 %v5847_v14  ;;  %6515 = vmatpush3.bf16.msra.mxu0 %v7196_v18  ;;  %v7248_v14 = vld [vmem:[%s9452_s1 + $0x328] sm:$0xff]   ;;  %v7252_v18 = vld [vmem:[%s9452_s1 + $0x330] sm:$0xff]  }
  0x45   :  { %6537 = vmatpush3.bf16.msra.mxu1 %v7197_v19  ;;  %6516 = vmatprep.subr.bf16.mxu0 %v7198_v20  ;;  %v7253_v19 = vld [vmem:[%s9452_s1 + $0x3b0] sm:$0xff]   ;;  %v7254_v20 = vld [vmem:[%s9452_s1 + $0x378] sm:$0xff]  }
  0x46   :  { %6538 = vmatprep.subr.bf16.mxu1 %v7199_v21  ;;  %4698 = vmatprep.mubr.bf16.mxu0 %v5850_v53  ;;  %v7255_v21 = vld [vmem:[%s9452_s1 + $0x3f8] sm:$0xff]   ;;  %v7279_v53 = vld [vmem:[%s9452_s1 + $0x4e8] sm:$0xff]  }
  0x47   :  { %4739 = vmatprep.mubr.bf16.mxu1 %v5852_v55  ;;  %v7281_v55 = vld [vmem:[%s9452_s1 + $0x4a8] sm:$0xff]  }
  0x48   :  { %6517 = vmatpush3.bf16.msra.mxu0 %v7200_v22  ;;  %v7256_v22 = vld [vmem:[%s9452_s1 + $0x338] sm:$0xff]  }
  0x49   :  { %6539 = vmatpush3.bf16.msra.mxu1 %v7201_v23  ;;  %6518 = vmatprep.subr.bf16.mxu0 %v7202_v24  ;;  %v7257_v23 = vld [vmem:[%s9452_s1 + $0x3b8] sm:$0xff]   ;;  %v21_v24 = vld [vmem:[%s9453_s0 + $0x30] sm:$0xff] }
  0x4a   :  { %6540 = vmatprep.subr.bf16.mxu1 %v7203_v25  ;;  %v53_v25 = vld [vmem:[%s9453_s0 + $0x130] sm:$0xff] }
  0x4c   :  { %6519 = vmatpush3.bf16.msra.mxu0 %v7204_v26  ;;  %v22_v26 = vld [vmem:[%s9453_s0 + $0x38] sm:$0xff] }
  0x4d   :  { %6541 = vmatpush3.bf16.msra.mxu1 %v7205_v27  ;;  %6520 = vmatprep.subr.bf16.mxu0 %v7206_v28  ;;  %v5853_v27 = vcombine.low %v21_v24, %v53_v25  ;;  %v5854_v28 = vcombine.high %v21_v24, %v53_v25  ;;  %v7306_v24 = vld [vmem:[%s9452_s1 + $0x560] sm:$0xff]  }
  0x4e   :  { %6542 = vmatprep.subr.bf16.mxu1 %v7207_v29  ;;  %v54_v29 = vld [vmem:[%s9453_s0 + $0x138] sm:$0xff]  ;;  %v7307_v25 = vld [vmem:[%s9452_s1 + $0x5e0] sm:$0xff]  }
  0x50   :  { %6521 = vmatpush3.bf16.msra.mxu0 %v7208_v30  ;;  %v5855_v30 = vcombine.low %v22_v26, %v54_v29 }
  0x51   :  { %6543 = vmatpush3.bf16.msra.mxu1 %v7209_v31  ;;  %6522 = vmatprep.subr.bf16.mxu0 %v7210_v32  ;;  %v5856_v31 = vcombine.high %v22_v26, %v54_v29  ;;  %v7258_v32 = vld [vmem:[%s9452_s1 + $0x440] sm:$0xff]   ;;  %v7311_v29 = vld [vmem:[%s9452_s1 + $0x5e8] sm:$0xff]  }
  0x52   :  { %6544 = vmatprep.subr.bf16.mxu1 %v7211_v33  ;;  %v7259_v33 = vld [vmem:[%s9452_s1 + $0x4c0] sm:$0xff]  }
  0x53   :  { %v7308_v26 = vld [vmem:[%s9452_s1 + $0x520] sm:$0xff]  }
  0x54   :  { %6523 = vmatpush3.bf16.msra.mxu0 %v7212_v34  ;;  %v7260_v34 = vld [vmem:[%s9452_s1 + $0x400] sm:$0xff]  }
  0x55   :  { %6545 = vmatpush3.bf16.msra.mxu1 %v7213_v35  ;;  %6524 = vmatprep.subr.bf16.mxu0 %v7214_v36  ;;  %v7261_v35 = vld [vmem:[%s9452_s1 + $0x480] sm:$0xff]   ;;  %v7262_v36 = vld [vmem:[%s9452_s1 + $0x448] sm:$0xff]  }
  0x56   :  { %6546 = vmatprep.subr.bf16.mxu1 %v7215_v37  ;;  %v7263_v37 = vld [vmem:[%s9452_s1 + $0x4c8] sm:$0xff]  }
  0x58   :  { %6525 = vmatpush3.bf16.msra.mxu0 %v7216_v38  ;;  %v7264_v38 = vld [vmem:[%s9452_s1 + $0x408] sm:$0xff]  }
  0x59   :  { %6547 = vmatpush3.bf16.msra.mxu1 %v7217_v39  ;;  %6526 = vmatprep.subr.bf16.mxu0 %v7218_v40  ;;  %v7265_v39 = vld [vmem:[%s9452_s1 + $0x488] sm:$0xff]   ;;  %v7266_v40 = vld [vmem:[%s9452_s1 + $0x450] sm:$0xff]  }
  0x5a   :  { %6548 = vmatprep.subr.bf16.mxu1 %v7219_v41  ;;  %v7267_v41 = vld [vmem:[%s9452_s1 + $0x4d0] sm:$0xff]  }
  0x5c   :  { %6527 = vmatpush3.bf16.msra.mxu0 %v7220_v42  ;;  %v7268_v42 = vld [vmem:[%s9452_s1 + $0x410] sm:$0xff]  }
  0x5d   :  { %6549 = vmatpush3.bf16.msra.mxu1 %v7221_v43  ;;  %6528 = vmatprep.subr.bf16.mxu0 %v7222_v44  ;;  %v7269_v43 = vld [vmem:[%s9452_s1 + $0x490] sm:$0xff]   ;;  %v7270_v44 = vld [vmem:[%s9452_s1 + $0x458] sm:$0xff]  }
  0x5e   :  { %6550 = vmatprep.subr.bf16.mxu1 %v7223_v45  ;;  %v7271_v45 = vld [vmem:[%s9452_s1 + $0x4d8] sm:$0xff]  }
  0x60   :  { %6529 = vmatpush3.bf16.msra.mxu0 %v7224_v46  ;;  %v7272_v46 = vld [vmem:[%s9452_s1 + $0x418] sm:$0xff]  }
  0x61   :  { %6551 = vmatpush3.bf16.msra.mxu1 %v7225_v47  ;;  %6558 = vmatprep.subr.bf16.mxu0 %v7226_v56  ;;  %v7273_v47 = vld [vmem:[%s9452_s1 + $0x498] sm:$0xff]   ;;  %v7282_v56 = vld [vmem:[%s9452_s1 + $0x470] sm:$0xff]  }
  0x62   :  { %6580 = vmatprep.subr.bf16.mxu1 %v7227_v57  ;;  %v7283_v57 = vld [vmem:[%s9452_s1 + $0x4f0] sm:$0xff]  }
  0x63   :  { %4699 = vmatmul.mubr.bf16.vlgmr.msra.gmra.mrb[8].mxu0 %v5849_v52  ;;  %v7278_v52 = vld [vmem:[%s9452_s1 + $0x468] sm:$0xff]  }
  0x64   :  { %4740 = vmatmul.mubr.bf16.vlgmr.msra.gmra.mrb[8].mxu1 %v5851_v54  ;;  %6559 = vmatpush3.bf16.msra.mxu0 %v7228_v58  ;;  %v7280_v54 = vld [vmem:[%s9452_s1 + $0x428] sm:$0xff]   ;;  %v7284_v58 = vld [vmem:[%s9452_s1 + $0x430] sm:$0xff]  }
  0x65   :  { %6581 = vmatpush3.bf16.msra.mxu1 %v7229_v59  ;;  %6560 = vmatprep.subr.bf16.mxu0 %v7230_v60  ;;  %v7285_v59 = vld [vmem:[%s9452_s1 + $0x4b0] sm:$0xff]   ;;  %v7286_v60 = vld [vmem:[%s9452_s1 + $0x478] sm:$0xff]  }
  0x66   :  { %6582 = vmatprep.subr.bf16.mxu1 %v7231_v61  ;;  %4780 = vmatprep.mubr.bf16.mxu0 %v5854_v28  ;;  %v7287_v61 = vld [vmem:[%s9452_s1 + $0x4f8] sm:$0xff]   ;;  %v7310_v28 = vld [vmem:[%s9452_s1 + $0x568] sm:$0xff]  }
  0x67   :  { %4821 = vmatprep.mubr.bf16.mxu1 %v5856_v31  ;;  %v7313_v31 = vld [vmem:[%s9452_s1 + $0x5a8] sm:$0xff]  }
  0x68   :  { %6561 = vmatpush3.bf16.msra.mxu0 %v7232_v62  ;;  %v7288_v62 = vld [vmem:[%s9452_s1 + $0x438] sm:$0xff]  }
  0x69   :  { %6583 = vmatpush3.bf16.msra.mxu1 %v7233_v63  ;;  %6562 = vmatprep.subr.bf16.mxu0 %v7234_v0  ;;  %v7289_v63 = vld [vmem:[%s9452_s1 + $0x4b8] sm:$0xff]   ;;  %v23_v0 = vld [vmem:[%s9453_s0 + $0x40] sm:$0xff] }
  0x6a   :  { %6584 = vmatprep.subr.bf16.mxu1 %v7235_v1  ;;  %v55_v1 = vld [vmem:[%s9453_s0 + $0x140] sm:$0xff] }
  0x6c   :  { %6563 = vmatpush3.bf16.msra.mxu0 %v7236_v2  ;;  %v5857_v2 = vcombine.low %v23_v0, %v55_v1 }
  0x6d   :  { %6585 = vmatpush3.bf16.msra.mxu1 %v7237_v3  ;;  %6564 = vmatprep.subr.bf16.mxu0 %v7238_v4  ;;  %v5858_v3 = vcombine.high %v23_v0, %v55_v1  ;;  %v24_v4 = vld [vmem:[%s9453_s0 + $0x48] sm:$0xff]  ;;  %v7338_v0 = vld [vmem:[%s9452_s1 + $0x660] sm:$0xff]  }
  0x6e   :  { %6586 = vmatprep.subr.bf16.mxu1 %v7239_v5  ;;  %v56_v5 = vld [vmem:[%s9453_s0 + $0x148] sm:$0xff]  ;;  %v7339_v1 = vld [vmem:[%s9452_s1 + $0x6e0] sm:$0xff]  }
  0x70   :  { %6565 = vmatpush3.bf16.msra.mxu0 %v7240_v6  ;;  %v5859_v6 = vcombine.low %v24_v4, %v56_v5 }
  0x71   :  { %6587 = vmatpush3.bf16.msra.mxu1 %v7241_v7  ;;  %6566 = vmatprep.subr.bf16.mxu0 %v7242_v8  ;;  %v5860_v7 = vcombine.high %v24_v4, %v56_v5  ;;  %v7290_v8 = vld [vmem:[%s9452_s1 + $0x540] sm:$0xff]   ;;  %v7342_v4 = vld [vmem:[%s9452_s1 + $0x668] sm:$0xff]  }
  0x72   :  { %6588 = vmatprep.subr.bf16.mxu1 %v7243_v9  ;;  %v7291_v9 = vld [vmem:[%s9452_s1 + $0x5c0] sm:$0xff]   ;;  %v7343_v5 = vld [vmem:[%s9452_s1 + $0x6e8] sm:$0xff]  }
  0x74   :  { %6567 = vmatpush3.bf16.msra.mxu0 %v7244_v10  ;;  %v7292_v10 = vld [vmem:[%s9452_s1 + $0x500] sm:$0xff]  }
  0x75   :  { %6589 = vmatpush3.bf16.msra.mxu1 %v7245_v11  ;;  %6568 = vmatprep.subr.bf16.mxu0 %v7246_v12  ;;  %v7293_v11 = vld [vmem:[%s9452_s1 + $0x580] sm:$0xff]   ;;  %v7294_v12 = vld [vmem:[%s9452_s1 + $0x548] sm:$0xff]  }
  0x76   :  { %6590 = vmatprep.subr.bf16.mxu1 %v7247_v13  ;;  %v7295_v13 = vld [vmem:[%s9452_s1 + $0x5c8] sm:$0xff]  }
  0x78   :  { %6569 = vmatpush3.bf16.msra.mxu0 %v7248_v14  ;;  %v7296_v14 = vld [vmem:[%s9452_s1 + $0x508] sm:$0xff]  }
  0x79   :  { %6591 = vmatpush3.bf16.msra.mxu1 %v7249_v15  ;;  %6570 = vmatprep.subr.bf16.mxu0 %v7250_v16  ;;  %v7297_v15 = vld [vmem:[%s9452_s1 + $0x588] sm:$0xff]   ;;  %v7298_v16 = vld [vmem:[%s9452_s1 + $0x550] sm:$0xff]  }
  0x7a   :  { %6592 = vmatprep.subr.bf16.mxu1 %v7251_v17  ;;  %v7299_v17 = vld [vmem:[%s9452_s1 + $0x5d0] sm:$0xff]  }
  0x7c   :  { %6571 = vmatpush3.bf16.msra.mxu0 %v7252_v18  ;;  %v7300_v18 = vld [vmem:[%s9452_s1 + $0x510] sm:$0xff]  }
  0x7d   :  { %6593 = vmatpush3.bf16.msra.mxu1 %v7253_v19  ;;  %6572 = vmatprep.subr.bf16.mxu0 %v7254_v20  ;;  %v7301_v19 = vld [vmem:[%s9452_s1 + $0x590] sm:$0xff]   ;;  %v7302_v20 = vld [vmem:[%s9452_s1 + $0x558] sm:$0xff]  }
  0x7e   :  { %6594 = vmatprep.subr.bf16.mxu1 %v7255_v21  ;;  %v7303_v21 = vld [vmem:[%s9452_s1 + $0x5d8] sm:$0xff]  }
  0x80   :  { %6573 = vmatpush3.bf16.msra.mxu0 %v7256_v22  ;;  %v7304_v22 = vld [vmem:[%s9452_s1 + $0x518] sm:$0xff]  }
  0x81   :  { %6595 = vmatpush3.bf16.msra.mxu1 %v7257_v23  ;;  %6602 = vmatprep.subr.bf16.mxu0 %v7258_v32  ;;  %v7305_v23 = vld [vmem:[%s9452_s1 + $0x598] sm:$0xff]   ;;  %v7314_v32 = vld [vmem:[%s9452_s1 + $0x570] sm:$0xff]  }
  0x82   :  { %6624 = vmatprep.subr.bf16.mxu1 %v7259_v33  ;;  %v7315_v33 = vld [vmem:[%s9452_s1 + $0x5f0] sm:$0xff]  }
  0x83   :  { %4781 = vmatmul.mubr.bf16.vlgmr.msra.gmra.mrb[12].mxu0 %v5853_v27  ;;  %v7309_v27 = vld [vmem:[%s9452_s1 + $0x5a0] sm:$0xff]  }
  0x84   :  { %4822 = vmatmul.mubr.bf16.vlgmr.msra.gmra.mrb[12].mxu1 %v5855_v30  ;;  %6603 = vmatpush3.bf16.msra.mxu0 %v7260_v34  ;;  %v7312_v30 = vld [vmem:[%s9452_s1 + $0x528] sm:$0xff]   ;;  %v7316_v34 = vld [vmem:[%s9452_s1 + $0x530] sm:$0xff]  }
  0x85   :  { %6625 = vmatpush3.bf16.msra.mxu1 %v7261_v35  ;;  %6604 = vmatprep.subr.bf16.mxu0 %v7262_v36  ;;  %v7317_v35 = vld [vmem:[%s9452_s1 + $0x5b0] sm:$0xff]   ;;  %v7318_v36 = vld [vmem:[%s9452_s1 + $0x578] sm:$0xff]  }
  0x86   :  { %6626 = vmatprep.subr.bf16.mxu1 %v7263_v37  ;;  %4862 = vmatprep.mubr.bf16.mxu0 %v5858_v3  ;;  %v7319_v37 = vld [vmem:[%s9452_s1 + $0x5f8] sm:$0xff]   ;;  %v7341_v3 = vld [vmem:[%s9452_s1 + $0x6a0] sm:$0xff]  }
  0x87   :  { %4903 = vmatprep.mubr.bf16.mxu1 %v5860_v7  ;;  %v7345_v7 = vld [vmem:[%s9452_s1 + $0x6a8] sm:$0xff]  }
  0x88   :  { %6605 = vmatpush3.bf16.msra.mxu0 %v7264_v38  ;;  %v7320_v38 = vld [vmem:[%s9452_s1 + $0x538] sm:$0xff]  }
  0x89   :  { %6627 = vmatpush3.bf16.msra.mxu1 %v7265_v39  ;;  %6606 = vmatprep.subr.bf16.mxu0 %v7266_v40  ;;  %v7321_v39 = vld [vmem:[%s9452_s1 + $0x5b8] sm:$0xff]   ;;  %v25_v40 = vld [vmem:[%s9453_s0 + $0x50] sm:$0xff] }
  0x8a   :  { %6628 = vmatprep.subr.bf16.mxu1 %v7267_v41  ;;  %v57_v41 = vld [vmem:[%s9453_s0 + $0x150] sm:$0xff] }
  0x8c   :  { %6607 = vmatpush3.bf16.msra.mxu0 %v7268_v42  ;;  %v26_v42 = vld [vmem:[%s9453_s0 + $0x58] sm:$0xff] }
  0x8d   :  { %6629 = vmatpush3.bf16.msra.mxu1 %v7269_v43  ;;  %6608 = vmatprep.subr.bf16.mxu0 %v7270_v44  ;;  %v58_v43 = vld [vmem:[%s9453_s0 + $0x158] sm:$0xff]  ;;  %v5861_v44 = vcombine.low %v25_v40, %v57_v41 }
  0x8e   :  { %6630 = vmatprep.subr.bf16.mxu1 %v7271_v45  ;;  %v5862_v45 = vcombine.high %v25_v40, %v57_v41  ;;  %v7369_v41 = vld [vmem:[%s9452_s1 + $0x798] sm:$0xff]  }
  0x90   :  { %6609 = vmatpush3.bf16.msra.mxu0 %v7272_v46  ;;  %v5863_v46 = vcombine.low %v26_v42, %v58_v43 }
  0x91   :  { %6631 = vmatpush3.bf16.msra.mxu1 %v7273_v47  ;;  %6610 = vmatprep.subr.bf16.mxu0 %v7274_v48  ;;  %v5864_v47 = vcombine.high %v26_v42, %v58_v43  ;;  %v7322_v48 = vld [vmem:[%s9452_s1 + $0x640] sm:$0xff]  }
  0x92   :  { %6632 = vmatprep.subr.bf16.mxu1 %v7275_v49  ;;  %v7323_v49 = vld [vmem:[%s9452_s1 + $0x6c0] sm:$0xff]  }
  0x93   :  { %v7370_v43 = vld [vmem:[%s9452_s1 + $0x760] sm:$0xff]  }
  0x94   :  { %6611 = vmatpush3.bf16.msra.mxu0 %v7276_v50  ;;  %v7324_v50 = vld [vmem:[%s9452_s1 + $0x600] sm:$0xff]  }
  0x95   :  { %6633 = vmatpush3.bf16.msra.mxu1 %v7277_v51  ;;  %6612 = vmatprep.subr.bf16.mxu0 %v7278_v52  ;;  %v7325_v51 = vld [vmem:[%s9452_s1 + $0x680] sm:$0xff]   ;;  %v7326_v52 = vld [vmem:[%s9452_s1 + $0x648] sm:$0xff]  }
  0x96   :  { %6634 = vmatprep.subr.bf16.mxu1 %v7279_v53  ;;  %v7327_v53 = vld [vmem:[%s9452_s1 + $0x6c8] sm:$0xff]  }
  0x98   :  { %6613 = vmatpush3.bf16.msra.mxu0 %v7280_v54  ;;  %v7328_v54 = vld [vmem:[%s9452_s1 + $0x608] sm:$0xff]  }
  0x99   :  { %6635 = vmatpush3.bf16.msra.mxu1 %v7281_v55  ;;  %6614 = vmatprep.subr.bf16.mxu0 %v7282_v56  ;;  %v7329_v55 = vld [vmem:[%s9452_s1 + $0x688] sm:$0xff]   ;;  %v7330_v56 = vld [vmem:[%s9452_s1 + $0x650] sm:$0xff]  }
  0x9a   :  { %6636 = vmatprep.subr.bf16.mxu1 %v7283_v57  ;;  %v7331_v57 = vld [vmem:[%s9452_s1 + $0x6d0] sm:$0xff]  }
  0x9c   :  { %6615 = vmatpush3.bf16.msra.mxu0 %v7284_v58  ;;  %v7332_v58 = vld [vmem:[%s9452_s1 + $0x610] sm:$0xff]  }
  0x9d   :  { %6637 = vmatpush3.bf16.msra.mxu1 %v7285_v59  ;;  %6616 = vmatprep.subr.bf16.mxu0 %v7286_v60  ;;  %v7333_v59 = vld [vmem:[%s9452_s1 + $0x690] sm:$0xff]   ;;  %v7334_v60 = vld [vmem:[%s9452_s1 + $0x658] sm:$0xff]  }
  0x9e   :  { %6638 = vmatprep.subr.bf16.mxu1 %v7287_v61  ;;  %v7335_v61 = vld [vmem:[%s9452_s1 + $0x6d8] sm:$0xff]  }
  0xa0   :  { %6617 = vmatpush3.bf16.msra.mxu0 %v7288_v62  ;;  %v7336_v62 = vld [vmem:[%s9452_s1 + $0x618] sm:$0xff]  }
  0xa1   :  { %6639 = vmatpush3.bf16.msra.mxu1 %v7289_v63  ;;  %6646 = vmatprep.subr.bf16.mxu0 %v7290_v8  ;;  %v7337_v63 = vld [vmem:[%s9452_s1 + $0x698] sm:$0xff]   ;;  %v7346_v8 = vld [vmem:[%s9452_s1 + $0x670] sm:$0xff]  }
  0xa2   :  { %6668 = vmatprep.subr.bf16.mxu1 %v7291_v9  ;;  %v7347_v9 = vld [vmem:[%s9452_s1 + $0x6f0] sm:$0xff]  }
  0xa3   :  { %4863 = vmatmul.mubr.bf16.vlgmr.msra.gmra.mrb[16].mxu0 %v5857_v2  ;;  %v7340_v2 = vld [vmem:[%s9452_s1 + $0x620] sm:$0xff]  }
  0xa4   :  { %4904 = vmatmul.mubr.bf16.vlgmr.msra.gmra.mrb[16].mxu1 %v5859_v6  ;;  %6647 = vmatpush3.bf16.msra.mxu0 %v7292_v10  ;;  %v7344_v6 = vld [vmem:[%s9452_s1 + $0x628] sm:$0xff]   ;;  %v7348_v10 = vld [vmem:[%s9452_s1 + $0x630] sm:$0xff]  }
  0xa5   :  { %6669 = vmatpush3.bf16.msra.mxu1 %v7293_v11  ;;  %6648 = vmatprep.subr.bf16.mxu0 %v7294_v12  ;;  %v7349_v11 = vld [vmem:[%s9452_s1 + $0x6b0] sm:$0xff]   ;;  %v7350_v12 = vld [vmem:[%s9452_s1 + $0x678] sm:$0xff]  }
  0xa6   :  { %6670 = vmatprep.subr.bf16.mxu1 %v7295_v13  ;;  %4944 = vmatprep.mubr.bf16.mxu0 %v5862_v45  ;;  %v7351_v13 = vld [vmem:[%s9452_s1 + $0x6f8] sm:$0xff]  }
  0xa7   :  { %4985 = vmatprep.mubr.bf16.mxu1 %v5864_v47 }
  0xa8   :  { %6649 = vmatpush3.bf16.msra.mxu0 %v7296_v14  ;;  %v7352_v14 = vld [vmem:[%s9452_s1 + $0x638] sm:$0xff]  }
  0xa9   :  { %6671 = vmatpush3.bf16.msra.mxu1 %v7297_v15  ;;  %6650 = vmatprep.subr.bf16.mxu0 %v7298_v16  ;;  %v7353_v15 = vld [vmem:[%s9452_s1 + $0x6b8] sm:$0xff]   ;;  %v27_v16 = vld [vmem:[%s9453_s0 + $0x60] sm:$0xff] }
  0xaa   :  { %6672 = vmatprep.subr.bf16.mxu1 %v7299_v17  ;;  %v59_v17 = vld [vmem:[%s9453_s0 + $0x160] sm:$0xff] }
  0xac   :  { %6651 = vmatpush3.bf16.msra.mxu0 %v7300_v18  ;;  %v28_v18 = vld [vmem:[%s9453_s0 + $0x68] sm:$0xff] }
  0xad   :  { %6673 = vmatpush3.bf16.msra.mxu1 %v7301_v19  ;;  %6652 = vmatprep.subr.bf16.mxu0 %v7302_v20  ;;  %v5865_v19 = vcombine.low %v27_v16, %v59_v17  ;;  %v5866_v20 = vcombine.high %v27_v16, %v59_v17  ;;  %v7386_v17 = vld [vmem:[%s9452_s1 + $0x840] sm:$0xff]  }
  0xae   :  { %6674 = vmatprep.subr.bf16.mxu1 %v7303_v21  ;;  %v60_v21 = vld [vmem:[%s9453_s0 + $0x168] sm:$0xff] }
  0xb0   :  { %6653 = vmatpush3.bf16.msra.mxu0 %v7304_v22  ;;  %v5867_v22 = vcombine.low %v28_v18, %v60_v21 }
  0xb1   :  { %6675 = vmatpush3.bf16.msra.mxu1 %v7305_v23  ;;  %6654 = vmatprep.subr.bf16.mxu0 %v7306_v24  ;;  %v5868_v23 = vcombine.high %v28_v18, %v60_v21  ;;  %v7354_v24 = vld [vmem:[%s9452_s1 + $0x740] sm:$0xff]   ;;  %v7390_v21 = vld [vmem:[%s9452_s1 + $0x848] sm:$0xff]  }
  0xb2   :  { %6676 = vmatprep.subr.bf16.mxu1 %v7307_v25  ;;  %v7355_v25 = vld [vmem:[%s9452_s1 + $0x7c0] sm:$0xff]  }
  0xb3   :  { %v7387_v18 = vld [vmem:[%s9452_s1 + $0x8c0] sm:$0xff]  }
  0xb4   :  { %6655 = vmatpush3.bf16.msra.mxu0 %v7308_v26  ;;  %v7356_v26 = vld [vmem:[%s9452_s1 + $0x700] sm:$0xff]  }
  0xb5   :  { %6677 = vmatpush3.bf16.msra.mxu1 %v7309_v27  ;;  %6656 = vmatprep.subr.bf16.mxu0 %v7310_v28  ;;  %v7357_v27 = vld [vmem:[%s9452_s1 + $0x780] sm:$0xff]   ;;  %v7358_v28 = vld [vmem:[%s9452_s1 + $0x748] sm:$0xff]  }
  0xb6   :  { %6678 = vmatprep.subr.bf16.mxu1 %v7311_v29  ;;  %v7359_v29 = vld [vmem:[%s9452_s1 + $0x7c8] sm:$0xff]  }
  0xb8   :  { %6657 = vmatpush3.bf16.msra.mxu0 %v7312_v30  ;;  %v7360_v30 = vld [vmem:[%s9452_s1 + $0x708] sm:$0xff]  }
  0xb9   :  { %6679 = vmatpush3.bf16.msra.mxu1 %v7313_v31  ;;  %6658 = vmatprep.subr.bf16.mxu0 %v7314_v32  ;;  %v7361_v31 = vld [vmem:[%s9452_s1 + $0x788] sm:$0xff]   ;;  %v7362_v32 = vld [vmem:[%s9452_s1 + $0x750] sm:$0xff]  }
  0xba   :  { %6680 = vmatprep.subr.bf16.mxu1 %v7315_v33  ;;  %v7363_v33 = vld [vmem:[%s9452_s1 + $0x7d0] sm:$0xff]  }
  0xbc   :  { %6659 = vmatpush3.bf16.msra.mxu0 %v7316_v34  ;;  %v7364_v34 = vld [vmem:[%s9452_s1 + $0x710] sm:$0xff]  }
  0xbd   :  { %6681 = vmatpush3.bf16.msra.mxu1 %v7317_v35  ;;  %6660 = vmatprep.subr.bf16.mxu0 %v7318_v36  ;;  %v7365_v35 = vld [vmem:[%s9452_s1 + $0x790] sm:$0xff]   ;;  %v7366_v36 = vld [vmem:[%s9452_s1 + $0x758] sm:$0xff]  }
  0xbe   :  { %6682 = vmatprep.subr.bf16.mxu1 %v7319_v37  ;;  %v7367_v37 = vld [vmem:[%s9452_s1 + $0x7d8] sm:$0xff]  }
  0xc0   :  { %6661 = vmatpush3.bf16.msra.mxu0 %v7320_v38 }
  0xc1   :  { %6683 = vmatpush3.bf16.msra.mxu1 %v7321_v39  ;;  %6690 = vmatprep.subr.bf16.mxu0 %v7322_v48  ;;  %v7368_v39 = vld [vmem:[%s9452_s1 + $0x718] sm:$0xff]  }
  0xc2   :  { %6712 = vmatprep.subr.bf16.mxu1 %v7323_v49  ;;  %v7372_v49 = vld [vmem:[%s9452_s1 + $0x720] sm:$0xff]  }
  0xc3   :  { %4945 = vmatmul.mubr.bf16.vlgmr.msra.gmra.mrb[20].mxu0 %v5861_v44 }
  0xc4   :  { %4986 = vmatmul.mubr.bf16.vlgmr.msra.gmra.mrb[20].mxu1 %v5863_v46  ;;  %6691 = vmatpush3.bf16.msra.mxu0 %v7324_v50  ;;  %v7371_v46 = vld [vmem:[%s9452_s1 + $0x7e0] sm:$0xff]  }
  0xc5   :  { %6713 = vmatpush3.bf16.msra.mxu1 %v7325_v51  ;;  %6692 = vmatprep.subr.bf16.mxu0 %v7326_v52  ;;  %v7373_v51 = vld [vmem:[%s9452_s1 + $0x7a0] sm:$0xff]  }
  0xc6   :  { %6714 = vmatprep.subr.bf16.mxu1 %v7327_v53  ;;  %5026 = vmatprep.mubr.bf16.mxu0 %v5866_v20  ;;  %v5840_v52 = vld [vmem:[%s9454_s2] ss:$0 sm:$0xff] }
  0xc7   :  { %5067 = vmatprep.mubr.bf16.mxu1 %v5868_v23  ;;  %v7389_v20 = vld [vmem:[%s9452_s1 + $0x880] sm:$0xff]   ;;  %v7392_v23 = vld [vmem:[%s9452_s1 + $0x808] sm:$0xff]  }
  0xc8   :  { %6693 = vmatpush3.bf16.msra.mxu0 %v7328_v54 }
  0xc9   :  { %6715 = vmatpush3.bf16.msra.mxu1 %v7329_v55  ;;  %6694 = vmatprep.subr.bf16.mxu0 %v7330_v56  ;;  %v7374_v55 = vld [vmem:[%s9452_s1 + $0x768] sm:$0xff]  }
  0xca   :  { %6716 = vmatprep.subr.bf16.mxu1 %v7331_v57 }
  0xcc   :  { %6695 = vmatpush3.bf16.msra.mxu0 %v7332_v58  ;;  %v7375_v58 = vld [vmem:[%s9452_s1 + $0x7e8] sm:$0xff]  }
  0xcd   :  { %6717 = vmatpush3.bf16.msra.mxu1 %v7333_v59  ;;  %6696 = vmatprep.subr.bf16.mxu0 %v7334_v60 }
  0xce   :  { %6718 = vmatprep.subr.bf16.mxu1 %v7335_v61  ;;  %v7376_v61 = vld [vmem:[%s9452_s1 + $0x728] sm:$0xff]  }
  0xd0   :  { %6697 = vmatpush3.bf16.msra.mxu0 %v7336_v62 }
  0xd1   :  { %6719 = vmatpush3.bf16.msra.mxu1 %v7337_v63  ;;  %6698 = vmatprep.subr.bf16.mxu0 %v7338_v0  ;;  %v7377_v63 = vld [vmem:[%s9452_s1 + $0x7a8] sm:$0xff]  }
  0xd2   :  { %6720 = vmatprep.subr.bf16.mxu1 %v7339_v1  ;;  %v7378_v1 = vld [vmem:[%s9452_s1 + $0x770] sm:$0xff]  }
  0xd4   :  { %6699 = vmatpush3.bf16.msra.mxu0 %v7340_v2  ;;  %v7379_v2 = vld [vmem:[%s9452_s1 + $0x7f0] sm:$0xff]  }
  0xd5   :  { %6721 = vmatpush3.bf16.msra.mxu1 %v7341_v3  ;;  %6700 = vmatprep.subr.bf16.mxu0 %v7342_v4  ;;  %v7380_v3 = vld [vmem:[%s9452_s1 + $0x730] sm:$0xff]  }
  0xd6   :  { %6722 = vmatprep.subr.bf16.mxu1 %v7343_v5  ;;  %v7381_v4 = vld [vmem:[%s9452_s1 + $0x7b0] sm:$0xff]   ;;  %v7382_v5 = vld [vmem:[%s9452_s1 + $0x778] sm:$0xff]  }
  0xd8   :  { %6701 = vmatpush3.bf16.msra.mxu0 %v7344_v6  ;;  %v7383_v6 = vld [vmem:[%s9452_s1 + $0x7f8] sm:$0xff]  }
  0xd9   :  { %6723 = vmatpush3.bf16.msra.mxu1 %v7345_v7  ;;  %6702 = vmatprep.subr.bf16.mxu0 %v7346_v8  ;;  %v7384_v7 = vld [vmem:[%s9452_s1 + $0x738] sm:$0xff]  }
  0xda   :  { %6724 = vmatprep.subr.bf16.mxu1 %v7347_v9  ;;  %v7385_v8 = vld [vmem:[%s9452_s1 + $0x7b8] sm:$0xff]   ;;  %v29_v9 = vld [vmem:[%s9453_s0 + $0x70] sm:$0xff] }
  0xdc   :  { %6703 = vmatpush3.bf16.msra.mxu0 %v7348_v10  ;;  %v61_v10 = vld [vmem:[%s9453_s0 + $0x170] sm:$0xff] }
  0xdd   :  { %6725 = vmatpush3.bf16.msra.mxu1 %v7349_v11  ;;  %6704 = vmatprep.subr.bf16.mxu0 %v7350_v12  ;;  %v30_v11 = vld [vmem:[%s9453_s0 + $0x78] sm:$0xff] }
  0xde   :  { %6726 = vmatprep.subr.bf16.mxu1 %v7351_v13  ;;  %v62_v12 = vld [vmem:[%s9453_s0 + $0x178] sm:$0xff]  ;;  %v5869_v13 = vcombine.low %v29_v9, %v61_v10 }
  0xdf   :  { %v5872_v16 = vcombine.high %v30_v11, %v62_v12 }
  0xe0   :  { %6705 = vmatpush3.bf16.msra.mxu0 %v7352_v14  ;;  %v5870_v14 = vcombine.high %v29_v9, %v61_v10  ;;  %v7418_v9 = vld [vmem:[%s9452_s1 + $0x940] sm:$0xff]  }
  0xe1   :  { %6727 = vmatpush3.bf16.msra.mxu1 %v7353_v15  ;;  %6734 = vmatprep.subr.bf16.mxu0 %v7354_v24  ;;  %v5871_v15 = vcombine.low %v30_v11, %v62_v12  ;;  %v7393_v24 = vld [vmem:[%s9452_s1 + $0x888] sm:$0xff]   ;;  %v7419_v10 = vld [vmem:[%s9452_s1 + $0x9c0] sm:$0xff]  }
  0xe2   :  { %6756 = vmatprep.subr.bf16.mxu1 %v7355_v25  ;;  %v7394_v25 = vld [vmem:[%s9452_s1 + $0x850] sm:$0xff]   ;;  %v7420_v11 = vld [vmem:[%s9452_s1 + $0x900] sm:$0xff]  }
  0xe3   :  { %5027 = vmatmul.mubr.bf16.vlgmr.msra.gmra.mrb[24].mxu0 %v5865_v19  ;;  %v7388_v19 = vld [vmem:[%s9452_s1 + $0x800] sm:$0xff]  }
  0xe4   :  { %5068 = vmatmul.mubr.bf16.vlgmr.msra.gmra.mrb[24].mxu1 %v5867_v22  ;;  %6735 = vmatpush3.bf16.msra.mxu0 %v7356_v26  ;;  %v7391_v22 = vld [vmem:[%s9452_s1 + $0x8c8] sm:$0xff]   ;;  %v7395_v26 = vld [vmem:[%s9452_s1 + $0x8d0] sm:$0xff]   ;;  %v7421_v12 = vld [vmem:[%s9452_s1 + $0x980] sm:$0xff]  }
  0xe5   :  { %6757 = vmatpush3.bf16.msra.mxu1 %v7357_v27  ;;  %6736 = vmatprep.subr.bf16.mxu0 %v7358_v28  ;;  %v7396_v27 = vld [vmem:[%s9452_s1 + $0x810] sm:$0xff]  }
  0xe6   :  { %6758 = vmatprep.subr.bf16.mxu1 %v7359_v29  ;;  %5108 = vmatprep.mubr.bf16.mxu0 %v5870_v14  ;;  %v7397_v28 = vld [vmem:[%s9452_s1 + $0x890] sm:$0xff]   ;;  %v7398_v29 = vld [vmem:[%s9452_s1 + $0x858] sm:$0xff]   ;;  %v7423_v14 = vld [vmem:[%s9452_s1 + $0x9c8] sm:$0xff]  }
  0xe7   :  { %5149 = vmatprep.mubr.bf16.mxu1 %v5872_v16  ;;  %v7425_v16 = vld [vmem:[%s9452_s1 + $0x988] sm:$0xff]  }
  0xe8   :  { %6737 = vmatpush3.bf16.msra.mxu0 %v7360_v30  ;;  %v7399_v30 = vld [vmem:[%s9452_s1 + $0x8d8] sm:$0xff]  }
  0xe9   :  { %6759 = vmatpush3.bf16.msra.mxu1 %v7361_v31  ;;  %6738 = vmatprep.subr.bf16.mxu0 %v7362_v32  ;;  %v7400_v32 = vld [vmem:[%s9452_s1 + $0x818] sm:$0xff]  }
  0xea   :  { %6760 = vmatprep.subr.bf16.mxu1 %v7363_v33 }
  0xec   :  { %6739 = vmatpush3.bf16.msra.mxu0 %v7364_v34  ;;  %v7401_v34 = vld [vmem:[%s9452_s1 + $0x898] sm:$0xff]  }
  0xed   :  { %6761 = vmatpush3.bf16.msra.mxu1 %v7365_v35  ;;  %6740 = vmatprep.subr.bf16.mxu0 %v7366_v36  ;;  %v7402_v36 = vld [vmem:[%s9452_s1 + $0x860] sm:$0xff]  }
  0xee   :  { %6762 = vmatprep.subr.bf16.mxu1 %v7367_v37 }
  0xf0   :  { %6741 = vmatpush3.bf16.msra.mxu0 %v7368_v39  ;;  %v7403_v39 = vld [vmem:[%s9452_s1 + $0x8e0] sm:$0xff]  }
  0xf1   :  { %6763 = vmatpush3.bf16.msra.mxu1 %v7369_v41  ;;  %6742 = vmatprep.subr.bf16.mxu0 %v7370_v43 }
  0xf2   :  { %6764 = vmatprep.subr.bf16.mxu1 %v7371_v46 }
  0xf4   :  { %6743 = vmatpush3.bf16.msra.mxu0 %v7372_v49 }
  0xf5   :  { %6765 = vmatpush3.bf16.msra.mxu1 %v7373_v51  ;;  %6744 = vmatprep.subr.bf16.mxu0 %v7374_v55  ;;  %v7407_v51 = vld [vmem:[%s9452_s1 + $0x8e8] sm:$0xff]  }
  0xf6   :  { %v6442_v38 = vpop.f32.mrb[0].mxu0  ;;  %6766 = vmatprep.subr.bf16.mxu1 %v7375_v58  ;;  %v7409_v55 = vld [vmem:[%s9452_s1 + $0x8a8] sm:$0xff]   ;;  %v7411_v58 = vld [vmem:[%s9452_s1 + $0x8f0] sm:$0xff]  }
  0xf7   :  { %v6464_v40 = vpop.f32.mrb[0].mxu1  ;;  %v6443_v42 = vpop.f32.mrb[1].mxu0 }
  0xf8   :  { %v6444_v44 = vadd.f32 %v6443_v42, %v6442_v38  ;;  %v6465_v45 = vpop.f32.mrb[1].mxu1  ;;  %v6445_v48 = vpop.f32.mrb[2].mxu0  ;;  %6745 = vmatpush3.bf16.msra.mxu0 %v7376_v61  ;;  %v7404_v42 = vld [vmem:[%s9452_s1 + $0x820] sm:$0xff]   ;;  %v7414_v61 = vld [vmem:[%s9452_s1 + $0x878] sm:$0xff]  }
  0xf9   :  { %v6466_v47 = vadd.f32 %v6465_v45, %v6464_v40  ;;  %v6467_v50 = vpop.f32.mrb[2].mxu1  ;;  %v6446_v53 = vpop.f32.mrb[3].mxu0  ;;  %6767 = vmatpush3.bf16.msra.mxu1 %v7377_v63  ;;  %6746 = vmatprep.subr.bf16.mxu0 %v7378_v1  ;;  %v7405_v45 = vld [vmem:[%s9452_s1 + $0x8a0] sm:$0xff]   ;;  %v7416_v63 = vld [vmem:[%s9452_s1 + $0x838] sm:$0xff]  }
  0xfa   :  { %v4537_v54 = vadd.f32 %v6444_v44, %v5840_v52  ;;  %v6447_v56 = vadd.f32 %v6446_v53, %v6445_v48  ;;  %v6468_v57 = vpop.f32.mrb[3].mxu1  ;;  %6768 = vmatprep.subr.bf16.mxu1 %v7379_v2  ;;  %v7406_v48 = vld [vmem:[%s9452_s1 + $0x868] sm:$0xff]   ;;  %v31_v1 = vld [vmem:[%s9453_s0 + $0x80] sm:$0xff] }
  0xfb   :  { %v6469_v59 = vadd.f32 %v6468_v57, %v6467_v50  ;;  %v7408_v53 = vld [vmem:[%s9452_s1 + $0x828] sm:$0xff]   ;;  %v7410_v57 = vld [vmem:[%s9452_s1 + $0x870] sm:$0xff]   ;;  %v63_v2 = vld [vmem:[%s9453_s0 + $0x180] sm:$0xff] }
  0xfc   :  { %v8495_v60 = vadd.f32 %v6466_v47, %v4537_v54  ;;  %v4540_v62 = vadd.f32 %v6447_v56, %v5840_v52  ;;  %6747 = vmatpush3.bf16.msra.mxu0 %v7380_v3  ;;  %v32_v3 = vld [vmem:[%s9453_s0 + $0x88] sm:$0xff] }
  0xfd   :  { %6769 = vmatpush3.bf16.msra.mxu1 %v7381_v4  ;;  %6748 = vmatprep.subr.bf16.mxu0 %v7382_v5  ;;  %v5873_v4 = vcombine.low %v31_v1, %v63_v2  ;;  %v5874_v5 = vcombine.high %v31_v1, %v63_v2  ;;  %v7450_v1 = vld [vmem:[%s9452_s1 + $0xa40] sm:$0xff]  }
  0xfe   :  { %v8503_v0 = vadd.f32 %v6469_v59, %v4540_v62  ;;  %6770 = vmatprep.subr.bf16.mxu1 %v7383_v6  ;;  %v7412_v59 = vld [vmem:[%s9452_s1 + $0x830] sm:$0xff]   ;;  %v7415_v62 = vld [vmem:[%s9452_s1 + $0x8f8] sm:$0xff]   ;;  %v64_v6 = vld [vmem:[%s9453_s0 + $0x188] sm:$0xff] }
  0xff   :  { %v7451_v2 = vld [vmem:[%s9452_s1 + $0xac0] sm:$0xff]  }
 0x100   :  { %6749 = vmatpush3.bf16.msra.mxu0 %v7384_v7  ;;  %v5875_v7 = vcombine.low %v32_v3, %v64_v6 }
 0x101   :  { %6771 = vmatpush3.bf16.msra.mxu1 %v7385_v8  ;;  %6778 = vmatprep.subr.bf16.mxu0 %v7386_v17  ;;  %v5876_v8 = vcombine.high %v32_v3, %v64_v6  ;;  %v7426_v17 = vld [vmem:[%s9452_s1 + $0x950] sm:$0xff]   ;;  %v7452_v3 = vld [vmem:[%s9452_s1 + $0xa00] sm:$0xff]   ;;  %v7455_v6 = vld [vmem:[%s9452_s1 + $0xac8] sm:$0xff]  }
 0x102   :  { %6800 = vmatprep.subr.bf16.mxu1 %v7387_v18  ;;  %v7427_v18 = vld [vmem:[%s9452_s1 + $0x9d0] sm:$0xff]  }
 0x103   :  { %5109 = vmatmul.mubr.bf16.vlgmr.msra.gmra.mrb[28].mxu0 %v5869_v13  ;;  %v7422_v13 = vld [vmem:[%s9452_s1 + $0x948] sm:$0xff]  }
 0x104   :  { %5150 = vmatmul.mubr.bf16.vlgmr.msra.gmra.mrb[28].mxu1 %v5871_v15  ;;  %6779 = vmatpush3.bf16.msra.mxu0 %v7388_v19  ;;  %v7424_v15 = vld [vmem:[%s9452_s1 + $0x908] sm:$0xff]   ;;  %v7428_v19 = vld [vmem:[%s9452_s1 + $0x910] sm:$0xff]  }
 0x105   :  { %6801 = vmatpush3.bf16.msra.mxu1 %v7389_v20  ;;  %6780 = vmatprep.subr.bf16.mxu0 %v7390_v21  ;;  %v7429_v20 = vld [vmem:[%s9452_s1 + $0x990] sm:$0xff]   ;;  %v7430_v21 = vld [vmem:[%s9452_s1 + $0x958] sm:$0xff]  }
 0x106   :  { %6802 = vmatprep.subr.bf16.mxu1 %v7391_v22  ;;  %5190 = vmatprep.mubr.bf16.mxu0 %v5874_v5  ;;  %v7431_v22 = vld [vmem:[%s9452_s1 + $0x9d8] sm:$0xff]   ;;  %v7454_v5 = vld [vmem:[%s9452_s1 + $0xa48] sm:$0xff]  }
 0x107   :  { %5231 = vmatprep.mubr.bf16.mxu1 %v5876_v8  ;;  %v7457_v8 = vld [vmem:[%s9452_s1 + $0xa88] sm:$0xff]  }
 0x108   :  { %6781 = vmatpush3.bf16.msra.mxu0 %v7392_v23 }
 0x109   :  { %6803 = vmatpush3.bf16.msra.mxu1 %v7393_v24  ;;  %6782 = vmatprep.subr.bf16.mxu0 %v7394_v25  ;;  %v7432_v24 = vld [vmem:[%s9452_s1 + $0x918] sm:$0xff]  }
 0x10a   :  { %6804 = vmatprep.subr.bf16.mxu1 %v7395_v26  ;;  %v7433_v26 = vld [vmem:[%s9452_s1 + $0x998] sm:$0xff]  }
 0x10c   :  { %6783 = vmatpush3.bf16.msra.mxu0 %v7396_v27 }
 0x10d   :  { %6805 = vmatpush3.bf16.msra.mxu1 %v7397_v28  ;;  %6784 = vmatprep.subr.bf16.mxu0 %v7398_v29  ;;  %v7434_v28 = vld [vmem:[%s9452_s1 + $0x960] sm:$0xff]  }
 0x10e   :  { %6806 = vmatprep.subr.bf16.mxu1 %v7399_v30 }
 0x110   :  { %6785 = vmatpush3.bf16.msra.mxu0 %v7400_v32 }
 0x111   :  { %6807 = vmatpush3.bf16.msra.mxu1 %v7401_v34  ;;  %6786 = vmatprep.subr.bf16.mxu0 %v7402_v36  ;;  %v7436_v34 = vld [vmem:[%s9452_s1 + $0x920] sm:$0xff]  }
 0x112   :  { %6808 = vmatprep.subr.bf16.mxu1 %v7403_v39 }
 0x114   :  { %6787 = vmatpush3.bf16.msra.mxu0 %v7404_v42 }
 0x115   :  { %6809 = vmatpush3.bf16.msra.mxu1 %v7405_v45  ;;  %6788 = vmatprep.subr.bf16.mxu0 %v7406_v48  ;;  %v7440_v45 = vld [vmem:[%s9452_s1 + $0x928] sm:$0xff]  }
 0x116   :  { %v6486_v31 = vpop.f32.mrb[4].mxu0  ;;  %6810 = vmatprep.subr.bf16.mxu1 %v7407_v51  ;;  %v7444_v51 = vld [vmem:[%s9452_s1 + $0x930] sm:$0xff]  }
 0x117   :  { %v6508_v33 = vpop.f32.mrb[4].mxu1  ;;  %v6487_v35 = vpop.f32.mrb[5].mxu0 }
 0x118   :  { %v6488_v37 = vadd.f32 %v6487_v35, %v6486_v31  ;;  %v6509_v38 = vpop.f32.mrb[5].mxu1  ;;  %v6489_v41 = vpop.f32.mrb[6].mxu0  ;;  %6789 = vmatpush3.bf16.msra.mxu0 %v7408_v53  ;;  %v7435_v31 = vld [vmem:[%s9452_s1 + $0x9e0] sm:$0xff]   ;;  %v7446_v53 = vld [vmem:[%s9452_s1 + $0x978] sm:$0xff]  }
 0x119   :  { %v6510_v40 = vadd.f32 %v6509_v38, %v6508_v33  ;;  %v6511_v44 = vpop.f32.mrb[6].mxu1  ;;  %v6490_v46 = vpop.f32.mrb[7].mxu0  ;;  %6811 = vmatpush3.bf16.msra.mxu1 %v7409_v55  ;;  %6790 = vmatprep.subr.bf16.mxu0 %v7410_v57  ;;  %v7448_v55 = vld [vmem:[%s9452_s1 + $0x938] sm:$0xff]   ;;  %v33_v57 = vld [vmem:[%s9453_s0 + $0x90] sm:$0xff] }
 0x11a   :  { %v4619_v43 = vadd.f32 %v6488_v37, %v8495_v60  ;;  %v6491_v49 = vadd.f32 %v6490_v46, %v6489_v41  ;;  %v6512_v50 = vpop.f32.mrb[7].mxu1  ;;  %6812 = vmatprep.subr.bf16.mxu1 %v7411_v58  ;;  %v7413_v60 = vld [vmem:[%s9452_s1 + $0x8b0] sm:$0xff]   ;;  %v7437_v37 = vld [vmem:[%s9452_s1 + $0x9a0] sm:$0xff]  }
 0x11b   :  { %v6513_v52 = vadd.f32 %v6512_v50, %v6511_v44  ;;  %v7443_v50 = vld [vmem:[%s9452_s1 + $0x9f0] sm:$0xff]  }
 0x11c   :  { %v8602_v47 = vadd.f32 %v6510_v40, %v4619_v43  ;;  %v4622_v54 = vadd.f32 %v6491_v49, %v8503_v0  ;;  %6791 = vmatpush3.bf16.msra.mxu0 %v7412_v59  ;;  %v7417_v0 = vld [vmem:[%s9452_s1 + $0x8b8] sm:$0xff]   ;;  %v7438_v40 = vld [vmem:[%s9452_s1 + $0x968] sm:$0xff]   ;;  %v7442_v49 = vld [vmem:[%s9452_s1 + $0x970] sm:$0xff]  }
 0x11d   :  { %6813 = vmatpush3.bf16.msra.mxu1 %v7413_v60  ;;  %6792 = vmatprep.subr.bf16.mxu0 %v7414_v61  ;;  %v7439_v43 = vld [vmem:[%s9452_s1 + $0x9e8] sm:$0xff]   ;;  %v65_v58 = vld [vmem:[%s9453_s0 + $0x190] sm:$0xff]  ;;  %v34_v61 = vld [vmem:[%s9453_s0 + $0x98] sm:$0xff] }
 0x11e   :  { %v8617_v56 = vadd.f32 %v6513_v52, %v4622_v54  ;;  %6814 = vmatprep.subr.bf16.mxu1 %v7415_v62  ;;  %v7445_v52 = vld [vmem:[%s9452_s1 + $0x9b0] sm:$0xff]   ;;  %v7447_v54 = vld [vmem:[%s9452_s1 + $0x9f8] sm:$0xff]   ;;  %v5877_v59 = vcombine.low %v33_v57, %v65_v58  ;;  %v5878_v60 = vcombine.high %v33_v57, %v65_v58  ;;  %v7482_v57 = vld [vmem:[%s9452_s1 + $0xb40] sm:$0xff]  }
 0x11f   :  { %v66_v62 = vld [vmem:[%s9453_s0 + $0x198] sm:$0xff]  ;;  %v7483_v58 = vld [vmem:[%s9452_s1 + $0xbc0] sm:$0xff]  }
 0x120   :  { %6793 = vmatpush3.bf16.msra.mxu0 %v7416_v63  ;;  %v5879_v63 = vcombine.low %v34_v61, %v66_v62 }
 0x121   :  { %6815 = vmatpush3.bf16.msra.mxu1 %v7417_v0  ;;  %6822 = vmatprep.subr.bf16.mxu0 %v7418_v9  ;;  %v5880_v0 = vcombine.high %v34_v61, %v66_v62  ;;  %v7458_v9 = vld [vmem:[%s9452_s1 + $0xa50] sm:$0xff]   ;;  %v7486_v61 = vld [vmem:[%s9452_s1 + $0xb48] sm:$0xff]  }
 0x122   :  { %6844 = vmatprep.subr.bf16.mxu1 %v7419_v10  ;;  %v7459_v10 = vld [vmem:[%s9452_s1 + $0xad0] sm:$0xff]   ;;  %v7487_v62 = vld [vmem:[%s9452_s1 + $0xbc8] sm:$0xff]  }
 0x123   :  { %5191 = vmatmul.mubr.bf16.vlgmr.msra.gmra.mrb[32].mxu0 %v5873_v4  ;;  %v7453_v4 = vld [vmem:[%s9452_s1 + $0xa80] sm:$0xff]  }
 0x124   :  { %5232 = vmatmul.mubr.bf16.vlgmr.msra.gmra.mrb[32].mxu1 %v5875_v7  ;;  %6823 = vmatpush3.bf16.msra.mxu0 %v7420_v11  ;;  %v7456_v7 = vld [vmem:[%s9452_s1 + $0xa08] sm:$0xff]   ;;  %v7460_v11 = vld [vmem:[%s9452_s1 + $0xa10] sm:$0xff]  }
 0x125   :  { %6845 = vmatpush3.bf16.msra.mxu1 %v7421_v12  ;;  %6824 = vmatprep.subr.bf16.mxu0 %v7422_v13  ;;  %v7461_v12 = vld [vmem:[%s9452_s1 + $0xa90] sm:$0xff]   ;;  %v7462_v13 = vld [vmem:[%s9452_s1 + $0xa58] sm:$0xff]  }
 0x126   :  { %6846 = vmatprep.subr.bf16.mxu1 %v7423_v14  ;;  %5272 = vmatprep.mubr.bf16.mxu0 %v5878_v60  ;;  %v7463_v14 = vld [vmem:[%s9452_s1 + $0xad8] sm:$0xff]   ;;  %v7485_v60 = vld [vmem:[%s9452_s1 + $0xb80] sm:$0xff]  }
 0x127   :  { %5313 = vmatprep.mubr.bf16.mxu1 %v5880_v0  ;;  %v7489_v0 = vld [vmem:[%s9452_s1 + $0xb88] sm:$0xff]  }
 0x128   :  { %6825 = vmatpush3.bf16.msra.mxu0 %v7424_v15 }
 0x129   :  { %6847 = vmatpush3.bf16.msra.mxu1 %v7425_v16  ;;  %6826 = vmatprep.subr.bf16.mxu0 %v7426_v17  ;;  %v7464_v16 = vld [vmem:[%s9452_s1 + $0xa18] sm:$0xff]  }
 0x12a   :  { %6848 = vmatprep.subr.bf16.mxu1 %v7427_v18  ;;  %v7465_v18 = vld [vmem:[%s9452_s1 + $0xa98] sm:$0xff]  }
 0x12c   :  { %6827 = vmatpush3.bf16.msra.mxu0 %v7428_v19 }
 0x12d   :  { %6849 = vmatpush3.bf16.msra.mxu1 %v7429_v20  ;;  %6828 = vmatprep.subr.bf16.mxu0 %v7430_v21  ;;  %v7466_v20 = vld [vmem:[%s9452_s1 + $0xa60] sm:$0xff]  }
 0x12e   :  { %6850 = vmatprep.subr.bf16.mxu1 %v7431_v22 }
 0x130   :  { %6829 = vmatpush3.bf16.msra.mxu0 %v7432_v24 }
 0x131   :  { %6851 = vmatpush3.bf16.msra.mxu1 %v7433_v26  ;;  %6830 = vmatprep.subr.bf16.mxu0 %v7434_v28  ;;  %v7468_v26 = vld [vmem:[%s9452_s1 + $0xa20] sm:$0xff]  }
 0x132   :  { %6852 = vmatprep.subr.bf16.mxu1 %v7435_v31 }
 0x134   :  { %6831 = vmatpush3.bf16.msra.mxu0 %v7436_v34 }
 0x135   :  { %6853 = vmatpush3.bf16.msra.mxu1 %v7437_v37  ;;  %6832 = vmatprep.subr.bf16.mxu0 %v7438_v40  ;;  %v7472_v37 = vld [vmem:[%s9452_s1 + $0xa28] sm:$0xff]  }
 0x136   :  { %v6530_v23 = vpop.f32.mrb[8].mxu0  ;;  %6854 = vmatprep.subr.bf16.mxu1 %v7439_v43  ;;  %v7476_v43 = vld [vmem:[%s9452_s1 + $0xa30] sm:$0xff]  }
 0x137   :  { %v6552_v25 = vpop.f32.mrb[8].mxu1  ;;  %v6531_v27 = vpop.f32.mrb[9].mxu0 }
 0x138   :  { %v6532_v29 = vadd.f32 %v6531_v27, %v6530_v23  ;;  %v6553_v30 = vpop.f32.mrb[9].mxu1  ;;  %v6533_v33 = vpop.f32.mrb[10].mxu0  ;;  %6833 = vmatpush3.bf16.msra.mxu0 %v7440_v45  ;;  %v7467_v23 = vld [vmem:[%s9452_s1 + $0xae0] sm:$0xff]   ;;  %v7478_v45 = vld [vmem:[%s9452_s1 + $0xa78] sm:$0xff]  }
 0x139   :  { %v6554_v32 = vadd.f32 %v6553_v30, %v6552_v25  ;;  %v6555_v36 = vpop.f32.mrb[10].mxu1  ;;  %v6534_v38 = vpop.f32.mrb[11].mxu0  ;;  %6834 = vmatprep.subr.bf16.mxu0 %v7442_v49  ;;  %v35_v49 = vld [vmem:[%s9453_s0 + $0xa0] sm:$0xff] }
 0x13a   :  { %v4701_v35 = vadd.f32 %v6532_v29, %v8602_v47  ;;  %v6535_v41 = vadd.f32 %v6534_v38, %v6533_v33  ;;  %v6556_v42 = vpop.f32.mrb[11].mxu1  ;;  %v7441_v47 = vld [vmem:[%s9452_s1 + $0x9a8] sm:$0xff]   ;;  %v7469_v29 = vld [vmem:[%s9452_s1 + $0xaa0] sm:$0xff]  }
 0x13b   :  { %v6557_v44 = vadd.f32 %v6556_v42, %v6555_v36  ;;  %6855 = vmatpush3.bf16.msra.mxu1 %v7441_v47  ;;  %v7475_v42 = vld [vmem:[%s9452_s1 + $0xaf0] sm:$0xff]   ;;  %v7480_v47 = vld [vmem:[%s9452_s1 + $0xa38] sm:$0xff]  }
 0x13c   :  { %v8716_v39 = vadd.f32 %v6554_v32, %v4701_v35  ;;  %v4704_v46 = vadd.f32 %v6535_v41, %v8617_v56  ;;  %6856 = vmatprep.subr.bf16.mxu1 %v7443_v50  ;;  %6835 = vmatpush3.bf16.msra.mxu0 %v7444_v51  ;;  %v7449_v56 = vld [vmem:[%s9452_s1 + $0x9b8] sm:$0xff]   ;;  %v7470_v32 = vld [vmem:[%s9452_s1 + $0xa68] sm:$0xff]   ;;  %v7474_v41 = vld [vmem:[%s9452_s1 + $0xa70] sm:$0xff]  }
 0x13d   :  { %6836 = vmatprep.subr.bf16.mxu0 %v7446_v53  ;;  %v7471_v35 = vld [vmem:[%s9452_s1 + $0xae8] sm:$0xff]   ;;  %v67_v50 = vld [vmem:[%s9453_s0 + $0x1a0] sm:$0xff] }
 0x13e   :  { %v8731_v48 = vadd.f32 %v6557_v44, %v4704_v46  ;;  %v7477_v44 = vld [vmem:[%s9452_s1 + $0xab0] sm:$0xff]   ;;  %v7479_v46 = vld [vmem:[%s9452_s1 + $0xaf8] sm:$0xff]   ;;  %v36_v51 = vld [vmem:[%s9453_s0 + $0xa8] sm:$0xff]  ;;  %v5881_v53 = vcombine.low %v35_v49, %v67_v50 }
 0x13f   :  { %6857 = vmatpush3.bf16.msra.mxu1 %v7445_v52  ;;  %v68_v52 = vld [vmem:[%s9453_s0 + $0x1a8] sm:$0xff] }
 0x140   :  { %6858 = vmatprep.subr.bf16.mxu1 %v7447_v54  ;;  %6837 = vmatpush3.bf16.msra.mxu0 %v7448_v55  ;;  %v5882_v54 = vcombine.high %v35_v49, %v67_v50  ;;  %v5883_v55 = vcombine.low %v36_v51, %v68_v52  ;;  %v7514_v49 = vld [vmem:[%s9452_s1 + $0xc40] sm:$0xff]  }
 0x141   :  { %6866 = vmatprep.subr.bf16.mxu0 %v7450_v1  ;;  %v7490_v1 = vld [vmem:[%s9452_s1 + $0xb50] sm:$0xff]   ;;  %v7515_v50 = vld [vmem:[%s9452_s1 + $0xcc0] sm:$0xff]  }
 0x143   :  { %6859 = vmatpush3.bf16.msra.mxu1 %v7449_v56  ;;  %5273 = vmatmul.mubr.bf16.vlgmr.msra.gmra.mrb[36].mxu0 %v5877_v59  ;;  %v5884_v56 = vcombine.high %v36_v51, %v68_v52  ;;  %v7484_v59 = vld [vmem:[%s9452_s1 + $0xb00] sm:$0xff]  }
 0x144   :  { %6888 = vmatprep.subr.bf16.mxu1 %v7451_v2  ;;  %6867 = vmatpush3.bf16.msra.mxu0 %v7452_v3  ;;  %v7491_v2 = vld [vmem:[%s9452_s1 + $0xbd0] sm:$0xff]   ;;  %v7516_v51 = vld [vmem:[%s9452_s1 + $0xc00] sm:$0xff]  }
 0x145   :  { %6868 = vmatprep.subr.bf16.mxu0 %v7454_v5  ;;  %5354 = vmatprep.mubr.bf16.mxu0 %v5882_v54  ;;  %v7492_v3 = vld [vmem:[%s9452_s1 + $0xb10] sm:$0xff]   ;;  %v7494_v5 = vld [vmem:[%s9452_s1 + $0xb58] sm:$0xff]   ;;  %v7517_v52 = vld [vmem:[%s9452_s1 + $0xc80] sm:$0xff]  }
 0x146   :  { %5314 = vmatmul.mubr.bf16.vlgmr.msra.gmra.mrb[36].mxu1 %v5879_v63  ;;  %v7488_v63 = vld [vmem:[%s9452_s1 + $0xb08] sm:$0xff]  }
 0x147   :  { %6889 = vmatpush3.bf16.msra.mxu1 %v7453_v4  ;;  %5395 = vmatprep.mubr.bf16.mxu1 %v5884_v56  ;;  %v7493_v4 = vld [vmem:[%s9452_s1 + $0xb90] sm:$0xff]   ;;  %v7519_v54 = vld [vmem:[%s9452_s1 + $0xcc8] sm:$0xff]  }
 0x148   :  { %6890 = vmatprep.subr.bf16.mxu1 %v7455_v6  ;;  %6869 = vmatpush3.bf16.msra.mxu0 %v7456_v7  ;;  %v7495_v6 = vld [vmem:[%s9452_s1 + $0xbd8] sm:$0xff]   ;;  %v7521_v56 = vld [vmem:[%s9452_s1 + $0xc88] sm:$0xff]  }
 0x149   :  { %6870 = vmatprep.subr.bf16.mxu0 %v7458_v9 }
 0x14b   :  { %6891 = vmatpush3.bf16.msra.mxu1 %v7457_v8  ;;  %v7496_v8 = vld [vmem:[%s9452_s1 + $0xb18] sm:$0xff]  }
 0x14c   :  { %6892 = vmatprep.subr.bf16.mxu1 %v7459_v10  ;;  %6871 = vmatpush3.bf16.msra.mxu0 %v7460_v11  ;;  %v7497_v10 = vld [vmem:[%s9452_s1 + $0xb98] sm:$0xff]  }
 0x14d   :  { %6872 = vmatprep.subr.bf16.mxu0 %v7462_v13 }
 0x14f   :  { %6893 = vmatpush3.bf16.msra.mxu1 %v7461_v12  ;;  %v7498_v12 = vld [vmem:[%s9452_s1 + $0xb60] sm:$0xff]  }
 0x150   :  { %6894 = vmatprep.subr.bf16.mxu1 %v7463_v14  ;;  %6873 = vmatpush3.bf16.msra.mxu0 %v7464_v16 }
 0x151   :  { %6874 = vmatprep.subr.bf16.mxu0 %v7466_v20 }
 0x153   :  { %6895 = vmatpush3.bf16.msra.mxu1 %v7465_v18  ;;  %v7500_v18 = vld [vmem:[%s9452_s1 + $0xb20] sm:$0xff]  }
 0x154   :  { %6896 = vmatprep.subr.bf16.mxu1 %v7467_v23  ;;  %6875 = vmatpush3.bf16.msra.mxu0 %v7468_v26 }
 0x155   :  { %6876 = vmatprep.subr.bf16.mxu0 %v7470_v32 }
 0x156   :  { %v6574_v15 = vpop.f32.mrb[12].mxu0 }
 0x157   :  { %v6596_v17 = vpop.f32.mrb[12].mxu1  ;;  %v6575_v19 = vpop.f32.mrb[13].mxu0  ;;  %6897 = vmatpush3.bf16.msra.mxu1 %v7469_v29  ;;  %v7504_v29 = vld [vmem:[%s9452_s1 + $0xb28] sm:$0xff]  }
 0x158   :  { %v6576_v21 = vadd.f32 %v6575_v19, %v6574_v15  ;;  %v6597_v22 = vpop.f32.mrb[13].mxu1  ;;  %v6577_v25 = vpop.f32.mrb[14].mxu0  ;;  %6898 = vmatprep.subr.bf16.mxu1 %v7471_v35  ;;  %6877 = vmatpush3.bf16.msra.mxu0 %v7472_v37  ;;  %v7499_v15 = vld [vmem:[%s9452_s1 + $0xbe0] sm:$0xff]   ;;  %v7508_v35 = vld [vmem:[%s9452_s1 + $0xb30] sm:$0xff]   ;;  %v7510_v37 = vld [vmem:[%s9452_s1 + $0xb78] sm:$0xff]  }
 0x159   :  { %v6598_v24 = vadd.f32 %v6597_v22, %v6596_v17  ;;  %v6599_v28 = vpop.f32.mrb[14].mxu1  ;;  %v6578_v30 = vpop.f32.mrb[15].mxu0  ;;  %6878 = vmatprep.subr.bf16.mxu0 %v7474_v41  ;;  %v37_v41 = vld [vmem:[%s9453_s0 + $0xb0] sm:$0xff] }
 0x15a   :  { %v4783_v27 = vadd.f32 %v6576_v21, %v8716_v39  ;;  %v6579_v33 = vadd.f32 %v6578_v30, %v6577_v25  ;;  %v6600_v34 = vpop.f32.mrb[15].mxu1  ;;  %v7473_v39 = vld [vmem:[%s9452_s1 + $0xaa8] sm:$0xff]   ;;  %v7501_v21 = vld [vmem:[%s9452_s1 + $0xba0] sm:$0xff]  }
 0x15b   :  { %v6601_v36 = vadd.f32 %v6600_v34, %v6599_v28  ;;  %6899 = vmatpush3.bf16.msra.mxu1 %v7473_v39  ;;  %v7507_v34 = vld [vmem:[%s9452_s1 + $0xbf0] sm:$0xff]   ;;  %v7512_v39 = vld [vmem:[%s9452_s1 + $0xb38] sm:$0xff]  }
 0x15c   :  { %v8830_v31 = vadd.f32 %v6598_v24, %v4783_v27  ;;  %v4786_v38 = vadd.f32 %v6579_v33, %v8731_v48  ;;  %6900 = vmatprep.subr.bf16.mxu1 %v7475_v42  ;;  %6879 = vmatpush3.bf16.msra.mxu0 %v7476_v43  ;;  %v7481_v48 = vld [vmem:[%s9452_s1 + $0xab8] sm:$0xff]   ;;  %v7502_v24 = vld [vmem:[%s9452_s1 + $0xb68] sm:$0xff]   ;;  %v7506_v33 = vld [vmem:[%s9452_s1 + $0xb70] sm:$0xff]  }
 0x15d   :  { %6880 = vmatprep.subr.bf16.mxu0 %v7478_v45  ;;  %v7503_v27 = vld [vmem:[%s9452_s1 + $0xbe8] sm:$0xff]   ;;  %v69_v42 = vld [vmem:[%s9453_s0 + $0x1b0] sm:$0xff]  ;;  %v38_v43 = vld [vmem:[%s9453_s0 + $0xb8] sm:$0xff] }
 0x15e   :  { %v8845_v40 = vadd.f32 %v6601_v36, %v4786_v38  ;;  %v7509_v36 = vld [vmem:[%s9452_s1 + $0xbb0] sm:$0xff]   ;;  %v7511_v38 = vld [vmem:[%s9452_s1 + $0xbf8] sm:$0xff]   ;;  %v5886_v45 = vcombine.high %v37_v41, %v69_v42 }
 0x15f   :  { %6901 = vmatpush3.bf16.msra.mxu1 %v7477_v44  ;;  %v5885_v44 = vcombine.low %v37_v41, %v69_v42  ;;  %v7546_v41 = vld [vmem:[%s9452_s1 + $0xd40] sm:$0xff]  }
 0x160   :  { %6902 = vmatprep.subr.bf16.mxu1 %v7479_v46  ;;  %6881 = vmatpush3.bf16.msra.mxu0 %v7480_v47  ;;  %v70_v46 = vld [vmem:[%s9453_s0 + $0x1b8] sm:$0xff]  ;;  %v7547_v42 = vld [vmem:[%s9452_s1 + $0xdc0] sm:$0xff]  }
 0x161   :  { %6910 = vmatprep.subr.bf16.mxu0 %v7482_v57  ;;  %v5887_v47 = vcombine.low %v38_v43, %v70_v46  ;;  %v7522_v57 = vld [vmem:[%s9452_s1 + $0xc50] sm:$0xff]  }
 0x163   :  { %6903 = vmatpush3.bf16.msra.mxu1 %v7481_v48  ;;  %5355 = vmatmul.mubr.bf16.vlgmr.msra.gmra.mrb[40].mxu0 %v5881_v53  ;;  %v5888_v48 = vcombine.high %v38_v43, %v70_v46  ;;  %v7518_v53 = vld [vmem:[%s9452_s1 + $0xc48] sm:$0xff]   ;;  %v7548_v43 = vld [vmem:[%s9452_s1 + $0xd00] sm:$0xff]  }
 0x164   :  { %6932 = vmatprep.subr.bf16.mxu1 %v7483_v58  ;;  %6911 = vmatpush3.bf16.msra.mxu0 %v7484_v59  ;;  %v7523_v58 = vld [vmem:[%s9452_s1 + $0xcd0] sm:$0xff]   ;;  %v7551_v46 = vld [vmem:[%s9452_s1 + $0xdc8] sm:$0xff]  }
 0x165   :  { %6912 = vmatprep.subr.bf16.mxu0 %v7486_v61  ;;  %5436 = vmatprep.mubr.bf16.mxu0 %v5886_v45  ;;  %v7524_v59 = vld [vmem:[%s9452_s1 + $0xc10] sm:$0xff]   ;;  %v7526_v61 = vld [vmem:[%s9452_s1 + $0xc58] sm:$0xff]   ;;  %v7550_v45 = vld [vmem:[%s9452_s1 + $0xd48] sm:$0xff]  }
 0x166   :  { %5396 = vmatmul.mubr.bf16.vlgmr.msra.gmra.mrb[40].mxu1 %v5883_v55  ;;  %v7520_v55 = vld [vmem:[%s9452_s1 + $0xc08] sm:$0xff]  }
 0x167   :  { %6933 = vmatpush3.bf16.msra.mxu1 %v7485_v60  ;;  %5477 = vmatprep.mubr.bf16.mxu1 %v5888_v48  ;;  %v7525_v60 = vld [vmem:[%s9452_s1 + $0xc90] sm:$0xff]   ;;  %v7553_v48 = vld [vmem:[%s9452_s1 + $0xd88] sm:$0xff]  }
 0x168   :  { %6934 = vmatprep.subr.bf16.mxu1 %v7487_v62  ;;  %6913 = vmatpush3.bf16.msra.mxu0 %v7488_v63  ;;  %v7527_v62 = vld [vmem:[%s9452_s1 + $0xcd8] sm:$0xff]  }
 0x169   :  { %6914 = vmatprep.subr.bf16.mxu0 %v7490_v1 }
 0x16b   :  { %6935 = vmatpush3.bf16.msra.mxu1 %v7489_v0  ;;  %v7528_v0 = vld [vmem:[%s9452_s1 + $0xc18] sm:$0xff]  }
 0x16c   :  { %6936 = vmatprep.subr.bf16.mxu1 %v7491_v2  ;;  %6915 = vmatpush3.bf16.msra.mxu0 %v7492_v3  ;;  %v7529_v2 = vld [vmem:[%s9452_s1 + $0xc98] sm:$0xff]  }
 0x16d   :  { %6916 = vmatprep.subr.bf16.mxu0 %v7494_v5 }
 0x16f   :  { %6937 = vmatpush3.bf16.msra.mxu1 %v7493_v4  ;;  %v7530_v4 = vld [vmem:[%s9452_s1 + $0xc60] sm:$0xff]  }
 0x170   :  { %6938 = vmatprep.subr.bf16.mxu1 %v7495_v6  ;;  %6917 = vmatpush3.bf16.msra.mxu0 %v7496_v8 }
 0x171   :  { %6918 = vmatprep.subr.bf16.mxu0 %v7498_v12 }
 0x173   :  { %6939 = vmatpush3.bf16.msra.mxu1 %v7497_v10  ;;  %v7532_v10 = vld [vmem:[%s9452_s1 + $0xc20] sm:$0xff]  }
 0x174   :  { %6940 = vmatprep.subr.bf16.mxu1 %v7499_v15  ;;  %6919 = vmatpush3.bf16.msra.mxu0 %v7500_v18 }
 0x175   :  { %6920 = vmatprep.subr.bf16.mxu0 %v7502_v24 }
 0x176   :  { %v6618_v7 = vpop.f32.mrb[16].mxu0 }
 0x177   :  { %v6640_v9 = vpop.f32.mrb[16].mxu1  ;;  %v6619_v11 = vpop.f32.mrb[17].mxu0  ;;  %6941 = vmatpush3.bf16.msra.mxu1 %v7501_v21  ;;  %v7536_v21 = vld [vmem:[%s9452_s1 + $0xc28] sm:$0xff]  }
 0x178   :  { %v6620_v13 = vadd.f32 %v6619_v11, %v6618_v7  ;;  %v6641_v14 = vpop.f32.mrb[17].mxu1  ;;  %v6621_v17 = vpop.f32.mrb[18].mxu0  ;;  %6942 = vmatprep.subr.bf16.mxu1 %v7503_v27  ;;  %6921 = vmatpush3.bf16.msra.mxu0 %v7504_v29  ;;  %v7531_v7 = vld [vmem:[%s9452_s1 + $0xce0] sm:$0xff]   ;;  %v7540_v27 = vld [vmem:[%s9452_s1 + $0xc30] sm:$0xff]   ;;  %v7542_v29 = vld [vmem:[%s9452_s1 + $0xc78] sm:$0xff]  }
 0x179   :  { %v6642_v16 = vadd.f32 %v6641_v14, %v6640_v9  ;;  %v6643_v20 = vpop.f32.mrb[18].mxu1  ;;  %v6622_v22 = vpop.f32.mrb[19].mxu0  ;;  %6922 = vmatprep.subr.bf16.mxu0 %v7506_v33  ;;  %v39_v33 = vld [vmem:[%s9453_s0 + $0xc0] sm:$0xff] }
 0x17a   :  { %v4865_v19 = vadd.f32 %v6620_v13, %v8830_v31  ;;  %v6623_v25 = vadd.f32 %v6622_v22, %v6621_v17  ;;  %v6644_v26 = vpop.f32.mrb[19].mxu1  ;;  %v7505_v31 = vld [vmem:[%s9452_s1 + $0xba8] sm:$0xff]   ;;  %v7533_v13 = vld [vmem:[%s9452_s1 + $0xca0] sm:$0xff]  }
 0x17b   :  { %v6645_v28 = vadd.f32 %v6644_v26, %v6643_v20  ;;  %6943 = vmatpush3.bf16.msra.mxu1 %v7505_v31  ;;  %v7539_v26 = vld [vmem:[%s9452_s1 + $0xcf0] sm:$0xff]   ;;  %v7544_v31 = vld [vmem:[%s9452_s1 + $0xc38] sm:$0xff]  }
 0x17c   :  { %v8944_v23 = vadd.f32 %v6642_v16, %v4865_v19  ;;  %v4868_v30 = vadd.f32 %v6623_v25, %v8845_v40  ;;  %6944 = vmatprep.subr.bf16.mxu1 %v7507_v34  ;;  %6923 = vmatpush3.bf16.msra.mxu0 %v7508_v35  ;;  %v7513_v40 = vld [vmem:[%s9452_s1 + $0xbb8] sm:$0xff]   ;;  %v7534_v16 = vld [vmem:[%s9452_s1 + $0xc68] sm:$0xff]   ;;  %v7538_v25 = vld [vmem:[%s9452_s1 + $0xc70] sm:$0xff]  }
 0x17d   :  { %6924 = vmatprep.subr.bf16.mxu0 %v7510_v37  ;;  %v7535_v19 = vld [vmem:[%s9452_s1 + $0xce8] sm:$0xff]   ;;  %v71_v34 = vld [vmem:[%s9453_s0 + $0x1c0] sm:$0xff] }
 0x17e   :  { %v8959_v32 = vadd.f32 %v6645_v28, %v4868_v30  ;;  %v7541_v28 = vld [vmem:[%s9452_s1 + $0xcb0] sm:$0xff]   ;;  %v7543_v30 = vld [vmem:[%s9452_s1 + $0xcf8] sm:$0xff]   ;;  %v5889_v35 = vcombine.low %v39_v33, %v71_v34  ;;  %v40_v37 = vld [vmem:[%s9453_s0 + $0xc8] sm:$0xff] }
 0x17f   :  { %6945 = vmatpush3.bf16.msra.mxu1 %v7509_v36  ;;  %v5890_v36 = vcombine.high %v39_v33, %v71_v34  ;;  %v7578_v33 = vld [vmem:[%s9452_s1 + $0xe40] sm:$0xff]  }
 0x180   :  { %6946 = vmatprep.subr.bf16.mxu1 %v7511_v38  ;;  %6925 = vmatpush3.bf16.msra.mxu0 %v7512_v39  ;;  %v72_v38 = vld [vmem:[%s9453_s0 + $0x1c8] sm:$0xff]  ;;  %v7579_v34 = vld [vmem:[%s9452_s1 + $0xec0] sm:$0xff]  }
 0x181   :  { %6954 = vmatprep.subr.bf16.mxu0 %v7514_v49  ;;  %v5891_v39 = vcombine.low %v40_v37, %v72_v38  ;;  %v7554_v49 = vld [vmem:[%s9452_s1 + $0xd50] sm:$0xff]  }
 0x183   :  { %6947 = vmatpush3.bf16.msra.mxu1 %v7513_v40  ;;  %5437 = vmatmul.mubr.bf16.vlgmr.msra.gmra.mrb[44].mxu0 %v5885_v44  ;;  %v5892_v40 = vcombine.high %v40_v37, %v72_v38  ;;  %v7549_v44 = vld [vmem:[%s9452_s1 + $0xd80] sm:$0xff]   ;;  %v7582_v37 = vld [vmem:[%s9452_s1 + $0xe48] sm:$0xff]  }
 0x184   :  { %6976 = vmatprep.subr.bf16.mxu1 %v7515_v50  ;;  %6955 = vmatpush3.bf16.msra.mxu0 %v7516_v51  ;;  %v7555_v50 = vld [vmem:[%s9452_s1 + $0xdd0] sm:$0xff]   ;;  %v7583_v38 = vld [vmem:[%s9452_s1 + $0xec8] sm:$0xff]  }
 0x185   :  { %6956 = vmatprep.subr.bf16.mxu0 %v7518_v53  ;;  %5518 = vmatprep.mubr.bf16.mxu0 %v5890_v36  ;;  %v7556_v51 = vld [vmem:[%s9452_s1 + $0xd10] sm:$0xff]   ;;  %v7558_v53 = vld [vmem:[%s9452_s1 + $0xd58] sm:$0xff]   ;;  %v7581_v36 = vld [vmem:[%s9452_s1 + $0xe80] sm:$0xff]  }
 0x186   :  { %5478 = vmatmul.mubr.bf16.vlgmr.msra.gmra.mrb[44].mxu1 %v5887_v47  ;;  %v7552_v47 = vld [vmem:[%s9452_s1 + $0xd08] sm:$0xff]  }
 0x187   :  { %6977 = vmatpush3.bf16.msra.mxu1 %v7517_v52  ;;  %5559 = vmatprep.mubr.bf16.mxu1 %v5892_v40  ;;  %v7557_v52 = vld [vmem:[%s9452_s1 + $0xd90] sm:$0xff]   ;;  %v7585_v40 = vld [vmem:[%s9452_s1 + $0xe88] sm:$0xff]  }
 0x188   :  { %6978 = vmatprep.subr.bf16.mxu1 %v7519_v54  ;;  %6957 = vmatpush3.bf16.msra.mxu0 %v7520_v55  ;;  %v7559_v54 = vld [vmem:[%s9452_s1 + $0xdd8] sm:$0xff]  }
 0x189   :  { %6958 = vmatprep.subr.bf16.mxu0 %v7522_v57 }
 0x18b   :  { %6979 = vmatpush3.bf16.msra.mxu1 %v7521_v56  ;;  %v7560_v56 = vld [vmem:[%s9452_s1 + $0xd18] sm:$0xff]  }
 0x18c   :  { %6980 = vmatprep.subr.bf16.mxu1 %v7523_v58  ;;  %6959 = vmatpush3.bf16.msra.mxu0 %v7524_v59  ;;  %v7561_v58 = vld [vmem:[%s9452_s1 + $0xd98] sm:$0xff]  }
 0x18d   :  { %6960 = vmatprep.subr.bf16.mxu0 %v7526_v61 }
 0x18f   :  { %6981 = vmatpush3.bf16.msra.mxu1 %v7525_v60  ;;  %v7562_v60 = vld [vmem:[%s9452_s1 + $0xd60] sm:$0xff]  }
 0x190   :  { %6982 = vmatprep.subr.bf16.mxu1 %v7527_v62  ;;  %6961 = vmatpush3.bf16.msra.mxu0 %v7528_v0 }
 0x191   :  { %6962 = vmatprep.subr.bf16.mxu0 %v7530_v4 }
 0x193   :  { %6983 = vmatpush3.bf16.msra.mxu1 %v7529_v2  ;;  %v7564_v2 = vld [vmem:[%s9452_s1 + $0xd20] sm:$0xff]  }
 0x194   :  { %6984 = vmatprep.subr.bf16.mxu1 %v7531_v7  ;;  %6963 = vmatpush3.bf16.msra.mxu0 %v7532_v10 }
 0x195   :  { %6964 = vmatprep.subr.bf16.mxu0 %v7534_v16 }
 0x196   :  { %v6662_v63 = vpop.f32.mrb[20].mxu0 }
 0x197   :  { %v6684_v1 = vpop.f32.mrb[20].mxu1  ;;  %v6663_v3 = vpop.f32.mrb[21].mxu0  ;;  %6985 = vmatpush3.bf16.msra.mxu1 %v7533_v13  ;;  %v7568_v13 = vld [vmem:[%s9452_s1 + $0xd28] sm:$0xff]  }
 0x198   :  { %v6664_v5 = vadd.f32 %v6663_v3, %v6662_v63  ;;  %v6685_v6 = vpop.f32.mrb[21].mxu1  ;;  %v6665_v9 = vpop.f32.mrb[22].mxu0  ;;  %6986 = vmatprep.subr.bf16.mxu1 %v7535_v19  ;;  %6965 = vmatpush3.bf16.msra.mxu0 %v7536_v21  ;;  %v7563_v63 = vld [vmem:[%s9452_s1 + $0xde0] sm:$0xff]   ;;  %v7572_v19 = vld [vmem:[%s9452_s1 + $0xd30] sm:$0xff]   ;;  %v7574_v21 = vld [vmem:[%s9452_s1 + $0xd78] sm:$0xff]  }
 0x199   :  { %v6686_v8 = vadd.f32 %v6685_v6, %v6684_v1  ;;  %v6687_v12 = vpop.f32.mrb[22].mxu1  ;;  %v6666_v14 = vpop.f32.mrb[23].mxu0  ;;  %6966 = vmatprep.subr.bf16.mxu0 %v7538_v25  ;;  %v41_v25 = vld [vmem:[%s9453_s0 + $0xd0] sm:$0xff] }
 0x19a   :  { %v4947_v11 = vadd.f32 %v6664_v5, %v8944_v23  ;;  %v6667_v17 = vadd.f32 %v6666_v14, %v6665_v9  ;;  %v6688_v18 = vpop.f32.mrb[23].mxu1  ;;  %v7537_v23 = vld [vmem:[%s9452_s1 + $0xca8] sm:$0xff]   ;;  %v7565_v5 = vld [vmem:[%s9452_s1 + $0xda0] sm:$0xff]  }
 0x19b   :  { %v6689_v20 = vadd.f32 %v6688_v18, %v6687_v12  ;;  %6987 = vmatpush3.bf16.msra.mxu1 %v7537_v23  ;;  %v7571_v18 = vld [vmem:[%s9452_s1 + $0xdf0] sm:$0xff]   ;;  %v7576_v23 = vld [vmem:[%s9452_s1 + $0xd38] sm:$0xff]  }
 0x19c   :  { %v9058_v15 = vadd.f32 %v6686_v8, %v4947_v11  ;;  %v4950_v22 = vadd.f32 %v6667_v17, %v8959_v32  ;;  %6988 = vmatprep.subr.bf16.mxu1 %v7539_v26  ;;  %6967 = vmatpush3.bf16.msra.mxu0 %v7540_v27  ;;  %v7545_v32 = vld [vmem:[%s9452_s1 + $0xcb8] sm:$0xff]   ;;  %v7566_v8 = vld [vmem:[%s9452_s1 + $0xd68] sm:$0xff]   ;;  %v7570_v17 = vld [vmem:[%s9452_s1 + $0xd70] sm:$0xff]  }
 0x19d   :  { %6968 = vmatprep.subr.bf16.mxu0 %v7542_v29  ;;  %v7567_v11 = vld [vmem:[%s9452_s1 + $0xde8] sm:$0xff]   ;;  %v73_v26 = vld [vmem:[%s9453_s0 + $0x1d0] sm:$0xff]  ;;  %v42_v27 = vld [vmem:[%s9453_s0 + $0xd8] sm:$0xff] }
 0x19e   :  { %v9073_v24 = vadd.f32 %v6689_v20, %v4950_v22  ;;  %v7573_v20 = vld [vmem:[%s9452_s1 + $0xdb0] sm:$0xff]   ;;  %v7575_v22 = vld [vmem:[%s9452_s1 + $0xdf8] sm:$0xff]   ;;  %v5893_v29 = vcombine.low %v41_v25, %v73_v26 }
 0x19f   :  { %6989 = vmatpush3.bf16.msra.mxu1 %v7541_v28  ;;  %v74_v28 = vld [vmem:[%s9453_s0 + $0x1d8] sm:$0xff] }
 0x1a0   :  { %6990 = vmatprep.subr.bf16.mxu1 %v7543_v30  ;;  %6969 = vmatpush3.bf16.msra.mxu0 %v7544_v31  ;;  %v5894_v30 = vcombine.high %v41_v25, %v73_v26  ;;  %v5895_v31 = vcombine.low %v42_v27, %v74_v28  ;;  %v7610_v25 = vld [vmem:[%s9452_s1 + $0xf40] sm:$0xff]  }
 0x1a1   :  { %6998 = vmatprep.subr.bf16.mxu0 %v7546_v41  ;;  %v7586_v41 = vld [vmem:[%s9452_s1 + $0xe50] sm:$0xff]   ;;  %v7611_v26 = vld [vmem:[%s9452_s1 + $0xfc0] sm:$0xff]  }
 0x1a3   :  { %6991 = vmatpush3.bf16.msra.mxu1 %v7545_v32  ;;  %5519 = vmatmul.mubr.bf16.vlgmr.msra.gmra.mrb[48].mxu0 %v5889_v35  ;;  %v5896_v32 = vcombine.high %v42_v27, %v74_v28  ;;  %v7580_v35 = vld [vmem:[%s9452_s1 + $0xe00] sm:$0xff]  }
 0x1a4   :  { %7020 = vmatprep.subr.bf16.mxu1 %v7547_v42  ;;  %6999 = vmatpush3.bf16.msra.mxu0 %v7548_v43  ;;  %v7587_v42 = vld [vmem:[%s9452_s1 + $0xed0] sm:$0xff]   ;;  %v7612_v27 = vld [vmem:[%s9452_s1 + $0xf00] sm:$0xff]  }
 0x1a5   :  { %7000 = vmatprep.subr.bf16.mxu0 %v7550_v45  ;;  %5600 = vmatprep.mubr.bf16.mxu0 %v5894_v30  ;;  %v7588_v43 = vld [vmem:[%s9452_s1 + $0xe10] sm:$0xff]   ;;  %v7590_v45 = vld [vmem:[%s9452_s1 + $0xe58] sm:$0xff]   ;;  %v7613_v28 = vld [vmem:[%s9452_s1 + $0xf80] sm:$0xff]  }
 0x1a6   :  { %5560 = vmatmul.mubr.bf16.vlgmr.msra.gmra.mrb[48].mxu1 %v5891_v39  ;;  %v7584_v39 = vld [vmem:[%s9452_s1 + $0xe08] sm:$0xff]  }
 0x1a7   :  { %7021 = vmatpush3.bf16.msra.mxu1 %v7549_v44  ;;  %5641 = vmatprep.mubr.bf16.mxu1 %v5896_v32  ;;  %v7589_v44 = vld [vmem:[%s9452_s1 + $0xe90] sm:$0xff]   ;;  %v7615_v30 = vld [vmem:[%s9452_s1 + $0xfc8] sm:$0xff]  }
 0x1a8   :  { %7022 = vmatprep.subr.bf16.mxu1 %v7551_v46  ;;  %7001 = vmatpush3.bf16.msra.mxu0 %v7552_v47  ;;  %v7591_v46 = vld [vmem:[%s9452_s1 + $0xed8] sm:$0xff]   ;;  %v7617_v32 = vld [vmem:[%s9452_s1 + $0xf88] sm:$0xff]  }
 0x1a9   :  { %7002 = vmatprep.subr.bf16.mxu0 %v7554_v49  ;;  %v7592_v47 = vld [vmem:[%s9452_s1 + $0xe18] sm:$0xff]  }
 0x1aa   :  { %v7593_v49 = vld [vmem:[%s9452_s1 + $0xe98] sm:$0xff]  }
 0x1ab   :  { %7023 = vmatpush3.bf16.msra.mxu1 %v7553_v48 }
 0x1ac   :  { %7024 = vmatprep.subr.bf16.mxu1 %v7555_v50  ;;  %7003 = vmatpush3.bf16.msra.mxu0 %v7556_v51  ;;  %v7594_v51 = vld [vmem:[%s9452_s1 + $0xe60] sm:$0xff]  }
 0x1ad   :  { %7004 = vmatprep.subr.bf16.mxu0 %v7558_v53  ;;  %v7595_v53 = vld [vmem:[%s9452_s1 + $0xee0] sm:$0xff]  }
 0x1af   :  { %7025 = vmatpush3.bf16.msra.mxu1 %v7557_v52 }
 0x1b0   :  { %7026 = vmatprep.subr.bf16.mxu1 %v7559_v54  ;;  %7005 = vmatpush3.bf16.msra.mxu0 %v7560_v56  ;;  %v7596_v56 = vld [vmem:[%s9452_s1 + $0xe20] sm:$0xff]  }
 0x1b1   :  { %7006 = vmatprep.subr.bf16.mxu0 %v7562_v60 }
 0x1b3   :  { %7027 = vmatpush3.bf16.msra.mxu1 %v7561_v58 }
 0x1b4   :  { %7028 = vmatprep.subr.bf16.mxu1 %v7563_v63  ;;  %7007 = vmatpush3.bf16.msra.mxu0 %v7564_v2 }
 0x1b5   :  { %7008 = vmatprep.subr.bf16.mxu0 %v7566_v8  ;;  %v7602_v8 = vld [vmem:[%s9452_s1 + $0xe70] sm:$0xff]  }
 0x1b6   :  { %v6706_v55 = vpop.f32.mrb[24].mxu0 }
 0x1b7   :  { %v6728_v57 = vpop.f32.mrb[24].mxu1  ;;  %v6707_v59 = vpop.f32.mrb[25].mxu0  ;;  %7029 = vmatpush3.bf16.msra.mxu1 %v7565_v5 }
 0x1b8   :  { %v6708_v61 = vadd.f32 %v6707_v59, %v6706_v55  ;;  %v6729_v62 = vpop.f32.mrb[25].mxu1  ;;  %v6709_v1 = vpop.f32.mrb[26].mxu0  ;;  %7030 = vmatprep.subr.bf16.mxu1 %v7567_v11  ;;  %7009 = vmatpush3.bf16.msra.mxu0 %v7568_v13  ;;  %v7597_v59 = vld [vmem:[%s9452_s1 + $0xea0] sm:$0xff]   ;;  %v7604_v11 = vld [vmem:[%s9452_s1 + $0xe30] sm:$0xff]   ;;  %v7606_v13 = vld [vmem:[%s9452_s1 + $0xe78] sm:$0xff]  }
 0x1b9   :  { %v6730_v0 = vadd.f32 %v6729_v62, %v6728_v57  ;;  %v6731_v4 = vpop.f32.mrb[26].mxu1  ;;  %v6710_v6 = vpop.f32.mrb[27].mxu0  ;;  %7010 = vmatprep.subr.bf16.mxu0 %v7570_v17  ;;  %v7598_v62 = vld [vmem:[%s9452_s1 + $0xe68] sm:$0xff]   ;;  %v43_v17 = vld [vmem:[%s9453_s0 + $0xe0] sm:$0xff] }
 0x1ba   :  { %v5029_v3 = vadd.f32 %v6708_v61, %v9058_v15  ;;  %v6711_v9 = vadd.f32 %v6710_v6, %v6709_v1  ;;  %v6732_v10 = vpop.f32.mrb[27].mxu1  ;;  %v7569_v15 = vld [vmem:[%s9452_s1 + $0xda8] sm:$0xff]  }
 0x1bb   :  { %v6733_v12 = vadd.f32 %v6732_v10, %v6731_v4  ;;  %7031 = vmatpush3.bf16.msra.mxu1 %v7569_v15  ;;  %v7599_v1 = vld [vmem:[%s9452_s1 + $0xee8] sm:$0xff]   ;;  %v7603_v10 = vld [vmem:[%s9452_s1 + $0xef0] sm:$0xff]   ;;  %v7608_v15 = vld [vmem:[%s9452_s1 + $0xe38] sm:$0xff]  }
 0x1bc   :  { %v9172_v7 = vadd.f32 %v6730_v0, %v5029_v3  ;;  %v5032_v14 = vadd.f32 %v6711_v9, %v9073_v24  ;;  %7032 = vmatprep.subr.bf16.mxu1 %v7571_v18  ;;  %7011 = vmatpush3.bf16.msra.mxu0 %v7572_v19  ;;  %v7577_v24 = vld [vmem:[%s9452_s1 + $0xdb8] sm:$0xff]   ;;  %v7600_v4 = vld [vmem:[%s9452_s1 + $0xe28] sm:$0xff]   ;;  %v75_v18 = vld [vmem:[%s9453_s0 + $0x1e0] sm:$0xff] }
 0x1bd   :  { %7012 = vmatprep.subr.bf16.mxu0 %v7574_v21  ;;  %v7601_v6 = vld [vmem:[%s9452_s1 + $0xea8] sm:$0xff]   ;;  %v5898_v21 = vcombine.high %v43_v17, %v75_v18 }
 0x1be   :  { %v9187_v16 = vadd.f32 %v6733_v12, %v5032_v14  ;;  %v7605_v12 = vld [vmem:[%s9452_s1 + $0xeb0] sm:$0xff]   ;;  %v7607_v14 = vld [vmem:[%s9452_s1 + $0xef8] sm:$0xff]   ;;  %v44_v19 = vld [vmem:[%s9453_s0 + $0xe8] sm:$0xff] }
 0x1bf   :  { %7033 = vmatpush3.bf16.msra.mxu1 %v7573_v20  ;;  %v5897_v20 = vcombine.low %v43_v17, %v75_v18 }
 0x1c0   :  { %7034 = vmatprep.subr.bf16.mxu1 %v7575_v22  ;;  %7013 = vmatpush3.bf16.msra.mxu0 %v7576_v23  ;;  %v76_v22 = vld [vmem:[%s9453_s0 + $0x1e8] sm:$0xff] }
 0x1c1   :  { %7042 = vmatprep.subr.bf16.mxu0 %v7578_v33  ;;  %v5899_v23 = vcombine.low %v44_v19, %v76_v22  ;;  %v7618_v33 = vld [vmem:[%s9452_s1 + $0xf50] sm:$0xff]  }
 0x1c3   :  { %7035 = vmatpush3.bf16.msra.mxu1 %v7577_v24  ;;  %5601 = vmatmul.mubr.bf16.vlgmr.msra.gmra.mrb[52].mxu0 %v5893_v29  ;;  %v5900_v24 = vcombine.high %v44_v19, %v76_v22  ;;  %v7614_v29 = vld [vmem:[%s9452_s1 + $0xf48] sm:$0xff]  }
 0x1c4   :  { %7064 = vmatprep.subr.bf16.mxu1 %v7579_v34  ;;  %7043 = vmatpush3.bf16.msra.mxu0 %v7580_v35  ;;  %v7619_v34 = vld [vmem:[%s9452_s1 + $0xfd0] sm:$0xff]  }
 0x1c5   :  { %7044 = vmatprep.subr.bf16.mxu0 %v7582_v37  ;;  %5682 = vmatprep.mubr.bf16.mxu0 %v5898_v21  ;;  %v7620_v35 = vld [vmem:[%s9452_s1 + $0xf10] sm:$0xff]   ;;  %v7622_v37 = vld [vmem:[%s9452_s1 + $0xf58] sm:$0xff]  }
 0x1c6   :  { %5642 = vmatmul.mubr.bf16.vlgmr.msra.gmra.mrb[52].mxu1 %v5895_v31  ;;  %v7616_v31 = vld [vmem:[%s9452_s1 + $0xf08] sm:$0xff]  }
 0x1c7   :  { %7065 = vmatpush3.bf16.msra.mxu1 %v7581_v36  ;;  %5723 = vmatprep.mubr.bf16.mxu1 %v5900_v24  ;;  %v7621_v36 = vld [vmem:[%s9452_s1 + $0xf90] sm:$0xff]  }
 0x1c8   :  { %7066 = vmatprep.subr.bf16.mxu1 %v7583_v38  ;;  %7045 = vmatpush3.bf16.msra.mxu0 %v7584_v39  ;;  %v7623_v38 = vld [vmem:[%s9452_s1 + $0xfd8] sm:$0xff]  }
 0x1c9   :  { %7046 = vmatprep.subr.bf16.mxu0 %v7586_v41 }
 0x1cb   :  { %7067 = vmatpush3.bf16.msra.mxu1 %v7585_v40  ;;  %v7624_v40 = vld [vmem:[%s9452_s1 + $0xf18] sm:$0xff]  }
 0x1cc   :  { %7068 = vmatprep.subr.bf16.mxu1 %v7587_v42  ;;  %7047 = vmatpush3.bf16.msra.mxu0 %v7588_v43  ;;  %v7625_v42 = vld [vmem:[%s9452_s1 + $0xf98] sm:$0xff]  }
 0x1cd   :  { %7048 = vmatprep.subr.bf16.mxu0 %v7590_v45 }
 0x1cf   :  { %7069 = vmatpush3.bf16.msra.mxu1 %v7589_v44  ;;  %v7626_v44 = vld [vmem:[%s9452_s1 + $0xf60] sm:$0xff]  }
 0x1d0   :  { %7070 = vmatprep.subr.bf16.mxu1 %v7591_v46  ;;  %7049 = vmatpush3.bf16.msra.mxu0 %v7592_v47  ;;  %v7627_v47 = vld [vmem:[%s9452_s1 + $0xfe0] sm:$0xff]  }
 0x1d1   :  { %7050 = vmatprep.subr.bf16.mxu0 %v7594_v51 }
 0x1d3   :  { %7071 = vmatpush3.bf16.msra.mxu1 %v7593_v49 }
 0x1d4   :  { %7072 = vmatprep.subr.bf16.mxu1 %v7595_v53  ;;  %7051 = vmatpush3.bf16.msra.mxu0 %v7596_v56  ;;  %v7629_v53 = vld [vmem:[%s9452_s1 + $0xfa0] sm:$0xff]   ;;  %v7630_v56 = vld [vmem:[%s9452_s1 + $0xf68] sm:$0xff]  }
 0x1d5   :  { %7052 = vmatprep.subr.bf16.mxu0 %v7598_v62 }
 0x1d6   :  { %v6750_v48 = vpop.f32.mrb[28].mxu0 }
 0x1d7   :  { %v6772_v50 = vpop.f32.mrb[28].mxu1  ;;  %v6751_v52 = vpop.f32.mrb[29].mxu0  ;;  %7073 = vmatpush3.bf16.msra.mxu1 %v7597_v59  ;;  %v7631_v59 = vld [vmem:[%s9452_s1 + $0xfe8] sm:$0xff]  }
 0x1d8   :  { %v6752_v54 = vadd.f32 %v6751_v52, %v6750_v48  ;;  %v6773_v55 = vpop.f32.mrb[29].mxu1  ;;  %v6753_v58 = vpop.f32.mrb[30].mxu0  ;;  %7074 = vmatprep.subr.bf16.mxu1 %v7599_v1  ;;  %7053 = vmatpush3.bf16.msra.mxu0 %v7600_v4  ;;  %v7634_v1 = vld [vmem:[%s9452_s1 + $0xf70] sm:$0xff]  }
 0x1d9   :  { %v6774_v57 = vadd.f32 %v6773_v55, %v6772_v50  ;;  %v6775_v61 = vpop.f32.mrb[30].mxu1  ;;  %v6754_v63 = vpop.f32.mrb[31].mxu0  ;;  %7054 = vmatprep.subr.bf16.mxu0 %v7602_v8  ;;  %v7628_v50 = vld [vmem:[%s9452_s1 + $0xf20] sm:$0xff]   ;;  %v7637_v4 = vld [vmem:[%s9452_s1 + $0xfb0] sm:$0xff]   ;;  %v7641_v8 = vld [vmem:[%s9452_s1 + $0xfb8] sm:$0xff]  }
 0x1da   :  { %v5111_v60 = vadd.f32 %v6752_v54, %v9172_v7  ;;  %v6755_v2 = vadd.f32 %v6754_v63, %v6753_v58  ;;  %v6776_v3 = vpop.f32.mrb[31].mxu1  ;;  %v7633_v63 = vld [vmem:[%s9452_s1 + $0xfa8] sm:$0xff]  }
 0x1db   :  { %v6777_v5 = vadd.f32 %v6776_v3, %v6775_v61  ;;  %7075 = vmatpush3.bf16.msra.mxu1 %v7601_v6  ;;  %v7632_v61 = vld [vmem:[%s9452_s1 + $0xf28] sm:$0xff]   ;;  %v7636_v3 = vld [vmem:[%s9452_s1 + $0xf30] sm:$0xff]   ;;  %v7639_v6 = vld [vmem:[%s9452_s1 + $0xff8] sm:$0xff]  }
 0x1dc   :  { %v9289_v0 = vadd.f32 %v6774_v57, %v5111_v60  ;;  %v5114_v7 = vadd.f32 %v6755_v2, %v9187_v16  ;;  %7076 = vmatprep.subr.bf16.mxu1 %v7603_v10  ;;  %7055 = vmatpush3.bf16.msra.mxu0 %v7604_v11  ;;  %v7609_v16 = vld [vmem:[%s9452_s1 + $0xeb8] sm:$0xff]   ;;  %v7635_v2 = vld [vmem:[%s9452_s1 + $0xff0] sm:$0xff]  }
 0x1dd   :  { %7056 = vmatprep.subr.bf16.mxu0 %v7606_v13  ;;  %v77_v10 = vld [vmem:[%s9453_s0 + $0x1f0] sm:$0xff]  ;;  %v46_v13 = vld [vmem:[%s9453_s0 + $0xf8] sm:$0xff] }
 0x1de   :  { %v9304_v9 = vadd.f32 %v6777_v5, %v5114_v7  ;;  %v7638_v5 = vld [vmem:[%s9452_s1 + $0xf78] sm:$0xff]  }
 0x1df   :  { %7077 = vmatpush3.bf16.msra.mxu1 %v7605_v12  ;;  %v7640_v7 = vld [vmem:[%s9452_s1 + $0xf38] sm:$0xff]  }
 0x1e0   :  { %7078 = vmatprep.subr.bf16.mxu1 %v7607_v14  ;;  %7057 = vmatpush3.bf16.msra.mxu0 %v7608_v15  ;;  %v78_v14 = vld [vmem:[%s9453_s0 + $0x1f8] sm:$0xff] }
 0x1e1   :  { %7086 = vmatprep.subr.bf16.mxu0 %v7610_v25  ;;  %v5903_v15 = vcombine.low %v46_v13, %v78_v14 }
 0x1e3   :  { %7079 = vmatpush3.bf16.msra.mxu1 %v7609_v16  ;;  %5683 = vmatmul.mubr.bf16.vlgmr.msra.gmra.mrb[56].mxu0 %v5897_v20  ;;  %v5904_v16 = vcombine.high %v46_v13, %v78_v14 }
 0x1e4   :  { %7108 = vmatprep.subr.bf16.mxu1 %v7611_v26  ;;  %7087 = vmatpush3.bf16.msra.mxu0 %v7612_v27 }
 0x1e5   :  { %7088 = vmatprep.subr.bf16.mxu0 %v7614_v29 }
 0x1e6   :  { %5724 = vmatmul.mubr.bf16.vlgmr.msra.gmra.mrb[56].mxu1 %v5899_v23 }
 0x1e7   :  { %7109 = vmatpush3.bf16.msra.mxu1 %v7613_v28  ;;  %5805 = vmatprep.mubr.bf16.mxu1 %v5904_v16 }
 0x1e8   :  { %7110 = vmatprep.subr.bf16.mxu1 %v7615_v30  ;;  %7089 = vmatpush3.bf16.msra.mxu0 %v7616_v31 }
 0x1e9   :  { %7090 = vmatprep.subr.bf16.mxu0 %v7618_v33 }
 0x1eb   :  { %7111 = vmatpush3.bf16.msra.mxu1 %v7617_v32 }
 0x1ec   :  { %7112 = vmatprep.subr.bf16.mxu1 %v7619_v34  ;;  %7091 = vmatpush3.bf16.msra.mxu0 %v7620_v35 }
 0x1ed   :  { %7092 = vmatprep.subr.bf16.mxu0 %v7622_v37 }
 0x1ef   :  { %7113 = vmatpush3.bf16.msra.mxu1 %v7621_v36 }
 0x1f0   :  { %7114 = vmatprep.subr.bf16.mxu1 %v7623_v38  ;;  %7093 = vmatpush3.bf16.msra.mxu0 %v7624_v40 }
 0x1f1   :  { %7094 = vmatprep.subr.bf16.mxu0 %v7626_v44 }
 0x1f3   :  { %7115 = vmatpush3.bf16.msra.mxu1 %v7625_v42 }
 0x1f4   :  { %7116 = vmatprep.subr.bf16.mxu1 %v7627_v47  ;;  %7095 = vmatpush3.bf16.msra.mxu0 %v7628_v50 }
 0x1f5   :  { %7096 = vmatprep.subr.bf16.mxu0 %v7630_v56 }
 0x1f6   :  { %v6794_v39 = vpop.f32.mrb[32].mxu0 }
 0x1f7   :  { %v6816_v41 = vpop.f32.mrb[32].mxu1  ;;  %v6795_v43 = vpop.f32.mrb[33].mxu0  ;;  %7117 = vmatpush3.bf16.msra.mxu1 %v7629_v53 }
 0x1f8   :  { %v6796_v45 = vadd.f32 %v6795_v43, %v6794_v39  ;;  %v6817_v46 = vpop.f32.mrb[33].mxu1  ;;  %v6797_v49 = vpop.f32.mrb[34].mxu0  ;;  %7118 = vmatprep.subr.bf16.mxu1 %v7631_v59  ;;  %7097 = vmatpush3.bf16.msra.mxu0 %v7632_v61 }
 0x1f9   :  { %v6818_v48 = vadd.f32 %v6817_v46, %v6816_v41  ;;  %v6819_v52 = vpop.f32.mrb[34].mxu1  ;;  %v6798_v54 = vpop.f32.mrb[35].mxu0  ;;  %7098 = vmatprep.subr.bf16.mxu0 %v7634_v1 }
 0x1fa   :  { %v5193_v51 = vadd.f32 %v6796_v45, %v9289_v0  ;;  %v6799_v57 = vadd.f32 %v6798_v54, %v6797_v49  ;;  %v6820_v58 = vpop.f32.mrb[35].mxu1 }
 0x1fb   :  { %v6821_v60 = vadd.f32 %v6820_v58, %v6819_v52  ;;  %7119 = vmatpush3.bf16.msra.mxu1 %v7633_v63 }
 0x1fc   :  { %v5234_v55 = vadd.f32 %v6818_v48, %v5193_v51  ;;  %v5196_v62 = vadd.f32 %v6799_v57, %v9304_v9  ;;  %7120 = vmatprep.subr.bf16.mxu1 %v7635_v2  ;;  %7099 = vmatpush3.bf16.msra.mxu0 %v7636_v3  ;;  %v45_v9 = vld [vmem:[%s9453_s0 + $0xf0] sm:$0xff] }
 0x1fd   :  { %7100 = vmatprep.subr.bf16.mxu0 %v7638_v5  ;;  %v5901_v11 = vcombine.low %v45_v9, %v77_v10  ;;  %v5902_v12 = vcombine.high %v45_v9, %v77_v10 }
 0x1fe   :  { %v5237_v0 = vadd.f32 %v6821_v60, %v5196_v62 }
 0x1ff   :  { %7121 = vmatpush3.bf16.msra.mxu1 %v7637_v4  ;;  %5764 = vmatprep.mubr.bf16.mxu0 %v5902_v12 }
 0x200   :  { %7122 = vmatprep.subr.bf16.mxu1 %v7639_v6  ;;  %7101 = vmatpush3.bf16.msra.mxu0 %v7640_v7 }
 0x203   :  { %7123 = vmatpush3.bf16.msra.mxu1 %v7641_v8  ;;  %5765 = vmatmul.mubr.bf16.vlgmr.msra.gmra.mrb[60].mxu0 %v5901_v11 }
 0x206   :  { %5806 = vmatmul.mubr.bf16.vlgmr.msra.gmra.mrb[60].mxu1 %v5903_v15 }
 0x216   :  { %v6838_v17 = vpop.f32.mrb[36].mxu0 }
 0x217   :  { %v6839_v19 = vpop.f32.mrb[37].mxu0 }
 0x218   :  { %v6840_v20 = vadd.f32 %v6839_v19, %v6838_v17  ;;  %v6841_v22 = vpop.f32.mrb[38].mxu0 }
 0x219   :  { %v6860_v18 = vpop.f32.mrb[36].mxu1  ;;  %v6842_v25 = vpop.f32.mrb[39].mxu0 }
 0x21a   :  { %v6861_v21 = vpop.f32.mrb[37].mxu1  ;;  %v5275_v26 = vadd.f32 %v6840_v20, %v5234_v55  ;;  %v6843_v27 = vadd.f32 %v6842_v25, %v6841_v22 }
 0x21b   :  { %v6862_v23 = vadd.f32 %v6861_v21, %v6860_v18  ;;  %v6863_v24 = vpop.f32.mrb[38].mxu1 }
 0x21c   :  { %v6864_v28 = vpop.f32.mrb[39].mxu1  ;;  %v5278_v31 = vadd.f32 %v6843_v27, %v5237_v0 }
 0x21d   :  { %v6865_v29 = vadd.f32 %v6864_v28, %v6863_v24  ;;  %v5316_v30 = vadd.f32 %v6862_v23, %v5275_v26 }
 0x21f   :  { %v5319_v32 = vadd.f32 %v6865_v29, %v5278_v31 }
 0x236   :  { %v6882_v33 = vpop.f32.mrb[40].mxu0 }
 0x237   :  { %v6883_v35 = vpop.f32.mrb[41].mxu0 }
 0x238   :  { %v6884_v37 = vadd.f32 %v6883_v35, %v6882_v33  ;;  %v6885_v39 = vpop.f32.mrb[42].mxu0 }
 0x239   :  { %v6904_v34 = vpop.f32.mrb[40].mxu1  ;;  %v6886_v41 = vpop.f32.mrb[43].mxu0 }
 0x23a   :  { %v6905_v36 = vpop.f32.mrb[41].mxu1  ;;  %v5357_v43 = vadd.f32 %v6884_v37, %v5316_v30  ;;  %v6887_v44 = vadd.f32 %v6886_v41, %v6885_v39 }
 0x23b   :  { %v6906_v38 = vadd.f32 %v6905_v36, %v6904_v34  ;;  %v6907_v40 = vpop.f32.mrb[42].mxu1 }
 0x23c   :  { %v6908_v42 = vpop.f32.mrb[43].mxu1  ;;  %v5360_v47 = vadd.f32 %v6887_v44, %v5319_v32 }
 0x23d   :  { %v6909_v45 = vadd.f32 %v6908_v42, %v6907_v40  ;;  %v5398_v46 = vadd.f32 %v6906_v38, %v5357_v43 }
 0x23f   :  { %v5401_v48 = vadd.f32 %v6909_v45, %v5360_v47 }
 0x256   :  { %v6926_v49 = vpop.f32.mrb[44].mxu0 }
 0x257   :  { %v6927_v51 = vpop.f32.mrb[45].mxu0 }
 0x258   :  { %v6928_v52 = vadd.f32 %v6927_v51, %v6926_v49  ;;  %v6929_v54 = vpop.f32.mrb[46].mxu0 }
 0x259   :  { %v6948_v50 = vpop.f32.mrb[44].mxu1  ;;  %v6930_v57 = vpop.f32.mrb[47].mxu0 }
 0x25a   :  { %v6949_v53 = vpop.f32.mrb[45].mxu1  ;;  %v5439_v58 = vadd.f32 %v6928_v52, %v5398_v46  ;;  %v6931_v59 = vadd.f32 %v6930_v57, %v6929_v54 }
 0x25b   :  { %v6950_v55 = vadd.f32 %v6949_v53, %v6948_v50  ;;  %v6951_v56 = vpop.f32.mrb[46].mxu1 }
 0x25c   :  { %v6952_v60 = vpop.f32.mrb[47].mxu1  ;;  %v5442_v63 = vadd.f32 %v6931_v59, %v5401_v48 }
 0x25d   :  { %v6953_v61 = vadd.f32 %v6952_v60, %v6951_v56  ;;  %v5480_v62 = vadd.f32 %v6950_v55, %v5439_v58 }
 0x25f   :  { %v5483_v0 = vadd.f32 %v6953_v61, %v5442_v63 }
 0x276   :  { %v6970_v1 = vpop.f32.mrb[48].mxu0 }
 0x277   :  { %v6971_v3 = vpop.f32.mrb[49].mxu0 }
 0x278   :  { %v6972_v4 = vadd.f32 %v6971_v3, %v6970_v1  ;;  %v6973_v6 = vpop.f32.mrb[50].mxu0 }
 0x279   :  { %v6992_v2 = vpop.f32.mrb[48].mxu1  ;;  %v6974_v9 = vpop.f32.mrb[51].mxu0 }
 0x27a   :  { %v6993_v5 = vpop.f32.mrb[49].mxu1  ;;  %v5521_v10 = vadd.f32 %v6972_v4, %v5480_v62  ;;  %v6975_v11 = vadd.f32 %v6974_v9, %v6973_v6 }
 0x27b   :  { %v6994_v7 = vadd.f32 %v6993_v5, %v6992_v2  ;;  %v6995_v8 = vpop.f32.mrb[50].mxu1 }
 0x27c   :  { %v6996_v12 = vpop.f32.mrb[51].mxu1  ;;  %v5524_v15 = vadd.f32 %v6975_v11, %v5483_v0 }
 0x27d   :  { %v6997_v13 = vadd.f32 %v6996_v12, %v6995_v8  ;;  %v5562_v14 = vadd.f32 %v6994_v7, %v5521_v10 }
 0x27f   :  { %v5565_v16 = vadd.f32 %v6997_v13, %v5524_v15 }
 0x296   :  { %v7014_v17 = vpop.f32.mrb[52].mxu0 }
 0x297   :  { %v7015_v19 = vpop.f32.mrb[53].mxu0 }
 0x298   :  { %v7016_v21 = vadd.f32 %v7015_v19, %v7014_v17  ;;  %v7017_v23 = vpop.f32.mrb[54].mxu0 }
 0x299   :  { %v7036_v18 = vpop.f32.mrb[52].mxu1  ;;  %v7018_v25 = vpop.f32.mrb[55].mxu0 }
 0x29a   :  { %v7037_v20 = vpop.f32.mrb[53].mxu1  ;;  %v5603_v27 = vadd.f32 %v7016_v21, %v5562_v14  ;;  %v7019_v28 = vadd.f32 %v7018_v25, %v7017_v23 }
 0x29b   :  { %v7038_v22 = vadd.f32 %v7037_v20, %v7036_v18  ;;  %v7039_v24 = vpop.f32.mrb[54].mxu1 }
 0x29c   :  { %v7040_v26 = vpop.f32.mrb[55].mxu1  ;;  %v5606_v31 = vadd.f32 %v7019_v28, %v5565_v16 }
 0x29d   :  { %v7041_v29 = vadd.f32 %v7040_v26, %v7039_v24  ;;  %v5644_v30 = vadd.f32 %v7038_v22, %v5603_v27 }
 0x29f   :  { %v5647_v32 = vadd.f32 %v7041_v29, %v5606_v31 }
 0x2b6   :  { %v7058_v33 = vpop.f32.mrb[56].mxu0 }
 0x2b7   :  { %v7059_v35 = vpop.f32.mrb[57].mxu0 }
 0x2b8   :  { %v7060_v36 = vadd.f32 %v7059_v35, %v7058_v33  ;;  %v7061_v38 = vpop.f32.mrb[58].mxu0 }
 0x2b9   :  { %v7080_v34 = vpop.f32.mrb[56].mxu1  ;;  %v7062_v41 = vpop.f32.mrb[59].mxu0 }
 0x2ba   :  { %v7081_v37 = vpop.f32.mrb[57].mxu1  ;;  %v5685_v42 = vadd.f32 %v7060_v36, %v5644_v30  ;;  %v7063_v43 = vadd.f32 %v7062_v41, %v7061_v38 }
 0x2bb   :  { %v7082_v39 = vadd.f32 %v7081_v37, %v7080_v34  ;;  %v7083_v40 = vpop.f32.mrb[58].mxu1 }
 0x2bc   :  { %v7084_v44 = vpop.f32.mrb[59].mxu1  ;;  %v5688_v47 = vadd.f32 %v7063_v43, %v5647_v32 }
 0x2bd   :  { %v7085_v45 = vadd.f32 %v7084_v44, %v7083_v40  ;;  %v5726_v46 = vadd.f32 %v7082_v39, %v5685_v42 }
 0x2bf   :  { %v5729_v48 = vadd.f32 %v7085_v45, %v5688_v47 }
 0x2d6   :  { %v7102_v49 = vpop.f32.mrb[60].mxu0 }
 0x2d7   :  { %v7103_v51 = vpop.f32.mrb[61].mxu0 }
 0x2d8   :  { %v7104_v52 = vadd.f32 %v7103_v51, %v7102_v49  ;;  %v7105_v54 = vpop.f32.mrb[62].mxu0 }
 0x2d9   :  { %v7124_v50 = vpop.f32.mrb[60].mxu1  ;;  %v7106_v57 = vpop.f32.mrb[63].mxu0 }
 0x2da   :  { %v7125_v53 = vpop.f32.mrb[61].mxu1  ;;  %v5767_v58 = vadd.f32 %v7104_v52, %v5726_v46  ;;  %v7107_v59 = vadd.f32 %v7106_v57, %v7105_v54 }
 0x2db   :  { %v7126_v55 = vadd.f32 %v7125_v53, %v7124_v50  ;;  %v7127_v56 = vpop.f32.mrb[62].mxu1 }
 0x2dc   :  { %v7128_v60 = vpop.f32.mrb[63].mxu1  ;;  %v5770_v63 = vadd.f32 %v7107_v59, %v5729_v48 }
 0x2dd   :  { %v7129_v61 = vadd.f32 %v7128_v60, %v7127_v56  ;;  %v5808_v62 = vadd.f32 %v7126_v55, %v5767_v58 }
 0x2df   :  { %v5814_v0 = vsub.f32 0.0, %v5808_v62  ;;  %v5811_v1 = vadd.f32 %v7129_v61, %v5770_v63 }
 0x2e1   :  { %v5816_v2 = vmul.f32 1.442695, %v5814_v0  ;;  %v5815_v3 = vsub.f32 0.0, %v5811_v1 }
 0x2e3   :  { %7642 = vpow2.f32 %v5816_v2  ;;  %v5818_v4 = vmul.f32 1.442695, %v5815_v3 }
 0x2e5   :  { %7644 = vpow2.f32 %v5818_v4 }
 0x2ed   :  { %v7643_v5 = vpop.eup %7642 }
 0x2ee   :  { %v5820_v6 = vadd.f32 1.0, %v7643_v5 }
 0x2ef   :  { %v7645_v7 = vpop.eup %7644 }
 0x2f0   :  { %v5821_v8 = vadd.f32 1.0, %v7645_v7  ;;  %7646 = vrcp.f32 %v5820_v6 }
 0x2f2   :  { %7648 = vrcp.f32 %v5821_v8 }
 0x2fa   :  { %v7647_v9 = vpop.eup %7646 }
 0x2fc   :  { %v7649_v10 = vpop.eup %7648 }
 0x2fd   :  { %v6424_v11 = vpack.c.bf16 %v7649_v10, %v7647_v9 }
 0x2ff   :  { %6425 = vst [vmem:[%s9455_s3] sm:$0xff] %v6424_v11  }

</bundles_post_ra>
